<compile_context>
chip_gen: v5e
topology: v5e:2x2
jax: 0.10.0
libtpu: 0.0.40
codegen_flags: <defaults>
</compile_context>

<pallas_src>
import numpy as np
import jax
import jax.numpy as jnp
from jax.experimental import pallas as pl
from jax.experimental.pallas import tpu as pltpu

# ----------------------------- config (small, deterministic) -----------------------------
B = 2            # batch
IN_C = 4         # obs channels
IMG = 16         # obs spatial size
C1, C2 = 8, 16   # conv channels
K, STRIDE = 3, 2
HIDDEN = 32      # encoder output size (== core output size, feed-forward core)
NUM_ACTIONS = 6  # Discrete(6)
OBS_MEAN = 0.0   # normalize_obs: (obs - obs_subtract_mean) / obs_scale
OBS_SCALE = 255.0

OH1 = (IMG - K) // STRIDE + 1     # 7
OH2 = (OH1 - K) // STRIDE + 1     # 3
KK = K * K                        # 9 kernel taps
NPOS1 = B * OH1 * OH1             # 98 conv1 output positions (all batch elements)
NPOS2 = B * OH2 * OH2             # 18 conv2 output positions


def _pad8(n):
    return ((n + 7) // 8) * 8


R1 = _pad8(NPOS1)                 # 104  (sublane-aligned row counts)
R2 = _pad8(NPOS2)                 # 24
R3 = _pad8(B)                     # 8
OUT_LANES = 128                   # lane-dense output slab width

_VMEM = pl.BlockSpec(memory_space=pltpu.MemorySpace.VMEM)


# ----------------------------- the single fused Pallas kernel -----------------------------
def _fused_actor_critic_kernel(x_ref, sel1_ref, sel2_ref, sel3_ref,
                               w1_ref, b1_ref, w2_ref, b2_ref,
                               wfc_ref, bfc_ref, wtail_ref, btail_ref,
                               out_ref):
    """Whole forward: conv1 -> conv2 -> fc (actor+critic batched) -> tail + log-softmax.

    All 'convolutions' are expressed as (constant 0/1 selection matrix) @ activations @ weights,
    accumulated over the 9 kernel taps, so the only in-kernel ops are 2-D MXU matmuls,
    elementwise VPU math and one full-width store.
    """
    f32 = jnp.float32
    x = x_ref[...]                                                        # [B*IMG*IMG, IN_C]

    # ---- conv1 (+ReLU), actor & critic fused along output channels; obs/255 folded into w1 ----
    h1 = jnp.zeros((R1, 2 * C1), f32)
    for kk in range(KK):
        g = jnp.dot(sel1_ref[kk], x, preferred_element_type=f32)          # [R1, IN_C]
        h1 = h1 + jnp.dot(g, w1_ref[kk], preferred_element_type=f32)      # [R1, 2*C1]
    h1 = jnp.maximum(h1 + b1_ref[...], 0.0)

    # ---- conv2 (+ReLU), block weights keep the two branches independent ----
    h2 = jnp.zeros((R2, 2 * C2), f32)
    for kk in range(KK):
        g = jnp.dot(sel2_ref[kk], h1, preferred_element_type=f32)         # [R2, 2*C1]
        h2 = h2 + jnp.dot(g, w2_ref[kk], preferred_element_type=f32)      # [R2, 2*C2]
    h2 = jnp.maximum(h2 + b2_ref[...], 0.0)

    # ---- fc (+ReLU) over the (C,H,W) flatten: contract one spatial position at a time ----
    hf = jnp.zeros((R3, 2 * HIDDEN), f32)
    for s in range(OH2 * OH2):
        g = jnp.dot(sel3_ref[s], h2, preferred_element_type=f32)          # [R3, 2*C2]
        hf = hf + jnp.dot(g, wfc_ref[s], preferred_element_type=f32)      # [R3, 2*HIDDEN]
    hf = jnp.maximum(hf + bfc_ref[...], 0.0)

    # ---- tail: one [64,128] matmul produces cols 0:6 = logits, 6:12 = logits copy,
    # ---- 12 = value, 13.. = 0.  The logits copy is turned into log-softmax below. ----
    t = jnp.dot(hf, wtail_ref[...], preferred_element_type=f32) + btail_ref[...]   # [R3, 128]

    col = jax.lax.broadcasted_iota(jnp.int32, (R3, OUT_LANES), 1)
    is_logit = col < NUM_ACTIONS
    is_logp = jnp.logical_and(col >= NUM_ACTIONS, col < 2 * NUM_ACTIONS)

    masked = jnp.where(is_logit, t, -1e30)
    m = jnp.max(masked, axis=-1, keepdims=True)                            # [R3, 1]
    p = jnp.where(is_logit, jnp.exp(t - m), 0.0)
    lse = jnp.log(jnp.sum(p, axis=-1, keepdims=True))                      # [R3, 1]
    corr = m + lse                                                         # log-sum-exp(logits)

    # single lane-dense [8,128] store: logits | log_softmax(logits) | value | zeros
    out_ref[...] = t - jnp.where(is_logp, corr, 0.0)


# ----------------------------- one-time host-side packing (numpy) -----------------------------
def build_selectors():
    """Constant 0/1 gather matrices implementing im2col / flatten inside the kernel."""
    sel1 = np.zeros((KK, R1, B * IMG * IMG), np.float32)   # obs rows -> conv1 patches
    sel2 = np.zeros((KK, R2, R1), np.float32)              # conv1 rows -> conv2 patches
    sel3 = np.zeros((OH2 * OH2, R3, R2), np.float32)       # conv2 rows -> per-batch flatten
    for b in range(B):
        for oh in range(OH1):
            for ow in range(OH1):
                r = b * OH1 * OH1 + oh * OH1 + ow
                for kh in range(K):
                    for kw in range(K):
                        src = b * IMG * IMG + (STRIDE * oh + kh) * IMG + (STRIDE * ow + kw)
                        sel1[kh * K + kw, r, src] = 1.0
        for oh in range(OH2):
            for ow in range(OH2):
                r = b * OH2 * OH2 + oh * OH2 + ow
                for kh in range(K):
                    for kw in range(K):
                        src = b * OH1 * OH1 + (STRIDE * oh + kh) * OH1 + (STRIDE * ow + kw)
                        sel2[kh * K + kw, r, src] = 1.0
        for s in range(OH2 * OH2):
            sel3[s, b, b * OH2 * OH2 + s] = 1.0
    return sel1, sel2, sel3


def pack_params(params):
    """Convert PyTorch-layout weights into the fused-kernel format (done ONCE on host)."""
    w1 = np.zeros((KK, IN_C, 2 * C1), np.float32)
    b1 = np.zeros((1, 2 * C1), np.float32)
    w2 = np.zeros((KK, 2 * C1, 2 * C2), np.float32)
    b2 = np.zeros((1, 2 * C2), np.float32)
    wfc = np.zeros((OH2 * OH2, 2 * C2, 2 * HIDDEN), np.float32)
    bfc = np.zeros((1, 2 * HIDDEN), np.float32)

    for br, enc in enumerate((params['actor_enc'], params['critic_enc'])):
        c1w = np.asarray(enc['conv1_w'])             # [C1, IN_C, K, K]
        c1b = np.asarray(enc['conv1_b'])             # [C1]
        c2w = np.asarray(enc['conv2_w'])             # [C2, C1, K, K]
        fcw = np.asarray(enc['fc_w'])                # [HIDDEN, C2*OH2*OH2] (PyTorch [out, in])
        # obs normalisation folded into conv1: conv((obs-mean)/scale) == conv(obs)/scale + bias shift
        w1[:, :, br * C1:(br + 1) * C1] = (
            np.transpose(c1w, (2, 3, 1, 0)).reshape(KK, IN_C, C1) / OBS_SCALE)
        b1[0, br * C1:(br + 1) * C1] = c1b - (OBS_MEAN / OBS_SCALE) * c1w.sum(axis=(1, 2, 3))
        w2[:, br * C1:(br + 1) * C1, br * C2:(br + 1) * C2] = (
            np.transpose(c2w, (2, 3, 1, 0)).reshape(KK, C1, C2))
        b2[0, br * C2:(br + 1) * C2] = np.asarray(enc['conv2_b'])
        # PyTorch .view(B,-1) flatten index is c*9 + oh*3 + ow -> per spatial position s: [C2, HIDDEN]
        wfc[:, br * C2:(br + 1) * C2, br * HIDDEN:(br + 1) * HIDDEN] = (
            np.transpose(fcw.reshape(HIDDEN, C2, OH2 * OH2), (2, 1, 0)))
        bfc[0, br * HIDDEN:(br + 1) * HIDDEN] = np.asarray(enc['fc_b'])

    # tail: actor half -> logits (cols 0:6 and a copy in 6:12), critic half -> value (col 12)
    wtail = np.zeros((2 * HIDDEN, OUT_LANES), np.float32)
    btail = np.zeros((1, OUT_LANES), np.float32)
    w_act = np.asarray(params['w_act'])              # [NUM_ACTIONS, HIDDEN]
    w_val = np.asarray(params['w_val'])              # [1, HIDDEN]
    wtail[0:HIDDEN, 0:NUM_ACTIONS] = w_act.T
    wtail[0:HIDDEN, NUM_ACTIONS:2 * NUM_ACTIONS] = w_act.T
    wtail[HIDDEN:2 * HIDDEN, 2 * NUM_ACTIONS] = w_val[0]
    btail[0, 0:NUM_ACTIONS] = np.asarray(params['b_act'])
    btail[0, NUM_ACTIONS:2 * NUM_ACTIONS] = np.asarray(params['b_act'])
    btail[0, 2 * NUM_ACTIONS] = np.asarray(params['b_val'])[0]

    sel1, sel2, sel3 = build_selectors()
    packed = dict(sel1=sel1, sel2=sel2, sel3=sel3,
                  w1=w1, b1=b1, w2=w2, b2=b2, wfc=wfc, bfc=bfc,
                  wtail=wtail, btail=btail)
    return {k: jnp.asarray(v) for k, v in packed.items()}


# ----------------------------- full forward (one pallas_call) -----------------------------
def actor_critic_forward(packed, obs, rnn_states, sample_key):
    # Only layout prep in XLA: NCHW -> [B*H*W, C] rows (channels on lanes). ~8 KB.
    x_rows = obs.astype(jnp.float32).transpose(0, 2, 3, 1).reshape(B * IMG * IMG, IN_C)

    out = pl.pallas_call(
        _fused_actor_critic_kernel,
        out_shape=jax.ShapeDtypeStruct((R3, OUT_LANES), jnp.float32),
        in_specs=[_VMEM] * 12,
        out_specs=_VMEM,
    )(x_rows, packed['sel1'], packed['sel2'], packed['sel3'],
      packed['w1'], packed['b1'], packed['w2'], packed['b2'],
      packed['wfc'], packed['bfc'], packed['wtail'], packed['btail'])

    logits = out[:B, 0:NUM_ACTIONS]
    log_probs = out[:B, NUM_ACTIONS:2 * NUM_ACTIONS]
    values = out[:B, 2 * NUM_ACTIONS:2 * NUM_ACTIONS + 1]

    # TODO(synk): categorical sampling + log-prob gather stay in JAX (jax.random PRNG stream);
    # they are not moved into the Pallas kernel.
    actions = jax.random.categorical(sample_key, logits, axis=-1)                 # [B] int
    log_prob_actions = jnp.take_along_axis(log_probs, actions[:, None], axis=-1)[:, 0]

    # forward_core: cfg.use_rnn == False -> _core_empty pass-through
    return dict(actions=actions,
                action_logits=logits,
                log_prob_actions=log_prob_actions,
                values=values,
                rnn_states=rnn_states)


# ----------------------------- deterministic parameter init (PyTorch layouts) -----------------------------
def _w(key, shape, fan_in):
    # TODO(synk): deterministic scaled-normal stand-in for nn.init.orthogonal_(gain=policy_init_gain)
    return jax.random.normal(key, shape, jnp.float32) * (1.0 / jnp.sqrt(fan_in))


def init_encoder_params(key):
    k1, k2, k3 = jax.random.split(key, 3)
    flat = C2 * OH2 * OH2                                   # 144
    return dict(
        conv1_w=_w(k1, (C1, IN_C, K, K), IN_C * K * K),
        conv1_b=jnp.zeros((C1,), jnp.float32),              # bias.fill_(0)
        conv2_w=_w(k2, (C2, C1, K, K), C1 * K * K),
        conv2_b=jnp.zeros((C2,), jnp.float32),
        fc_w=_w(k3, (HIDDEN, flat), flat),                  # PyTorch Linear layout [out, in]
        fc_b=jnp.zeros((HIDDEN,), jnp.float32),
    )


def init_params(key):
    ka, kc, kact, kval = jax.random.split(key, 4)
    return dict(
        actor_enc=init_encoder_params(ka),
        critic_enc=init_encoder_params(kc),
        w_act=_w(kact, (NUM_ACTIONS, HIDDEN), HIDDEN),      # ActionParameterizationDefault linear
        b_act=jnp.zeros((NUM_ACTIONS,), jnp.float32),
        w_val=_w(kval, (1, HIDDEN), HIDDEN),                # critic_linear
        b_val=jnp.zeros((1,), jnp.float32),
    )


# ----------------------------- pure-JAX reference (for correctness check) -----------------------------
def _ref_encoder(x, enc):
    y = jax.lax.conv_general_dilated(
        x, enc['conv1_w'], (STRIDE, STRIDE), 'VALID',
        dimension_numbers=('NCHW', 'OIHW', 'NCHW')) + enc['conv1_b'][None, :, None, None]
    y = jnp.maximum(y, 0.0)
    y = jax.lax.conv_general_dilated(
        y, enc['conv2_w'], (STRIDE, STRIDE), 'VALID',
        dimension_numbers=('NCHW', 'OIHW', 'NCHW')) + enc['conv2_b'][None, :, None, None]
    y = jnp.maximum(y, 0.0)
    y = y.reshape(y.shape[0], -1)
    return jnp.maximum(y @ enc['fc_w'].T + enc['fc_b'], 0.0)


def _ref_logits_values(params, obs):
    x = (obs - OBS_MEAN) / OBS_SCALE
    ha = _ref_encoder(x, params['actor_enc'])
    hc = _ref_encoder(x, params['critic_enc'])
    logits = ha @ params['w_act'].T + params['b_act']
    values = hc @ params['w_val'].T + params['b_val']
    return logits, values


# ----------------------------- main -----------------------------
if __name__ == "__main__":
    root = jax.random.PRNGKey(0)
    k_obs, k_params, k_sample = jax.random.split(root, 3)

    obs = jax.random.uniform(k_obs, (B, IN_C, IMG, IMG), jnp.float32, 0.0, 255.0)  # NCHW obs
    rnn_states = jnp.zeros((B, 2 * HIDDEN), jnp.float32)   # fake rnn states (feed-forward path)
    params = init_params(k_params)
    packed = pack_params(params)                           # one-time host-side packing

    fwd = jax.jit(actor_critic_forward)
    out = fwd(packed, obs, rnn_states, k_sample)
    out = jax.tree_util.tree_map(lambda a: a.block_until_ready(), out)

    assert out['actions'].shape == (B,)
    assert out['action_logits'].shape == (B, NUM_ACTIONS)
    assert out['log_prob_actions'].shape == (B,)
    assert out['values'].shape == (B, 1)
    assert out['rnn_states'].shape == (B, 2 * HIDDEN)
    assert bool(jnp.all(jnp.isfinite(out['action_logits'])))
    assert bool(jnp.all(jnp.isfinite(out['values'])))

    # check the fused kernel against a plain-JAX reference of the PyTorch forward
    ref_logits, ref_values = _ref_logits_values(params, obs)
    np.testing.assert_allclose(np.asarray(out['action_logits']), np.asarray(ref_logits),
                               rtol=5e-2, atol=5e-2)
    np.testing.assert_allclose(np.asarray(out['values']), np.asarray(ref_values),
                               rtol=5e-2, atol=5e-2)

    print("KERNEL_OK")
</pallas_src>

<mosaic_0001>
module attributes {stable_mosaic.version = 11 : i64} {
  func.func @_fused_actor_critic_kernel(%arg0: memref<512x4xf32, #tpu.memory_space<vmem>>, %arg1: memref<9x104x512xf32, #tpu.memory_space<vmem>>, %arg2: memref<9x24x104xf32, #tpu.memory_space<vmem>>, %arg3: memref<9x8x24xf32, #tpu.memory_space<vmem>>, %arg4: memref<9x4x16xf32, #tpu.memory_space<vmem>>, %arg5: memref<1x16xf32, #tpu.memory_space<vmem>>, %arg6: memref<9x16x32xf32, #tpu.memory_space<vmem>>, %arg7: memref<1x32xf32, #tpu.memory_space<vmem>>, %arg8: memref<9x32x64xf32, #tpu.memory_space<vmem>>, %arg9: memref<1x64xf32, #tpu.memory_space<vmem>>, %arg10: memref<64x128xf32, #tpu.memory_space<vmem>>, %arg11: memref<1x128xf32, #tpu.memory_space<vmem>>, %arg12: memref<8x128xf32, #tpu.memory_space<vmem>>) attributes {dimension_semantics = [], scalar_prefetch = 0 : i64, scratch_operands = 0 : i64, tpu.core_type = #tpu.core_type<tc>} {
    %c0 = arith.constant 0 : index
    %c0_0 = arith.constant 0 : index
    %0 = vector.load %arg0[%c0, %c0_0] : memref<512x4xf32, #tpu.memory_space<vmem>>, vector<512x4xf32>
    %cst = arith.constant 0.000000e+00 : f32
    %1 = vector.broadcast %cst : f32 to vector<104x16xf32>
    %c0_1 = arith.constant 0 : index
    %c0_2 = arith.constant 0 : index
    %c0_3 = arith.constant 0 : index
    %2 = vector.load %arg1[%c0_1, %c0_2, %c0_3] : memref<9x104x512xf32, #tpu.memory_space<vmem>>, vector<1x104x512xf32>
    %3 = vector.shape_cast %2 : vector<1x104x512xf32> to vector<104x512xf32>
    %cst_4 = arith.constant dense<0.000000e+00> : vector<104x4xf32>
    %4 = tpu.matmul %3, %0, %cst_4 {dimension_numbers = #tpu.dot_dimension_numbers<[1], [0], [0], [1], [0, 0, 1, 1], [], []>} : vector<104x512xf32>, vector<512x4xf32>, vector<104x4xf32> -> vector<104x4xf32>
    %c0_5 = arith.constant 0 : index
    %c0_6 = arith.constant 0 : index
    %c0_7 = arith.constant 0 : index
    %5 = vector.load %arg4[%c0_5, %c0_6, %c0_7] : memref<9x4x16xf32, #tpu.memory_space<vmem>>, vector<1x4x16xf32>
    %6 = vector.shape_cast %5 : vector<1x4x16xf32> to vector<4x16xf32>
    %cst_8 = arith.constant dense<0.000000e+00> : vector<104x16xf32>
    %7 = tpu.matmul %4, %6, %cst_8 {dimension_numbers = #tpu.dot_dimension_numbers<[1], [0], [0], [1], [0, 0, 1, 1], [], []>} : vector<104x4xf32>, vector<4x16xf32>, vector<104x16xf32> -> vector<104x16xf32>
    %8 = arith.addf %1, %7 : vector<104x16xf32>
    %c1 = arith.constant 1 : index
    %c0_9 = arith.constant 0 : index
    %c0_10 = arith.constant 0 : index
    %9 = vector.load %arg1[%c1, %c0_9, %c0_10] : memref<9x104x512xf32, #tpu.memory_space<vmem>>, vector<1x104x512xf32>
    %10 = vector.shape_cast %9 : vector<1x104x512xf32> to vector<104x512xf32>
    %cst_11 = arith.constant dense<0.000000e+00> : vector<104x4xf32>
    %11 = tpu.matmul %10, %0, %cst_11 {dimension_numbers = #tpu.dot_dimension_numbers<[1], [0], [0], [1], [0, 0, 1, 1], [], []>} : vector<104x512xf32>, vector<512x4xf32>, vector<104x4xf32> -> vector<104x4xf32>
    %c1_12 = arith.constant 1 : index
    %c0_13 = arith.constant 0 : index
    %c0_14 = arith.constant 0 : index
    %12 = vector.load %arg4[%c1_12, %c0_13, %c0_14] : memref<9x4x16xf32, #tpu.memory_space<vmem>>, vector<1x4x16xf32>
    %13 = vector.shape_cast %12 : vector<1x4x16xf32> to vector<4x16xf32>
    %cst_15 = arith.constant dense<0.000000e+00> : vector<104x16xf32>
    %14 = tpu.matmul %11, %13, %cst_15 {dimension_numbers = #tpu.dot_dimension_numbers<[1], [0], [0], [1], [0, 0, 1, 1], [], []>} : vector<104x4xf32>, vector<4x16xf32>, vector<104x16xf32> -> vector<104x16xf32>
    %15 = arith.addf %8, %14 : vector<104x16xf32>
    %c2 = arith.constant 2 : index
    %c0_16 = arith.constant 0 : index
    %c0_17 = arith.constant 0 : index
    %16 = vector.load %arg1[%c2, %c0_16, %c0_17] : memref<9x104x512xf32, #tpu.memory_space<vmem>>, vector<1x104x512xf32>
    %17 = vector.shape_cast %16 : vector<1x104x512xf32> to vector<104x512xf32>
    %cst_18 = arith.constant dense<0.000000e+00> : vector<104x4xf32>
    %18 = tpu.matmul %17, %0, %cst_18 {dimension_numbers = #tpu.dot_dimension_numbers<[1], [0], [0], [1], [0, 0, 1, 1], [], []>} : vector<104x512xf32>, vector<512x4xf32>, vector<104x4xf32> -> vector<104x4xf32>
    %c2_19 = arith.constant 2 : index
    %c0_20 = arith.constant 0 : index
    %c0_21 = arith.constant 0 : index
    %19 = vector.load %arg4[%c2_19, %c0_20, %c0_21] : memref<9x4x16xf32, #tpu.memory_space<vmem>>, vector<1x4x16xf32>
    %20 = vector.shape_cast %19 : vector<1x4x16xf32> to vector<4x16xf32>
    %cst_22 = arith.constant dense<0.000000e+00> : vector<104x16xf32>
    %21 = tpu.matmul %18, %20, %cst_22 {dimension_numbers = #tpu.dot_dimension_numbers<[1], [0], [0], [1], [0, 0, 1, 1], [], []>} : vector<104x4xf32>, vector<4x16xf32>, vector<104x16xf32> -> vector<104x16xf32>
    %22 = arith.addf %15, %21 : vector<104x16xf32>
    %c3 = arith.constant 3 : index
    %c0_23 = arith.constant 0 : index
    %c0_24 = arith.constant 0 : index
    %23 = vector.load %arg1[%c3, %c0_23, %c0_24] : memref<9x104x512xf32, #tpu.memory_space<vmem>>, vector<1x104x512xf32>
    %24 = vector.shape_cast %23 : vector<1x104x512xf32> to vector<104x512xf32>
    %cst_25 = arith.constant dense<0.000000e+00> : vector<104x4xf32>
    %25 = tpu.matmul %24, %0, %cst_25 {dimension_numbers = #tpu.dot_dimension_numbers<[1], [0], [0], [1], [0, 0, 1, 1], [], []>} : vector<104x512xf32>, vector<512x4xf32>, vector<104x4xf32> -> vector<104x4xf32>
    %c3_26 = arith.constant 3 : index
    %c0_27 = arith.constant 0 : index
    %c0_28 = arith.constant 0 : index
    %26 = vector.load %arg4[%c3_26, %c0_27, %c0_28] : memref<9x4x16xf32, #tpu.memory_space<vmem>>, vector<1x4x16xf32>
    %27 = vector.shape_cast %26 : vector<1x4x16xf32> to vector<4x16xf32>
    %cst_29 = arith.constant dense<0.000000e+00> : vector<104x16xf32>
    %28 = tpu.matmul %25, %27, %cst_29 {dimension_numbers = #tpu.dot_dimension_numbers<[1], [0], [0], [1], [0, 0, 1, 1], [], []>} : vector<104x4xf32>, vector<4x16xf32>, vector<104x16xf32> -> vector<104x16xf32>
    %29 = arith.addf %22, %28 : vector<104x16xf32>
    %c4 = arith.constant 4 : index
    %c0_30 = arith.constant 0 : index
    %c0_31 = arith.constant 0 : index
    %30 = vector.load %arg1[%c4, %c0_30, %c0_31] : memref<9x104x512xf32, #tpu.memory_space<vmem>>, vector<1x104x512xf32>
    %31 = vector.shape_cast %30 : vector<1x104x512xf32> to vector<104x512xf32>
    %cst_32 = arith.constant dense<0.000000e+00> : vector<104x4xf32>
    %32 = tpu.matmul %31, %0, %cst_32 {dimension_numbers = #tpu.dot_dimension_numbers<[1], [0], [0], [1], [0, 0, 1, 1], [], []>} : vector<104x512xf32>, vector<512x4xf32>, vector<104x4xf32> -> vector<104x4xf32>
    %c4_33 = arith.constant 4 : index
    %c0_34 = arith.constant 0 : index
    %c0_35 = arith.constant 0 : index
    %33 = vector.load %arg4[%c4_33, %c0_34, %c0_35] : memref<9x4x16xf32, #tpu.memory_space<vmem>>, vector<1x4x16xf32>
    %34 = vector.shape_cast %33 : vector<1x4x16xf32> to vector<4x16xf32>
    %cst_36 = arith.constant dense<0.000000e+00> : vector<104x16xf32>
    %35 = tpu.matmul %32, %34, %cst_36 {dimension_numbers = #tpu.dot_dimension_numbers<[1], [0], [0], [1], [0, 0, 1, 1], [], []>} : vector<104x4xf32>, vector<4x16xf32>, vector<104x16xf32> -> vector<104x16xf32>
    %36 = arith.addf %29, %35 : vector<104x16xf32>
    %c5 = arith.constant 5 : index
    %c0_37 = arith.constant 0 : index
    %c0_38 = arith.constant 0 : index
    %37 = vector.load %arg1[%c5, %c0_37, %c0_38] : memref<9x104x512xf32, #tpu.memory_space<vmem>>, vector<1x104x512xf32>
    %38 = vector.shape_cast %37 : vector<1x104x512xf32> to vector<104x512xf32>
    %cst_39 = arith.constant dense<0.000000e+00> : vector<104x4xf32>
    %39 = tpu.matmul %38, %0, %cst_39 {dimension_numbers = #tpu.dot_dimension_numbers<[1], [0], [0], [1], [0, 0, 1, 1], [], []>} : vector<104x512xf32>, vector<512x4xf32>, vector<104x4xf32> -> vector<104x4xf32>
    %c5_40 = arith.constant 5 : index
    %c0_41 = arith.constant 0 : index
    %c0_42 = arith.constant 0 : index
    %40 = vector.load %arg4[%c5_40, %c0_41, %c0_42] : memref<9x4x16xf32, #tpu.memory_space<vmem>>, vector<1x4x16xf32>
    %41 = vector.shape_cast %40 : vector<1x4x16xf32> to vector<4x16xf32>
    %cst_43 = arith.constant dense<0.000000e+00> : vector<104x16xf32>
    %42 = tpu.matmul %39, %41, %cst_43 {dimension_numbers = #tpu.dot_dimension_numbers<[1], [0], [0], [1], [0, 0, 1, 1], [], []>} : vector<104x4xf32>, vector<4x16xf32>, vector<104x16xf32> -> vector<104x16xf32>
    %43 = arith.addf %36, %42 : vector<104x16xf32>
    %c6 = arith.constant 6 : index
    %c0_44 = arith.constant 0 : index
    %c0_45 = arith.constant 0 : index
    %44 = vector.load %arg1[%c6, %c0_44, %c0_45] : memref<9x104x512xf32, #tpu.memory_space<vmem>>, vector<1x104x512xf32>
    %45 = vector.shape_cast %44 : vector<1x104x512xf32> to vector<104x512xf32>
    %cst_46 = arith.constant dense<0.000000e+00> : vector<104x4xf32>
    %46 = tpu.matmul %45, %0, %cst_46 {dimension_numbers = #tpu.dot_dimension_numbers<[1], [0], [0], [1], [0, 0, 1, 1], [], []>} : vector<104x512xf32>, vector<512x4xf32>, vector<104x4xf32> -> vector<104x4xf32>
    %c6_47 = arith.constant 6 : index
    %c0_48 = arith.constant 0 : index
    %c0_49 = arith.constant 0 : index
    %47 = vector.load %arg4[%c6_47, %c0_48, %c0_49] : memref<9x4x16xf32, #tpu.memory_space<vmem>>, vector<1x4x16xf32>
    %48 = vector.shape_cast %47 : vector<1x4x16xf32> to vector<4x16xf32>
    %cst_50 = arith.constant dense<0.000000e+00> : vector<104x16xf32>
    %49 = tpu.matmul %46, %48, %cst_50 {dimension_numbers = #tpu.dot_dimension_numbers<[1], [0], [0], [1], [0, 0, 1, 1], [], []>} : vector<104x4xf32>, vector<4x16xf32>, vector<104x16xf32> -> vector<104x16xf32>
    %50 = arith.addf %43, %49 : vector<104x16xf32>
    %c7 = arith.constant 7 : index
    %c0_51 = arith.constant 0 : index
    %c0_52 = arith.constant 0 : index
    %51 = vector.load %arg1[%c7, %c0_51, %c0_52] : memref<9x104x512xf32, #tpu.memory_space<vmem>>, vector<1x104x512xf32>
    %52 = vector.shape_cast %51 : vector<1x104x512xf32> to vector<104x512xf32>
    %cst_53 = arith.constant dense<0.000000e+00> : vector<104x4xf32>
    %53 = tpu.matmul %52, %0, %cst_53 {dimension_numbers = #tpu.dot_dimension_numbers<[1], [0], [0], [1], [0, 0, 1, 1], [], []>} : vector<104x512xf32>, vector<512x4xf32>, vector<104x4xf32> -> vector<104x4xf32>
    %c7_54 = arith.constant 7 : index
    %c0_55 = arith.constant 0 : index
    %c0_56 = arith.constant 0 : index
    %54 = vector.load %arg4[%c7_54, %c0_55, %c0_56] : memref<9x4x16xf32, #tpu.memory_space<vmem>>, vector<1x4x16xf32>
    %55 = vector.shape_cast %54 : vector<1x4x16xf32> to vector<4x16xf32>
    %cst_57 = arith.constant dense<0.000000e+00> : vector<104x16xf32>
    %56 = tpu.matmul %53, %55, %cst_57 {dimension_numbers = #tpu.dot_dimension_numbers<[1], [0], [0], [1], [0, 0, 1, 1], [], []>} : vector<104x4xf32>, vector<4x16xf32>, vector<104x16xf32> -> vector<104x16xf32>
    %57 = arith.addf %50, %56 : vector<104x16xf32>
    %c8 = arith.constant 8 : index
    %c0_58 = arith.constant 0 : index
    %c0_59 = arith.constant 0 : index
    %58 = vector.load %arg1[%c8, %c0_58, %c0_59] : memref<9x104x512xf32, #tpu.memory_space<vmem>>, vector<1x104x512xf32>
    %59 = vector.shape_cast %58 : vector<1x104x512xf32> to vector<104x512xf32>
    %cst_60 = arith.constant dense<0.000000e+00> : vector<104x4xf32>
    %60 = tpu.matmul %59, %0, %cst_60 {dimension_numbers = #tpu.dot_dimension_numbers<[1], [0], [0], [1], [0, 0, 1, 1], [], []>} : vector<104x512xf32>, vector<512x4xf32>, vector<104x4xf32> -> vector<104x4xf32>
    %c8_61 = arith.constant 8 : index
    %c0_62 = arith.constant 0 : index
    %c0_63 = arith.constant 0 : index
    %61 = vector.load %arg4[%c8_61, %c0_62, %c0_63] : memref<9x4x16xf32, #tpu.memory_space<vmem>>, vector<1x4x16xf32>
    %62 = vector.shape_cast %61 : vector<1x4x16xf32> to vector<4x16xf32>
    %cst_64 = arith.constant dense<0.000000e+00> : vector<104x16xf32>
    %63 = tpu.matmul %60, %62, %cst_64 {dimension_numbers = #tpu.dot_dimension_numbers<[1], [0], [0], [1], [0, 0, 1, 1], [], []>} : vector<104x4xf32>, vector<4x16xf32>, vector<104x16xf32> -> vector<104x16xf32>
    %64 = arith.addf %57, %63 : vector<104x16xf32>
    %c0_65 = arith.constant 0 : index
    %c0_66 = arith.constant 0 : index
    %65 = vector.load %arg5[%c0_65, %c0_66] : memref<1x16xf32, #tpu.memory_space<vmem>>, vector<1x16xf32>
    %66 = vector.broadcast %65 : vector<1x16xf32> to vector<104x16xf32>
    %67 = arith.addf %64, %66 : vector<104x16xf32>
    %cst_67 = arith.constant 0.000000e+00 : f32
    %68 = vector.broadcast %cst_67 : f32 to vector<104x16xf32>
    %69 = arith.maximumf %67, %68 : vector<104x16xf32>
    %cst_68 = arith.constant 0.000000e+00 : f32
    %70 = vector.broadcast %cst_68 : f32 to vector<24x32xf32>
    %c0_69 = arith.constant 0 : index
    %c0_70 = arith.constant 0 : index
    %c0_71 = arith.constant 0 : index
    %71 = vector.load %arg2[%c0_69, %c0_70, %c0_71] : memref<9x24x104xf32, #tpu.memory_space<vmem>>, vector<1x24x104xf32>
    %72 = vector.shape_cast %71 : vector<1x24x104xf32> to vector<24x104xf32>
    %cst_72 = arith.constant dense<0.000000e+00> : vector<24x16xf32>
    %73 = tpu.matmul %72, %69, %cst_72 {dimension_numbers = #tpu.dot_dimension_numbers<[1], [0], [0], [1], [0, 0, 1, 1], [], []>} : vector<24x104xf32>, vector<104x16xf32>, vector<24x16xf32> -> vector<24x16xf32>
    %c0_73 = arith.constant 0 : index
    %c0_74 = arith.constant 0 : index
    %c0_75 = arith.constant 0 : index
    %74 = vector.load %arg6[%c0_73, %c0_74, %c0_75] : memref<9x16x32xf32, #tpu.memory_space<vmem>>, vector<1x16x32xf32>
    %75 = vector.shape_cast %74 : vector<1x16x32xf32> to vector<16x32xf32>
    %cst_76 = arith.constant dense<0.000000e+00> : vector<24x32xf32>
    %76 = tpu.matmul %73, %75, %cst_76 {dimension_numbers = #tpu.dot_dimension_numbers<[1], [0], [0], [1], [0, 0, 1, 1], [], []>} : vector<24x16xf32>, vector<16x32xf32>, vector<24x32xf32> -> vector<24x32xf32>
    %77 = arith.addf %70, %76 : vector<24x32xf32>
    %c1_77 = arith.constant 1 : index
    %c0_78 = arith.constant 0 : index
    %c0_79 = arith.constant 0 : index
    %78 = vector.load %arg2[%c1_77, %c0_78, %c0_79] : memref<9x24x104xf32, #tpu.memory_space<vmem>>, vector<1x24x104xf32>
    %79 = vector.shape_cast %78 : vector<1x24x104xf32> to vector<24x104xf32>
    %cst_80 = arith.constant dense<0.000000e+00> : vector<24x16xf32>
    %80 = tpu.matmul %79, %69, %cst_80 {dimension_numbers = #tpu.dot_dimension_numbers<[1], [0], [0], [1], [0, 0, 1, 1], [], []>} : vector<24x104xf32>, vector<104x16xf32>, vector<24x16xf32> -> vector<24x16xf32>
    %c1_81 = arith.constant 1 : index
    %c0_82 = arith.constant 0 : index
    %c0_83 = arith.constant 0 : index
    %81 = vector.load %arg6[%c1_81, %c0_82, %c0_83] : memref<9x16x32xf32, #tpu.memory_space<vmem>>, vector<1x16x32xf32>
    %82 = vector.shape_cast %81 : vector<1x16x32xf32> to vector<16x32xf32>
    %cst_84 = arith.constant dense<0.000000e+00> : vector<24x32xf32>
    %83 = tpu.matmul %80, %82, %cst_84 {dimension_numbers = #tpu.dot_dimension_numbers<[1], [0], [0], [1], [0, 0, 1, 1], [], []>} : vector<24x16xf32>, vector<16x32xf32>, vector<24x32xf32> -> vector<24x32xf32>
    %84 = arith.addf %77, %83 : vector<24x32xf32>
    %c2_85 = arith.constant 2 : index
    %c0_86 = arith.constant 0 : index
    %c0_87 = arith.constant 0 : index
    %85 = vector.load %arg2[%c2_85, %c0_86, %c0_87] : memref<9x24x104xf32, #tpu.memory_space<vmem>>, vector<1x24x104xf32>
    %86 = vector.shape_cast %85 : vector<1x24x104xf32> to vector<24x104xf32>
    %cst_88 = arith.constant dense<0.000000e+00> : vector<24x16xf32>
    %87 = tpu.matmul %86, %69, %cst_88 {dimension_numbers = #tpu.dot_dimension_numbers<[1], [0], [0], [1], [0, 0, 1, 1], [], []>} : vector<24x104xf32>, vector<104x16xf32>, vector<24x16xf32> -> vector<24x16xf32>
    %c2_89 = arith.constant 2 : index
    %c0_90 = arith.constant 0 : index
    %c0_91 = arith.constant 0 : index
    %88 = vector.load %arg6[%c2_89, %c0_90, %c0_91] : memref<9x16x32xf32, #tpu.memory_space<vmem>>, vector<1x16x32xf32>
    %89 = vector.shape_cast %88 : vector<1x16x32xf32> to vector<16x32xf32>
    %cst_92 = arith.constant dense<0.000000e+00> : vector<24x32xf32>
    %90 = tpu.matmul %87, %89, %cst_92 {dimension_numbers = #tpu.dot_dimension_numbers<[1], [0], [0], [1], [0, 0, 1, 1], [], []>} : vector<24x16xf32>, vector<16x32xf32>, vector<24x32xf32> -> vector<24x32xf32>
    %91 = arith.addf %84, %90 : vector<24x32xf32>
    %c3_93 = arith.constant 3 : index
    %c0_94 = arith.constant 0 : index
    %c0_95 = arith.constant 0 : index
    %92 = vector.load %arg2[%c3_93, %c0_94, %c0_95] : memref<9x24x104xf32, #tpu.memory_space<vmem>>, vector<1x24x104xf32>
    %93 = vector.shape_cast %92 : vector<1x24x104xf32> to vector<24x104xf32>
    %cst_96 = arith.constant dense<0.000000e+00> : vector<24x16xf32>
    %94 = tpu.matmul %93, %69, %cst_96 {dimension_numbers = #tpu.dot_dimension_numbers<[1], [0], [0], [1], [0, 0, 1, 1], [], []>} : vector<24x104xf32>, vector<104x16xf32>, vector<24x16xf32> -> vector<24x16xf32>
    %c3_97 = arith.constant 3 : index
    %c0_98 = arith.constant 0 : index
    %c0_99 = arith.constant 0 : index
    %95 = vector.load %arg6[%c3_97, %c0_98, %c0_99] : memref<9x16x32xf32, #tpu.memory_space<vmem>>, vector<1x16x32xf32>
    %96 = vector.shape_cast %95 : vector<1x16x32xf32> to vector<16x32xf32>
    %cst_100 = arith.constant dense<0.000000e+00> : vector<24x32xf32>
    %97 = tpu.matmul %94, %96, %cst_100 {dimension_numbers = #tpu.dot_dimension_numbers<[1], [0], [0], [1], [0, 0, 1, 1], [], []>} : vector<24x16xf32>, vector<16x32xf32>, vector<24x32xf32> -> vector<24x32xf32>
    %98 = arith.addf %91, %97 : vector<24x32xf32>
    %c4_101 = arith.constant 4 : index
    %c0_102 = arith.constant 0 : index
    %c0_103 = arith.constant 0 : index
    %99 = vector.load %arg2[%c4_101, %c0_102, %c0_103] : memref<9x24x104xf32, #tpu.memory_space<vmem>>, vector<1x24x104xf32>
    %100 = vector.shape_cast %99 : vector<1x24x104xf32> to vector<24x104xf32>
    %cst_104 = arith.constant dense<0.000000e+00> : vector<24x16xf32>
    %101 = tpu.matmul %100, %69, %cst_104 {dimension_numbers = #tpu.dot_dimension_numbers<[1], [0], [0], [1], [0, 0, 1, 1], [], []>} : vector<24x104xf32>, vector<104x16xf32>, vector<24x16xf32> -> vector<24x16xf32>
    %c4_105 = arith.constant 4 : index
    %c0_106 = arith.constant 0 : index
    %c0_107 = arith.constant 0 : index
    %102 = vector.load %arg6[%c4_105, %c0_106, %c0_107] : memref<9x16x32xf32, #tpu.memory_space<vmem>>, vector<1x16x32xf32>
    %103 = vector.shape_cast %102 : vector<1x16x32xf32> to vector<16x32xf32>
    %cst_108 = arith.constant dense<0.000000e+00> : vector<24x32xf32>
    %104 = tpu.matmul %101, %103, %cst_108 {dimension_numbers = #tpu.dot_dimension_numbers<[1], [0], [0], [1], [0, 0, 1, 1], [], []>} : vector<24x16xf32>, vector<16x32xf32>, vector<24x32xf32> -> vector<24x32xf32>
    %105 = arith.addf %98, %104 : vector<24x32xf32>
    %c5_109 = arith.constant 5 : index
    %c0_110 = arith.constant 0 : index
    %c0_111 = arith.constant 0 : index
    %106 = vector.load %arg2[%c5_109, %c0_110, %c0_111] : memref<9x24x104xf32, #tpu.memory_space<vmem>>, vector<1x24x104xf32>
    %107 = vector.shape_cast %106 : vector<1x24x104xf32> to vector<24x104xf32>
    %cst_112 = arith.constant dense<0.000000e+00> : vector<24x16xf32>
    %108 = tpu.matmul %107, %69, %cst_112 {dimension_numbers = #tpu.dot_dimension_numbers<[1], [0], [0], [1], [0, 0, 1, 1], [], []>} : vector<24x104xf32>, vector<104x16xf32>, vector<24x16xf32> -> vector<24x16xf32>
    %c5_113 = arith.constant 5 : index
    %c0_114 = arith.constant 0 : index
    %c0_115 = arith.constant 0 : index
    %109 = vector.load %arg6[%c5_113, %c0_114, %c0_115] : memref<9x16x32xf32, #tpu.memory_space<vmem>>, vector<1x16x32xf32>
    %110 = vector.shape_cast %109 : vector<1x16x32xf32> to vector<16x32xf32>
    %cst_116 = arith.constant dense<0.000000e+00> : vector<24x32xf32>
    %111 = tpu.matmul %108, %110, %cst_116 {dimension_numbers = #tpu.dot_dimension_numbers<[1], [0], [0], [1], [0, 0, 1, 1], [], []>} : vector<24x16xf32>, vector<16x32xf32>, vector<24x32xf32> -> vector<24x32xf32>
    %112 = arith.addf %105, %111 : vector<24x32xf32>
    %c6_117 = arith.constant 6 : index
    %c0_118 = arith.constant 0 : index
    %c0_119 = arith.constant 0 : index
    %113 = vector.load %arg2[%c6_117, %c0_118, %c0_119] : memref<9x24x104xf32, #tpu.memory_space<vmem>>, vector<1x24x104xf32>
    %114 = vector.shape_cast %113 : vector<1x24x104xf32> to vector<24x104xf32>
    %cst_120 = arith.constant dense<0.000000e+00> : vector<24x16xf32>
    %115 = tpu.matmul %114, %69, %cst_120 {dimension_numbers = #tpu.dot_dimension_numbers<[1], [0], [0], [1], [0, 0, 1, 1], [], []>} : vector<24x104xf32>, vector<104x16xf32>, vector<24x16xf32> -> vector<24x16xf32>
    %c6_121 = arith.constant 6 : index
    %c0_122 = arith.constant 0 : index
    %c0_123 = arith.constant 0 : index
    %116 = vector.load %arg6[%c6_121, %c0_122, %c0_123] : memref<9x16x32xf32, #tpu.memory_space<vmem>>, vector<1x16x32xf32>
    %117 = vector.shape_cast %116 : vector<1x16x32xf32> to vector<16x32xf32>
    %cst_124 = arith.constant dense<0.000000e+00> : vector<24x32xf32>
    %118 = tpu.matmul %115, %117, %cst_124 {dimension_numbers = #tpu.dot_dimension_numbers<[1], [0], [0], [1], [0, 0, 1, 1], [], []>} : vector<24x16xf32>, vector<16x32xf32>, vector<24x32xf32> -> vector<24x32xf32>
    %119 = arith.addf %112, %118 : vector<24x32xf32>
    %c7_125 = arith.constant 7 : index
    %c0_126 = arith.constant 0 : index
    %c0_127 = arith.constant 0 : index
    %120 = vector.load %arg2[%c7_125, %c0_126, %c0_127] : memref<9x24x104xf32, #tpu.memory_space<vmem>>, vector<1x24x104xf32>
    %121 = vector.shape_cast %120 : vector<1x24x104xf32> to vector<24x104xf32>
    %cst_128 = arith.constant dense<0.000000e+00> : vector<24x16xf32>
    %122 = tpu.matmul %121, %69, %cst_128 {dimension_numbers = #tpu.dot_dimension_numbers<[1], [0], [0], [1], [0, 0, 1, 1], [], []>} : vector<24x104xf32>, vector<104x16xf32>, vector<24x16xf32> -> vector<24x16xf32>
    %c7_129 = arith.constant 7 : index
    %c0_130 = arith.constant 0 : index
    %c0_131 = arith.constant 0 : index
    %123 = vector.load %arg6[%c7_129, %c0_130, %c0_131] : memref<9x16x32xf32, #tpu.memory_space<vmem>>, vector<1x16x32xf32>
    %124 = vector.shape_cast %123 : vector<1x16x32xf32> to vector<16x32xf32>
    %cst_132 = arith.constant dense<0.000000e+00> : vector<24x32xf32>
    %125 = tpu.matmul %122, %124, %cst_132 {dimension_numbers = #tpu.dot_dimension_numbers<[1], [0], [0], [1], [0, 0, 1, 1], [], []>} : vector<24x16xf32>, vector<16x32xf32>, vector<24x32xf32> -> vector<24x32xf32>
    %126 = arith.addf %119, %125 : vector<24x32xf32>
    %c8_133 = arith.constant 8 : index
    %c0_134 = arith.constant 0 : index
    %c0_135 = arith.constant 0 : index
    %127 = vector.load %arg2[%c8_133, %c0_134, %c0_135] : memref<9x24x104xf32, #tpu.memory_space<vmem>>, vector<1x24x104xf32>
    %128 = vector.shape_cast %127 : vector<1x24x104xf32> to vector<24x104xf32>
    %cst_136 = arith.constant dense<0.000000e+00> : vector<24x16xf32>
    %129 = tpu.matmul %128, %69, %cst_136 {dimension_numbers = #tpu.dot_dimension_numbers<[1], [0], [0], [1], [0, 0, 1, 1], [], []>} : vector<24x104xf32>, vector<104x16xf32>, vector<24x16xf32> -> vector<24x16xf32>
    %c8_137 = arith.constant 8 : index
    %c0_138 = arith.constant 0 : index
    %c0_139 = arith.constant 0 : index
    %130 = vector.load %arg6[%c8_137, %c0_138, %c0_139] : memref<9x16x32xf32, #tpu.memory_space<vmem>>, vector<1x16x32xf32>
    %131 = vector.shape_cast %130 : vector<1x16x32xf32> to vector<16x32xf32>
    %cst_140 = arith.constant dense<0.000000e+00> : vector<24x32xf32>
    %132 = tpu.matmul %129, %131, %cst_140 {dimension_numbers = #tpu.dot_dimension_numbers<[1], [0], [0], [1], [0, 0, 1, 1], [], []>} : vector<24x16xf32>, vector<16x32xf32>, vector<24x32xf32> -> vector<24x32xf32>
    %133 = arith.addf %126, %132 : vector<24x32xf32>
    %c0_141 = arith.constant 0 : index
    %c0_142 = arith.constant 0 : index
    %134 = vector.load %arg7[%c0_141, %c0_142] : memref<1x32xf32, #tpu.memory_space<vmem>>, vector<1x32xf32>
    %135 = vector.broadcast %134 : vector<1x32xf32> to vector<24x32xf32>
    %136 = arith.addf %133, %135 : vector<24x32xf32>
    %cst_143 = arith.constant 0.000000e+00 : f32
    %137 = vector.broadcast %cst_143 : f32 to vector<24x32xf32>
    %138 = arith.maximumf %136, %137 : vector<24x32xf32>
    %cst_144 = arith.constant 0.000000e+00 : f32
    %139 = vector.broadcast %cst_144 : f32 to vector<8x64xf32>
    %c0_145 = arith.constant 0 : index
    %c0_146 = arith.constant 0 : index
    %c0_147 = arith.constant 0 : index
    %140 = vector.load %arg3[%c0_145, %c0_146, %c0_147] : memref<9x8x24xf32, #tpu.memory_space<vmem>>, vector<1x8x24xf32>
    %141 = vector.shape_cast %140 : vector<1x8x24xf32> to vector<8x24xf32>
    %cst_148 = arith.constant dense<0.000000e+00> : vector<8x32xf32>
    %142 = tpu.matmul %141, %138, %cst_148 {dimension_numbers = #tpu.dot_dimension_numbers<[1], [0], [0], [1], [0, 0, 1, 1], [], []>} : vector<8x24xf32>, vector<24x32xf32>, vector<8x32xf32> -> vector<8x32xf32>
    %c0_149 = arith.constant 0 : index
    %c0_150 = arith.constant 0 : index
    %c0_151 = arith.constant 0 : index
    %143 = vector.load %arg8[%c0_149, %c0_150, %c0_151] : memref<9x32x64xf32, #tpu.memory_space<vmem>>, vector<1x32x64xf32>
    %144 = vector.shape_cast %143 : vector<1x32x64xf32> to vector<32x64xf32>
    %cst_152 = arith.constant dense<0.000000e+00> : vector<8x64xf32>
    %145 = tpu.matmul %142, %144, %cst_152 {dimension_numbers = #tpu.dot_dimension_numbers<[1], [0], [0], [1], [0, 0, 1, 1], [], []>} : vector<8x32xf32>, vector<32x64xf32>, vector<8x64xf32> -> vector<8x64xf32>
    %146 = arith.addf %139, %145 : vector<8x64xf32>
    %c1_153 = arith.constant 1 : index
    %c0_154 = arith.constant 0 : index
    %c0_155 = arith.constant 0 : index
    %147 = vector.load %arg3[%c1_153, %c0_154, %c0_155] : memref<9x8x24xf32, #tpu.memory_space<vmem>>, vector<1x8x24xf32>
    %148 = vector.shape_cast %147 : vector<1x8x24xf32> to vector<8x24xf32>
    %cst_156 = arith.constant dense<0.000000e+00> : vector<8x32xf32>
    %149 = tpu.matmul %148, %138, %cst_156 {dimension_numbers = #tpu.dot_dimension_numbers<[1], [0], [0], [1], [0, 0, 1, 1], [], []>} : vector<8x24xf32>, vector<24x32xf32>, vector<8x32xf32> -> vector<8x32xf32>
    %c1_157 = arith.constant 1 : index
    %c0_158 = arith.constant 0 : index
    %c0_159 = arith.constant 0 : index
    %150 = vector.load %arg8[%c1_157, %c0_158, %c0_159] : memref<9x32x64xf32, #tpu.memory_space<vmem>>, vector<1x32x64xf32>
    %151 = vector.shape_cast %150 : vector<1x32x64xf32> to vector<32x64xf32>
    %cst_160 = arith.constant dense<0.000000e+00> : vector<8x64xf32>
    %152 = tpu.matmul %149, %151, %cst_160 {dimension_numbers = #tpu.dot_dimension_numbers<[1], [0], [0], [1], [0, 0, 1, 1], [], []>} : vector<8x32xf32>, vector<32x64xf32>, vector<8x64xf32> -> vector<8x64xf32>
    %153 = arith.addf %146, %152 : vector<8x64xf32>
    %c2_161 = arith.constant 2 : index
    %c0_162 = arith.constant 0 : index
    %c0_163 = arith.constant 0 : index
    %154 = vector.load %arg3[%c2_161, %c0_162, %c0_163] : memref<9x8x24xf32, #tpu.memory_space<vmem>>, vector<1x8x24xf32>
    %155 = vector.shape_cast %154 : vector<1x8x24xf32> to vector<8x24xf32>
    %cst_164 = arith.constant dense<0.000000e+00> : vector<8x32xf32>
    %156 = tpu.matmul %155, %138, %cst_164 {dimension_numbers = #tpu.dot_dimension_numbers<[1], [0], [0], [1], [0, 0, 1, 1], [], []>} : vector<8x24xf32>, vector<24x32xf32>, vector<8x32xf32> -> vector<8x32xf32>
    %c2_165 = arith.constant 2 : index
    %c0_166 = arith.constant 0 : index
    %c0_167 = arith.constant 0 : index
    %157 = vector.load %arg8[%c2_165, %c0_166, %c0_167] : memref<9x32x64xf32, #tpu.memory_space<vmem>>, vector<1x32x64xf32>
    %158 = vector.shape_cast %157 : vector<1x32x64xf32> to vector<32x64xf32>
    %cst_168 = arith.constant dense<0.000000e+00> : vector<8x64xf32>
    %159 = tpu.matmul %156, %158, %cst_168 {dimension_numbers = #tpu.dot_dimension_numbers<[1], [0], [0], [1], [0, 0, 1, 1], [], []>} : vector<8x32xf32>, vector<32x64xf32>, vector<8x64xf32> -> vector<8x64xf32>
    %160 = arith.addf %153, %159 : vector<8x64xf32>
    %c3_169 = arith.constant 3 : index
    %c0_170 = arith.constant 0 : index
    %c0_171 = arith.constant 0 : index
    %161 = vector.load %arg3[%c3_169, %c0_170, %c0_171] : memref<9x8x24xf32, #tpu.memory_space<vmem>>, vector<1x8x24xf32>
    %162 = vector.shape_cast %161 : vector<1x8x24xf32> to vector<8x24xf32>
    %cst_172 = arith.constant dense<0.000000e+00> : vector<8x32xf32>
    %163 = tpu.matmul %162, %138, %cst_172 {dimension_numbers = #tpu.dot_dimension_numbers<[1], [0], [0], [1], [0, 0, 1, 1], [], []>} : vector<8x24xf32>, vector<24x32xf32>, vector<8x32xf32> -> vector<8x32xf32>
    %c3_173 = arith.constant 3 : index
    %c0_174 = arith.constant 0 : index
    %c0_175 = arith.constant 0 : index
    %164 = vector.load %arg8[%c3_173, %c0_174, %c0_175] : memref<9x32x64xf32, #tpu.memory_space<vmem>>, vector<1x32x64xf32>
    %165 = vector.shape_cast %164 : vector<1x32x64xf32> to vector<32x64xf32>
    %cst_176 = arith.constant dense<0.000000e+00> : vector<8x64xf32>
    %166 = tpu.matmul %163, %165, %cst_176 {dimension_numbers = #tpu.dot_dimension_numbers<[1], [0], [0], [1], [0, 0, 1, 1], [], []>} : vector<8x32xf32>, vector<32x64xf32>, vector<8x64xf32> -> vector<8x64xf32>
    %167 = arith.addf %160, %166 : vector<8x64xf32>
    %c4_177 = arith.constant 4 : index
    %c0_178 = arith.constant 0 : index
    %c0_179 = arith.constant 0 : index
    %168 = vector.load %arg3[%c4_177, %c0_178, %c0_179] : memref<9x8x24xf32, #tpu.memory_space<vmem>>, vector<1x8x24xf32>
    %169 = vector.shape_cast %168 : vector<1x8x24xf32> to vector<8x24xf32>
    %cst_180 = arith.constant dense<0.000000e+00> : vector<8x32xf32>
    %170 = tpu.matmul %169, %138, %cst_180 {dimension_numbers = #tpu.dot_dimension_numbers<[1], [0], [0], [1], [0, 0, 1, 1], [], []>} : vector<8x24xf32>, vector<24x32xf32>, vector<8x32xf32> -> vector<8x32xf32>
    %c4_181 = arith.constant 4 : index
    %c0_182 = arith.constant 0 : index
    %c0_183 = arith.constant 0 : index
    %171 = vector.load %arg8[%c4_181, %c0_182, %c0_183] : memref<9x32x64xf32, #tpu.memory_space<vmem>>, vector<1x32x64xf32>
    %172 = vector.shape_cast %171 : vector<1x32x64xf32> to vector<32x64xf32>
    %cst_184 = arith.constant dense<0.000000e+00> : vector<8x64xf32>
    %173 = tpu.matmul %170, %172, %cst_184 {dimension_numbers = #tpu.dot_dimension_numbers<[1], [0], [0], [1], [0, 0, 1, 1], [], []>} : vector<8x32xf32>, vector<32x64xf32>, vector<8x64xf32> -> vector<8x64xf32>
    %174 = arith.addf %167, %173 : vector<8x64xf32>
    %c5_185 = arith.constant 5 : index
    %c0_186 = arith.constant 0 : index
    %c0_187 = arith.constant 0 : index
    %175 = vector.load %arg3[%c5_185, %c0_186, %c0_187] : memref<9x8x24xf32, #tpu.memory_space<vmem>>, vector<1x8x24xf32>
    %176 = vector.shape_cast %175 : vector<1x8x24xf32> to vector<8x24xf32>
    %cst_188 = arith.constant dense<0.000000e+00> : vector<8x32xf32>
    %177 = tpu.matmul %176, %138, %cst_188 {dimension_numbers = #tpu.dot_dimension_numbers<[1], [0], [0], [1], [0, 0, 1, 1], [], []>} : vector<8x24xf32>, vector<24x32xf32>, vector<8x32xf32> -> vector<8x32xf32>
    %c5_189 = arith.constant 5 : index
    %c0_190 = arith.constant 0 : index
    %c0_191 = arith.constant 0 : index
    %178 = vector.load %arg8[%c5_189, %c0_190, %c0_191] : memref<9x32x64xf32, #tpu.memory_space<vmem>>, vector<1x32x64xf32>
    %179 = vector.shape_cast %178 : vector<1x32x64xf32> to vector<32x64xf32>
    %cst_192 = arith.constant dense<0.000000e+00> : vector<8x64xf32>
    %180 = tpu.matmul %177, %179, %cst_192 {dimension_numbers = #tpu.dot_dimension_numbers<[1], [0], [0], [1], [0, 0, 1, 1], [], []>} : vector<8x32xf32>, vector<32x64xf32>, vector<8x64xf32> -> vector<8x64xf32>
    %181 = arith.addf %174, %180 : vector<8x64xf32>
    %c6_193 = arith.constant 6 : index
    %c0_194 = arith.constant 0 : index
    %c0_195 = arith.constant 0 : index
    %182 = vector.load %arg3[%c6_193, %c0_194, %c0_195] : memref<9x8x24xf32, #tpu.memory_space<vmem>>, vector<1x8x24xf32>
    %183 = vector.shape_cast %182 : vector<1x8x24xf32> to vector<8x24xf32>
    %cst_196 = arith.constant dense<0.000000e+00> : vector<8x32xf32>
    %184 = tpu.matmul %183, %138, %cst_196 {dimension_numbers = #tpu.dot_dimension_numbers<[1], [0], [0], [1], [0, 0, 1, 1], [], []>} : vector<8x24xf32>, vector<24x32xf32>, vector<8x32xf32> -> vector<8x32xf32>
    %c6_197 = arith.constant 6 : index
    %c0_198 = arith.constant 0 : index
    %c0_199 = arith.constant 0 : index
    %185 = vector.load %arg8[%c6_197, %c0_198, %c0_199] : memref<9x32x64xf32, #tpu.memory_space<vmem>>, vector<1x32x64xf32>
    %186 = vector.shape_cast %185 : vector<1x32x64xf32> to vector<32x64xf32>
    %cst_200 = arith.constant dense<0.000000e+00> : vector<8x64xf32>
    %187 = tpu.matmul %184, %186, %cst_200 {dimension_numbers = #tpu.dot_dimension_numbers<[1], [0], [0], [1], [0, 0, 1, 1], [], []>} : vector<8x32xf32>, vector<32x64xf32>, vector<8x64xf32> -> vector<8x64xf32>
    %188 = arith.addf %181, %187 : vector<8x64xf32>
    %c7_201 = arith.constant 7 : index
    %c0_202 = arith.constant 0 : index
    %c0_203 = arith.constant 0 : index
    %189 = vector.load %arg3[%c7_201, %c0_202, %c0_203] : memref<9x8x24xf32, #tpu.memory_space<vmem>>, vector<1x8x24xf32>
    %190 = vector.shape_cast %189 : vector<1x8x24xf32> to vector<8x24xf32>
    %cst_204 = arith.constant dense<0.000000e+00> : vector<8x32xf32>
    %191 = tpu.matmul %190, %138, %cst_204 {dimension_numbers = #tpu.dot_dimension_numbers<[1], [0], [0], [1], [0, 0, 1, 1], [], []>} : vector<8x24xf32>, vector<24x32xf32>, vector<8x32xf32> -> vector<8x32xf32>
    %c7_205 = arith.constant 7 : index
    %c0_206 = arith.constant 0 : index
    %c0_207 = arith.constant 0 : index
    %192 = vector.load %arg8[%c7_205, %c0_206, %c0_207] : memref<9x32x64xf32, #tpu.memory_space<vmem>>, vector<1x32x64xf32>
    %193 = vector.shape_cast %192 : vector<1x32x64xf32> to vector<32x64xf32>
    %cst_208 = arith.constant dense<0.000000e+00> : vector<8x64xf32>
    %194 = tpu.matmul %191, %193, %cst_208 {dimension_numbers = #tpu.dot_dimension_numbers<[1], [0], [0], [1], [0, 0, 1, 1], [], []>} : vector<8x32xf32>, vector<32x64xf32>, vector<8x64xf32> -> vector<8x64xf32>
    %195 = arith.addf %188, %194 : vector<8x64xf32>
    %c8_209 = arith.constant 8 : index
    %c0_210 = arith.constant 0 : index
    %c0_211 = arith.constant 0 : index
    %196 = vector.load %arg3[%c8_209, %c0_210, %c0_211] : memref<9x8x24xf32, #tpu.memory_space<vmem>>, vector<1x8x24xf32>
    %197 = vector.shape_cast %196 : vector<1x8x24xf32> to vector<8x24xf32>
    %cst_212 = arith.constant dense<0.000000e+00> : vector<8x32xf32>
    %198 = tpu.matmul %197, %138, %cst_212 {dimension_numbers = #tpu.dot_dimension_numbers<[1], [0], [0], [1], [0, 0, 1, 1], [], []>} : vector<8x24xf32>, vector<24x32xf32>, vector<8x32xf32> -> vector<8x32xf32>
    %c8_213 = arith.constant 8 : index
    %c0_214 = arith.constant 0 : index
    %c0_215 = arith.constant 0 : index
    %199 = vector.load %arg8[%c8_213, %c0_214, %c0_215] : memref<9x32x64xf32, #tpu.memory_space<vmem>>, vector<1x32x64xf32>
    %200 = vector.shape_cast %199 : vector<1x32x64xf32> to vector<32x64xf32>
    %cst_216 = arith.constant dense<0.000000e+00> : vector<8x64xf32>
    %201 = tpu.matmul %198, %200, %cst_216 {dimension_numbers = #tpu.dot_dimension_numbers<[1], [0], [0], [1], [0, 0, 1, 1], [], []>} : vector<8x32xf32>, vector<32x64xf32>, vector<8x64xf32> -> vector<8x64xf32>
    %202 = arith.addf %195, %201 : vector<8x64xf32>
    %c0_217 = arith.constant 0 : index
    %c0_218 = arith.constant 0 : index
    %203 = vector.load %arg9[%c0_217, %c0_218] : memref<1x64xf32, #tpu.memory_space<vmem>>, vector<1x64xf32>
    %204 = vector.broadcast %203 : vector<1x64xf32> to vector<8x64xf32>
    %205 = arith.addf %202, %204 : vector<8x64xf32>
    %cst_219 = arith.constant 0.000000e+00 : f32
    %206 = vector.broadcast %cst_219 : f32 to vector<8x64xf32>
    %207 = arith.maximumf %205, %206 : vector<8x64xf32>
    %c0_220 = arith.constant 0 : index
    %c0_221 = arith.constant 0 : index
    %208 = vector.load %arg10[%c0_220, %c0_221] : memref<64x128xf32, #tpu.memory_space<vmem>>, vector<64x128xf32>
    %cst_222 = arith.constant dense<0.000000e+00> : vector<8x128xf32>
    %209 = tpu.matmul %207, %208, %cst_222 {dimension_numbers = #tpu.dot_dimension_numbers<[1], [0], [0], [1], [0, 0, 1, 1], [], []>} : vector<8x64xf32>, vector<64x128xf32>, vector<8x128xf32> -> vector<8x128xf32>
    %c0_223 = arith.constant 0 : index
    %c0_224 = arith.constant 0 : index
    %210 = vector.load %arg11[%c0_223, %c0_224] : memref<1x128xf32, #tpu.memory_space<vmem>>, vector<1x128xf32>
    %211 = vector.broadcast %210 : vector<1x128xf32> to vector<8x128xf32>
    %212 = arith.addf %209, %211 : vector<8x128xf32>
    %213 = tpu.iota {dimensions = array<i32: 1>} : vector<8x128xi32>
    %c6_i32 = arith.constant 6 : i32
    %214 = vector.broadcast %c6_i32 : i32 to vector<8x128xi32>
    %215 = arith.cmpi slt, %213, %214 : vector<8x128xi32>
    %c6_i32_225 = arith.constant 6 : i32
    %216 = vector.broadcast %c6_i32_225 : i32 to vector<8x128xi32>
    %217 = arith.cmpi sge, %213, %216 : vector<8x128xi32>
    %c12_i32 = arith.constant 12 : i32
    %218 = vector.broadcast %c12_i32 : i32 to vector<8x128xi32>
    %219 = arith.cmpi slt, %213, %218 : vector<8x128xi32>
    %220 = arith.andi %217, %219 : vector<8x128xi1>
    %cst_226 = arith.constant -1.000000e+30 : f32
    %221 = vector.broadcast %cst_226 : f32 to vector<8x128xf32>
    %222 = arith.select %215, %212, %221 : vector<8x128xi1>, vector<8x128xf32>
    %cst_227 = arith.constant dense<0xFF800000> : vector<8xf32>
    %223 = vector.multi_reduction <maximumf>, %222, %cst_227 [1] : vector<8x128xf32> to vector<8xf32>
    %224 = vector.shape_cast %223 : vector<8xf32> to vector<8x1xf32>
    %225 = vector.broadcast %224 : vector<8x1xf32> to vector<8x128xf32>
    %226 = arith.subf %212, %225 : vector<8x128xf32>
    %227 = math.exp %226 : vector<8x128xf32>
    %cst_228 = arith.constant 0.000000e+00 : f32
    %228 = vector.broadcast %cst_228 : f32 to vector<8x128xf32>
    %229 = arith.select %215, %227, %228 : vector<8x128xi1>, vector<8x128xf32>
    %cst_229 = arith.constant dense<0.000000e+00> : vector<8xf32>
    %230 = vector.multi_reduction <add>, %229, %cst_229 [1] : vector<8x128xf32> to vector<8xf32>
    %231 = vector.shape_cast %230 : vector<8xf32> to vector<8x1xf32>
    %232 = math.log %231 : vector<8x1xf32>
    %233 = arith.addf %224, %232 : vector<8x1xf32>
    %cst_230 = arith.constant 0.000000e+00 : f32
    %234 = vector.shape_cast %233 : vector<8x1xf32> to vector<8x1xf32>
    %235 = vector.broadcast %234 : vector<8x1xf32> to vector<8x128xf32>
    %236 = vector.broadcast %cst_230 : f32 to vector<8x128xf32>
    %237 = arith.select %220, %235, %236 : vector<8x128xi1>, vector<8x128xf32>
    %238 = arith.subf %212, %237 : vector<8x128xf32>
    %c0_231 = arith.constant 0 : index
    %c0_232 = arith.constant 0 : index
    %239 = vector.load %arg12[%c0_231, %c0_232] : memref<8x128xf32, #tpu.memory_space<vmem>>, vector<8x128xf32>
    tpu.vector_store %arg12[%c0_231, %c0_232], %238 {strides = array<i32>} : memref<8x128xf32, #tpu.memory_space<vmem>>, vector<8x128xf32>,
    return
  }
}

</mosaic_0001>

<bundles_post_ra>
// kernel: actor_critic_forward.1
= control target key start
LH: loop header
LB: loop body
LE: loop exit
PB: predicated region body
PF: predicated region fallthrough
CT: control target
= control target key end

     0   :  { %17 = vsyncpa [#allocation3], 0  ;;  %s8523_s0 = inlined_call_operand.vmem [shape: f32[512,4], index: 0, kind: input, shape index: {}]   ;;  %s8524_s1 = inlined_call_operand.hbm [shape: f32[9,104,512], index: 1, kind: input, shape index: {}]   ;;  %s8525_s2 = inlined_call_operand.hbm [shape: f32[9,24,104], index: 2, kind: input, shape index: {}]   ;;  %s8526_s3 = inlined_call_operand.hbm [shape: f32[9,8,24], index: 3, kind: input, shape index: {}]   ;;  %s8527_s4 = inlined_call_operand.hbm [shape: f32[9,4,16], index: 4, kind: input, shape index: {}]   ;;  %s8528_s5 = inlined_call_operand.hbm [shape: f32[1,16], index: 5, kind: input, shape index: {}]   ;;  %s8529_s6 = inlined_call_operand.hbm [shape: f32[9,16,32], index: 6, kind: input, shape index: {}]   ;;  %s8530_s7 = inlined_call_operand.hbm [shape: f32[1,32], index: 7, kind: input, shape index: {}]   ;;  %s8531_s8 = inlined_call_operand.hbm [shape: f32[9,32,64], index: 8, kind: input, shape index: {}]   ;;  %s8532_s9 = inlined_call_operand.hbm [shape: f32[1,64], index: 9, kind: input, shape index: {}]   ;;  %s8533_s10 = inlined_call_operand.hbm [shape: f32[64,128], index: 10, kind: input, shape index: {}]   ;;  %s8534_s11 = inlined_call_operand.hbm [shape: f32[1,128], index: 11, kind: input, shape index: {}]   ;;  %s8535_s12 = inlined_call_operand.vmem [shape: f32[8,128], index: 12, kind: output, shape index: {}]  }
   0x1   :  { %18 = vsyncpa [#allocation5], 0 }
   0x2   :  { %19 = vsyncpa [#allocation8], 0 }
   0x3   :  { %20 = vsyncpa [#allocation11], 0 }
   0x4   :  { %21 = vsyncpa [#allocation14], 0  ;;  %s42_s23 = sshll.u32 %s8525_s2, 4  ;;  %s43_s23 = int_to_ptr.hbm [resolvable:$true] %s42_s23 }
   0x5   :  { %22 = vsyncpa [#allocation17], 0  ;;  %s5771_s24 = smov [#allocation4]   ;;  %s68_s28 = sshll.u32 %s8527_s4, 4  ;;  %s69_s28 = int_to_ptr.hbm [resolvable:$true] %s68_s28 }
   0x6   :  { %s44_s25 = sshll.u32 %s5771_s24, 4  ;;  %s5772_s29 = smov 128   ;;  %s45_s25 = int_to_ptr.vmem [resolvable:$true] %s44_s25 }
   0x7   :  { %s5773_s30 = smov 8   ;;  %s5774_s13 = smov [#allocation7]  }
   0x8   :  { %50 = dma.hbm_to_vmem [thread:$0]  %s43_s23, 3456, %s45_s25, [#allocation5], %s5772_s29, %s5772_s29, %s5773_s30  }
   0x9   :  { %s70_s14 = sshll.u32 %s5774_s13, 4  ;;  %s5775_s2 = smov 64   ;;  %s71_s14 = int_to_ptr.vmem [resolvable:$true] %s70_s14 }
   0xa   :  { %s5776_s15 = smov 4   ;;  %s92_s18 = sshll.u32 %s8529_s6, 4  ;;  %s93_s18 = int_to_ptr.hbm [resolvable:$true] %s92_s18 }
   0xb   :  { %76 = dma.hbm_to_vmem [thread:$0]  %s69_s28, 576, %s71_s14, [#allocation8], %s5775_s2, %s5775_s2, %s5776_s15  }
   0xc   :  { %s5777_s19 = smov [#allocation10]   ;;  %s116_s22 = sshll.u32 %s8531_s8, 4  ;;  %s117_s22 = int_to_ptr.hbm [resolvable:$true] %s116_s22 }
   0xd   :  { %s94_s4 = sshll.u32 %s5777_s19, 4  ;;  %s5778_s23 = smov [#allocation13]   ;;  %s95_s4 = int_to_ptr.vmem [resolvable:$true] %s94_s4 }
   0xe   :  { %100 = dma.hbm_to_vmem [thread:$0]  %s93_s18, 2304, %s95_s4, [#allocation11], %s5772_s29, %s5772_s29, %s5773_s30  }
   0xf   :  { %s118_s24 = sshll.u32 %s5778_s23, 4  ;;  %s140_s27 = sshll.u32 %s8533_s10, 4  ;;  %s119_s24 = int_to_ptr.vmem [resolvable:$true] %s118_s24  ;;  %s141_s27 = int_to_ptr.hbm [resolvable:$true] %s140_s27 }
  0x10   :  { %124 = dma.hbm_to_vmem [thread:$0]  %s117_s22, 4608, %s119_s24, [#allocation14], %s5772_s29, %s5772_s29, %s5773_s30  }
  0x11   :  { %s29_s8 = sshll.u32 %s8524_s1, 4  ;;  %s5779_s13 = smov [#allocation16]   ;;  %s30_s8 = int_to_ptr.hbm [resolvable:$true] %s29_s8 }
  0x12   :  { %s142_s14 = sshll.u32 %s5779_s13, 4  ;;  %s5780_s2 = smov [#allocation2]   ;;  %s143_s14 = int_to_ptr.vmem [resolvable:$true] %s142_s14 }
  0x13   :  { %148 = dma.hbm_to_vmem [thread:$0]  %s141_s27, 1024, %s143_s14, [#allocation17], %s5772_s29, %s5772_s29, %s5773_s30  }
  0x14   :  { %s31_s10 = sshll.u32 %s5780_s2, 4  ;;  %s5781_s15 = smov 512   ;;  %s32_s10 = int_to_ptr.vmem [resolvable:$true] %s31_s10 }
  0x15   :  { %s5782_s16 = smov 32   ;;  %s55_s19 = sshll.u32 %s8526_s3, 4  ;;  %s56_s19 = int_to_ptr.hbm [resolvable:$true] %s55_s19 }
  0x16   :  { %37 = dma.hbm_to_vmem [thread:$0]  %s30_s8, 59904, %s32_s10, [#allocation3], %s5781_s15, %s5781_s15, %s5782_s16  }
  0x17   :  { %s5783_s1 = smov [#allocation6]   ;;  %s82_s22 = sshll.u32 %s8528_s5, 4  ;;  %s83_s22 = int_to_ptr.hbm [resolvable:$true] %s82_s22 }
  0x18   :  { %s57_s4 = sshll.u32 %s5783_s1, 4  ;;  %s5784_s23 = smov [#allocation9]   ;;  %s58_s4 = int_to_ptr.vmem [resolvable:$true] %s57_s4 }
  0x19   :  { %63 = dma.hbm_to_vmem [thread:$0]  %s56_s19, 1152, %s58_s4, [#allocation5], %s5772_s29, %s5772_s29, %s5773_s30  }
  0x1a   :  { %s84_s24 = sshll.u32 %s5784_s23, 4  ;;  %s106_s27 = sshll.u32 %s8530_s7, 4  ;;  %s85_s24 = int_to_ptr.vmem [resolvable:$true] %s84_s24  ;;  %s107_s27 = int_to_ptr.hbm [resolvable:$true] %s106_s27 }
  0x1b   :  { %87 = dma.hbm_to_vmem [thread:$0]  %s83_s22, 16, %s85_s24, [#allocation8]  }
  0x1c   :  { %s130_s28 = sshll.u32 %s8532_s9, 4  ;;  %s5785_s8 = smov [#allocation12]   ;;  %s131_s28 = int_to_ptr.hbm [resolvable:$true] %s130_s28 }
  0x1d   :  { %s108_s5 = sshll.u32 %s5785_s8, 4  ;;  %s5786_s29 = smov [#allocation15]   ;;  %s109_s5 = int_to_ptr.vmem [resolvable:$true] %s108_s5 }
  0x1e   :  { %111 = dma.hbm_to_vmem [thread:$0]  %s107_s27, 16, %s109_s5, [#allocation11]  }
  0x1f   :  { %s132_s30 = sshll.u32 %s5786_s29, 4  ;;  %s154_s2 = sshll.u32 %s8534_s11, 4  ;;  %s133_s30 = int_to_ptr.vmem [resolvable:$true] %s132_s30  ;;  %s155_s2 = int_to_ptr.hbm [resolvable:$true] %s154_s2 }
  0x20   :  { %135 = dma.hbm_to_vmem [thread:$0]  %s131_s28, 16, %s133_s30, [#allocation14]  }
  0x21   :  { %s5787_s7 = smov [#allocation18]  }
  0x22   :  { %s156_s10 = sshll.u32 %s5787_s7, 4  ;;  %s157_s10 = int_to_ptr.vmem [resolvable:$true] %s156_s10 }
  0x23   :  { %159 = dma.hbm_to_vmem [thread:$0]  %s155_s2, 16, %s157_s10, [#allocation17]  }
  0x24   :  { %5759 = dma.done.wait [#allocation3], 59904  }
  0x25   :  { %5760 = vsyncadd [#allocation3], 4294907392 }
  0x26   :  { %5761 = dma.done.wait [#allocation5], 4608  }
  0x27   :  { %5762 = vsyncadd [#allocation5], 4294962688 }
  0x28   :  { %5763 = dma.done.wait [#allocation8], 592  }
  0x29   :  { %5764 = vsyncadd [#allocation8], 4294966704 }
  0x2a   :  { %5765 = dma.done.wait [#allocation11], 2320  }
  0x2b   :  { %5766 = vsyncadd [#allocation11], 4294964976 }
  0x2c   :  { %5767 = dma.done.wait [#allocation14], 4624  }
  0x2d   :  { %5768 = vsyncadd [#allocation14], 4294962672 }
  0x2e   :  { %5769 = dma.done.wait [#allocation17], 1040  }
  0x2f   :  { %5770 = vsyncadd [#allocation17], 4294966256  ;;  %v5904_v0 = vld [vmem:[%s8523_s0 + $0xf8] sm:$0xff]  ;;  %v5914_v2 = vld [vmem:[%s8523_s0 + $0xf0] sm:$0xff]  ;;  %vm864_vm0 = vcmask 1043456   ;;  %vm824_vm1 = vcmask 31744  }
  0x30   :  { %v5909_v1 = vld [vmem:[%s8523_s0 + $0x178] sm:$0xff]  ;;  %376 = vmatpush.msra.mxu1 %v5904_v0  ;;  %v5921_v3 = vld [vmem:[%s8523_s0 + $0x170] sm:$0xff]  ;;  %v5938_v6 = vld [vmem:[%s8523_s0 + $0xe8] sm:$0xff]  ;;  %vm3785_vm2 = vcmask 850944   ;;  %vm3865_vm3 = vcmask 130048   ;;  %vm4507_vm4 = vcmask 195584  }
  0x31   :  { %432 = vmatpush.msra.mxu2 %v5909_v1  ;;  %v5926_v4 = vld [vmem:[%s8523_s0 + $0x1f8] sm:$0xff]  ;;  %v5943_v7 = vld [vmem:[%s8523_s0 + $0x168] sm:$0xff]  ;;  %v5948_v8 = vld [vmem:[%s8523_s0 + $0x1f0] sm:$0xff]  ;;  %vm4565_vm5 = vcmask 261120   ;;  %vm5008_vm6 = vcmask 523264  }
  0x32   :  { %v5931_v5 = vld [vmem:[%s8523_s0 + $0x78] sm:$0xff]  ;;  %488 = vmatpush.msra.mxu3 %v5926_v4  ;;  %377 = vmatpush.msra.mxu1 %v5914_v2  ;;  %v5955_v9 = vld [vmem:[%s8523_s0 + $0x70] sm:$0xff]  ;;  %v5960_v10 = vld [vmem:[%s8523_s0 + $0xe0] sm:$0xff] }
  0x33   :  { %320 = vmatpush.msra.mxu0 %v5931_v5  ;;  %433 = vmatpush.msra.mxu2 %v5921_v3  ;;  %v5967_v11 = vld [vmem:[%s8523_s0 + $0x160] sm:$0xff]  ;;  %v5972_v12 = vld [vmem:[%s8523_s0 + $0x1e8] sm:$0xff]  ;;  %v5996_v16 = vld [vmem:[%s8523_s0 + $0xd8] sm:$0xff] }
  0x34   :  { %489 = vmatpush.msra.mxu3 %v5948_v8  ;;  %v5977_v13 = vld [vmem:[%s8523_s0 + $0x68] sm:$0xff]  ;;  %378 = vmatpush.msra.mxu1 %v5938_v6  ;;  %v5984_v14 = vld [vmem:[%s8523_s0 + $0x1e0] sm:$0xff]  ;;  %v6001_v17 = vld [vmem:[%s8523_s0 + $0x158] sm:$0xff] }
  0x35   :  { %321 = vmatpush.msra.mxu0 %v5955_v9  ;;  %434 = vmatpush.msra.mxu2 %v5943_v7  ;;  %v5989_v15 = vld [vmem:[%s8523_s0 + $0x60] sm:$0xff]  ;;  %v6008_v18 = vld [vmem:[%s8523_s0 + $0x1d8] sm:$0xff]  ;;  %v6020_v20 = vld [vmem:[%s8523_s0 + $0xd0] sm:$0xff] }
  0x36   :  { %490 = vmatpush.msra.mxu3 %v5972_v12  ;;  %379 = vmatpush.msra.mxu1 %v5960_v10  ;;  %v6013_v19 = vld [vmem:[%s8523_s0 + $0x58] sm:$0xff]  ;;  %v6025_v21 = vld [vmem:[%s8523_s0 + $0x150] sm:$0xff]  ;;  %v6044_v24 = vld [vmem:[%s8523_s0 + $0xc8] sm:$0xff] }
  0x37   :  { %322 = vmatpush.msra.mxu0 %v5977_v13  ;;  %435 = vmatpush.msra.mxu2 %v5967_v11  ;;  %v6032_v22 = vld [vmem:[%s8523_s0 + $0x1d0] sm:$0xff]  ;;  %v6049_v25 = vld [vmem:[%s8523_s0 + $0x148] sm:$0xff]  ;;  %v6068_v28 = vld [vmem:[%s8523_s0 + $0xc0] sm:$0xff] }
  0x38   :  { %491 = vmatpush.msra.mxu3 %v5984_v14  ;;  %380 = vmatpush.msra.mxu1 %v5996_v16  ;;  %v6037_v23 = vld [vmem:[%s8523_s0 + $0x50] sm:$0xff]  ;;  %v6056_v26 = vld [vmem:[%s8523_s0 + $0x1c8] sm:$0xff]  ;;  %v6073_v29 = vld [vmem:[%s8523_s0 + $0x140] sm:$0xff] }
  0x39   :  { %323 = vmatpush.msra.mxu0 %v5989_v15  ;;  %436 = vmatpush.msra.mxu2 %v6001_v17  ;;  %v6061_v27 = vld [vmem:[%s8523_s0 + $0x48] sm:$0xff]  ;;  %v6080_v30 = vld [vmem:[%s8523_s0 + $0x1c0] sm:$0xff]  ;;  %v6092_v32 = vld [vmem:[%s8523_s0 + $0xb8] sm:$0xff] }
  0x3a   :  { %492 = vmatpush.msra.mxu3 %v6008_v18  ;;  %381 = vmatpush.msra.mxu1 %v6020_v20  ;;  %v6085_v31 = vld [vmem:[%s8523_s0 + $0x40] sm:$0xff]  ;;  %v6097_v33 = vld [vmem:[%s8523_s0 + $0x138] sm:$0xff]  ;;  %v6116_v36 = vld [vmem:[%s8523_s0 + $0xb0] sm:$0xff] }
  0x3b   :  { %324 = vmatpush.msra.mxu0 %v6013_v19  ;;  %437 = vmatpush.msra.mxu2 %v6025_v21  ;;  %v6104_v34 = vld [vmem:[%s8523_s0 + $0x1b8] sm:$0xff]  ;;  %v6121_v37 = vld [vmem:[%s8523_s0 + $0x130] sm:$0xff]  ;;  %v6140_v40 = vld [vmem:[%s8523_s0 + $0xa8] sm:$0xff] }
  0x3c   :  { %493 = vmatpush.msra.mxu3 %v6032_v22  ;;  %382 = vmatpush.msra.mxu1 %v6044_v24  ;;  %v6109_v35 = vld [vmem:[%s8523_s0 + $0x38] sm:$0xff]  ;;  %8598 = vst [vmem:[#allocation25_spill] sm:$0xff] %v6121_v37  ;;  %v6128_v38 = vld [vmem:[%s8523_s0 + $0x1b0] sm:$0xff]  ;;  %v6145_v41 = vld [vmem:[%s8523_s0 + $0x128] sm:$0xff] }
  0x3d   :  { %325 = vmatpush.msra.mxu0 %v6037_v23  ;;  %438 = vmatpush.msra.mxu2 %v6049_v25  ;;  %v6133_v39 = vld [vmem:[%s8523_s0 + $0x30] sm:$0xff]  ;;  %8599 = vst [vmem:[#allocation26_spill] sm:$0xff] %v6145_v41  ;;  %v6152_v42 = vld [vmem:[%s8523_s0 + $0x1a8] sm:$0xff]  ;;  %v6164_v44 = vld [vmem:[%s8523_s0 + $0xa0] sm:$0xff] }
  0x3e   :  { %494 = vmatpush.msra.mxu3 %v6056_v26  ;;  %383 = vmatpush.msra.mxu1 %v6068_v28  ;;  %v6157_v43 = vld [vmem:[%s8523_s0 + $0x28] sm:$0xff]  ;;  %v6169_v45 = vld [vmem:[%s8523_s0 + $0x120] sm:$0xff]  ;;  %v6188_v48 = vld [vmem:[%s8523_s0 + $0x98] sm:$0xff] }
  0x3f   :  { %326 = vmatpush.msra.mxu0 %v6061_v27  ;;  %439 = vmatpush.msra.mxu2 %v6073_v29  ;;  %8600 = vst [vmem:[#allocation27_spill] sm:$0xff] %v6169_v45  ;;  %v6176_v46 = vld [vmem:[%s8523_s0 + $0x1a0] sm:$0xff]  ;;  %v6193_v49 = vld [vmem:[%s8523_s0 + $0x118] sm:$0xff]  ;;  %v6212_v52 = vld [vmem:[%s8523_s0 + $0x90] sm:$0xff] }
  0x40   :  { %495 = vmatpush.msra.mxu3 %v6080_v30  ;;  %384 = vmatpush.msra.mxu1 %v6092_v32  ;;  %v6181_v47 = vld [vmem:[%s8523_s0 + $0x20] sm:$0xff]  ;;  %8601 = vst [vmem:[#allocation28_spill] sm:$0xff] %v6193_v49  ;;  %v6200_v50 = vld [vmem:[%s8523_s0 + $0x198] sm:$0xff]  ;;  %v6217_v53 = vld [vmem:[%s8523_s0 + $0x110] sm:$0xff] }
  0x41   :  { %327 = vmatpush.msra.mxu0 %v6085_v31  ;;  %440 = vmatpush.msra.mxu2 %v6097_v33  ;;  %v6205_v51 = vld [vmem:[%s8523_s0 + $0x18] sm:$0xff]  ;;  %8602 = vst [vmem:[#allocation29_spill] sm:$0xff] %v6217_v53  ;;  %v6224_v54 = vld [vmem:[%s8523_s0 + $0x88] sm:$0xff]  ;;  %v6229_v55 = vld [vmem:[%s8523_s0 + $0x190] sm:$0xff] }
  0x42   :  { %496 = vmatpush.msra.mxu3 %v6104_v34  ;;  %385 = vmatpush.msra.mxu1 %v6116_v36  ;;  %8603 = vst [vmem:[#allocation30_spill] sm:$0xff] %v6224_v54  ;;  %v6234_v56 = vld [vmem:[%s8523_s0 + $0x10] sm:$0xff]  ;;  %v6241_v57 = vld [vmem:[%s8523_s0 + $0x108] sm:$0xff]  ;;  %v6260_v60 = vld [vmem:[%s8523_s0 + $0x80] sm:$0xff] }
  0x43   :  { %328 = vmatpush.msra.mxu0 %v6109_v35  ;;  %441 = vmatpush.msra.mxu2 %v6121_v37  ;;  %8604 = vst [vmem:[#allocation31_spill] sm:$0xff] %v6229_v55  ;;  %v6246_v58 = vld [vmem:[%s8523_s0 + $0x188] sm:$0xff]  ;;  %v6265_v61 = vld [vmem:[%s8523_s0 + $0x100] sm:$0xff]  ;;  %v270_v63 = vld [vmem:[#allocation2 + $0x10] sm:$0xff] }
  0x44   :  { %497 = vmatpush.msra.mxu3 %v6128_v38  ;;  %386 = vmatpush.msra.mxu1 %v6140_v40  ;;  %8605 = vst [vmem:[#allocation32_spill] sm:$0xff] %v6234_v56  ;;  %v6251_v59 = vld [vmem:[%s8523_s0 + $0x8] sm:$0xff] }
  0x45   :  { %329 = vmatpush.msra.mxu0 %v6133_v39  ;;  %442 = vmatpush.msra.mxu2 %v6145_v41  ;;  %8606 = vst [vmem:[#allocation33_spill] sm:$0xff] %v6241_v57  ;;  %v269_v62 = vld [vmem:[#allocation2 + $0x8] sm:$0xff] }
  0x46   :  { %498 = vmatpush.msra.mxu3 %v6152_v42  ;;  %387 = vmatpush.msra.mxu1 %v6164_v44  ;;  %8607 = vst [vmem:[#allocation34_spill] sm:$0xff] %v6246_v58 }
  0x47   :  { %330 = vmatpush.msra.mxu0 %v6157_v43  ;;  %443 = vmatpush.msra.mxu2 %v6169_v45  ;;  %8608 = vst [vmem:[#allocation35_spill] sm:$0xff] %v6251_v59 }
  0x48   :  { %499 = vmatpush.msra.mxu3 %v6176_v46  ;;  %388 = vmatpush.msra.mxu1 %v6188_v48  ;;  %8609 = vst [vmem:[#allocation36_spill] sm:$0xff] %v6265_v61 }
  0x49   :  { %331 = vmatpush.msra.mxu0 %v6181_v47  ;;  %444 = vmatpush.msra.mxu2 %v6193_v49 }
  0x4a   :  { %500 = vmatpush.msra.mxu3 %v6200_v50  ;;  %389 = vmatpush.msra.mxu1 %v6212_v52 }
  0x4b   :  { %332 = vmatpush.msra.mxu0 %v6205_v51  ;;  %445 = vmatpush.msra.mxu2 %v6217_v53 }
  0x4c   :  { %501 = vmatpush.msra.mxu3 %v6229_v55  ;;  %390 = vmatpush.msra.mxu1 %v6224_v54  ;;  %v6279_v55 = vld [vmem:[%s8523_s0] sm:$0xff] }
  0x4d   :  { %333 = vmatpush.msra.mxu0 %v6234_v56  ;;  %446 = vmatpush.msra.mxu2 %v6241_v57  ;;  %v6274_v56 = vld [vmem:[%s8523_s0 + $0x180] sm:$0xff]  ;;  %v271_v57 = vld [vmem:[#allocation2 + $0x18] sm:$0xff] }
  0x4e   :  { %502 = vmatpush.msra.mxu3 %v6246_v58  ;;  %391 = vmatpush.msra.mxu1 %v6260_v60  ;;  %v268_v54 = vld [vmem:[#allocation2] sm:$0xff]  ;;  %v274_v58 = vld [vmem:[#allocation2 + $0x30] sm:$0xff] }
  0x4f   :  { %334 = vmatpush.msra.mxu0 %v6251_v59  ;;  %447 = vmatpush.msra.mxu2 %v6265_v61  ;;  %v273_v59 = vld [vmem:[#allocation2 + $0x28] sm:$0xff] }
  0x50   :  { %392 = vmatmul.f32.vlgmr.msra.gmra.mxu1 %v269_v62  ;;  %448 = vmatmul.f32.vlgmr.msra.gmra.mxu2 %v270_v63  ;;  %v277_v62 = vld [vmem:[#allocation2 + $0x48] sm:$0xff]  ;;  %v278_v63 = vld [vmem:[#allocation2 + $0x50] sm:$0xff] }
  0x51   :  { %503 = vmatpush.msra.mxu3 %v6274_v56  ;;  %335 = vmatpush.msra.mxu0 %v6279_v55 }
  0x52   :  { %504 = vmatmul.f32.vlgmr.msra.gmra.mxu3 %v271_v57  ;;  %336 = vmatmul.f32.vlgmr.msra.gmra.mxu0 %v268_v54  ;;  %v275_v57 = vld [vmem:[#allocation2 + $0x38] sm:$0xff]  ;;  %v272_v54 = vld [vmem:[#allocation2 + $0x20] sm:$0xff] }
  0x53   :  { %654 = vmatpush.msrb.mxu1 %v5904_v0  ;;  %710 = vmatpush.msrb.mxu2 %v5909_v1 }
  0x54   :  { %766 = vmatpush.msrb.mxu3 %v5926_v4  ;;  %598 = vmatpush.msrb.mxu0 %v5931_v5 }
  0x55   :  { %655 = vmatpush.msrb.mxu1 %v5914_v2  ;;  %711 = vmatpush.msrb.mxu2 %v5921_v3 }
  0x56   :  { %767 = vmatpush.msrb.mxu3 %v5948_v8  ;;  %599 = vmatpush.msrb.mxu0 %v5955_v9 }
  0x57   :  { %656 = vmatpush.msrb.mxu1 %v5938_v6  ;;  %712 = vmatpush.msrb.mxu2 %v5943_v7 }
  0x58   :  { %395 = vmatmul.f32.gmra.mxu1 %v273_v59  ;;  %451 = vmatmul.f32.gmra.mxu2 %v274_v58  ;;  %v279_v58 = vld [vmem:[#allocation2 + $0x58] sm:$0xff]  ;;  %v276_v59 = vld [vmem:[#allocation2 + $0x40] sm:$0xff] }
  0x59   :  { %657 = vmatpush.msrb.mxu1 %v5960_v10  ;;  %713 = vmatpush.msrb.mxu2 %v5967_v11 }
  0x5a   :  { %507 = vmatmul.f32.gmra.mxu3 %v275_v57  ;;  %339 = vmatmul.f32.gmra.mxu0 %v272_v54  ;;  %v281_v57 = vld [vmem:[#allocation2 + $0x68] sm:$0xff]  ;;  %v282_v54 = vld [vmem:[#allocation2 + $0x70] sm:$0xff] }
  0x5b   :  { %768 = vmatpush.msrb.mxu3 %v5972_v12  ;;  %600 = vmatpush.msrb.mxu0 %v5977_v13 }
  0x5c   :  { %658 = vmatpush.msrb.mxu1 %v5996_v16  ;;  %714 = vmatpush.msrb.mxu2 %v6001_v17 }
  0x5d   :  { %769 = vmatpush.msrb.mxu3 %v5984_v14  ;;  %601 = vmatpush.msrb.mxu0 %v5989_v15 }
  0x5e   :  { %659 = vmatpush.msrb.mxu1 %v6020_v20  ;;  %715 = vmatpush.msrb.mxu2 %v6025_v21 }
  0x5f   :  { %770 = vmatpush.msrb.mxu3 %v6008_v18  ;;  %602 = vmatpush.msrb.mxu0 %v6013_v19 }
  0x60   :  { %398 = vmatmul.f32.gmra.mxu1 %v277_v62  ;;  %454 = vmatmul.f32.gmra.mxu2 %v278_v63  ;;  %v283_v62 = vld [vmem:[#allocation2 + $0x78] sm:$0xff]  ;;  %v280_v63 = vld [vmem:[#allocation2 + $0x60] sm:$0xff] }
  0x61   :  { %660 = vmatpush.msrb.mxu1 %v6044_v24  ;;  %716 = vmatpush.msrb.mxu2 %v6049_v25 }
  0x62   :  { %510 = vmatmul.f32.gmra.mxu3 %v279_v58  ;;  %342 = vmatmul.f32.gmra.mxu0 %v276_v59  ;;  %v285_v58 = vld [vmem:[#allocation2 + $0x88] sm:$0xff]  ;;  %v286_v59 = vld [vmem:[#allocation2 + $0x90] sm:$0xff] }
  0x63   :  { %771 = vmatpush.msrb.mxu3 %v6032_v22  ;;  %603 = vmatpush.msrb.mxu0 %v6037_v23 }
  0x64   :  { %661 = vmatpush.msrb.mxu1 %v6068_v28  ;;  %717 = vmatpush.msrb.mxu2 %v6073_v29 }
  0x65   :  { %772 = vmatpush.msrb.mxu3 %v6056_v26  ;;  %604 = vmatpush.msrb.mxu0 %v6061_v27 }
  0x66   :  { %662 = vmatpush.msrb.mxu1 %v6092_v32  ;;  %718 = vmatpush.msrb.mxu2 %v6097_v33 }
  0x67   :  { %773 = vmatpush.msrb.mxu3 %v6080_v30  ;;  %605 = vmatpush.msrb.mxu0 %v6085_v31 }
  0x68   :  { %401 = vmatmul.f32.gmra.mxu1 %v281_v57  ;;  %457 = vmatmul.f32.gmra.mxu2 %v282_v54  ;;  %v287_v57 = vld [vmem:[#allocation2 + $0x98] sm:$0xff]  ;;  %v284_v54 = vld [vmem:[#allocation2 + $0x80] sm:$0xff] }
  0x69   :  { %663 = vmatpush.msrb.mxu1 %v6116_v36  ;;  %719 = vmatpush.msrb.mxu2 %v6121_v37  ;;  %v294_v37 = vld [vmem:[#allocation2 + $0xd0] sm:$0xff] }
  0x6a   :  { %513 = vmatmul.f32.gmra.mxu3 %v283_v62  ;;  %345 = vmatmul.f32.gmra.mxu0 %v280_v63  ;;  %v289_v62 = vld [vmem:[#allocation2 + $0xa8] sm:$0xff]  ;;  %v290_v63 = vld [vmem:[#allocation2 + $0xb0] sm:$0xff] }
  0x6b   :  { %774 = vmatpush.msrb.mxu3 %v6104_v34  ;;  %606 = vmatpush.msrb.mxu0 %v6109_v35 }
  0x6c   :  { %664 = vmatpush.msrb.mxu1 %v6140_v40  ;;  %720 = vmatpush.msrb.mxu2 %v6145_v41  ;;  %v8615_v41 = vld [vmem:[#allocation35_spill] sm:$0xff] }
  0x6d   :  { %775 = vmatpush.msrb.mxu3 %v6128_v38  ;;  %607 = vmatpush.msrb.mxu0 %v6133_v39 }
  0x6e   :  { %665 = vmatpush.msrb.mxu1 %v6164_v44  ;;  %721 = vmatpush.msrb.mxu2 %v6169_v45  ;;  %v8613_v45 = vld [vmem:[#allocation32_spill] sm:$0xff] }
  0x6f   :  { %776 = vmatpush.msrb.mxu3 %v6152_v42  ;;  %608 = vmatpush.msrb.mxu0 %v6157_v43 }
  0x70   :  { %404 = vmatmul.f32.gmra.mxu1 %v285_v58  ;;  %460 = vmatmul.f32.gmra.mxu2 %v286_v59  ;;  %v8610_v58 = vld [vmem:[#allocation30_spill] sm:$0xff]  ;;  %v8611_v59 = vld [vmem:[#allocation33_spill] sm:$0xff] }
  0x71   :  { %666 = vmatpush.msrb.mxu1 %v6188_v48  ;;  %722 = vmatpush.msrb.mxu2 %v6193_v49  ;;  %v8612_v49 = vld [vmem:[#allocation31_spill] sm:$0xff] }
  0x72   :  { %516 = vmatmul.f32.gmra.mxu3 %v287_v57  ;;  %348 = vmatmul.f32.gmra.mxu0 %v284_v54  ;;  %v291_v57 = vld [vmem:[#allocation2 + $0xb8] sm:$0xff]  ;;  %v288_v54 = vld [vmem:[#allocation2 + $0xa0] sm:$0xff] }
  0x73   :  { %777 = vmatpush.msrb.mxu3 %v6176_v46  ;;  %609 = vmatpush.msrb.mxu0 %v6181_v47 }
  0x74   :  { %667 = vmatpush.msrb.mxu1 %v6212_v52  ;;  %723 = vmatpush.msrb.mxu2 %v6217_v53  ;;  %v8614_v53 = vld [vmem:[#allocation34_spill] sm:$0xff] }
  0x75   :  { %778 = vmatpush.msrb.mxu3 %v6200_v50  ;;  %610 = vmatpush.msrb.mxu0 %v6205_v51 }
  0x76   :  { %668 = vmatpush.msrb.mxu1 %v8610_v58  ;;  %724 = vmatpush.msrb.mxu2 %v8611_v59  ;;  %v293_v59 = vld [vmem:[#allocation2 + $0xc8] sm:$0xff] }
  0x77   :  { %779 = vmatpush.msrb.mxu3 %v8612_v49  ;;  %611 = vmatpush.msrb.mxu0 %v8613_v45 }
  0x78   :  { %407 = vmatmul.f32.gmra.mxu1 %v289_v62  ;;  %463 = vmatmul.f32.gmra.mxu2 %v290_v63  ;;  %v295_v62 = vld [vmem:[#allocation2 + $0xd8] sm:$0xff]  ;;  %v292_v63 = vld [vmem:[#allocation2 + $0xc0] sm:$0xff] }
  0x79   :  { %669 = vmatpush.msrb.mxu1 %v6260_v60  ;;  %725 = vmatpush.msrb.mxu2 %v6265_v61  ;;  %v296_v61 = vld [vmem:[#allocation2 + $0xe0] sm:$0xff] }
  0x7a   :  { %519 = vmatmul.f32.gmra.mxu3 %v291_v57  ;;  %351 = vmatmul.f32.gmra.mxu0 %v288_v54  ;;  %v297_v57 = vld [vmem:[#allocation2 + $0xe8] sm:$0xff]  ;;  %v298_v54 = vld [vmem:[#allocation2 + $0xf0] sm:$0xff] }
  0x7b   :  { %780 = vmatpush.msrb.mxu3 %v8614_v53  ;;  %612 = vmatpush.msrb.mxu0 %v8615_v41 }
  0x7c   :  { %1075 = vmatpush.msra.mxu2 %v5931_v5 }
  0x7d   :  { %781 = vmatpush.msrb.mxu3 %v6274_v56  ;;  %613 = vmatpush.msrb.mxu0 %v6279_v55 }
  0x7e   :  { %1076 = vmatpush.msra.mxu2 %v5955_v9 }
  0x7f   :  { %1131 = vmatpush.msra.mxu3 %v5904_v0  ;;  %v299_v0 = vld [vmem:[#allocation2 + $0xf8] sm:$0xff] }
  0x80   :  { %410 = vmatmul.f32.gmra.mxu1 %v293_v59  ;;  %466 = vmatmul.f32.gmra.mxu2 %v294_v37  ;;  %v310_v37 = vld [vmem:[#allocation2 + $0x150] sm:$0xff]  ;;  %v312_v59 = vld [vmem:[#allocation2 + $0x160] sm:$0xff] }
  0x81   :  { %1132 = vmatpush.msra.mxu3 %v5914_v2  ;;  %1077 = vmatpush.msra.mxu2 %v5977_v13  ;;  %v301_v2 = vld [vmem:[#allocation2 + $0x108] sm:$0xff] }
  0x82   :  { %522 = vmatmul.f32.gmra.mxu3 %v295_v62  ;;  %354 = vmatmul.f32.gmra.mxu0 %v292_v63  ;;  %v318_v62 = vld [vmem:[#allocation2 + $0x190] sm:$0xff]  ;;  %v319_v63 = vld [vmem:[#allocation2 + $0x198] sm:$0xff] }
  0x83   :  { %1133 = vmatpush.msra.mxu3 %v5938_v6  ;;  %1078 = vmatpush.msra.mxu2 %v5989_v15  ;;  %v302_v6 = vld [vmem:[#allocation2 + $0x110] sm:$0xff] }
  0x85   :  { %1134 = vmatpush.msra.mxu3 %v5960_v10  ;;  %1079 = vmatpush.msra.mxu2 %v6013_v19  ;;  %v303_v10 = vld [vmem:[#allocation2 + $0x118] sm:$0xff] }
  0x87   :  { %1135 = vmatpush.msra.mxu3 %v5996_v16  ;;  %1080 = vmatpush.msra.mxu2 %v6037_v23  ;;  %v300_v16 = vld [vmem:[#allocation2 + $0x100] sm:$0xff] }
  0x88   :  { %413 = vmatmul.f32.gmra.mxu1 %v297_v57  ;;  %469 = vmatmul.f32.gmra.mxu2 %v298_v54  ;;  %v316_v57 = vld [vmem:[#allocation2 + $0x180] sm:$0xff]  ;;  %v548_v54 = vld [vmem:[#allocation2 + $0x1b0] sm:$0xff] }
  0x89   :  { %1136 = vmatpush.msra.mxu3 %v6020_v20  ;;  %1081 = vmatpush.msra.mxu2 %v6061_v27  ;;  %v305_v20 = vld [vmem:[#allocation2 + $0x128] sm:$0xff] }
  0x8a   :  { %525 = vmatmul.f32.gmra.mxu3 %v299_v0  ;;  %357 = vmatmul.f32.gmra.mxu0 %v296_v61  ;;  %v315_v61 = vld [vmem:[#allocation2 + $0x178] sm:$0xff] }
  0x8b   :  { %1137 = vmatpush.msra.mxu3 %v6044_v24  ;;  %1082 = vmatpush.msra.mxu2 %v6085_v31  ;;  %v306_v24 = vld [vmem:[#allocation2 + $0x130] sm:$0xff]  ;;  %v549_v0 = vld [vmem:[#allocation2 + $0x1b8] sm:$0xff] }
  0x8d   :  { %1138 = vmatpush.msra.mxu3 %v6068_v28  ;;  %1083 = vmatpush.msra.mxu2 %v6109_v35  ;;  %v307_v28 = vld [vmem:[#allocation2 + $0x138] sm:$0xff] }
  0x8f   :  { %1139 = vmatpush.msra.mxu3 %v6092_v32  ;;  %1084 = vmatpush.msra.mxu2 %v6133_v39  ;;  %v304_v32 = vld [vmem:[#allocation2 + $0x120] sm:$0xff] }
  0x90   :  { %416 = vmatmul.f32.gmra.mxu1 %v301_v2  ;;  %472 = vmatmul.f32.gmra.mxu2 %v302_v6  ;;  %v546_v2 = vld [vmem:[#allocation2 + $0x1a0] sm:$0xff]  ;;  %v551_v6 = vld [vmem:[#allocation2 + $0x1c8] sm:$0xff] }
  0x91   :  { %1140 = vmatpush.msra.mxu3 %v6116_v36  ;;  %1085 = vmatpush.msra.mxu2 %v6157_v43  ;;  %v309_v36 = vld [vmem:[#allocation2 + $0x148] sm:$0xff] }
  0x92   :  { %528 = vmatmul.f32.gmra.mxu3 %v303_v10  ;;  %360 = vmatmul.f32.gmra.mxu0 %v300_v16  ;;  %v552_v10 = vld [vmem:[#allocation2 + $0x1d0] sm:$0xff]  ;;  %v553_v16 = vld [vmem:[#allocation2 + $0x1d8] sm:$0xff] }
  0x93   :  { %1141 = vmatpush.msra.mxu3 %v6140_v40  ;;  %1086 = vmatpush.msra.mxu2 %v6181_v47  ;;  %v311_v40 = vld [vmem:[#allocation2 + $0x158] sm:$0xff] }
  0x95   :  { %1142 = vmatpush.msra.mxu3 %v6164_v44  ;;  %1087 = vmatpush.msra.mxu2 %v6205_v51  ;;  %v308_v44 = vld [vmem:[#allocation2 + $0x140] sm:$0xff] }
  0x97   :  { %1143 = vmatpush.msra.mxu3 %v6188_v48  ;;  %1088 = vmatpush.msra.mxu2 %v8613_v45  ;;  %v313_v48 = vld [vmem:[#allocation2 + $0x168] sm:$0xff] }
  0x98   :  { %419 = vmatmul.f32.gmra.mxu1 %v305_v20  ;;  %475 = vmatmul.f32.gmra.mxu2 %v306_v24  ;;  %v550_v20 = vld [vmem:[#allocation2 + $0x1c0] sm:$0xff]  ;;  %v555_v24 = vld [vmem:[#allocation2 + $0x1e8] sm:$0xff] }
  0x99   :  { %1144 = vmatpush.msra.mxu3 %v6212_v52  ;;  %1089 = vmatpush.msra.mxu2 %v8615_v41  ;;  %v314_v52 = vld [vmem:[#allocation2 + $0x170] sm:$0xff] }
  0x9a   :  { %531 = vmatmul.f32.gmra.mxu3 %v307_v28  ;;  %363 = vmatmul.f32.gmra.mxu0 %v304_v32  ;;  %v556_v28 = vld [vmem:[#allocation2 + $0x1f0] sm:$0xff]  ;;  %v554_v32 = vld [vmem:[#allocation2 + $0x1e0] sm:$0xff] }
  0x9b   :  { %1145 = vmatpush.msra.mxu3 %v8610_v58  ;;  %1090 = vmatpush.msra.mxu2 %v6279_v55  ;;  %v317_v58 = vld [vmem:[#allocation2 + $0x188] sm:$0xff] }
  0x9d   :  { %1146 = vmatpush.msra.mxu3 %v6260_v60  ;;  %v547_v60 = vld [vmem:[#allocation2 + $0x1a8] sm:$0xff] }
  0xa0   :  { %422 = vmatmul.f32.gmra.mxu1 %v309_v36  ;;  %478 = vmatmul.f32.gmra.mxu2 %v310_v37  ;;  %v561_v36 = vld [vmem:[#allocation2 + $0x218] sm:$0xff] }
  0xa2   :  { %534 = vmatmul.f32.gmra.mxu3 %v311_v40  ;;  %366 = vmatmul.f32.gmra.mxu0 %v308_v44  ;;  %v563_v44 = vld [vmem:[#allocation2 + $0x228] sm:$0xff] }
  0xa8   :  { %425 = vmatmul.f32.gmra.mxu1 %v313_v48  ;;  %481 = vmatmul.f32.gmra.mxu2 %v314_v52  ;;  %v565_v52 = vld [vmem:[#allocation2 + $0x238] sm:$0xff] }
  0xaa   :  { %537 = vmatmul.f32.gmra.mxu3 %v315_v61  ;;  %369 = vmatmul.f32.gmra.mxu0 %v312_v59  ;;  %v562_v61 = vld [vmem:[#allocation2 + $0x220] sm:$0xff] }
  0xb0   :  { %428 = vmatmul.f32.gmra.mxu1 %v317_v58  ;;  %484 = vmatmul.f32.gmra.mxu2 %v318_v62 }
  0xb2   :  { %540 = vmatmul.f32.gmra.mxu3 %v319_v63  ;;  %372 = vmatmul.f32.gmra.mxu0 %v316_v57  ;;  %v568_v63 = vld [vmem:[#allocation2 + $0x250] sm:$0xff] }
  0xb8   :  { %670 = vmatmul.f32.vlgmr.msrb.gmra.mxu1 %v547_v60  ;;  %726 = vmatmul.f32.vlgmr.msrb.gmra.mxu2 %v548_v54  ;;  %v569_v54 = vld [vmem:[#allocation2 + $0x258] sm:$0xff] }
  0xba   :  { %782 = vmatmul.f32.vlgmr.msrb.gmra.mxu3 %v549_v0  ;;  %614 = vmatmul.f32.vlgmr.msrb.gmra.mxu0 %v546_v2 }
  0xbb   :  { %1465 = vmatpush.msrb.mxu3 %v5931_v5  ;;  %v557_v5 = vld [vmem:[#allocation2 + $0x1f8] sm:$0xff] }
  0xbd   :  { %1466 = vmatpush.msrb.mxu3 %v5955_v9 }
  0xbf   :  { %1467 = vmatpush.msrb.mxu3 %v5977_v13  ;;  %v559_v13 = vld [vmem:[#allocation2 + $0x208] sm:$0xff] }
  0xc0   :  { %673 = vmatmul.f32.gmra.mxu1 %v551_v6  ;;  %729 = vmatmul.f32.gmra.mxu2 %v552_v10  ;;  %v571_v6 = vld [vmem:[#allocation2 + $0x268] sm:$0xff]  ;;  %v572_v10 = vld [vmem:[#allocation2 + $0x270] sm:$0xff] }
  0xc1   :  { %1468 = vmatpush.msrb.mxu3 %v5989_v15  ;;  %v560_v15 = vld [vmem:[#allocation2 + $0x210] sm:$0xff] }
  0xc2   :  { %785 = vmatmul.f32.gmra.mxu3 %v553_v16  ;;  %617 = vmatmul.f32.gmra.mxu0 %v550_v20  ;;  %v573_v20 = vld [vmem:[#allocation2 + $0x278] sm:$0xff] }
  0xc3   :  { %1469 = vmatpush.msrb.mxu3 %v6013_v19 }
  0xc5   :  { %1470 = vmatpush.msrb.mxu3 %v6037_v23  ;;  %v558_v23 = vld [vmem:[#allocation2 + $0x200] sm:$0xff] }
  0xc7   :  { %1471 = vmatpush.msrb.mxu3 %v6061_v27 }
  0xc8   :  { %676 = vmatmul.f32.gmra.mxu1 %v555_v24  ;;  %732 = vmatmul.f32.gmra.mxu2 %v556_v28  ;;  %v570_v24 = vld [vmem:[#allocation2 + $0x260] sm:$0xff] }
  0xc9   :  { %1472 = vmatpush.msrb.mxu3 %v6085_v31 }
  0xca   :  { %788 = vmatmul.f32.gmra.mxu3 %v557_v5  ;;  %620 = vmatmul.f32.gmra.mxu0 %v554_v32 }
  0xcb   :  { %1473 = vmatpush.msrb.mxu3 %v6109_v35 }
  0xcd   :  { %v393_v9 = vpop.f32.mrf.mxu1  ;;  %1474 = vmatpush.msrb.mxu3 %v6133_v39  ;;  %v564_v39 = vld [vmem:[#allocation2 + $0x230] sm:$0xff] }
  0xcf   :  { %v337_v19 = vpop.f32.mrf.mxu0  ;;  %1475 = vmatpush.msrb.mxu3 %v6157_v43 }
  0xd0   :  { %679 = vmatmul.f32.gmra.mxu1 %v559_v13  ;;  %735 = vmatmul.f32.gmra.mxu2 %v560_v15  ;;  %v394_v27 = vadd.f32 %v393_v9, %v337_v19  ;;  %v575_v9 = vld [vmem:[#allocation2 + $0x288] sm:$0xff]  ;;  %v576_v13 = vld [vmem:[#allocation2 + $0x290] sm:$0xff]  ;;  %v577_v19 = vld [vmem:[#allocation2 + $0x298] sm:$0xff] }
  0xd1   :  { %1476 = vmatpush.msrb.mxu3 %v6181_v47 }
  0xd2   :  { %791 = vmatmul.f32.gmra.mxu3 %v561_v36  ;;  %623 = vmatmul.f32.gmra.mxu0 %v558_v23  ;;  %v574_v36 = vld [vmem:[#allocation2 + $0x280] sm:$0xff] }
  0xd3   :  { %v449_v31 = vpop.f32.mrf.mxu2  ;;  %1477 = vmatpush.msrb.mxu3 %v6205_v51 }
  0xd4   :  { %v450_v35 = vadd.f32 %v449_v31, %v394_v27 }
  0xd5   :  { %v396_v37 = vpop.f32.mrf.mxu1  ;;  %v505_v40 = vpop.f32.mrf.mxu3  ;;  %1478 = vmatpush.msrb.mxu3 %v8613_v45  ;;  %v567_v45 = vld [vmem:[#allocation2 + $0x248] sm:$0xff] }
  0xd6   :  { %v6395_v48 = vadd.f32 %v505_v40, %v450_v35  ;;  %v579_v35 = vld [vmem:[#allocation2 + $0x2a8] sm:$0xff] }
  0xd7   :  { %v340_v43 = vpop.f32.mrf.mxu0  ;;  %1479 = vmatpush.msrb.mxu3 %v8615_v41  ;;  %v566_v41 = vld [vmem:[#allocation2 + $0x240] sm:$0xff] }
  0xd8   :  { %682 = vmatmul.f32.gmra.mxu1 %v563_v44  ;;  %738 = vmatmul.f32.gmra.mxu2 %v564_v39  ;;  %v397_v47 = vadd.f32 %v396_v37, %v340_v43  ;;  %v580_v37 = vld [vmem:[#allocation2 + $0x2b0] sm:$0xff]  ;;  %v581_v44 = vld [vmem:[#allocation2 + $0x2b8] sm:$0xff]  ;;  %v578_v39 = vld [vmem:[#allocation2 + $0x2a0] sm:$0xff] }
  0xd9   :  { %1480 = vmatpush.msrb.mxu3 %v6279_v55 }
  0xda   :  { %794 = vmatmul.f32.gmra.mxu3 %v565_v52  ;;  %626 = vmatmul.f32.gmra.mxu0 %v562_v61 }
  0xdb   :  { %v452_v51 = vpop.f32.mrf.mxu2 }
  0xdc   :  { %v453_v59 = vadd.f32 %v452_v51, %v397_v47  ;;  %v583_v47 = vld [vmem:[#allocation2 + $0x2c8] sm:$0xff]  ;;  %v584_v51 = vld [vmem:[#allocation2 + $0x2d0] sm:$0xff] }
  0xdd   :  { %v6399_v58 = vpop.f32.mrf.mxu1  ;;  %v508_v62 = vpop.f32.mrf.mxu3 }
  0xde   :  { %v6401_v57 = vadd.f32 %v508_v62, %v453_v59  ;;  %v544_v59 = vld [vmem:[#allocation7] sm:$0xf] }
  0xdf   :  { %v6403_v60 = vpop.f32.mrf.mxu0  ;;  %5077 = vmatpush.msk.msra.mxu1 %vm864_vm0, %v544_v59  ;;  %v8621_v59 = vld [vmem:[#allocation33_spill] sm:$0xff] }
  0xe0   :  { %685 = vmatmul.f32.gmra.mxu1 %v567_v45  ;;  %741 = vmatmul.f32.gmra.mxu2 %v568_v63  ;;  %v585_v45 = vld [vmem:[#allocation2 + $0x2d8] sm:$0xff]  ;;  %v582_v63 = vld [vmem:[#allocation2 + $0x2c0] sm:$0xff] }
  0xe1   :  { %1243 = vmatpush.msrb.mxu1 %v5926_v4 }
  0xe2   :  { %797 = vmatmul.f32.gmra.mxu3 %v569_v54  ;;  %629 = vmatmul.f32.gmra.mxu0 %v566_v41 }
  0xe3   :  { %v6405_v55 = vpop.f32.mrf.mxu2  ;;  %1244 = vmatpush.msrb.mxu1 %v5948_v8 }
  0xe5   :  { %v6407_v0 = vpop.f32.mrf.mxu1  ;;  %v6409_v2 = vpop.f32.mrf.mxu3  ;;  %1245 = vmatpush.msrb.mxu1 %v5972_v12 }
  0xe7   :  { %v6411_v16 = vpop.f32.mrf.mxu0  ;;  %1246 = vmatpush.msrb.mxu1 %v5984_v14  ;;  %v592_v14 = vld [vmem:[#allocation2 + $0x310] sm:$0xff] }
  0xe8   :  { %688 = vmatmul.f32.gmra.mxu1 %v571_v6  ;;  %744 = vmatmul.f32.gmra.mxu2 %v572_v10  ;;  %v587_v10 = vld [vmem:[#allocation2 + $0x2e8] sm:$0xff] }
  0xe9   :  { %1247 = vmatpush.msrb.mxu1 %v6008_v18  ;;  %v593_v18 = vld [vmem:[#allocation2 + $0x318] sm:$0xff] }
  0xea   :  { %800 = vmatmul.f32.gmra.mxu3 %v573_v20  ;;  %632 = vmatmul.f32.gmra.mxu0 %v570_v24  ;;  %v588_v20 = vld [vmem:[#allocation2 + $0x2f0] sm:$0xff]  ;;  %v823_v24 = vld [vmem:[#allocation7 + $0x4] sm:$0xf] }
  0xeb   :  { %v6413_v28 = vpop.f32.mrf.mxu2  ;;  %5063 = vmatpush.msk.msra.mxu0 %vm864_vm0, %v823_v24  ;;  %1248 = vmatpush.msrb.mxu1 %v6032_v22  ;;  %v6536_v24 = vld [vmem:[%s8523_s0 + $0x160] sm:$0xff] }
  0xed   :  { %v6415_v5 = vpop.f32.mrf.mxu1  ;;  %v6417_v32 = vpop.f32.mrf.mxu3  ;;  %1187 = vmatpush.msrb.mxu0 %v5909_v1  ;;  %1249 = vmatpush.msrb.mxu1 %v6056_v26  ;;  %v596_v26 = vld [vmem:[#allocation2 + $0x330] sm:$0xff] }
  0xef   :  { %v6419_v15 = vpop.f32.mrf.mxu0  ;;  %1188 = vmatpush.msrb.mxu0 %v5921_v3  ;;  %1250 = vmatpush.msrb.mxu1 %v6080_v30  ;;  %v597_v30 = vld [vmem:[#allocation2 + $0x338] sm:$0xff] }
  0xf0   :  { %691 = vmatmul.f32.gmra.mxu1 %v575_v9  ;;  %747 = vmatmul.f32.gmra.mxu2 %v576_v13  ;;  %v589_v13 = vld [vmem:[#allocation2 + $0x2f8] sm:$0xff] }
  0xf1   :  { %1189 = vmatpush.msrb.mxu0 %v5943_v7  ;;  %1251 = vmatpush.msrb.mxu1 %v6104_v34  ;;  %v594_v34 = vld [vmem:[#allocation2 + $0x320] sm:$0xff] }
  0xf2   :  { %803 = vmatmul.f32.gmra.mxu3 %v577_v19  ;;  %635 = vmatmul.f32.gmra.mxu0 %v574_v36  ;;  %v586_v19 = vld [vmem:[#allocation2 + $0x2e0] sm:$0xff]  ;;  %v591_v36 = vld [vmem:[#allocation2 + $0x308] sm:$0xff] }
  0xf3   :  { %v6421_v23 = vpop.f32.mrf.mxu2  ;;  %1190 = vmatpush.msrb.mxu0 %v5967_v11  ;;  %1252 = vmatpush.msrb.mxu1 %v6128_v38  ;;  %v595_v11 = vld [vmem:[#allocation2 + $0x328] sm:$0xff]  ;;  %v8616_v38 = vld [vmem:[#allocation25_spill] sm:$0xff] }
  0xf5   :  { %v6423_v27 = vpop.f32.mrf.mxu1  ;;  %v6425_v31 = vpop.f32.mrf.mxu3  ;;  %1191 = vmatpush.msrb.mxu0 %v6001_v17  ;;  %1253 = vmatpush.msrb.mxu1 %v6152_v42 }
  0xf7   :  { %v6427_v40 = vpop.f32.mrf.mxu0  ;;  %1192 = vmatpush.msrb.mxu0 %v6025_v21  ;;  %1254 = vmatpush.msrb.mxu1 %v6176_v46  ;;  %v8617_v46 = vld [vmem:[#allocation26_spill] sm:$0xff] }
  0xf8   :  { %694 = vmatmul.f32.gmra.mxu1 %v579_v35  ;;  %750 = vmatmul.f32.gmra.mxu2 %v580_v37  ;;  %v590_v35 = vld [vmem:[#allocation2 + $0x300] sm:$0xff] }
  0xf9   :  { %1193 = vmatpush.msrb.mxu0 %v6049_v25  ;;  %1255 = vmatpush.msrb.mxu1 %v6200_v50  ;;  %v8618_v50 = vld [vmem:[#allocation27_spill] sm:$0xff] }
  0xfa   :  { %806 = vmatmul.f32.gmra.mxu3 %v581_v44  ;;  %638 = vmatmul.f32.gmra.mxu0 %v578_v39  ;;  %v8619_v39 = vld [vmem:[#allocation28_spill] sm:$0xff] }
  0xfb   :  { %v6429_v43 = vpop.f32.mrf.mxu2  ;;  %1194 = vmatpush.msrb.mxu0 %v6073_v29  ;;  %1256 = vmatpush.msrb.mxu1 %v8612_v49  ;;  %v6505_v49 = vld [vmem:[%s8523_s0 + $0x178] sm:$0xff] }
  0xfd   :  { %v6431_v52 = vpop.f32.mrf.mxu1  ;;  %v6433_v61 = vpop.f32.mrf.mxu3  ;;  %1195 = vmatpush.msrb.mxu0 %v6097_v33  ;;  %1257 = vmatpush.msrb.mxu1 %v8614_v53  ;;  %v8620_v53 = vld [vmem:[#allocation29_spill] sm:$0xff] }
  0xff   :  { %v6435_v62 = vpop.f32.mrf.mxu0  ;;  %1196 = vmatpush.msrb.mxu0 %v8616_v38  ;;  %1258 = vmatpush.msrb.mxu1 %v6274_v56  ;;  %v6514_v56 = vld [vmem:[%s8523_s0 + $0x170] sm:$0xff] }
 0x100   :  { %697 = vmatmul.f32.gmra.mxu1 %v583_v47  ;;  %753 = vmatmul.f32.gmra.mxu2 %v584_v51 }
 0x101   :  { %1197 = vmatpush.msrb.mxu0 %v8617_v46 }
 0x102   :  { %809 = vmatmul.f32.gmra.mxu3 %v585_v45  ;;  %641 = vmatmul.f32.gmra.mxu0 %v582_v63  ;;  %v6525_v45 = vld [vmem:[%s8523_s0 + $0x168] sm:$0xff]  ;;  %v400_v63 = vadd.f32 %v6399_v58, %v6403_v60 }
 0x103   :  { %v6439_v54 = vpop.f32.mrf.mxu2  ;;  %1198 = vmatpush.msrb.mxu0 %v8618_v50 }
 0x104   :  { %v456_v58 = vadd.f32 %v6405_v55, %v400_v63  ;;  %v403_v55 = vadd.f32 %v6407_v0, %v6411_v16  ;;  %v6607_v63 = vld [vmem:[%s8523_s0 + $0xe8] sm:$0xff] }
 0x105   :  { %v6442_v41 = vpop.f32.mrf.mxu1  ;;  %v6444_v6 = vpop.f32.mrf.mxu3  ;;  %1199 = vmatpush.msrb.mxu0 %v8619_v39 }
 0x107   :  { %v6447_v9 = vpop.f32.mrf.mxu0  ;;  %1200 = vmatpush.msrb.mxu0 %v8620_v53 }
 0x108   :  { %700 = vmatmul.f32.gmra.mxu1 %v587_v10  ;;  %756 = vmatmul.f32.gmra.mxu2 %v588_v20  ;;  %v8622_v20 = vld [vmem:[#allocation36_spill] sm:$0xff] }
 0x109   :  { %1201 = vmatpush.msrb.mxu0 %v8621_v59 }
 0x10a   :  { %812 = vmatmul.f32.gmra.mxu3 %v589_v13  ;;  %644 = vmatmul.f32.gmra.mxu0 %v586_v19  ;;  %v6544_v13 = vld [vmem:[%s8523_s0 + $0x158] sm:$0xff]  ;;  %v6553_v19 = vld [vmem:[%s8523_s0 + $0x150] sm:$0xff] }
 0x10b   :  { %v6453_v4 = vpop.f32.mrf.mxu2  ;;  %1202 = vmatpush.msrb.mxu0 %v8622_v20 }
 0x10d   :  { %v6457_v8 = vpop.f32.mrf.mxu1  ;;  %v6459_v12 = vpop.f32.mrf.mxu3 }
 0x10f   :  { %v6463_v1 = vpop.f32.mrf.mxu0 }
 0x110   :  { %703 = vmatmul.f32.gmra.mxu1 %v591_v36  ;;  %759 = vmatmul.f32.gmra.mxu2 %v592_v14  ;;  %v512_v14 = vadd.f32 %v6409_v2, %v456_v58 }
 0x112   :  { %815 = vmatmul.f32.gmra.mxu3 %v593_v18  ;;  %647 = vmatmul.f32.gmra.mxu0 %v590_v35  ;;  %v459_v35 = vadd.f32 %v6413_v28, %v403_v55  ;;  %v6616_v55 = vld [vmem:[%s8523_s0 + $0xe0] sm:$0xff] }
 0x113   :  { %v6469_v3 = vpop.f32.mrf.mxu2 }
 0x114   :  { %v515_v0 = vadd.f32 %v6417_v32, %v459_v35  ;;  %v409_v32 = vadd.f32 %v6423_v27, %v6427_v40  ;;  %v6601_v27 = vld [vmem:[%s8523_s0 + $0xf0] sm:$0xff] }
 0x115   :  { %v6473_v7 = vpop.f32.mrf.mxu1  ;;  %v6475_v22 = vpop.f32.mrf.mxu3 }
 0x117   :  { %v6479_v17 = vpop.f32.mrf.mxu0 }
 0x118   :  { %706 = vmatmul.f32.gmra.mxu1 %v595_v11  ;;  %762 = vmatmul.f32.gmra.mxu2 %v596_v26 }
 0x11a   :  { %818 = vmatmul.f32.gmra.mxu3 %v597_v30  ;;  %650 = vmatmul.f32.gmra.mxu0 %v594_v34 }
 0x11b   :  { %v6485_v21 = vpop.f32.mrf.mxu2 }
 0x11d   :  { %v6489_v42 = vpop.f32.mrf.mxu1  ;;  %v6491_v37 = vpop.f32.mrf.mxu3 }
 0x11f   :  { %v6495_v44 = vpop.f32.mrf.mxu0 }
 0x120   :  { %5078 = vmatmul.msk.f32.vlgmr.msra.gmra.mxu1 %vm824_vm1, %v6395_v48 }
 0x121   :  { %1577 = vmatpush.msra.mxu1 %v6505_v49 }
 0x123   :  { %v6508_v47 = vpop.f32.mrf.mxu2  ;;  %1578 = vmatpush.msra.mxu1 %v6514_v56 }
 0x125   :  { %v6517_v48 = vpop.f32.mrf.mxu1  ;;  %v6519_v51 = vpop.f32.mrf.mxu3  ;;  %1579 = vmatpush.msra.mxu1 %v6525_v45 }
 0x127   :  { %v6530_v10 = vpop.f32.mrf.mxu0  ;;  %1580 = vmatpush.msra.mxu1 %v6536_v24 }
 0x128   :  { %5079 = vmatmul.msk.f32.gmra.mxu1 %vm824_vm1, %v6401_v57 }
 0x129   :  { %1581 = vmatpush.msra.mxu1 %v6544_v13 }
 0x12b   :  { %v6548_v60 = vpop.f32.mrf.mxu2  ;;  %1582 = vmatpush.msra.mxu1 %v6553_v19 }
 0x12d   :  { %v6556_v36 = vpop.f32.mrf.mxu1  ;;  %v6558_v57 = vpop.f32.mrf.mxu3  ;;  %1583 = vmatpush.msra.mxu1 %v6049_v25 }
 0x12f   :  { %v6564_v18 = vpop.f32.mrf.mxu0  ;;  %1584 = vmatpush.msra.mxu1 %v6073_v29  ;;  %v406_v29 = vadd.f32 %v6415_v5, %v6419_v15 }
 0x130   :  { %5080 = vmatmul.msk.f32.gmra.mxu1 %vm824_vm1, %v512_v14 }
 0x131   :  { %1585 = vmatpush.msra.mxu1 %v6097_v33  ;;  %v462_v28 = vadd.f32 %v6421_v23, %v406_v29 }
 0x133   :  { %v6570_v11 = vpop.f32.mrf.mxu2  ;;  %1586 = vmatpush.msra.mxu1 %v8616_v38  ;;  %v518_v5 = vadd.f32 %v6425_v31, %v462_v28  ;;  %v465_v31 = vadd.f32 %v6429_v43, %v409_v32  ;;  %v415_v28 = vadd.f32 %v6442_v41, %v6447_v9 }
 0x135   :  { %v6573_v25 = vpop.f32.mrf.mxu3  ;;  %v671_v2 = vpop.f32.mrf.mxu1  ;;  %1587 = vmatpush.msra.mxu1 %v8617_v46  ;;  %v521_v43 = vadd.f32 %v6433_v61, %v465_v31  ;;  %v6624_v61 = vld [vmem:[%s8523_s0 + $0xd8] sm:$0xff]  ;;  %v471_v41 = vadd.f32 %v6453_v4, %v415_v28  ;;  %v418_v31 = vadd.f32 %v6457_v8, %v6463_v1 }
 0x137   :  { %v615_v16 = vpop.f32.mrf.mxu0  ;;  %1588 = vmatpush.msra.mxu1 %v8618_v50  ;;  %v6594_v50 = vld [vmem:[%s8523_s0 + $0xf8] sm:$0xff]  ;;  %v527_v4 = vadd.f32 %v6459_v12, %v471_v41  ;;  %v474_v8 = vadd.f32 %v6469_v3, %v418_v31 }
 0x138   :  { %5081 = vmatmul.msk.f32.gmra.mxu1 %vm824_vm1, %v515_v0  ;;  %v672_v33 = vadd.f32 %v671_v2, %v615_v16  ;;  %v6631_v2 = vld [vmem:[%s8523_s0 + $0xd0] sm:$0xff]  ;;  %v6684_v12 = vld [vmem:[%s8523_s0 + $0x98] sm:$0xff] }
 0x139   :  { %1589 = vmatpush.msra.mxu1 %v8619_v39  ;;  %8625 = vst [vmem:[#allocation32_spill] sm:$0xff] %v6684_v12  ;;  %v530_v3 = vadd.f32 %v6475_v22, %v474_v8 }
 0x13b   :  { %v727_v26 = vpop.f32.mrf.mxu2  ;;  %1590 = vmatpush.msra.mxu1 %v8620_v53 }
 0x13c   :  { %v728_v30 = vadd.f32 %v727_v26, %v672_v33  ;;  %v6637_v33 = vld [vmem:[%s8523_s0 + $0xc8] sm:$0xff] }
 0x13d   :  { %v674_v34 = vpop.f32.mrf.mxu1  ;;  %v783_v38 = vpop.f32.mrf.mxu3  ;;  %1591 = vmatpush.msra.mxu1 %v8621_v59 }
 0x13e   :  { %v784_v15 = vadd.f32 %v783_v38, %v728_v30 }
 0x13f   :  { %v618_v46 = vpop.f32.mrf.mxu0  ;;  %1592 = vmatpush.msra.mxu1 %v8622_v20  ;;  %v412_v20 = vadd.f32 %v6431_v52, %v6435_v62 }
 0x140   :  { %5064 = vmatmul.msk.f32.vlgmr.msra.gmra.mxu0 %vm824_vm1, %v784_v15  ;;  %5082 = vmatmul.msk.f32.gmra.mxu1 %vm824_vm1, %v518_v5  ;;  %v675_v23 = vadd.f32 %v674_v34, %v618_v46  ;;  %v6646_v34 = vld [vmem:[%s8523_s0 + $0xc0] sm:$0xff]  ;;  %v6661_v5 = vld [vmem:[%s8523_s0 + $0xb0] sm:$0xff] }
 0x141   :  { %1521 = vmatpush.msra.mxu0 %v6594_v50  ;;  %v468_v52 = vadd.f32 %v6439_v54, %v412_v20 }
 0x143   :  { %v730_v39 = vpop.f32.mrf.mxu2  ;;  %1522 = vmatpush.msra.mxu0 %v6601_v27  ;;  %v524_v54 = vadd.f32 %v6444_v6, %v468_v52  ;;  %v6654_v6 = vld [vmem:[%s8523_s0 + $0xb8] sm:$0xff]  ;;  %v421_v52 = vadd.f32 %v6473_v7, %v6479_v17 }
 0x144   :  { %v731_v40 = vadd.f32 %v730_v39, %v675_v23  ;;  %v6667_v23 = vld [vmem:[%s8523_s0 + $0xa8] sm:$0xff] }
 0x145   :  { %v677_v53 = vpop.f32.mrf.mxu1  ;;  %v786_v59 = vpop.f32.mrf.mxu3  ;;  %1523 = vmatpush.msra.mxu0 %v6607_v63  ;;  %8623 = vst [vmem:[#allocation30_spill] sm:$0xff] %v6667_v23 }
 0x146   :  { %v787_v58 = vadd.f32 %v786_v59, %v731_v40 }
 0x147   :  { %v621_v14 = vpop.f32.mrf.mxu0  ;;  %1524 = vmatpush.msra.mxu0 %v6616_v55 }
 0x148   :  { %5065 = vmatmul.msk.f32.gmra.mxu0 %vm824_vm1, %v787_v58  ;;  %5083 = vmatmul.msk.f32.gmra.mxu1 %vm824_vm1, %v521_v43  ;;  %v678_v35 = vadd.f32 %v677_v53, %v621_v14  ;;  %v6676_v53 = vld [vmem:[%s8523_s0 + $0xa0] sm:$0xff]  ;;  %v6691_v43 = vld [vmem:[%s8523_s0 + $0x90] sm:$0xff] }
 0x149   :  { %1525 = vmatpush.msra.mxu0 %v6624_v61  ;;  %8624 = vst [vmem:[#allocation31_spill] sm:$0xff] %v6676_v53 }
 0x14a   :  { %8626 = vst [vmem:[#allocation34_spill] sm:$0xff] %v6691_v43 }
 0x14b   :  { %v733_v62 = vpop.f32.mrf.mxu2  ;;  %1526 = vmatpush.msra.mxu0 %v6631_v2 }
 0x14c   :  { %v734_v0 = vadd.f32 %v733_v62, %v678_v35  ;;  %v6697_v35 = vld [vmem:[%s8523_s0 + $0x88] sm:$0xff] }
 0x14d   :  { %v680_v29 = vpop.f32.mrf.mxu1  ;;  %v789_v16 = vpop.f32.mrf.mxu3  ;;  %1527 = vmatpush.msra.mxu0 %v6637_v33  ;;  %8627 = vst [vmem:[#allocation35_spill] sm:$0xff] %v6697_v35 }
 0x14e   :  { %v790_v26 = vadd.f32 %v789_v16, %v734_v0 }
 0x14f   :  { %v624_v30 = vpop.f32.mrf.mxu0  ;;  %1528 = vmatpush.msra.mxu0 %v6646_v34 }
 0x150   :  { %5066 = vmatmul.msk.f32.gmra.mxu0 %vm824_vm1, %v790_v26  ;;  %5084 = vmatmul.msk.f32.gmra.mxu1 %vm824_vm1, %v524_v54  ;;  %v681_v38 = vadd.f32 %v680_v29, %v624_v30  ;;  %v6706_v29 = vld [vmem:[%s8523_s0 + $0x80] sm:$0xff]  ;;  %v477_v54 = vadd.f32 %v6485_v21, %v421_v52  ;;  %v424_v30 = vadd.f32 %v6489_v42, %v6495_v44 }
 0x151   :  { %1529 = vmatpush.msra.mxu0 %v6654_v6  ;;  %8628 = vst [vmem:[#allocation25_spill] sm:$0xff] %v6706_v29 }
 0x152   :  { %v533_v17 = vadd.f32 %v6491_v37, %v477_v54  ;;  %v427_v37 = vadd.f32 %v6517_v48, %v6530_v10  ;;  %v1023_v54 = vld [vmem:[#allocation2 + $0x340] sm:$0xff] }
 0x153   :  { %v736_v9 = vpop.f32.mrf.mxu2  ;;  %1530 = vmatpush.msra.mxu0 %v6661_v5  ;;  %1091 = vmatmul.f32.vlgmr.msra.gmra.mxu2 %v1023_v54  ;;  %v6794_v54 = vld [vmem:[%s8523_s0 + $0x110] sm:$0xff] }
 0x154   :  { %v737_v32 = vadd.f32 %v736_v9, %v681_v38 }
 0x155   :  { %v683_v15 = vpop.f32.mrf.mxu1  ;;  %v792_v46 = vpop.f32.mrf.mxu3  ;;  %1531 = vmatpush.msra.mxu0 %v6667_v23 }
 0x156   :  { %v793_v39 = vadd.f32 %v792_v46, %v737_v32  ;;  %v480_v32 = vadd.f32 %v6508_v47, %v424_v30 }
 0x157   :  { %v627_v40 = vpop.f32.mrf.mxu0  ;;  %1532 = vmatpush.msra.mxu0 %v6676_v53 }
 0x158   :  { %5067 = vmatmul.msk.f32.gmra.mxu0 %vm824_vm1, %v793_v39  ;;  %5085 = vmatmul.msk.f32.gmra.mxu1 %vm824_vm1, %v527_v4  ;;  %v684_v59 = vadd.f32 %v683_v15, %v627_v40  ;;  %v536_v31 = vadd.f32 %v6519_v51, %v480_v32  ;;  %v483_v40 = vadd.f32 %v6548_v60, %v427_v37  ;;  %v6745_v37 = vld [vmem:[%s8523_s0 + $0x148] sm:$0xff] }
 0x159   :  { %1533 = vmatpush.msra.mxu0 %v6684_v12  ;;  %v430_v51 = vadd.f32 %v6556_v36, %v6564_v18 }
 0x15b   :  { %v739_v1 = vpop.f32.mrf.mxu2  ;;  %1534 = vmatpush.msra.mxu0 %v6691_v43 }
 0x15c   :  { %v740_v20 = vadd.f32 %v739_v1, %v684_v59 }
 0x15d   :  { %v686_v58 = vpop.f32.mrf.mxu1  ;;  %v795_v14 = vpop.f32.mrf.mxu3  ;;  %1535 = vmatpush.msra.mxu0 %v6697_v35 }
 0x15e   :  { %v796_v62 = vadd.f32 %v795_v14, %v740_v20  ;;  %v539_v20 = vadd.f32 %v6558_v57, %v483_v40  ;;  %v486_v14 = vadd.f32 %v6570_v11, %v430_v51  ;;  %v6753_v40 = vld [vmem:[%s8523_s0 + $0x140] sm:$0xff] }
 0x15f   :  { %v630_v0 = vpop.f32.mrf.mxu0  ;;  %1536 = vmatpush.msra.mxu0 %v6706_v29 }
 0x160   :  { %5068 = vmatmul.msk.f32.gmra.mxu0 %vm824_vm1, %v796_v62  ;;  %5086 = vmatmul.msk.f32.gmra.mxu1 %vm824_vm1, %v530_v3  ;;  %v687_v16 = vadd.f32 %v686_v58, %v630_v0  ;;  %v542_v0 = vadd.f32 %v6573_v25, %v486_v14  ;;  %v6773_v14 = vld [vmem:[%s8523_s0 + $0x128] sm:$0xff] }
 0x163   :  { %v742_v22 = vpop.f32.mrf.mxu2 }
 0x164   :  { %v743_v28 = vadd.f32 %v742_v22, %v687_v16  ;;  %v1024_v22 = vld [vmem:[#allocation2 + $0x348] sm:$0xff] }
 0x165   :  { %v689_v26 = vpop.f32.mrf.mxu1  ;;  %v798_v7 = vpop.f32.mrf.mxu3  ;;  %1147 = vmatmul.f32.vlgmr.msra.gmra.mxu3 %v1024_v22 }
 0x166   :  { %v799_v38 = vadd.f32 %v798_v7, %v743_v28  ;;  %5262 = vmatpush.msra.mxu3 %v6505_v49  ;;  %v1027_v7 = vld [vmem:[#allocation2 + $0x360] sm:$0xff] }
 0x167   :  { %v633_v41 = vpop.f32.mrf.mxu0  ;;  %1094 = vmatmul.f32.gmra.mxu2 %v1027_v7  ;;  %v6811_v7 = vld [vmem:[%s8523_s0 + $0x100] sm:$0xff] }
 0x168   :  { %5069 = vmatmul.msk.f32.gmra.mxu0 %vm824_vm1, %v799_v38  ;;  %5087 = vmatmul.msk.f32.gmra.mxu1 %vm824_vm1, %v533_v17  ;;  %v690_v9 = vadd.f32 %v689_v26, %v633_v41  ;;  %v1028_v17 = vld [vmem:[#allocation2 + $0x368] sm:$0xff]  ;;  %v1026_v41 = vld [vmem:[#allocation2 + $0x358] sm:$0xff] }
 0x169   :  { %5263 = vmatpush.msra.mxu3 %v6514_v56 }
 0x16b   :  { %v745_v15 = vpop.f32.mrf.mxu2  ;;  %5264 = vmatpush.msra.mxu3 %v6525_v45 }
 0x16c   :  { %v746_v21 = vadd.f32 %v745_v15, %v690_v9 }
 0x16d   :  { %v692_v46 = vpop.f32.mrf.mxu1  ;;  %v801_v4 = vpop.f32.mrf.mxu3  ;;  %5265 = vmatpush.msra.mxu3 %v6536_v24 }
 0x16e   :  { %v802_v39 = vadd.f32 %v801_v4, %v746_v21  ;;  %1150 = vmatmul.f32.gmra.mxu3 %v1028_v17  ;;  %v1031_v4 = vld [vmem:[#allocation2 + $0x380] sm:$0xff] }
 0x16f   :  { %v636_v42 = vpop.f32.mrf.mxu0  ;;  %5266 = vmatpush.msra.mxu3 %v6544_v13  ;;  %1097 = vmatmul.f32.gmra.mxu2 %v1031_v4  ;;  %v1047_v4 = vld [vmem:[#allocation2 + $0x400] sm:$0xff] }
 0x170   :  { %5070 = vmatmul.msk.f32.gmra.mxu0 %vm824_vm1, %v802_v39  ;;  %5088 = vmatmul.msk.f32.gmra.mxu1 %vm824_vm1, %v536_v31  ;;  %v693_v44 = vadd.f32 %v692_v46, %v636_v42  ;;  %v1032_v31 = vld [vmem:[#allocation2 + $0x388] sm:$0xff] }
 0x171   :  { %5267 = vmatpush.msra.mxu3 %v6553_v19 }
 0x173   :  { %v748_v59 = vpop.f32.mrf.mxu2  ;;  %5268 = vmatpush.msra.mxu3 %v6745_v37 }
 0x174   :  { %v749_v47 = vadd.f32 %v748_v59, %v693_v44  ;;  %v1030_v44 = vld [vmem:[#allocation2 + $0x378] sm:$0xff] }
 0x175   :  { %v695_v8 = vpop.f32.mrf.mxu1  ;;  %v804_v1 = vpop.f32.mrf.mxu3  ;;  %5269 = vmatpush.msra.mxu3 %v6753_v40  ;;  %v6759_v59 = vld [vmem:[%s8523_s0 + $0x138] sm:$0xff] }
 0x176   :  { %v805_v58 = vadd.f32 %v804_v1, %v749_v47  ;;  %1153 = vmatmul.f32.gmra.mxu3 %v1032_v31  ;;  %v6766_v1 = vld [vmem:[%s8523_s0 + $0x130] sm:$0xff]  ;;  %v1048_v31 = vld [vmem:[#allocation2 + $0x408] sm:$0xff] }
 0x177   :  { %v639_v48 = vpop.f32.mrf.mxu0  ;;  %5270 = vmatpush.msra.mxu3 %v6759_v59 }
 0x178   :  { %5071 = vmatmul.msk.f32.gmra.mxu0 %vm824_vm1, %v805_v58  ;;  %5089 = vmatmul.msk.f32.gmra.mxu1 %vm824_vm1, %v539_v20  ;;  %v696_v10 = vadd.f32 %v695_v8, %v639_v48  ;;  %v1035_v48 = vld [vmem:[#allocation2 + $0x3a0] sm:$0xff] }
 0x179   :  { %5271 = vmatpush.msra.mxu3 %v6766_v1  ;;  %1100 = vmatmul.f32.gmra.mxu2 %v1035_v48  ;;  %v6860_v48 = vld [vmem:[%s8523_s0 + $0x50] sm:$0xff] }
 0x17b   :  { %v751_v3 = vpop.f32.mrf.mxu2  ;;  %5272 = vmatpush.msra.mxu3 %v6773_v14 }
 0x17c   :  { %v752_v60 = vadd.f32 %v751_v3, %v696_v10  ;;  %v1036_v10 = vld [vmem:[#allocation2 + $0x3a8] sm:$0xff] }
 0x17d   :  { %v698_v52 = vpop.f32.mrf.mxu1  ;;  %v807_v62 = vpop.f32.mrf.mxu3 }
 0x17e   :  { %v808_v16 = vadd.f32 %v807_v62, %v752_v60  ;;  %v6781_v62 = vld [vmem:[%s8523_s0 + $0x120] sm:$0xff]  ;;  %1156 = vmatmul.f32.gmra.mxu3 %v1036_v10  ;;  %v1050_v10 = vld [vmem:[#allocation2 + $0x418] sm:$0xff] }
 0x17f   :  { %v642_v57 = vpop.f32.mrf.mxu0  ;;  %5273 = vmatpush.msra.mxu3 %v6781_v62 }
 0x180   :  { %5072 = vmatmul.msk.f32.gmra.mxu0 %vm824_vm1, %v808_v16  ;;  %5090 = vmatmul.msk.f32.gmra.mxu1 %vm824_vm1, %v542_v0  ;;  %v699_v36 = vadd.f32 %v698_v52, %v642_v57  ;;  %v1034_v52 = vld [vmem:[#allocation2 + $0x398] sm:$0xff] }
 0x181   :  { %v6787_v0 = vld [vmem:[%s8523_s0 + $0x118] sm:$0xff] }
 0x182   :  { %5274 = vmatpush.msra.mxu3 %v6787_v0 }
 0x183   :  { %v754_v18 = vpop.f32.mrf.mxu2 }
 0x184   :  { %v755_v11 = vadd.f32 %v754_v18, %v699_v36  ;;  %5275 = vmatpush.msra.mxu3 %v6794_v54 }
 0x185   :  { %v701_v28 = vpop.f32.mrf.mxu1  ;;  %v810_v26 = vpop.f32.mrf.mxu3 }
 0x186   :  { %v811_v25 = vadd.f32 %v810_v26, %v755_v11  ;;  %v1039_v11 = vld [vmem:[#allocation2 + $0x3c0] sm:$0xff]  ;;  %v6803_v26 = vld [vmem:[%s8523_s0 + $0x108] sm:$0xff] }
 0x187   :  { %v645_v30 = vpop.f32.mrf.mxu0  ;;  %5276 = vmatpush.msra.mxu3 %v6803_v26  ;;  %1103 = vmatmul.f32.gmra.mxu2 %v1039_v11  ;;  %v6882_v11 = vld [vmem:[%s8523_s0 + $0x38] sm:$0xff] }
 0x188   :  { %5073 = vmatmul.msk.f32.gmra.mxu0 %vm824_vm1, %v811_v25  ;;  %v702_v38 = vadd.f32 %v701_v28, %v645_v30  ;;  %1259 = vmatmul.f32.vlgmr.msrb.gmra.mxu1 %v1026_v41  ;;  %v1040_v28 = vld [vmem:[#allocation2 + $0x3c8] sm:$0xff]  ;;  %v1038_v25 = vld [vmem:[#allocation2 + $0x3b8] sm:$0xff]  ;;  %v1025_v30 = vld [vmem:[#allocation2 + $0x350] sm:$0xff] }
 0x189   :  { %1911 = vmatpush.msrb.mxu1 %v6594_v50  ;;  %5277 = vmatpush.msra.mxu3 %v6811_v7  ;;  %v1044_v41 = vld [vmem:[#allocation2 + $0x3e8] sm:$0xff] }
 0x18a   :  { %1159 = vmatmul.f32.gmra.mxu3 %v1040_v28  ;;  %v1054_v28 = vld [vmem:[#allocation2 + $0x438] sm:$0xff] }
 0x18b   :  { %v757_v9 = vpop.f32.mrf.mxu2  ;;  %1912 = vmatpush.msrb.mxu1 %v6601_v27 }
 0x18c   :  { %v758_v32 = vadd.f32 %v757_v9, %v702_v38  ;;  %v1043_v38 = vld [vmem:[#allocation2 + $0x3e0] sm:$0xff]  ;;  %v1042_v9 = vld [vmem:[#allocation2 + $0x3d8] sm:$0xff] }
 0x18d   :  { %v704_v15 = vpop.f32.mrf.mxu1  ;;  %v813_v21 = vpop.f32.mrf.mxu3  ;;  %1913 = vmatpush.msrb.mxu1 %v6607_v63 }
 0x18e   :  { %v814_v46 = vadd.f32 %v813_v21, %v758_v32  ;;  %v6822_v32 = vld [vmem:[%s8523_s0 + $0x78] sm:$0xff] }
 0x18f   :  { %v648_v39 = vpop.f32.mrf.mxu0  ;;  %1914 = vmatpush.msrb.mxu1 %v6616_v55  ;;  %1106 = vmatmul.f32.gmra.mxu2 %v1043_v38 }
 0x190   :  { %5074 = vmatmul.msk.f32.gmra.mxu0 %vm824_vm1, %v814_v46  ;;  %v705_v42 = vadd.f32 %v704_v15, %v648_v39  ;;  %1262 = vmatmul.f32.gmra.mxu1 %v1030_v44  ;;  %v6829_v15 = vld [vmem:[%s8523_s0 + $0x70] sm:$0xff]  ;;  %v6838_v39 = vld [vmem:[%s8523_s0 + $0x68] sm:$0xff]  ;;  %v6845_v44 = vld [vmem:[%s8523_s0 + $0x60] sm:$0xff] }
 0x191   :  { %1915 = vmatpush.msrb.mxu1 %v6624_v61  ;;  %v1029_v46 = vld [vmem:[#allocation2 + $0x370] sm:$0xff] }
 0x192   :  { %1162 = vmatmul.f32.gmra.mxu3 %v1044_v41 }
 0x193   :  { %v760_v47 = vpop.f32.mrf.mxu2  ;;  %1916 = vmatpush.msrb.mxu1 %v6631_v2 }
 0x194   :  { %v761_v8 = vadd.f32 %v760_v47, %v705_v42  ;;  %v1046_v42 = vld [vmem:[#allocation2 + $0x3f8] sm:$0xff] }
 0x195   :  { %v707_v20 = vpop.f32.mrf.mxu1  ;;  %v816_v51 = vpop.f32.mrf.mxu3  ;;  %1917 = vmatpush.msrb.mxu1 %v6637_v33  ;;  %v6852_v47 = vld [vmem:[%s8523_s0 + $0x58] sm:$0xff] }
 0x196   :  { %v817_v58 = vadd.f32 %v816_v51, %v761_v8  ;;  %v1051_v51 = vld [vmem:[#allocation2 + $0x420] sm:$0xff] }
 0x197   :  { %v651_v3 = vpop.f32.mrf.mxu0  ;;  %1918 = vmatpush.msrb.mxu1 %v6646_v34  ;;  %1109 = vmatmul.f32.gmra.mxu2 %v1047_v4  ;;  %v1060_v4 = vld [vmem:[#allocation2 + $0x468] sm:$0xff] }
 0x198   :  { %5075 = vmatmul.msk.f32.gmra.mxu0 %vm824_vm1, %v817_v58  ;;  %v708_v60 = vadd.f32 %v707_v20, %v651_v3  ;;  %1265 = vmatmul.f32.gmra.mxu1 %v1034_v52  ;;  %v1033_v20 = vld [vmem:[#allocation2 + $0x390] sm:$0xff]  ;;  %v1052_v58 = vld [vmem:[#allocation2 + $0x428] sm:$0xff] }
 0x199   :  { %1919 = vmatpush.msrb.mxu1 %v6654_v6  ;;  %v6866_v3 = vld [vmem:[%s8523_s0 + $0x48] sm:$0xff] }
 0x19a   :  { %1165 = vmatmul.f32.gmra.mxu3 %v1048_v31  ;;  %v6904_v31 = vld [vmem:[%s8523_s0 + $0x20] sm:$0xff] }
 0x19b   :  { %v763_v16 = vpop.f32.mrf.mxu2  ;;  %1920 = vmatpush.msrb.mxu1 %v6661_v5 }
 0x19c   :  { %v764_v57 = vadd.f32 %v763_v16, %v708_v60  ;;  %v6872_v60 = vld [vmem:[%s8523_s0 + $0x40] sm:$0xff] }
 0x19d   :  { %v819_v22 = vpop.f32.mrf.mxu3  ;;  %v6797_v36 = vpop.f32.mrf.mxu1  ;;  %1921 = vmatpush.msrb.mxu1 %v6667_v23 }
 0x19e   :  { %8629 = vst [vmem:[#allocation26_spill] sm:$0xff] %v6797_v36  ;;  %v820_v18 = vadd.f32 %v819_v22, %v764_v57  ;;  %v1037_v57 = vld [vmem:[#allocation2 + $0x3b0] sm:$0xff]  ;;  %v1055_v22 = vld [vmem:[#allocation2 + $0x440] sm:$0xff] }
 0x19f   :  { %1922 = vmatpush.msrb.mxu1 %v6676_v53  ;;  %1112 = vmatmul.f32.gmra.mxu2 %v1051_v51  ;;  %v6916_v51 = vld [vmem:[%s8523_s0 + $0x10] sm:$0xff] }
 0x1a0   :  { %5076 = vmatmul.msk.f32.gmra.mxu0 %vm824_vm1, %v820_v18  ;;  %1268 = vmatmul.f32.gmra.mxu1 %v1038_v25  ;;  %v1056_v18 = vld [vmem:[#allocation2 + $0x448] sm:$0xff]  ;;  %v6888_v25 = vld [vmem:[%s8523_s0 + $0x30] sm:$0xff] }
 0x1a1   :  { %1923 = vmatpush.msrb.mxu1 %v6684_v12 }
 0x1a2   :  { %1168 = vmatmul.f32.gmra.mxu3 %v1052_v58 }
 0x1a3   :  { %1924 = vmatpush.msrb.mxu1 %v6691_v43 }
 0x1a5   :  { %v6815_v17 = vpop.f32.mrf.mxu1  ;;  %1925 = vmatpush.msrb.mxu1 %v6697_v35 }
 0x1a6   :  { %8630 = vst [vmem:[#allocation27_spill] sm:$0xff] %v6815_v17 }
 0x1a7   :  { %1926 = vmatpush.msrb.mxu1 %v6706_v29  ;;  %1115 = vmatmul.f32.gmra.mxu2 %v1055_v22  ;;  %v1063_v22 = vld [vmem:[#allocation2 + $0x480] sm:$0xff] }
 0x1a8   :  { %1203 = vmatmul.f32.vlgmr.msrb.gmra.mxu0 %v1025_v30  ;;  %1271 = vmatmul.f32.gmra.mxu1 %v1042_v9  ;;  %v6894_v30 = vld [vmem:[%s8523_s0 + $0x28] sm:$0xff]  ;;  %v1041_v9 = vld [vmem:[#allocation2 + $0x3d0] sm:$0xff] }
 0x1a9   :  { %1855 = vmatpush.msrb.mxu0 %v6822_v32 }
 0x1aa   :  { %1171 = vmatmul.f32.gmra.mxu3 %v1056_v18  ;;  %v1064_v18 = vld [vmem:[#allocation2 + $0x488] sm:$0xff] }
 0x1ab   :  { %1856 = vmatpush.msrb.mxu0 %v6829_v15 }
 0x1ad   :  { %v6832_v21 = vpop.f32.mrf.mxu1  ;;  %1857 = vmatpush.msrb.mxu0 %v6838_v39 }
 0x1ae   :  { %8631 = vst [vmem:[#allocation28_spill] sm:$0xff] %v6832_v21  ;;  %v1072_v21 = vld [vmem:[#allocation2 + $0x4c8] sm:$0xff] }
 0x1af   :  { %1858 = vmatpush.msrb.mxu0 %v6845_v44 }
 0x1b0   :  { %1206 = vmatmul.f32.gmra.mxu0 %v1029_v46  ;;  %1274 = vmatmul.f32.gmra.mxu1 %v1046_v42  ;;  %v1059_v46 = vld [vmem:[#allocation2 + $0x460] sm:$0xff]  ;;  %v1058_v42 = vld [vmem:[#allocation2 + $0x458] sm:$0xff] }
 0x1b1   :  { %1859 = vmatpush.msrb.mxu0 %v6852_v47  ;;  %1118 = vmatmul.f32.gmra.mxu2 %v1059_v46  ;;  %v6932_v46 = vld [vmem:[%s8523_s0] sm:$0xff] }
 0x1b2   :  { %1174 = vmatmul.f32.gmra.mxu3 %v1060_v4 }
 0x1b3   :  { %1860 = vmatpush.msrb.mxu0 %v6860_v48 }
 0x1b5   :  { %v6855_v8 = vpop.f32.mrf.mxu1  ;;  %1861 = vmatpush.msrb.mxu0 %v6866_v3 }
 0x1b6   :  { %8632 = vst [vmem:[#allocation29_spill] sm:$0xff] %v6855_v8  ;;  %v1071_v8 = vld [vmem:[#allocation2 + $0x4c0] sm:$0xff] }
 0x1b7   :  { %1862 = vmatpush.msrb.mxu0 %v6872_v60 }
 0x1b8   :  { %1209 = vmatmul.f32.gmra.mxu0 %v1033_v20  ;;  %1277 = vmatmul.f32.gmra.mxu1 %v1050_v10  ;;  %v6910_v20 = vld [vmem:[%s8523_s0 + $0x18] sm:$0xff] }
 0x1b9   :  { %1863 = vmatpush.msrb.mxu0 %v6882_v11  ;;  %1121 = vmatmul.f32.gmra.mxu2 %v1063_v22 }
 0x1ba   :  { %1177 = vmatmul.f32.gmra.mxu3 %v1064_v18 }
 0x1bb   :  { %1864 = vmatpush.msrb.mxu0 %v6888_v25 }
 0x1bd   :  { %v6875_v52 = vpop.f32.mrf.mxu0  ;;  %v6877_v16 = vpop.f32.mrf.mxu1  ;;  %1865 = vmatpush.msrb.mxu0 %v6894_v30 }
 0x1be   :  { %8633 = vst [vmem:[#allocation33_spill] sm:$0xff] %v6875_v52 }
 0x1bf   :  { %8634 = vst [vmem:[#allocation36_spill] sm:$0xff] %v6877_v16  ;;  %1866 = vmatpush.msrb.mxu0 %v6904_v31  ;;  %v1068_v16 = vld [vmem:[#allocation2 + $0x4a8] sm:$0xff] }
 0x1c0   :  { %1212 = vmatmul.f32.gmra.mxu0 %v1037_v57  ;;  %1280 = vmatmul.f32.gmra.mxu1 %v1054_v28  ;;  %v1045_v57 = vld [vmem:[#allocation2 + $0x3f0] sm:$0xff]  ;;  %v6926_v28 = vld [vmem:[%s8523_s0 + $0x8] sm:$0xff] }
 0x1c1   :  { %1867 = vmatpush.msrb.mxu0 %v6910_v20 }
 0x1c2   :  { %1180 = vmatmul.f32.gmra.mxu3 %v1068_v16  ;;  %v1074_v16 = vld [vmem:[#allocation2 + $0x4d8] sm:$0xff] }
 0x1c3   :  { %1868 = vmatpush.msrb.mxu0 %v6916_v51 }
 0x1c5   :  { %v6897_v38 = vpop.f32.mrf.mxu0  ;;  %v6899_v41 = vpop.f32.mrf.mxu1  ;;  %1869 = vmatpush.msrb.mxu0 %v6926_v28 }
 0x1c6   :  { %8635 = vst [vmem:[#allocation37_spill] sm:$0xff] %v6897_v38 }
 0x1c7   :  { %8636 = vst [vmem:[#allocation38_spill] sm:$0xff] %v6899_v41  ;;  %1870 = vmatpush.msrb.mxu0 %v6932_v46  ;;  %v1067_v41 = vld [vmem:[#allocation2 + $0x4a0] sm:$0xff] }
 0x1c8   :  { %1215 = vmatmul.f32.gmra.mxu0 %v1041_v9  ;;  %1283 = vmatmul.f32.gmra.mxu1 %v1058_v42  ;;  %v1062_v9 = vld [vmem:[#allocation2 + $0x478] sm:$0xff] }
 0x1c9   :  { %1124 = vmatmul.f32.gmra.mxu2 %v1067_v41 }
 0x1ca   :  { %1183 = vmatmul.f32.gmra.mxu3 %v1072_v21  ;;  %v6953_v21 = vld [vmem:[%s8523_s0 + $0x1f8] sm:$0xff] }
 0x1cb   :  { %8646 = vst [vmem:[#allocation48_spill] sm:$0xff] %v6953_v21 }
 0x1cd   :  { %v6919_v58 = vpop.f32.mrf.mxu0  ;;  %v6921_v10 = vpop.f32.mrf.mxu1 }
 0x1ce   :  { %8637 = vst [vmem:[#allocation39_spill] sm:$0xff] %v6919_v58  ;;  %v1070_v58 = vld [vmem:[#allocation2 + $0x4b8] sm:$0xff] }
 0x1cf   :  { %8638 = vst [vmem:[#allocation40_spill] sm:$0xff] %v6921_v10  ;;  %v1049_v10 = vld [vmem:[#allocation2 + $0x410] sm:$0xff] }
 0x1d0   :  { %1218 = vmatmul.f32.gmra.mxu0 %v1045_v57  ;;  %1286 = vmatmul.f32.gmra.mxu1 %v1062_v9  ;;  %v1066_v57 = vld [vmem:[#allocation2 + $0x498] sm:$0xff]  ;;  %v1053_v9 = vld [vmem:[#allocation2 + $0x430] sm:$0xff] }
 0x1d1   :  { %1127 = vmatmul.f32.gmra.mxu2 %v1071_v8 }
 0x1d5   :  { %v6935_v4 = vpop.f32.mrf.mxu0  ;;  %v6937_v42 = vpop.f32.mrf.mxu1 }
 0x1d6   :  { %8639 = vst [vmem:[#allocation41_spill] sm:$0xff] %v6935_v4  ;;  %v1057_v4 = vld [vmem:[#allocation2 + $0x450] sm:$0xff] }
 0x1d7   :  { %8640 = vst [vmem:[#allocation42_spill] sm:$0xff] %v6937_v42 }
 0x1d8   :  { %1221 = vmatmul.f32.gmra.mxu0 %v1049_v10  ;;  %1289 = vmatmul.f32.gmra.mxu1 %v1066_v57  ;;  %v1061_v57 = vld [vmem:[#allocation2 + $0x470] sm:$0xff] }
 0x1dd   :  { %v6939_v22 = vpop.f32.mrf.mxu0  ;;  %v6941_v18 = vpop.f32.mrf.mxu1 }
 0x1de   :  { %8641 = vst [vmem:[#allocation43_spill] sm:$0xff] %v6939_v22  ;;  %v1300_v22 = vld [vmem:[#allocation7 + $0x8] sm:$0xf] }
 0x1df   :  { %8642 = vst [vmem:[#allocation44_spill] sm:$0xff] %v6941_v18  ;;  %5091 = vmatpush.msk.msrb.mxu2 %vm864_vm0, %v1300_v22  ;;  %v1069_v18 = vld [vmem:[#allocation2 + $0x4b0] sm:$0xff] }
 0x1e0   :  { %1224 = vmatmul.f32.gmra.mxu0 %v1053_v9  ;;  %1292 = vmatmul.f32.gmra.mxu1 %v1070_v58  ;;  %v6961_v58 = vld [vmem:[%s8523_s0 + $0x1f0] sm:$0xff] }
 0x1e1   :  { %1633 = vmatpush.msra.mxu2 %v6953_v21  ;;  %8648 = vst [vmem:[#allocation50_spill] sm:$0xff] %v6961_v58  ;;  %v1065_v9 = vld [vmem:[#allocation2 + $0x490] sm:$0xff] }
 0x1e3   :  { %1634 = vmatpush.msra.mxu2 %v6961_v58 }
 0x1e5   :  { %v6943_v42 = vpop.f32.mrf.mxu0  ;;  %v6945_v10 = vpop.f32.mrf.mxu1 }
 0x1e6   :  { %8643 = vst [vmem:[#allocation45_spill] sm:$0xff] %v6943_v42 }
 0x1e7   :  { %8644 = vst [vmem:[#allocation46_spill] sm:$0xff] %v6945_v10  ;;  %v7003_v10 = vld [vmem:[%s8523_s0 + $0x1c0] sm:$0xff] }
 0x1e8   :  { %1227 = vmatmul.f32.gmra.mxu0 %v1057_v4  ;;  %1295 = vmatmul.f32.gmra.mxu1 %v1074_v16  ;;  %v6967_v4 = vld [vmem:[%s8523_s0 + $0x1e8] sm:$0xff]  ;;  %v6975_v16 = vld [vmem:[%s8523_s0 + $0x1e0] sm:$0xff]  ;;  %8657 = vst [vmem:[#allocation59_spill] sm:$0xff] %v7003_v10 }
 0x1e9   :  { %8649 = vst [vmem:[#allocation51_spill] sm:$0xff] %v6967_v4  ;;  %1635 = vmatpush.msra.mxu2 %v6967_v4 }
 0x1ea   :  { %8651 = vst [vmem:[#allocation53_spill] sm:$0xff] %v6975_v16 }
 0x1eb   :  { %1636 = vmatpush.msra.mxu2 %v6975_v16 }
 0x1ed   :  { %v6947_v41 = vpop.f32.mrf.mxu0  ;;  %v6956_v8 = vpop.f32.mrf.mxu1 }
 0x1ee   :  { %8645 = vst [vmem:[#allocation47_spill] sm:$0xff] %v6947_v41  ;;  %v6987_v41 = vld [vmem:[%s8523_s0 + $0x1d0] sm:$0xff] }
 0x1ef   :  { %8647 = vst [vmem:[#allocation49_spill] sm:$0xff] %v6956_v8  ;;  %v7009_v8 = vld [vmem:[%s8523_s0 + $0x1b8] sm:$0xff] }
 0x1f0   :  { %1230 = vmatmul.f32.gmra.mxu0 %v1061_v57  ;;  %v6981_v57 = vld [vmem:[%s8523_s0 + $0x1d8] sm:$0xff]  ;;  %8653 = vst [vmem:[#allocation55_spill] sm:$0xff] %v6987_v41 }
 0x1f1   :  { %8652 = vst [vmem:[#allocation54_spill] sm:$0xff] %v6981_v57  ;;  %1637 = vmatpush.msra.mxu2 %v6981_v57  ;;  %v7037_v57 = vld [vmem:[%s8523_s0 + $0x198] sm:$0xff] }
 0x1f2   :  { %8658 = vst [vmem:[#allocation60_spill] sm:$0xff] %v7009_v8 }
 0x1f3   :  { %1638 = vmatpush.msra.mxu2 %v6987_v41  ;;  %v7031_v41 = vld [vmem:[%s8523_s0 + $0x1a0] sm:$0xff]  ;;  %8664 = vst [vmem:[#allocation66_spill] sm:$0xff] %v7037_v57 }
 0x1f4   :  { %8663 = vst [vmem:[#allocation65_spill] sm:$0xff] %v7031_v41 }
 0x1f5   :  { %v6970_v22 = vpop.f32.mrf.mxu0 }
 0x1f6   :  { %8650 = vst [vmem:[#allocation52_spill] sm:$0xff] %v6970_v22  ;;  %v6990_v22 = vpop.f32.mrf.mxu1 }
 0x1f7   :  { %8654 = vst [vmem:[#allocation56_spill] sm:$0xff] %v6990_v22  ;;  %v7021_v22 = vld [vmem:[%s8523_s0 + $0x1a8] sm:$0xff] }
 0x1f8   :  { %1233 = vmatmul.f32.gmra.mxu0 %v1065_v9  ;;  %v6995_v9 = vld [vmem:[%s8523_s0 + $0x1c8] sm:$0xff]  ;;  %8660 = vst [vmem:[#allocation62_spill] sm:$0xff] %v7021_v22 }
 0x1f9   :  { %8655 = vst [vmem:[#allocation57_spill] sm:$0xff] %v6995_v9  ;;  %1639 = vmatpush.msra.mxu2 %v6995_v9  ;;  %v1073_v9 = vld [vmem:[#allocation2 + $0x4d0] sm:$0xff] }
 0x1fb   :  { %1640 = vmatpush.msra.mxu2 %v7003_v10 }
 0x1fd   :  { %v6998_v42 = vpop.f32.mrf.mxu0  ;;  %1641 = vmatpush.msra.mxu2 %v7009_v8  ;;  %v1092_v8 = vpop.f32.mrf.mxu2 }
 0x1fe   :  { %8656 = vst [vmem:[#allocation58_spill] sm:$0xff] %v6998_v42  ;;  %v7015_v42 = vld [vmem:[%s8523_s0 + $0x1b0] sm:$0xff] }
 0x1ff   :  { %8659 = vst [vmem:[#allocation61_spill] sm:$0xff] %v7015_v42  ;;  %1642 = vmatpush.msra.mxu2 %v7015_v42  ;;  %v1148_v42 = vpop.f32.mrf.mxu3 }
 0x200   :  { %1236 = vmatmul.f32.gmra.mxu0 %v1069_v18  ;;  %v7024_v18 = vpop.f32.mrf.mxu1  ;;  %v1149_v38 = vadd.f32 %v1148_v42, %v1092_v8 }
 0x201   :  { %1643 = vmatpush.msra.mxu2 %v7021_v22  ;;  %8661 = vst [vmem:[#allocation63_spill] sm:$0xff] %v7024_v18  ;;  %v7049_v18 = vld [vmem:[%s8523_s0 + $0x188] sm:$0xff] }
 0x202   :  { %8666 = vst [vmem:[#allocation68_spill] sm:$0xff] %v7049_v18 }
 0x203   :  { %1644 = vmatpush.msra.mxu2 %v7031_v41 }
 0x205   :  { %v7026_v10 = vpop.f32.mrf.mxu0  ;;  %1645 = vmatpush.msra.mxu2 %v7037_v57  ;;  %v7057_v57 = vld [vmem:[%s8523_s0 + $0x180] sm:$0xff]  ;;  %v1095_v22 = vpop.f32.mrf.mxu2 }
 0x206   :  { %8662 = vst [vmem:[#allocation64_spill] sm:$0xff] %v7026_v10  ;;  %v7043_v10 = vld [vmem:[%s8523_s0 + $0x190] sm:$0xff] }
 0x207   :  { %8665 = vst [vmem:[#allocation67_spill] sm:$0xff] %v7043_v10  ;;  %1646 = vmatpush.msra.mxu2 %v7043_v10  ;;  %v1151_v16 = vpop.f32.mrf.mxu3 }
 0x208   :  { %1239 = vmatmul.f32.gmra.mxu0 %v1073_v9  ;;  %v1260_v41 = vpop.f32.mrf.mxu1  ;;  %8668 = vst [vmem:[#allocation70_spill] sm:$0xff] %v7057_v57  ;;  %v1152_v52 = vadd.f32 %v1151_v16, %v1095_v22 }
 0x209   :  { %1647 = vmatpush.msra.mxu2 %v7049_v18 }
 0x20b   :  { %1648 = vmatpush.msra.mxu2 %v7057_v57 }
 0x20d   :  { %v7052_v9 = vpop.f32.mrf.mxu0  ;;  %v1098_v58 = vpop.f32.mrf.mxu2 }
 0x20e   :  { %8667 = vst [vmem:[#allocation69_spill] sm:$0xff] %v7052_v9 }
 0x20f   :  { %v1154_v21 = vpop.f32.mrf.mxu3 }
 0x210   :  { %v1263_v4 = vpop.f32.mrf.mxu1 }
 0x215   :  { %v7060_v10 = vpop.f32.mrf.mxu0  ;;  %v1101_v9 = vpop.f32.mrf.mxu2 }
 0x216   :  { %8669 = vst [vmem:[#allocation71_spill] sm:$0xff] %v7060_v10 }
 0x217   :  { %v1157_v35 = vpop.f32.mrf.mxu3 }
 0x218   :  { %v1266_v18 = vpop.f32.mrf.mxu1 }
 0x21d   :  { %v7062_v17 = vpop.f32.mrf.mxu0  ;;  %v1104_v53 = vpop.f32.mrf.mxu2 }
 0x21e   :  { %8670 = vst [vmem:[#allocation72_spill] sm:$0xff] %v7062_v17 }
 0x21f   :  { %v1160_v23 = vpop.f32.mrf.mxu3 }
 0x220   :  { %v1269_v57 = vpop.f32.mrf.mxu1 }
 0x225   :  { %v1204_v29 = vpop.f32.mrf.mxu0 }
 0x226   :  { %v1205_v43 = vadd.f32 %v1204_v29, %v1149_v38 }
 0x228   :  { %v1261_v36 = vadd.f32 %v1260_v41, %v1205_v43  ;;  %v1155_v43 = vadd.f32 %v1154_v21, %v1098_v58 }
 0x22a   :  { %5092 = vmatmul.msk.f32.vlgmr.msrb.gmra.mxu2 %vm824_vm1, %v1261_v36  ;;  %v1272_v36 = vpop.f32.mrf.mxu1 }
 0x22b   :  { %1967 = vmatpush.msrb.mxu2 %v6505_v49 }
 0x22d   :  { %v1207_v12 = vpop.f32.mrf.mxu0  ;;  %1968 = vmatpush.msrb.mxu2 %v6514_v56 }
 0x22e   :  { %v1208_v10 = vadd.f32 %v1207_v12, %v1152_v52  ;;  %v1107_v12 = vpop.f32.mrf.mxu2  ;;  %v1163_v52 = vpop.f32.mrf.mxu3 }
 0x22f   :  { %1969 = vmatpush.msrb.mxu2 %v6525_v45  ;;  %v1158_v45 = vadd.f32 %v1157_v35, %v1101_v9  ;;  %v1164_v21 = vadd.f32 %v1163_v52, %v1107_v12 }
 0x230   :  { %v1264_v42 = vadd.f32 %v1263_v4, %v1208_v10 }
 0x231   :  { %1970 = vmatpush.msrb.mxu2 %v6536_v24 }
 0x232   :  { %5093 = vmatmul.msk.f32.gmra.mxu2 %vm824_vm1, %v1264_v42  ;;  %v1275_v38 = vpop.f32.mrf.mxu1 }
 0x233   :  { %1971 = vmatpush.msrb.mxu2 %v6544_v13 }
 0x235   :  { %v1210_v29 = vpop.f32.mrf.mxu0  ;;  %1972 = vmatpush.msrb.mxu2 %v6553_v19 }
 0x236   :  { %v1211_v49 = vadd.f32 %v1210_v29, %v1155_v43  ;;  %v1110_v10 = vpop.f32.mrf.mxu2 }
 0x237   :  { %1973 = vmatpush.msrb.mxu2 %v6745_v37  ;;  %v1161_v37 = vadd.f32 %v1160_v23, %v1104_v53 }
 0x238   :  { %v1267_v56 = vadd.f32 %v1266_v18, %v1211_v49 }
 0x239   :  { %1974 = vmatpush.msrb.mxu2 %v6753_v40  ;;  %v1166_v40 = vpop.f32.mrf.mxu3 }
 0x23a   :  { %5094 = vmatmul.msk.f32.gmra.mxu2 %vm824_vm1, %v1267_v56  ;;  %v1278_v41 = vpop.f32.mrf.mxu1  ;;  %v1167_v22 = vadd.f32 %v1166_v40, %v1110_v10  ;;  %v1417_v40 = vld [vmem:[#allocation2 + $0x500] sm:$0xff] }
 0x23b   :  { %1975 = vmatpush.msrb.mxu2 %v6759_v59 }
 0x23d   :  { %v1213_v24 = vpop.f32.mrf.mxu0  ;;  %1976 = vmatpush.msrb.mxu2 %v6766_v1 }
 0x23e   :  { %v1214_v13 = vadd.f32 %v1213_v24, %v1158_v45  ;;  %v1113_v8 = vpop.f32.mrf.mxu2  ;;  %v1413_v24 = vld [vmem:[#allocation2 + $0x4e0] sm:$0xff] }
 0x23f   :  { %1977 = vmatpush.msrb.mxu2 %v6773_v14  ;;  %1481 = vmatmul.f32.vlgmr.msrb.gmra.mxu3 %v1413_v24  ;;  %v1426_v24 = vld [vmem:[#allocation2 + $0x548] sm:$0xff] }
 0x240   :  { %v1270_v19 = vadd.f32 %v1269_v57, %v1214_v13 }
 0x241   :  { %1978 = vmatpush.msrb.mxu2 %v6781_v62  ;;  %v1169_v23 = vpop.f32.mrf.mxu3 }
 0x242   :  { %5095 = vmatmul.msk.f32.gmra.mxu2 %vm824_vm1, %v1270_v19  ;;  %v1281_v16 = vpop.f32.mrf.mxu1  ;;  %v1170_v29 = vadd.f32 %v1169_v23, %v1113_v8  ;;  %v1421_v23 = vld [vmem:[#allocation2 + $0x520] sm:$0xff] }
 0x243   :  { %1979 = vmatpush.msrb.mxu2 %v6787_v0 }
 0x245   :  { %v1216_v35 = vpop.f32.mrf.mxu0  ;;  %1980 = vmatpush.msrb.mxu2 %v6794_v54 }
 0x246   :  { %v1217_v59 = vadd.f32 %v1216_v35, %v1161_v37  ;;  %v1116_v9 = vpop.f32.mrf.mxu2 }
 0x247   :  { %1981 = vmatpush.msrb.mxu2 %v6803_v26  ;;  %1484 = vmatmul.f32.gmra.mxu3 %v1417_v40  ;;  %v1437_v40 = vld [vmem:[#allocation2 + $0x5a0] sm:$0xff] }
 0x248   :  { %v1273_v1 = vadd.f32 %v1272_v36, %v1217_v59 }
 0x249   :  { %1982 = vmatpush.msrb.mxu2 %v6811_v7  ;;  %v1172_v42 = vpop.f32.mrf.mxu3 }
 0x24a   :  { %5096 = vmatmul.msk.f32.gmra.mxu2 %vm824_vm1, %v1273_v1  ;;  %v1284_v49 = vpop.f32.mrf.mxu1  ;;  %v1173_v13 = vadd.f32 %v1172_v42, %v1116_v9  ;;  %v1414_v1 = vld [vmem:[#allocation2 + $0x4e8] sm:$0xff] }
 0x24b   :  { %1537 = vmatmul.f32.vlgmr.msra.gmra.mxu0 %v1414_v1  ;;  %v8675_v1 = vld [vmem:[#allocation26_spill] sm:$0xff] }
 0x24d   :  { %v1219_v58 = vpop.f32.mrf.mxu0 }
 0x24e   :  { %v1220_v53 = vadd.f32 %v1219_v58, %v1164_v21  ;;  %v1119_v52 = vpop.f32.mrf.mxu2 }
 0x24f   :  { %1487 = vmatmul.f32.gmra.mxu3 %v1421_v23  ;;  %v1432_v23 = vld [vmem:[#allocation2 + $0x578] sm:$0xff] }
 0x250   :  { %v1276_v4 = vadd.f32 %v1275_v38, %v1220_v53 }
 0x251   :  { %v1175_v45 = vpop.f32.mrf.mxu3 }
 0x252   :  { %5097 = vmatmul.msk.f32.gmra.mxu2 %vm824_vm1, %v1276_v4  ;;  %v1287_v37 = vpop.f32.mrf.mxu1  ;;  %v1176_v35 = vadd.f32 %v1175_v45, %v1119_v52  ;;  %v1429_v52 = vld [vmem:[#allocation2 + $0x560] sm:$0xff] }
 0x255   :  { %v1222_v57 = vpop.f32.mrf.mxu0 }
 0x256   :  { %v1223_v18 = vadd.f32 %v1222_v57, %v1167_v22  ;;  %v1122_v59 = vpop.f32.mrf.mxu2  ;;  %v1419_v57 = vld [vmem:[#allocation2 + $0x510] sm:$0xff] }
 0x258   :  { %v1279_v43 = vadd.f32 %v1278_v41, %v1223_v18  ;;  %v1415_v41 = vld [vmem:[#allocation2 + $0x4f0] sm:$0xff] }
 0x259   :  { %v1178_v21 = vpop.f32.mrf.mxu3  ;;  %1593 = vmatmul.f32.vlgmr.msra.gmra.mxu1 %v1415_v41 }
 0x25a   :  { %5098 = vmatmul.msk.f32.gmra.mxu2 %vm824_vm1, %v1279_v43  ;;  %2245 = vmatpush.msra.mxu1 %v6822_v32  ;;  %v1290_v4 = vpop.f32.mrf.mxu1  ;;  %v1179_v22 = vadd.f32 %v1178_v21, %v1122_v59  ;;  %v8672_v59 = vld [vmem:[#allocation31_spill] sm:$0xff] }
 0x25b   :  { %v1446_v21 = vld [vmem:[#allocation2 + $0x5e8] sm:$0xff] }
 0x25c   :  { %2246 = vmatpush.msra.mxu1 %v6829_v15  ;;  %v1425_v15 = vld [vmem:[#allocation2 + $0x540] sm:$0xff] }
 0x25d   :  { %v1225_v36 = vpop.f32.mrf.mxu0  ;;  %1490 = vmatmul.f32.gmra.mxu3 %v1425_v15  ;;  %v1451_v15 = vld [vmem:[#allocation2 + $0x610] sm:$0xff] }
 0x25e   :  { %v1226_v56 = vadd.f32 %v1225_v36, %v1170_v29  ;;  %2247 = vmatpush.msra.mxu1 %v6838_v39  ;;  %v1125_v18 = vpop.f32.mrf.mxu2  ;;  %v1422_v29 = vld [vmem:[#allocation2 + $0x528] sm:$0xff]  ;;  %v1423_v36 = vld [vmem:[#allocation2 + $0x530] sm:$0xff] }
 0x260   :  { %v1282_v12 = vadd.f32 %v1281_v16, %v1226_v56  ;;  %v1418_v16 = vld [vmem:[#allocation2 + $0x508] sm:$0xff]  ;;  %2248 = vmatpush.msra.mxu1 %v6845_v44 }
 0x261   :  { %1540 = vmatmul.f32.gmra.mxu0 %v1418_v16  ;;  %1596 = vmatmul.f32.gmra.mxu1 %v1419_v57  ;;  %v1181_v9 = vpop.f32.mrf.mxu3  ;;  %v8679_v16 = vld [vmem:[#allocation37_spill] sm:$0xff]  ;;  %v8680_v57 = vld [vmem:[#allocation27_spill] sm:$0xff] }
 0x262   :  { %5099 = vmatmul.msk.f32.gmra.mxu2 %vm824_vm1, %v1282_v12  ;;  %2249 = vmatpush.msra.mxu1 %v6852_v47  ;;  %v1182_v39 = vadd.f32 %v1181_v9, %v1125_v18  ;;  %v987_v18 = vadd.f32 %v8680_v57, %v8679_v16  ;;  %v1450_v9 = vld [vmem:[#allocation2 + $0x608] sm:$0xff] }
 0x264   :  { %2250 = vmatpush.msra.mxu1 %v6860_v48 }
 0x265   :  { %v1228_v38 = vpop.f32.mrf.mxu0  ;;  %1493 = vmatmul.f32.gmra.mxu3 %v1429_v52  ;;  %v1459_v52 = vld [vmem:[#allocation2 + $0x650] sm:$0xff] }
 0x266   :  { %v1229_v19 = vadd.f32 %v1228_v38, %v1173_v13  ;;  %2251 = vmatpush.msra.mxu1 %v6866_v3  ;;  %v1128_v47 = vpop.f32.mrf.mxu2  ;;  %v1427_v13 = vld [vmem:[#allocation2 + $0x550] sm:$0xff] }
 0x268   :  { %v1285_v10 = vadd.f32 %v1284_v49, %v1229_v19  ;;  %v1293_v49 = vpop.f32.mrf.mxu1  ;;  %2252 = vmatpush.msra.mxu1 %v6872_v60  ;;  %v1433_v60 = vld [vmem:[#allocation2 + $0x580] sm:$0xff] }
 0x269   :  { %1543 = vmatmul.f32.gmra.mxu0 %v1422_v29  ;;  %1599 = vmatmul.f32.gmra.mxu1 %v1423_v36  ;;  %v1184_v12 = vpop.f32.mrf.mxu3  ;;  %v1454_v36 = vld [vmem:[#allocation2 + $0x628] sm:$0xff] }
 0x26a   :  { %5100 = vmatmul.msk.f32.gmra.mxu2 %vm824_vm1, %v1285_v10  ;;  %2253 = vmatpush.msra.mxu1 %v6882_v11  ;;  %v1185_v48 = vadd.f32 %v1184_v12, %v1128_v47  ;;  %v1430_v11 = vld [vmem:[#allocation2 + $0x568] sm:$0xff]  ;;  %v1431_v10 = vld [vmem:[#allocation2 + $0x570] sm:$0xff] }
 0x26b   :  { %v1458_v12 = vld [vmem:[#allocation2 + $0x648] sm:$0xff] }
 0x26c   :  { %2254 = vmatpush.msra.mxu1 %v6888_v25  ;;  %v1416_v25 = vld [vmem:[#allocation2 + $0x4f8] sm:$0xff] }
 0x26d   :  { %v1231_v8 = vpop.f32.mrf.mxu0  ;;  %1496 = vmatmul.f32.gmra.mxu3 %v1433_v60 }
 0x26e   :  { %v1232_v58 = vadd.f32 %v1231_v8, %v1176_v35  ;;  %2255 = vmatpush.msra.mxu1 %v6894_v30  ;;  %v1434_v30 = vld [vmem:[#allocation2 + $0x588] sm:$0xff] }
 0x26f   :  { %v8671_v35 = vld [vmem:[#allocation30_spill] sm:$0xff] }
 0x270   :  { %v1288_v53 = vadd.f32 %v1287_v37, %v1232_v58  ;;  %v1296_v38 = vpop.f32.mrf.mxu1  ;;  %2256 = vmatpush.msra.mxu1 %v6904_v31  ;;  %v1435_v31 = vld [vmem:[#allocation2 + $0x590] sm:$0xff]  ;;  %v8676_v8 = vld [vmem:[#allocation34_spill] sm:$0xff] }
 0x271   :  { %1546 = vmatmul.f32.gmra.mxu0 %v1426_v24  ;;  %1602 = vmatmul.f32.gmra.mxu1 %v1427_v13  ;;  %v1447_v58 = vld [vmem:[#allocation2 + $0x5f0] sm:$0xff]  ;;  %v1462_v13 = vld [vmem:[#allocation2 + $0x668] sm:$0xff] }
 0x272   :  { %5101 = vmatmul.msk.f32.gmra.mxu2 %vm824_vm1, %v1288_v53  ;;  %2257 = vmatpush.msra.mxu1 %v6910_v20  ;;  %v1420_v20 = vld [vmem:[#allocation2 + $0x518] sm:$0xff]  ;;  %v1453_v53 = vld [vmem:[#allocation2 + $0x620] sm:$0xff] }
 0x274   :  { %2258 = vmatpush.msra.mxu1 %v6916_v51  ;;  %v1441_v51 = vld [vmem:[#allocation2 + $0x5c0] sm:$0xff] }
 0x275   :  { %v1234_v32 = vpop.f32.mrf.mxu0  ;;  %1499 = vmatmul.f32.gmra.mxu3 %v1437_v40  ;;  %v1464_v40 = vld [vmem:[#allocation2 + $0x678] sm:$0xff] }
 0x276   :  { %v1235_v42 = vadd.f32 %v1234_v32, %v1179_v22  ;;  %2259 = vmatpush.msra.mxu1 %v6926_v28  ;;  %v1438_v28 = vld [vmem:[#allocation2 + $0x5a8] sm:$0xff]  ;;  %v8678_v22 = vld [vmem:[#allocation25_spill] sm:$0xff] }
 0x278   :  { %v1291_v43 = vadd.f32 %v1290_v4, %v1235_v42  ;;  %2260 = vmatpush.msra.mxu1 %v6932_v46  ;;  %v1424_v46 = vld [vmem:[#allocation2 + $0x538] sm:$0xff]  ;;  %v8677_v4 = vld [vmem:[#allocation35_spill] sm:$0xff] }
 0x279   :  { %1549 = vmatmul.f32.gmra.mxu0 %v1430_v11  ;;  %1605 = vmatmul.f32.gmra.mxu1 %v1431_v10  ;;  %v1460_v10 = vld [vmem:[#allocation2 + $0x658] sm:$0xff] }
 0x27a   :  { %5102 = vmatmul.msk.f32.gmra.mxu2 %vm824_vm1, %v1291_v43  ;;  %v1436_v43 = vld [vmem:[#allocation2 + $0x598] sm:$0xff] }
 0x27d   :  { %v1237_v44 = vpop.f32.mrf.mxu0  ;;  %1502 = vmatmul.f32.gmra.mxu3 %v1441_v51  ;;  %v1690_v51 = vld [vmem:[#allocation7 + $0xc] sm:$0xf] }
 0x27e   :  { %v1238_v56 = vadd.f32 %v1237_v44, %v1182_v39  ;;  %v1457_v39 = vld [vmem:[#allocation2 + $0x640] sm:$0xff]  ;;  %v1440_v44 = vld [vmem:[#allocation2 + $0x5b8] sm:$0xff]  ;;  %5105 = vmatpush.msk.msrb.mxu3 %vm864_vm0, %v1690_v51 }
 0x280   :  { %v1294_v45 = vadd.f32 %v1293_v49, %v1238_v56  ;;  %v1455_v49 = vld [vmem:[#allocation2 + $0x630] sm:$0xff]  ;;  %v1461_v56 = vld [vmem:[#allocation2 + $0x660] sm:$0xff] }
 0x281   :  { %1552 = vmatmul.f32.gmra.mxu0 %v1434_v30  ;;  %1608 = vmatmul.f32.gmra.mxu1 %v1435_v31 }
 0x282   :  { %5103 = vmatmul.msk.f32.gmra.mxu2 %vm824_vm1, %v1294_v45  ;;  %v1444_v45 = vld [vmem:[#allocation2 + $0x5d8] sm:$0xff] }
 0x285   :  { %v1240_v3 = vpop.f32.mrf.mxu0 }
 0x286   :  { %v1241_v19 = vadd.f32 %v1240_v3, %v1185_v48  ;;  %v1463_v48 = vld [vmem:[#allocation2 + $0x670] sm:$0xff]  ;;  %v1448_v3 = vld [vmem:[#allocation2 + $0x5f8] sm:$0xff] }
 0x288   :  { %v1297_v37 = vadd.f32 %v1296_v38, %v1241_v19  ;;  %v1452_v19 = vld [vmem:[#allocation2 + $0x618] sm:$0xff] }
 0x289   :  { %1555 = vmatmul.f32.gmra.mxu0 %v1438_v28  ;;  %v8689_v28 = vld [vmem:[#allocation48_spill] sm:$0xff] }
 0x28a   :  { %5104 = vmatmul.msk.f32.gmra.mxu2 %vm824_vm1, %v1297_v37  ;;  %v1456_v37 = vld [vmem:[#allocation2 + $0x638] sm:$0xff] }
 0x292   :  { %1649 = vmatmul.f32.vlgmr.msra.gmra.mxu2 %v1416_v25 }
 0x293   :  { %2301 = vmatpush.msra.mxu2 %v6594_v50  ;;  %v1439_v50 = vld [vmem:[#allocation2 + $0x5b0] sm:$0xff] }
 0x294   :  { %1611 = vmatmul.f32.gmra.mxu1 %v1439_v50 }
 0x295   :  { %2302 = vmatpush.msra.mxu2 %v6601_v27  ;;  %v1445_v27 = vld [vmem:[#allocation2 + $0x5e0] sm:$0xff] }
 0x296   :  { %1505 = vmatmul.f32.gmra.mxu3 %v1445_v27 }
 0x297   :  { %2303 = vmatpush.msra.mxu2 %v6607_v63  ;;  %v1442_v63 = vld [vmem:[#allocation2 + $0x5c8] sm:$0xff] }
 0x298   :  { %1558 = vmatmul.f32.gmra.mxu0 %v1442_v63  ;;  %v8691_v63 = vld [vmem:[#allocation51_spill] sm:$0xff] }
 0x299   :  { %2304 = vmatpush.msra.mxu2 %v6616_v55  ;;  %v1443_v55 = vld [vmem:[#allocation2 + $0x5d0] sm:$0xff] }
 0x29a   :  { %1652 = vmatmul.f32.gmra.mxu2 %v1420_v20 }
 0x29b   :  { %2305 = vmatpush.msra.mxu2 %v6624_v61  ;;  %v1428_v61 = vld [vmem:[#allocation2 + $0x558] sm:$0xff] }
 0x29c   :  { %1614 = vmatmul.f32.gmra.mxu1 %v1443_v55 }
 0x29d   :  { %2306 = vmatpush.msra.mxu2 %v6631_v2  ;;  %v1449_v2 = vld [vmem:[#allocation2 + $0x600] sm:$0xff] }
 0x29e   :  { %1508 = vmatmul.f32.gmra.mxu3 %v1449_v2 }
 0x29f   :  { %2307 = vmatpush.msra.mxu2 %v6637_v33  ;;  %v8673_v33 = vld [vmem:[#allocation32_spill] sm:$0xff] }
 0x2a0   :  { %1561 = vmatmul.f32.gmra.mxu0 %v1446_v21  ;;  %v8699_v21 = vld [vmem:[#allocation60_spill] sm:$0xff] }
 0x2a1   :  { %2308 = vmatpush.msra.mxu2 %v6646_v34  ;;  %v8674_v34 = vld [vmem:[#allocation33_spill] sm:$0xff] }
 0x2a2   :  { %1655 = vmatmul.f32.gmra.mxu2 %v1424_v46  ;;  %v984_v41 = vadd.f32 %v8675_v1, %v8674_v34  ;;  %v8690_v46 = vld [vmem:[#allocation50_spill] sm:$0xff]  ;;  %v8696_v34 = vld [vmem:[#allocation57_spill] sm:$0xff] }
 0x2a3   :  { %2309 = vmatpush.msra.mxu2 %v6654_v6 }
 0x2a4   :  { %1617 = vmatmul.f32.gmra.mxu1 %v1447_v58  ;;  %v8700_v58 = vld [vmem:[#allocation61_spill] sm:$0xff] }
 0x2a5   :  { %2310 = vmatpush.msra.mxu2 %v6661_v5 }
 0x2a6   :  { %1511 = vmatmul.f32.gmra.mxu3 %v1453_v53 }
 0x2a7   :  { %2311 = vmatpush.msra.mxu2 %v8671_v35  ;;  %v8694_v35 = vld [vmem:[#allocation54_spill] sm:$0xff] }
 0x2a8   :  { %1564 = vmatmul.f32.gmra.mxu0 %v1450_v9 }
 0x2a9   :  { %2312 = vmatpush.msra.mxu2 %v8672_v59  ;;  %v8695_v59 = vld [vmem:[#allocation55_spill] sm:$0xff] }
 0x2aa   :  { %1658 = vmatmul.f32.gmra.mxu2 %v1428_v61  ;;  %v8693_v61 = vld [vmem:[#allocation53_spill] sm:$0xff] }
 0x2ab   :  { %2313 = vmatpush.msra.mxu2 %v8673_v33 }
 0x2ac   :  { %1620 = vmatmul.f32.gmra.mxu1 %v1451_v15 }
 0x2ad   :  { %v1360_v6 = vpop.f32.mrf.mxu2  ;;  %2314 = vmatpush.msra.mxu2 %v8676_v8 }
 0x2ae   :  { %v7125_v5 = vadd.f32 %v1360_v6, %v984_v41  ;;  %1514 = vmatmul.f32.gmra.mxu3 %v1457_v39  ;;  %v8698_v6 = vld [vmem:[#allocation59_spill] sm:$0xff] }
 0x2af   :  { %2315 = vmatpush.msra.mxu2 %v8677_v4 }
 0x2b0   :  { %1567 = vmatmul.f32.gmra.mxu0 %v1454_v36 }
 0x2b1   :  { %2316 = vmatpush.msra.mxu2 %v8678_v22  ;;  %v8703_v22 = vld [vmem:[#allocation65_spill] sm:$0xff] }
 0x2b2   :  { %1661 = vmatmul.f32.gmra.mxu2 %v1432_v23  ;;  %v8701_v23 = vld [vmem:[#allocation62_spill] sm:$0xff] }
 0x2b4   :  { %1623 = vmatmul.f32.gmra.mxu1 %v1455_v49  ;;  %v8707_v49 = vld [vmem:[#allocation70_spill] sm:$0xff] }
 0x2b5   :  { %v1363_v32 = vpop.f32.mrf.mxu2 }
 0x2b6   :  { %v7131_v42 = vadd.f32 %v1363_v32, %v987_v18  ;;  %1517 = vmatmul.f32.gmra.mxu3 %v1461_v56  ;;  %v8704_v18 = vld [vmem:[#allocation66_spill] sm:$0xff]  ;;  %v8705_v32 = vld [vmem:[#allocation67_spill] sm:$0xff] }
 0x2b8   :  { %1570 = vmatmul.f32.gmra.mxu0 %v1458_v12 }
 0x2ba   :  { %1664 = vmatmul.f32.gmra.mxu2 %v1436_v43  ;;  %v8706_v43 = vld [vmem:[#allocation68_spill] sm:$0xff] }
 0x2bc   :  { %1626 = vmatmul.f32.gmra.mxu1 %v1459_v52  ;;  %v7176_v52 = vld [vmem:[%s8523_s0 + $0x178] sm:$0xff] }
 0x2bd   :  { %v7133_v29 = vpop.f32.mrf.mxu2 }
 0x2be   :  { %8681 = vst [vmem:[#allocation30_spill] sm:$0xff] %v7133_v29  ;;  %1629 = vmatmul.f32.vlgmr.msra.gmra.mxu3 %v1463_v48  ;;  %v7527_v29 = vld [vmem:[%s8523_s0 + $0x1a8] sm:$0xff] }
 0x2bf   :  { %2023 = vmatpush.msra.mxu3 %v8689_v28  ;;  %v7207_v28 = vld [vmem:[%s8523_s0 + $0x150] sm:$0xff]  ;;  %8727 = vst [vmem:[#allocation77_spill] sm:$0xff] %v7527_v29 }
 0x2c0   :  { %1573 = vmatmul.f32.gmra.mxu0 %v1462_v13 }
 0x2c1   :  { %2024 = vmatpush.msra.mxu3 %v8690_v46 }
 0x2c2   :  { %1667 = vmatmul.f32.gmra.mxu2 %v1440_v44  ;;  %v1482_v30 = vpop.f32.mrf.mxu3 }
 0x2c3   :  { %2025 = vmatpush.msra.mxu3 %v8691_v63 }
 0x2c5   :  { %v7135_v47 = vpop.f32.mrf.mxu2  ;;  %2026 = vmatpush.msra.mxu3 %v8693_v61 }
 0x2c6   :  { %8682 = vst [vmem:[#allocation31_spill] sm:$0xff] %v7135_v47  ;;  %v1838_v47 = vld [vmem:[#allocation2 + $0x798] sm:$0xff] }
 0x2c7   :  { %2027 = vmatpush.msra.mxu3 %v8694_v35 }
 0x2c8   :  { %v1538_v20 = vpop.f32.mrf.mxu0 }
 0x2c9   :  { %2028 = vmatpush.msra.mxu3 %v8695_v59  ;;  %v1539_v57 = vadd.f32 %v1538_v20, %v1482_v30  ;;  %v7201_v20 = vld [vmem:[%s8523_s0 + $0x158] sm:$0xff] }
 0x2ca   :  { %1670 = vmatmul.f32.gmra.mxu2 %v1444_v45  ;;  %v1485_v50 = vpop.f32.mrf.mxu3  ;;  %v7182_v45 = vld [vmem:[%s8523_s0 + $0x170] sm:$0xff]  ;;  %v7226_v59 = vld [vmem:[%s8523_s0 + $0x138] sm:$0xff] }
 0x2cb   :  { %2029 = vmatpush.msra.mxu3 %v8696_v34  ;;  %v7232_v34 = vld [vmem:[%s8523_s0 + $0x130] sm:$0xff] }
 0x2cd   :  { %v7137_v24 = vpop.f32.mrf.mxu2  ;;  %2030 = vmatpush.msra.mxu3 %v8698_v6 }
 0x2ce   :  { %8683 = vst [vmem:[#allocation32_spill] sm:$0xff] %v7137_v24  ;;  %v1847_v24 = vld [vmem:[#allocation2 + $0x7e0] sm:$0xff] }
 0x2cf   :  { %2031 = vmatpush.msra.mxu3 %v8699_v21 }
 0x2d1   :  { %2032 = vmatpush.msra.mxu3 %v8700_v58 }
 0x2d2   :  { %1673 = vmatmul.f32.gmra.mxu2 %v1448_v3  ;;  %v1488_v33 = vpop.f32.mrf.mxu3 }
 0x2d3   :  { %2033 = vmatpush.msra.mxu3 %v8701_v23 }
 0x2d5   :  { %v7139_v38 = vpop.f32.mrf.mxu2  ;;  %2034 = vmatpush.msra.mxu3 %v8703_v22 }
 0x2d6   :  { %8684 = vst [vmem:[#allocation33_spill] sm:$0xff] %v7139_v38  ;;  %v1594_v27 = vpop.f32.mrf.mxu1  ;;  %v1848_v38 = vld [vmem:[#allocation2 + $0x7e8] sm:$0xff] }
 0x2d7   :  { %2035 = vmatpush.msra.mxu3 %v8704_v18  ;;  %v1595_v15 = vadd.f32 %v1594_v27, %v1539_v57  ;;  %v7213_v27 = vld [vmem:[%s8523_s0 + $0x148] sm:$0xff] }
 0x2d9   :  { %2036 = vmatpush.msra.mxu3 %v8705_v32 }
 0x2da   :  { %1676 = vmatmul.f32.gmra.mxu2 %v1452_v19  ;;  %v7188_v19 = vld [vmem:[%s8523_s0 + $0x168] sm:$0xff] }
 0x2db   :  { %2037 = vmatpush.msra.mxu3 %v8706_v43 }
 0x2dd   :  { %v7141_v60 = vpop.f32.mrf.mxu2  ;;  %2038 = vmatpush.msra.mxu3 %v8707_v49 }
 0x2de   :  { %8685 = vst [vmem:[#allocation26_spill] sm:$0xff] %v7141_v60  ;;  %v1541_v2 = vpop.f32.mrf.mxu0  ;;  %v1597_v41 = vpop.f32.mrf.mxu1 }
 0x2df   :  { %v1542_v56 = vadd.f32 %v1541_v2, %v1485_v50  ;;  %v7219_v2 = vld [vmem:[%s8523_s0 + $0x140] sm:$0xff] }
 0x2e0   :  { %v1491_v4 = vpop.f32.mrf.mxu3 }
 0x2e1   :  { %v1598_v48 = vadd.f32 %v1597_v41, %v1542_v56 }
 0x2e2   :  { %1679 = vmatmul.f32.gmra.mxu2 %v1456_v37 }
 0x2e5   :  { %v7143_v11 = vpop.f32.mrf.mxu2 }
 0x2e6   :  { %8686 = vst [vmem:[#allocation34_spill] sm:$0xff] %v7143_v11  ;;  %v1544_v8 = vpop.f32.mrf.mxu0  ;;  %v1600_v16 = vpop.f32.mrf.mxu1 }
 0x2e8   :  { %v1494_v44 = vpop.f32.mrf.mxu3 }
 0x2ea   :  { %1682 = vmatmul.f32.gmra.mxu2 %v1460_v10  ;;  %v7194_v10 = vld [vmem:[%s8523_s0 + $0x160] sm:$0xff] }
 0x2ed   :  { %v7145_v25 = vpop.f32.mrf.mxu2 }
 0x2ee   :  { %8687 = vst [vmem:[#allocation35_spill] sm:$0xff] %v7145_v25  ;;  %v1547_v9 = vpop.f32.mrf.mxu0  ;;  %v1603_v12 = vpop.f32.mrf.mxu1 }
 0x2ef   :  { %v1548_v35 = vadd.f32 %v1547_v9, %v1491_v4 }
 0x2f0   :  { %v1497_v30 = vpop.f32.mrf.mxu3 }
 0x2f1   :  { %v1604_v41 = vadd.f32 %v1603_v12, %v1548_v35 }
 0x2f2   :  { %1685 = vmatmul.f32.gmra.mxu2 %v1464_v40  ;;  %v1545_v40 = vadd.f32 %v1544_v8, %v1488_v33 }
 0x2f4   :  { %v1601_v50 = vadd.f32 %v1600_v16, %v1545_v40 }
 0x2f5   :  { %v7147_v31 = vpop.f32.mrf.mxu2 }
 0x2f6   :  { %8688 = vst [vmem:[#allocation25_spill] sm:$0xff] %v7147_v31  ;;  %v1550_v3 = vpop.f32.mrf.mxu0  ;;  %v1606_v51 = vpop.f32.mrf.mxu1 }
 0x2f7   :  { %v1551_v58 = vadd.f32 %v1550_v3, %v1494_v44 }
 0x2f8   :  { %v1500_v33 = vpop.f32.mrf.mxu3 }
 0x2f9   :  { %v1607_v4 = vadd.f32 %v1606_v51, %v1551_v58 }
 0x2fd   :  { %v7153_v55 = vpop.f32.mrf.mxu2 }
 0x2fe   :  { %8692 = vst [vmem:[#allocation37_spill] sm:$0xff] %v7153_v55  ;;  %v1553_v61 = vpop.f32.mrf.mxu0  ;;  %v1609_v21 = vpop.f32.mrf.mxu1  ;;  %v7547_v55 = vld [vmem:[%s8523_s0 + $0x190] sm:$0xff] }
 0x2ff   :  { %8731 = vst [vmem:[#allocation81_spill] sm:$0xff] %v7547_v55 }
 0x300   :  { %v1503_v16 = vpop.f32.mrf.mxu3 }
 0x305   :  { %v7159_v1 = vpop.f32.mrf.mxu2 }
 0x306   :  { %8697 = vst [vmem:[#allocation27_spill] sm:$0xff] %v7159_v1  ;;  %v1556_v23 = vpop.f32.mrf.mxu0  ;;  %v7553_v1 = vld [vmem:[%s8523_s0 + $0x188] sm:$0xff] }
 0x307   :  { %8732 = vst [vmem:[#allocation82_spill] sm:$0xff] %v7553_v1 }
 0x30d   :  { %v7165_v53 = vpop.f32.mrf.mxu2 }
 0x30e   :  { %8702 = vst [vmem:[#allocation48_spill] sm:$0xff] %v7165_v53  ;;  %v7541_v53 = vld [vmem:[%s8523_s0 + $0x198] sm:$0xff] }
 0x30f   :  { %8730 = vst [vmem:[#allocation80_spill] sm:$0xff] %v7541_v53 }
 0x311   :  { %v1612_v18 = vpop.f32.mrf.mxu1 }
 0x315   :  { %v1650_v39 = vpop.f32.mrf.mxu2 }
 0x316   :  { %v1651_v36 = vadd.f32 %v1650_v39, %v1595_v15 }
 0x318   :  { %5106 = vmatmul.msk.f32.vlgmr.msrb.gmra.mxu3 %vm824_vm1, %v1651_v36 }
 0x319   :  { %2357 = vmatpush.msrb.mxu3 %v7176_v52  ;;  %v1506_v43 = vpop.f32.mrf.mxu3 }
 0x31b   :  { %2358 = vmatpush.msrb.mxu3 %v7182_v45 }
 0x31d   :  { %v1653_v13 = vpop.f32.mrf.mxu2  ;;  %2359 = vmatpush.msrb.mxu3 %v7188_v19 }
 0x31e   :  { %v1654_v37 = vadd.f32 %v1653_v13, %v1598_v48 }
 0x31f   :  { %2360 = vmatpush.msrb.mxu3 %v7194_v10 }
 0x320   :  { %5107 = vmatmul.msk.f32.gmra.mxu3 %vm824_vm1, %v1654_v37 }
 0x321   :  { %2361 = vmatpush.msrb.mxu3 %v7201_v20 }
 0x323   :  { %2362 = vmatpush.msrb.mxu3 %v7207_v28 }
 0x325   :  { %v1656_v46 = vpop.f32.mrf.mxu2  ;;  %2363 = vmatpush.msrb.mxu3 %v7213_v27 }
 0x326   :  { %v1657_v63 = vadd.f32 %v1656_v46, %v1601_v50 }
 0x327   :  { %2364 = vmatpush.msrb.mxu3 %v7219_v2 }
 0x328   :  { %5108 = vmatmul.msk.f32.gmra.mxu3 %vm824_vm1, %v1657_v63 }
 0x329   :  { %2365 = vmatpush.msrb.mxu3 %v7226_v59 }
 0x32b   :  { %2366 = vmatpush.msrb.mxu3 %v7232_v34 }
 0x32d   :  { %v1659_v6 = vpop.f32.mrf.mxu2  ;;  %2367 = vmatpush.msrb.mxu3 %v6773_v14  ;;  %v1554_v14 = vadd.f32 %v1553_v61, %v1497_v30  ;;  %v1805_v61 = vld [vmem:[#allocation2 + $0x690] sm:$0xff] }
 0x32e   :  { %v1660_v8 = vadd.f32 %v1659_v6, %v1604_v41  ;;  %1983 = vmatmul.f32.vlgmr.msrb.gmra.mxu2 %v1805_v61  ;;  %v7256_v6 = vld [vmem:[%s8523_s0 + $0x70] sm:$0xff]  ;;  %v7313_v61 = vld [vmem:[%s8523_s0 + $0x28] sm:$0xff] }
 0x32f   :  { %2368 = vmatpush.msrb.mxu3 %v6781_v62  ;;  %v1559_v62 = vpop.f32.mrf.mxu0  ;;  %v1610_v32 = vadd.f32 %v1609_v21, %v1554_v14  ;;  %v7269_v14 = vld [vmem:[%s8523_s0 + $0x60] sm:$0xff] }
 0x330   :  { %5109 = vmatmul.msk.f32.gmra.mxu3 %vm824_vm1, %v1660_v8  ;;  %v1560_v44 = vadd.f32 %v1559_v62, %v1503_v16  ;;  %v1803_v16 = vld [vmem:[#allocation2 + $0x680] sm:$0xff] }
 0x331   :  { %2369 = vmatpush.msrb.mxu3 %v6787_v0  ;;  %v1557_v0 = vadd.f32 %v1556_v23, %v1500_v33  ;;  %v7250_v33 = vld [vmem:[%s8523_s0 + $0x78] sm:$0xff]  ;;  %v7262_v23 = vld [vmem:[%s8523_s0 + $0x68] sm:$0xff]  ;;  %1871 = vmatmul.f32.vlgmr.msrb.gmra.mxu0 %v1803_v16  ;;  %v7332_v16 = vld [vmem:[%s8523_s0 + $0x10] sm:$0xff] }
 0x332   :  { %2635 = vmatpush.msrb.mxu2 %v7250_v33 }
 0x333   :  { %2370 = vmatpush.msrb.mxu3 %v6794_v54  ;;  %v1615_v54 = vpop.f32.mrf.mxu1  ;;  %v1613_v39 = vadd.f32 %v1612_v18, %v1557_v0  ;;  %v1809_v18 = vld [vmem:[#allocation2 + $0x6b0] sm:$0xff] }
 0x334   :  { %v1616_v12 = vadd.f32 %v1615_v54, %v1560_v44  ;;  %2636 = vmatpush.msrb.mxu2 %v7256_v6  ;;  %v1813_v44 = vld [vmem:[#allocation2 + $0x6d0] sm:$0xff] }
 0x335   :  { %v1662_v22 = vpop.f32.mrf.mxu2  ;;  %2371 = vmatpush.msrb.mxu3 %v6803_v26 }
 0x336   :  { %v1663_v57 = vadd.f32 %v1662_v22, %v1607_v4  ;;  %2637 = vmatpush.msrb.mxu2 %v7262_v23 }
 0x337   :  { %2372 = vmatpush.msrb.mxu3 %v6811_v7  ;;  %v1562_v49 = vpop.f32.mrf.mxu0  ;;  %v1509_v7 = vpop.f32.mrf.mxu3  ;;  %1986 = vmatmul.f32.gmra.mxu2 %v1809_v18  ;;  %v7338_v18 = vld [vmem:[%s8523_s0 + $0x8] sm:$0xff] }
 0x338   :  { %5110 = vmatmul.msk.f32.gmra.mxu3 %vm824_vm1, %v1663_v57  ;;  %v1563_v37 = vadd.f32 %v1562_v49, %v1506_v43  ;;  %v1804_v57 = vld [vmem:[#allocation2 + $0x688] sm:$0xff]  ;;  %2638 = vmatpush.msrb.mxu2 %v7269_v14  ;;  %v7281_v43 = vld [vmem:[%s8523_s0 + $0x50] sm:$0xff]  ;;  %v1807_v49 = vld [vmem:[#allocation2 + $0x6a0] sm:$0xff] }
 0x339   :  { %1927 = vmatmul.f32.vlgmr.msrb.gmra.mxu1 %v1804_v57  ;;  %1874 = vmatmul.f32.gmra.mxu0 %v1807_v49  ;;  %v1821_v57 = vld [vmem:[#allocation2 + $0x710] sm:$0xff] }
 0x33a   :  { %v7356_v49 = vld [vmem:[%s8523_s0 + $0xf0] sm:$0xff] }
 0x33b   :  { %v1618_v56 = vpop.f32.mrf.mxu1 }
 0x33c   :  { %v1619_v30 = vadd.f32 %v1618_v56, %v1563_v37  ;;  %v7294_v56 = vld [vmem:[%s8523_s0 + $0x40] sm:$0xff] }
 0x33d   :  { %v1665_v9 = vpop.f32.mrf.mxu2 }
 0x33e   :  { %v1666_v15 = vadd.f32 %v1665_v9, %v1610_v32  ;;  %v7275_v32 = vld [vmem:[%s8523_s0 + $0x58] sm:$0xff] }
 0x33f   :  { %v1565_v3 = vpop.f32.mrf.mxu0  ;;  %v1512_v40 = vpop.f32.mrf.mxu3  ;;  %2639 = vmatpush.msrb.mxu2 %v7275_v32 }
 0x340   :  { %5111 = vmatmul.msk.f32.gmra.mxu3 %vm824_vm1, %v1666_v15  ;;  %v1566_v63 = vadd.f32 %v1565_v3, %v1509_v7  ;;  %1989 = vmatmul.f32.gmra.mxu2 %v1813_v44  ;;  %v7300_v3 = vld [vmem:[%s8523_s0 + $0x38] sm:$0xff]  ;;  %v7362_v44 = vld [vmem:[%s8523_s0 + $0xe8] sm:$0xff] }
 0x341   :  { %2640 = vmatpush.msrb.mxu2 %v7281_v43 }
 0x343   :  { %v1621_v51 = vpop.f32.mrf.mxu1 }
 0x344   :  { %v1622_v41 = vadd.f32 %v1621_v51, %v1566_v63  ;;  %v1811_v51 = vld [vmem:[#allocation2 + $0x6c0] sm:$0xff] }
 0x345   :  { %v1668_v36 = vpop.f32.mrf.mxu2  ;;  %1877 = vmatmul.f32.gmra.mxu0 %v1811_v51  ;;  %v7380_v51 = vld [vmem:[%s8523_s0 + $0xd0] sm:$0xff] }
 0x346   :  { %v1669_v26 = vadd.f32 %v1668_v36, %v1613_v39  ;;  %v7287_v39 = vld [vmem:[%s8523_s0 + $0x48] sm:$0xff] }
 0x347   :  { %v1568_v35 = vpop.f32.mrf.mxu0  ;;  %v1515_v21 = vpop.f32.mrf.mxu3  ;;  %2641 = vmatpush.msrb.mxu2 %v7287_v39 }
 0x348   :  { %5112 = vmatmul.msk.f32.gmra.mxu3 %vm824_vm1, %v1669_v26  ;;  %v1569_v22 = vadd.f32 %v1568_v35, %v1512_v40  ;;  %v1808_v26 = vld [vmem:[#allocation2 + $0x6a8] sm:$0xff]  ;;  %v7306_v40 = vld [vmem:[%s8523_s0 + $0x30] sm:$0xff] }
 0x349   :  { %1930 = vmatmul.f32.gmra.mxu1 %v1808_v26  ;;  %2642 = vmatpush.msrb.mxu2 %v7294_v56  ;;  %v1810_v26 = vld [vmem:[#allocation2 + $0x6b8] sm:$0xff] }
 0x34b   :  { %v1624_v4 = vpop.f32.mrf.mxu1  ;;  %2643 = vmatpush.msrb.mxu2 %v7300_v3 }
 0x34c   :  { %v1625_v9 = vadd.f32 %v1624_v4, %v1569_v22  ;;  %v1815_v4 = vld [vmem:[#allocation2 + $0x6e0] sm:$0xff]  ;;  %v1816_v22 = vld [vmem:[#allocation2 + $0x6e8] sm:$0xff] }
 0x34d   :  { %v1671_v48 = vpop.f32.mrf.mxu2  ;;  %2644 = vmatpush.msrb.mxu2 %v7306_v40  ;;  %1880 = vmatmul.f32.gmra.mxu0 %v1815_v4  ;;  %v7398_v4 = vld [vmem:[%s8523_s0 + $0xb8] sm:$0xff] }
 0x34e   :  { %v1672_v13 = vadd.f32 %v1671_v48, %v1616_v12 }
 0x34f   :  { %v1571_v62 = vpop.f32.mrf.mxu0  ;;  %v1518_v54 = vpop.f32.mrf.mxu3  ;;  %2645 = vmatpush.msrb.mxu2 %v7313_v61 }
 0x350   :  { %5113 = vmatmul.msk.f32.gmra.mxu3 %vm824_vm1, %v1672_v13  ;;  %v1572_v36 = vadd.f32 %v1571_v62, %v1515_v21  ;;  %v7319_v21 = vld [vmem:[%s8523_s0 + $0x20] sm:$0xff]  ;;  %v1806_v62 = vld [vmem:[#allocation2 + $0x698] sm:$0xff] }
 0x351   :  { %2646 = vmatpush.msrb.mxu2 %v7319_v21 }
 0x353   :  { %v1627_v7 = vpop.f32.mrf.mxu1 }
 0x354   :  { %v1628_v12 = vadd.f32 %v1627_v7, %v1572_v36  ;;  %v1825_v36 = vld [vmem:[#allocation2 + $0x730] sm:$0xff]  ;;  %v1823_v7 = vld [vmem:[#allocation2 + $0x720] sm:$0xff] }
 0x355   :  { %v1674_v50 = vpop.f32.mrf.mxu2 }
 0x356   :  { %v1675_v46 = vadd.f32 %v1674_v50, %v1619_v30  ;;  %v1812_v50 = vld [vmem:[#allocation2 + $0x6c8] sm:$0xff] }
 0x357   :  { %v1574_v48 = vpop.f32.mrf.mxu0  ;;  %v1630_v63 = vpop.f32.mrf.mxu3  ;;  %1933 = vmatmul.f32.gmra.mxu1 %v1812_v50  ;;  %v1827_v50 = vld [vmem:[#allocation2 + $0x740] sm:$0xff] }
 0x358   :  { %5114 = vmatmul.msk.f32.gmra.mxu3 %vm824_vm1, %v1675_v46  ;;  %v1575_v30 = vadd.f32 %v1574_v48, %v1518_v54  ;;  %v1817_v46 = vld [vmem:[#allocation2 + $0x6f0] sm:$0xff]  ;;  %v7350_v54 = vld [vmem:[%s8523_s0 + $0xf8] sm:$0xff]  ;;  %v7368_v48 = vld [vmem:[%s8523_s0 + $0xe0] sm:$0xff] }
 0x359   :  { %1992 = vmatmul.f32.gmra.mxu2 %v1817_v46  ;;  %v1828_v46 = vld [vmem:[#allocation2 + $0x748] sm:$0xff] }
 0x35a   :  { %v1631_v35 = vadd.f32 %v1630_v63, %v1575_v30  ;;  %v1814_v30 = vld [vmem:[#allocation2 + $0x6d8] sm:$0xff]  ;;  %v7386_v63 = vld [vmem:[%s8523_s0 + $0xc8] sm:$0xff] }
 0x35d   :  { %v1677_v8 = vpop.f32.mrf.mxu2 }
 0x35e   :  { %v1678_v58 = vadd.f32 %v1677_v8, %v1622_v41 }
 0x35f   :  { %1936 = vmatmul.f32.gmra.mxu1 %v1816_v22  ;;  %v1831_v22 = vld [vmem:[#allocation2 + $0x760] sm:$0xff] }
 0x360   :  { %5115 = vmatmul.msk.f32.gmra.mxu3 %vm824_vm1, %v1678_v58  ;;  %v7325_v58 = vld [vmem:[%s8523_s0 + $0x18] sm:$0xff] }
 0x361   :  { %2647 = vmatpush.msrb.mxu2 %v7325_v58 }
 0x362   :  { %1995 = vmatmul.f32.gmra.mxu2 %v1821_v57  ;;  %v1832_v57 = vld [vmem:[#allocation2 + $0x768] sm:$0xff] }
 0x363   :  { %2648 = vmatpush.msrb.mxu2 %v7332_v16 }
 0x365   :  { %v1680_v15 = vpop.f32.mrf.mxu2  ;;  %2649 = vmatpush.msrb.mxu2 %v7338_v18 }
 0x366   :  { %v1681_v0 = vadd.f32 %v1680_v15, %v1625_v9  ;;  %v7344_v9 = vld [vmem:[%s8523_s0] sm:$0xff] }
 0x367   :  { %2650 = vmatpush.msrb.mxu2 %v7344_v9  ;;  %v1819_v15 = vld [vmem:[#allocation2 + $0x700] sm:$0xff] }
 0x368   :  { %5116 = vmatmul.msk.f32.gmra.mxu3 %vm824_vm1, %v1681_v0  ;;  %v1820_v0 = vld [vmem:[#allocation2 + $0x708] sm:$0xff]  ;;  %1883 = vmatmul.f32.gmra.mxu0 %v1819_v15 }
 0x369   :  { %1939 = vmatmul.f32.gmra.mxu1 %v1820_v0 }
 0x36a   :  { %1998 = vmatmul.f32.gmra.mxu2 %v1825_v36  ;;  %v1837_v36 = vld [vmem:[#allocation2 + $0x790] sm:$0xff] }
 0x36d   :  { %v1683_v13 = vpop.f32.mrf.mxu2 }
 0x36e   :  { %v1684_v37 = vadd.f32 %v1683_v13, %v1628_v12  ;;  %v1824_v12 = vld [vmem:[#allocation2 + $0x728] sm:$0xff]  ;;  %v1829_v13 = vld [vmem:[#allocation2 + $0x750] sm:$0xff] }
 0x370   :  { %5117 = vmatmul.msk.f32.gmra.mxu3 %vm824_vm1, %v1684_v37  ;;  %1886 = vmatmul.f32.gmra.mxu0 %v1823_v7  ;;  %v7374_v37 = vld [vmem:[%s8523_s0 + $0xd8] sm:$0xff] }
 0x371   :  { %1942 = vmatmul.f32.gmra.mxu1 %v1824_v12  ;;  %v1822_v7 = vld [vmem:[#allocation2 + $0x718] sm:$0xff]  ;;  %v7419_v12 = vld [vmem:[%s8523_s0 + $0xa0] sm:$0xff] }
 0x372   :  { %2001 = vmatmul.f32.gmra.mxu2 %v1829_v13  ;;  %v1836_v13 = vld [vmem:[#allocation2 + $0x788] sm:$0xff] }
 0x375   :  { %v1686_v41 = vpop.f32.mrf.mxu2 }
 0x376   :  { %v1687_v8 = vadd.f32 %v1686_v41, %v1631_v35  ;;  %v1833_v35 = vld [vmem:[#allocation2 + $0x770] sm:$0xff]  ;;  %v7392_v41 = vld [vmem:[%s8523_s0 + $0xc0] sm:$0xff] }
 0x378   :  { %5118 = vmatmul.msk.f32.gmra.mxu3 %vm824_vm1, %v1687_v8  ;;  %1889 = vmatmul.f32.gmra.mxu0 %v1827_v50  ;;  %v1818_v8 = vld [vmem:[#allocation2 + $0x6f8] sm:$0xff] }
 0x379   :  { %1945 = vmatmul.f32.gmra.mxu1 %v1828_v46 }
 0x37a   :  { %2004 = vmatmul.f32.gmra.mxu2 %v1833_v35  ;;  %v1841_v35 = vld [vmem:[#allocation2 + $0x7b0] sm:$0xff] }
 0x380   :  { %2039 = vmatmul.f32.vlgmr.msra.gmra.mxu3 %v1806_v62  ;;  %1892 = vmatmul.f32.gmra.mxu0 %v1831_v22  ;;  %v7404_v62 = vld [vmem:[%s8523_s0 + $0xb0] sm:$0xff]  ;;  %v1826_v22 = vld [vmem:[#allocation2 + $0x738] sm:$0xff] }
 0x381   :  { %2691 = vmatpush.msra.mxu3 %v7350_v54  ;;  %1948 = vmatmul.f32.gmra.mxu1 %v1832_v57  ;;  %v7440_v57 = vld [vmem:[%s8523_s0 + $0x88] sm:$0xff] }
 0x382   :  { %2007 = vmatmul.f32.gmra.mxu2 %v1837_v36  ;;  %v7446_v36 = vld [vmem:[%s8523_s0 + $0x80] sm:$0xff] }
 0x383   :  { %2692 = vmatpush.msra.mxu3 %v7356_v49 }
 0x385   :  { %2693 = vmatpush.msra.mxu3 %v7362_v44 }
 0x387   :  { %2694 = vmatpush.msra.mxu3 %v7368_v48 }
 0x388   :  { %2042 = vmatmul.f32.gmra.mxu3 %v1810_v26  ;;  %v7413_v26 = vld [vmem:[%s8523_s0 + $0xa8] sm:$0xff] }
 0x389   :  { %2695 = vmatpush.msra.mxu3 %v7374_v37  ;;  %1951 = vmatmul.f32.gmra.mxu1 %v1836_v13  ;;  %v1830_v13 = vld [vmem:[#allocation2 + $0x758] sm:$0xff] }
 0x38a   :  { %2010 = vmatmul.f32.gmra.mxu2 %v1841_v35  ;;  %v1844_v35 = vld [vmem:[#allocation2 + $0x7c8] sm:$0xff] }
 0x38b   :  { %2696 = vmatpush.msra.mxu3 %v7380_v51 }
 0x38d   :  { %2697 = vmatpush.msra.mxu3 %v7386_v63 }
 0x38f   :  { %2698 = vmatpush.msra.mxu3 %v7392_v41 }
 0x390   :  { %2045 = vmatmul.f32.gmra.mxu3 %v1814_v30  ;;  %v7425_v30 = vld [vmem:[%s8523_s0 + $0x98] sm:$0xff] }
 0x391   :  { %2699 = vmatpush.msra.mxu3 %v7398_v4 }
 0x393   :  { %2700 = vmatpush.msra.mxu3 %v7404_v62 }
 0x395   :  { %2701 = vmatpush.msra.mxu3 %v7413_v26 }
 0x397   :  { %2702 = vmatpush.msra.mxu3 %v7419_v12 }
 0x398   :  { %2048 = vmatmul.f32.gmra.mxu3 %v1818_v8  ;;  %v7434_v8 = vld [vmem:[%s8523_s0 + $0x90] sm:$0xff] }
 0x399   :  { %2703 = vmatpush.msra.mxu3 %v7425_v30 }
 0x39b   :  { %v1750_v15 = vpop.f32.mrf.mxu3  ;;  %2704 = vmatpush.msra.mxu3 %v7434_v8 }
 0x39c   :  { %v7408_v0 = vadd.f32 %v1750_v15, %v7125_v5  ;;  %v1835_v5 = vld [vmem:[#allocation2 + $0x780] sm:$0xff]  ;;  %v1840_v15 = vld [vmem:[#allocation2 + $0x7a8] sm:$0xff] }
 0x39d   :  { %1895 = vmatmul.f32.gmra.mxu0 %v1835_v5  ;;  %2705 = vmatpush.msra.mxu3 %v7440_v57  ;;  %v1845_v5 = vld [vmem:[#allocation2 + $0x7d0] sm:$0xff] }
 0x39e   :  { %8708 = vst [vmem:[#allocation50_spill] sm:$0xff] %v7408_v0  ;;  %1954 = vmatmul.f32.gmra.mxu1 %v1840_v15  ;;  %2013 = vmatmul.f32.gmra.mxu2 %v1845_v5  ;;  %v1834_v15 = vld [vmem:[#allocation2 + $0x778] sm:$0xff]  ;;  %v1851_v5 = vld [vmem:[#allocation2 + $0x800] sm:$0xff] }
 0x39f   :  { %2706 = vmatpush.msra.mxu3 %v7446_v36  ;;  %v7561_v0 = vld [vmem:[%s8523_s0 + $0x180] sm:$0xff] }
 0x3a0   :  { %2051 = vmatmul.f32.gmra.mxu3 %v1822_v7  ;;  %8734 = vst [vmem:[#allocation84_spill] sm:$0xff] %v7561_v0 }
 0x3a3   :  { %v1753_v50 = vpop.f32.mrf.mxu3 }
 0x3a4   :  { %v7429_v46 = vadd.f32 %v1753_v50, %v7131_v42  ;;  %v1839_v42 = vld [vmem:[#allocation2 + $0x7a0] sm:$0xff] }
 0x3a5   :  { %1898 = vmatmul.f32.gmra.mxu0 %v1839_v42  ;;  %v1843_v50 = vld [vmem:[#allocation2 + $0x7c0] sm:$0xff]  ;;  %v1849_v42 = vld [vmem:[#allocation2 + $0x7f0] sm:$0xff] }
 0x3a6   :  { %8709 = vst [vmem:[#allocation51_spill] sm:$0xff] %v7429_v46  ;;  %1957 = vmatmul.f32.gmra.mxu1 %v1844_v35  ;;  %2016 = vmatmul.f32.gmra.mxu2 %v1849_v42  ;;  %v1842_v35 = vld [vmem:[#allocation2 + $0x7b8] sm:$0xff] }
 0x3a8   :  { %2054 = vmatmul.f32.gmra.mxu3 %v1826_v22 }
 0x3ab   :  { %v7449_v7 = vpop.f32.mrf.mxu3 }
 0x3ac   :  { %8710 = vst [vmem:[#allocation53_spill] sm:$0xff] %v7449_v7  ;;  %v1853_v7 = vld [vmem:[#allocation2 + $0x810] sm:$0xff] }
 0x3ad   :  { %1901 = vmatmul.f32.gmra.mxu0 %v1843_v50 }
 0x3ae   :  { %1960 = vmatmul.f32.gmra.mxu1 %v1848_v38  ;;  %2019 = vmatmul.f32.gmra.mxu2 %v1853_v7  ;;  %v7475_v38 = vld [vmem:[%s8523_s0 + $0x1e8] sm:$0xff] }
 0x3af   :  { %8717 = vst [vmem:[#allocation62_spill] sm:$0xff] %v7475_v38 }
 0x3b0   :  { %2057 = vmatmul.f32.gmra.mxu3 %v1830_v13  ;;  %v1852_v13 = vld [vmem:[#allocation2 + $0x808] sm:$0xff] }
 0x3b1   :  { %v1984_v31 = vpop.f32.mrf.mxu2 }
 0x3b3   :  { %v7451_v22 = vpop.f32.mrf.mxu3 }
 0x3b4   :  { %8711 = vst [vmem:[#allocation54_spill] sm:$0xff] %v7451_v22  ;;  %v1846_v22 = vld [vmem:[#allocation2 + $0x7d8] sm:$0xff] }
 0x3b5   :  { %1904 = vmatmul.f32.gmra.mxu0 %v1847_v24  ;;  %v7463_v24 = vld [vmem:[%s8523_s0 + $0x1f8] sm:$0xff] }
 0x3b6   :  { %1963 = vmatmul.f32.gmra.mxu1 %v1852_v13  ;;  %8715 = vst [vmem:[#allocation60_spill] sm:$0xff] %v7463_v24  ;;  %v7489_v13 = vld [vmem:[%s8523_s0 + $0x1d8] sm:$0xff]  ;;  %v1928_v11 = vpop.f32.mrf.mxu1 }
 0x3b7   :  { %8720 = vst [vmem:[#allocation67_spill] sm:$0xff] %v7489_v13 }
 0x3b8   :  { %2060 = vmatmul.f32.gmra.mxu3 %v1834_v15  ;;  %v2080_v15 = vld [vmem:[#allocation7 + $0x10] sm:$0xf] }
 0x3b9   :  { %5119 = vmatpush.msk.msra.mxu0 %vm864_vm0, %v2080_v15  ;;  %v7501_v15 = vld [vmem:[%s8523_s0 + $0x1c8] sm:$0xff] }
 0x3ba   :  { %8722 = vst [vmem:[#allocation70_spill] sm:$0xff] %v7501_v15 }
 0x3bb   :  { %v7453_v60 = vpop.f32.mrf.mxu3  ;;  %2413 = vmatpush.msrb.mxu0 %v7463_v24 }
 0x3bc   :  { %8712 = vst [vmem:[#allocation55_spill] sm:$0xff] %v7453_v60 }
 0x3bd   :  { %1907 = vmatmul.f32.gmra.mxu0 %v1851_v5  ;;  %v1850_v5 = vld [vmem:[#allocation2 + $0x7f8] sm:$0xff] }
 0x3c0   :  { %2063 = vmatmul.f32.gmra.mxu3 %v1838_v47  ;;  %v7469_v47 = vld [vmem:[%s8523_s0 + $0x1f0] sm:$0xff] }
 0x3c1   :  { %8716 = vst [vmem:[#allocation61_spill] sm:$0xff] %v7469_v47  ;;  %2414 = vmatpush.msrb.mxu0 %v7469_v47 }
 0x3c3   :  { %v7455_v50 = vpop.f32.mrf.mxu3  ;;  %2415 = vmatpush.msrb.mxu0 %v7475_v38 }
 0x3c4   :  { %8713 = vst [vmem:[#allocation57_spill] sm:$0xff] %v7455_v50  ;;  %v1854_v50 = vld [vmem:[#allocation2 + $0x818] sm:$0xff] }
 0x3c6   :  { %v1931_v46 = vpop.f32.mrf.mxu1 }
 0x3c8   :  { %2066 = vmatmul.f32.gmra.mxu3 %v1842_v35  ;;  %v7495_v35 = vld [vmem:[%s8523_s0 + $0x1d0] sm:$0xff] }
 0x3c9   :  { %8721 = vst [vmem:[#allocation68_spill] sm:$0xff] %v7495_v35 }
 0x3cb   :  { %v7457_v42 = vpop.f32.mrf.mxu3 }
 0x3cc   :  { %8714 = vst [vmem:[#allocation59_spill] sm:$0xff] %v7457_v42  ;;  %v7515_v42 = vld [vmem:[%s8523_s0 + $0x1b8] sm:$0xff] }
 0x3cd   :  { %8725 = vst [vmem:[#allocation75_spill] sm:$0xff] %v7515_v42 }
 0x3d0   :  { %2069 = vmatmul.f32.gmra.mxu3 %v1846_v22  ;;  %v7483_v22 = vld [vmem:[%s8523_s0 + $0x1e0] sm:$0xff] }
 0x3d1   :  { %8719 = vst [vmem:[#allocation66_spill] sm:$0xff] %v7483_v22  ;;  %2416 = vmatpush.msrb.mxu0 %v7483_v22 }
 0x3d3   :  { %v7478_v7 = vpop.f32.mrf.mxu3  ;;  %2417 = vmatpush.msrb.mxu0 %v7489_v13 }
 0x3d4   :  { %8718 = vst [vmem:[#allocation65_spill] sm:$0xff] %v7478_v7  ;;  %v1872_v7 = vpop.f32.mrf.mxu0 }
 0x3d5   :  { %2418 = vmatpush.msrb.mxu0 %v7495_v35 }
 0x3d7   :  { %2419 = vmatpush.msrb.mxu0 %v7501_v15 }
 0x3d8   :  { %2072 = vmatmul.f32.gmra.mxu3 %v1850_v5  ;;  %v7509_v5 = vld [vmem:[%s8523_s0 + $0x1c0] sm:$0xff] }
 0x3d9   :  { %8724 = vst [vmem:[#allocation74_spill] sm:$0xff] %v7509_v5  ;;  %2420 = vmatpush.msrb.mxu0 %v7509_v5  ;;  %v1929_v5 = vadd.f32 %v1928_v11, %v1872_v7 }
 0x3db   :  { %v7504_v60 = vpop.f32.mrf.mxu3  ;;  %2421 = vmatpush.msrb.mxu0 %v7515_v42 }
 0x3dc   :  { %8723 = vst [vmem:[#allocation73_spill] sm:$0xff] %v7504_v60  ;;  %v7521_v60 = vld [vmem:[%s8523_s0 + $0x1b0] sm:$0xff] }
 0x3dd   :  { %8726 = vst [vmem:[#allocation76_spill] sm:$0xff] %v7521_v60  ;;  %2422 = vmatpush.msrb.mxu0 %v7521_v60 }
 0x3df   :  { %2423 = vmatpush.msrb.mxu0 %v7527_v29  ;;  %v1934_v29 = vpop.f32.mrf.mxu1 }
 0x3e0   :  { %2075 = vmatmul.f32.gmra.mxu3 %v1854_v50  ;;  %v7535_v50 = vld [vmem:[%s8523_s0 + $0x1a0] sm:$0xff] }
 0x3e1   :  { %8729 = vst [vmem:[#allocation79_spill] sm:$0xff] %v7535_v50  ;;  %2424 = vmatpush.msrb.mxu0 %v7535_v50 }
 0x3e3   :  { %v7530_v25 = vpop.f32.mrf.mxu3  ;;  %2425 = vmatpush.msrb.mxu0 %v7541_v53  ;;  %v1987_v53 = vpop.f32.mrf.mxu2 }
 0x3e4   :  { %8728 = vst [vmem:[#allocation78_spill] sm:$0xff] %v7530_v25  ;;  %v1875_v25 = vpop.f32.mrf.mxu0 }
 0x3e5   :  { %2426 = vmatpush.msrb.mxu0 %v7547_v55  ;;  %v1932_v38 = vadd.f32 %v1931_v46, %v1875_v25 }
 0x3e7   :  { %2427 = vmatpush.msrb.mxu0 %v7553_v1  ;;  %v1937_v15 = vpop.f32.mrf.mxu1 }
 0x3e9   :  { %2428 = vmatpush.msrb.mxu0 %v7561_v0  ;;  %v1988_v0 = vadd.f32 %v1987_v53, %v1932_v38 }
 0x3eb   :  { %v7556_v17 = vpop.f32.mrf.mxu3  ;;  %v1990_v60 = vpop.f32.mrf.mxu2 }
 0x3ec   :  { %8733 = vst [vmem:[#allocation83_spill] sm:$0xff] %v7556_v17  ;;  %v1878_v50 = vpop.f32.mrf.mxu0  ;;  %v1985_v17 = vadd.f32 %v1984_v31, %v1929_v5 }
 0x3ed   :  { %v1935_v7 = vadd.f32 %v1934_v29, %v1878_v50 }
 0x3f3   :  { %v7564_v55 = vpop.f32.mrf.mxu3  ;;  %v1993_v13 = vpop.f32.mrf.mxu2 }
 0x3f4   :  { %8735 = vst [vmem:[#allocation85_spill] sm:$0xff] %v7564_v55  ;;  %v1881_v1 = vpop.f32.mrf.mxu0  ;;  %v1940_v55 = vpop.f32.mrf.mxu1 }
 0x3fb   :  { %v7566_v42 = vpop.f32.mrf.mxu3 }
 0x3fc   :  { %8736 = vst [vmem:[#allocation86_spill] sm:$0xff] %v7566_v42  ;;  %v1884_v47 = vpop.f32.mrf.mxu0  ;;  %v1996_v42 = vpop.f32.mrf.mxu2 }
 0x3fd   :  { %v1943_v53 = vpop.f32.mrf.mxu1 }
 0x403   :  { %v2040_v35 = vpop.f32.mrf.mxu3 }
 0x404   :  { %v2041_v22 = vadd.f32 %v2040_v35, %v1985_v17  ;;  %v1991_v17 = vadd.f32 %v1990_v60, %v1935_v7  ;;  %v1887_v25 = vpop.f32.mrf.mxu0  ;;  %v1999_v29 = vpop.f32.mrf.mxu2 }
 0x405   :  { %v1944_v38 = vadd.f32 %v1943_v53, %v1887_v25 }
 0x406   :  { %5120 = vmatmul.msk.f32.vlgmr.msra.gmra.mxu0 %vm824_vm1, %v2041_v22 }
 0x407   :  { %2747 = vmatpush.msra.mxu0 %v7176_v52  ;;  %v2000_v35 = vadd.f32 %v1999_v29, %v1944_v38 }
 0x409   :  { %2748 = vmatpush.msra.mxu0 %v7182_v45  ;;  %v1938_v45 = vadd.f32 %v1937_v15, %v1881_v1  ;;  %v1941_v1 = vadd.f32 %v1940_v55, %v1884_v47 }
 0x40b   :  { %v2043_v24 = vpop.f32.mrf.mxu3  ;;  %2749 = vmatpush.msra.mxu0 %v7188_v19  ;;  %v1994_v19 = vadd.f32 %v1993_v13, %v1938_v45 }
 0x40c   :  { %v2044_v11 = vadd.f32 %v2043_v24, %v1988_v0  ;;  %v2002_v55 = vpop.f32.mrf.mxu2  ;;  %v7603_v0 = vld [vmem:[%s8523_s0 + $0x110] sm:$0xff]  ;;  %v7609_v24 = vld [vmem:[%s8523_s0 + $0x108] sm:$0xff] }
 0x40d   :  { %2750 = vmatpush.msra.mxu0 %v7194_v10  ;;  %v7584_v10 = vld [vmem:[%s8523_s0 + $0x128] sm:$0xff] }
 0x40e   :  { %5121 = vmatmul.msk.f32.gmra.mxu0 %vm824_vm1, %v2044_v11 }
 0x40f   :  { %2751 = vmatpush.msra.mxu0 %v7201_v20 }
 0x411   :  { %2752 = vmatpush.msra.mxu0 %v7207_v28  ;;  %v1890_v28 = vpop.f32.mrf.mxu0 }
 0x413   :  { %v2046_v31 = vpop.f32.mrf.mxu3  ;;  %2753 = vmatpush.msra.mxu0 %v7213_v27  ;;  %v1946_v27 = vpop.f32.mrf.mxu1 }
 0x414   :  { %v2047_v52 = vadd.f32 %v2046_v31, %v1991_v17  ;;  %v2005_v5 = vpop.f32.mrf.mxu2  ;;  %v1947_v11 = vadd.f32 %v1946_v27, %v1890_v28 }
 0x415   :  { %2754 = vmatpush.msra.mxu0 %v7219_v2  ;;  %v7590_v2 = vld [vmem:[%s8523_s0 + $0x120] sm:$0xff] }
 0x416   :  { %5122 = vmatmul.msk.f32.gmra.mxu0 %vm824_vm1, %v2047_v52  ;;  %v2003_v7 = vadd.f32 %v2002_v55, %v1947_v11  ;;  %v2194_v55 = vld [vmem:[#allocation2 + $0x828] sm:$0xff] }
 0x417   :  { %2755 = vmatpush.msra.mxu0 %v7226_v59  ;;  %v7597_v59 = vld [vmem:[%s8523_s0 + $0x118] sm:$0xff]  ;;  %2317 = vmatmul.f32.vlgmr.msra.gmra.mxu2 %v2194_v55  ;;  %v2198_v11 = vld [vmem:[#allocation2 + $0x848] sm:$0xff] }
 0x419   :  { %2756 = vmatpush.msra.mxu0 %v7232_v34  ;;  %v1997_v34 = vadd.f32 %v1996_v42, %v1941_v1  ;;  %v7615_v42 = vld [vmem:[%s8523_s0 + $0x100] sm:$0xff]  ;;  %v1893_v22 = vpop.f32.mrf.mxu0 }
 0x41b   :  { %v2049_v60 = vpop.f32.mrf.mxu3  ;;  %2757 = vmatpush.msra.mxu0 %v7584_v10  ;;  %v1949_v13 = vpop.f32.mrf.mxu1 }
 0x41c   :  { %v2050_v20 = vadd.f32 %v2049_v60, %v1994_v19  ;;  %v1950_v52 = vadd.f32 %v1949_v13, %v1893_v22  ;;  %v2008_v45 = vpop.f32.mrf.mxu2  ;;  %v2195_v13 = vld [vmem:[#allocation2 + $0x830] sm:$0xff] }
 0x41d   :  { %2758 = vmatpush.msra.mxu0 %v7590_v2  ;;  %2373 = vmatmul.f32.vlgmr.msrb.gmra.mxu3 %v2195_v13  ;;  %v2218_v13 = vld [vmem:[#allocation2 + $0x8e8] sm:$0xff] }
 0x41e   :  { %5123 = vmatmul.msk.f32.gmra.mxu0 %vm824_vm1, %v2050_v20  ;;  %v2006_v19 = vadd.f32 %v2005_v5, %v1950_v52  ;;  %3025 = vmatpush.msrb.mxu3 %v7250_v33 }
 0x41f   :  { %2759 = vmatpush.msra.mxu0 %v7597_v59  ;;  %2320 = vmatmul.f32.gmra.mxu2 %v2198_v11 }
 0x420   :  { %3026 = vmatpush.msrb.mxu3 %v7256_v6  ;;  %v2202_v6 = vld [vmem:[#allocation2 + $0x868] sm:$0xff] }
 0x421   :  { %2760 = vmatpush.msra.mxu0 %v7603_v0  ;;  %v1896_v17 = vpop.f32.mrf.mxu0 }
 0x422   :  { %3027 = vmatpush.msrb.mxu3 %v7262_v23 }
 0x423   :  { %v2052_v46 = vpop.f32.mrf.mxu3  ;;  %2761 = vmatpush.msra.mxu0 %v7609_v24  ;;  %v1952_v25 = vpop.f32.mrf.mxu1 }
 0x424   :  { %v2053_v47 = vadd.f32 %v2052_v46, %v1997_v34  ;;  %v1953_v34 = vadd.f32 %v1952_v25, %v1896_v17  ;;  %v2011_v28 = vpop.f32.mrf.mxu2  ;;  %v2199_v17 = vld [vmem:[#allocation2 + $0x850] sm:$0xff]  ;;  %3028 = vmatpush.msrb.mxu3 %v7269_v14 }
 0x425   :  { %2762 = vmatpush.msra.mxu0 %v7615_v42  ;;  %2376 = vmatmul.f32.gmra.mxu3 %v2199_v17  ;;  %v2233_v17 = vld [vmem:[#allocation2 + $0x960] sm:$0xff] }
 0x426   :  { %5124 = vmatmul.msk.f32.gmra.mxu0 %vm824_vm1, %v2053_v47  ;;  %v2009_v27 = vadd.f32 %v2008_v45, %v1953_v34  ;;  %3029 = vmatpush.msrb.mxu3 %v7275_v32  ;;  %v2206_v34 = vld [vmem:[#allocation2 + $0x888] sm:$0xff] }
 0x427   :  { %2323 = vmatmul.f32.gmra.mxu2 %v2202_v6  ;;  %v2243_v6 = vld [vmem:[#allocation2 + $0x9b0] sm:$0xff] }
 0x428   :  { %3030 = vmatpush.msrb.mxu3 %v7281_v43 }
 0x429   :  { %v1899_v60 = vpop.f32.mrf.mxu0 }
 0x42a   :  { %3031 = vmatpush.msrb.mxu3 %v7287_v39  ;;  %v2207_v39 = vld [vmem:[#allocation2 + $0x890] sm:$0xff] }
 0x42b   :  { %v2055_v15 = vpop.f32.mrf.mxu3  ;;  %v1955_v1 = vpop.f32.mrf.mxu1 }
 0x42c   :  { %v2056_v50 = vadd.f32 %v2055_v15, %v2000_v35  ;;  %v1956_v38 = vadd.f32 %v1955_v1, %v1899_v60  ;;  %v2193_v15 = vld [vmem:[#allocation2 + $0x820] sm:$0xff]  ;;  %v2203_v60 = vld [vmem:[#allocation2 + $0x870] sm:$0xff]  ;;  %3032 = vmatpush.msrb.mxu3 %v7294_v56 }
 0x42d   :  { %2261 = vmatmul.f32.vlgmr.msra.gmra.mxu1 %v2193_v15  ;;  %2379 = vmatmul.f32.gmra.mxu3 %v2203_v60  ;;  %v2201_v1 = vld [vmem:[#allocation2 + $0x860] sm:$0xff]  ;;  %v2228_v60 = vld [vmem:[#allocation2 + $0x938] sm:$0xff] }
 0x42e   :  { %5125 = vmatmul.msk.f32.gmra.mxu0 %vm824_vm1, %v2056_v50  ;;  %v2012_v5 = vadd.f32 %v2011_v28, %v1956_v38  ;;  %v2014_v50 = vpop.f32.mrf.mxu2  ;;  %3033 = vmatpush.msrb.mxu3 %v7300_v3  ;;  %v2205_v3 = vld [vmem:[#allocation2 + $0x880] sm:$0xff]  ;;  %v2211_v38 = vld [vmem:[#allocation2 + $0x8b0] sm:$0xff] }
 0x42f   :  { %2326 = vmatmul.f32.gmra.mxu2 %v2206_v34  ;;  %v2217_v15 = vld [vmem:[#allocation2 + $0x8e0] sm:$0xff] }
 0x430   :  { %3034 = vmatpush.msrb.mxu3 %v7306_v40 }
 0x431   :  { %v1902_v35 = vpop.f32.mrf.mxu0 }
 0x432   :  { %3035 = vmatpush.msrb.mxu3 %v7313_v61 }
 0x433   :  { %v2058_v31 = vpop.f32.mrf.mxu3  ;;  %v1958_v22 = vpop.f32.mrf.mxu1 }
 0x434   :  { %v2059_v53 = vadd.f32 %v2058_v31, %v2003_v7  ;;  %v1959_v31 = vadd.f32 %v1958_v22, %v1902_v35  ;;  %3036 = vmatpush.msrb.mxu3 %v7319_v21  ;;  %v2209_v21 = vld [vmem:[#allocation2 + $0x8a0] sm:$0xff]  ;;  %v2196_v35 = vld [vmem:[#allocation2 + $0x838] sm:$0xff]  ;;  %v2214_v22 = vld [vmem:[#allocation2 + $0x8c8] sm:$0xff] }
 0x435   :  { %2382 = vmatmul.f32.gmra.mxu3 %v2207_v39  ;;  %v8744_v39 = vld [vmem:[#allocation66_spill] sm:$0xff] }
 0x436   :  { %5126 = vmatmul.msk.f32.gmra.mxu0 %vm824_vm1, %v2059_v53  ;;  %v2197_v53 = vld [vmem:[#allocation2 + $0x840] sm:$0xff]  ;;  %v2015_v45 = vadd.f32 %v2014_v50, %v1959_v31  ;;  %v2017_v23 = vpop.f32.mrf.mxu2  ;;  %3037 = vmatpush.msrb.mxu3 %v7325_v58  ;;  %v2215_v58 = vld [vmem:[#allocation2 + $0x8d0] sm:$0xff]  ;;  %v2230_v50 = vld [vmem:[#allocation2 + $0x948] sm:$0xff] }
 0x437   :  { %2264 = vmatmul.f32.gmra.mxu1 %v2197_v53  ;;  %v2238_v31 = vld [vmem:[#allocation2 + $0x988] sm:$0xff]  ;;  %v2237_v53 = vld [vmem:[#allocation2 + $0x980] sm:$0xff] }
 0x438   :  { %3038 = vmatpush.msrb.mxu3 %v7332_v16  ;;  %v2213_v16 = vld [vmem:[#allocation2 + $0x8c0] sm:$0xff] }
 0x439   :  { %v1905_v52 = vpop.f32.mrf.mxu0 }
 0x43a   :  { %3039 = vmatpush.msrb.mxu3 %v7338_v18  ;;  %v2200_v18 = vld [vmem:[#allocation2 + $0x858] sm:$0xff] }
 0x43b   :  { %v2061_v20 = vpop.f32.mrf.mxu3  ;;  %v1961_v33 = vpop.f32.mrf.mxu1 }
 0x43c   :  { %v2062_v29 = vadd.f32 %v2061_v20, %v2006_v19  ;;  %v1962_v14 = vadd.f32 %v1961_v33, %v1905_v52  ;;  %3040 = vmatpush.msrb.mxu3 %v7344_v9  ;;  %v2219_v9 = vld [vmem:[#allocation2 + $0x8f0] sm:$0xff]  ;;  %v2224_v33 = vld [vmem:[#allocation2 + $0x918] sm:$0xff] }
 0x43d   :  { %2385 = vmatmul.f32.gmra.mxu3 %v2211_v38  ;;  %v8750_v38 = vld [vmem:[#allocation76_spill] sm:$0xff] }
 0x43e   :  { %5127 = vmatmul.msk.f32.gmra.mxu0 %vm824_vm1, %v2062_v29  ;;  %v2018_v32 = vadd.f32 %v2017_v23, %v1962_v14  ;;  %v2020_v56 = vpop.f32.mrf.mxu2  ;;  %v2232_v14 = vld [vmem:[#allocation2 + $0x958] sm:$0xff] }
 0x43f   :  { %2267 = vmatmul.f32.gmra.mxu1 %v2201_v1  ;;  %v2470_v1 = vld [vmem:[#allocation7 + $0x14] sm:$0xf] }
 0x440   :  { %5133 = vmatpush.msk.msrb.mxu1 %vm864_vm0, %v2470_v1 }
 0x441   :  { %v1908_v29 = vpop.f32.mrf.mxu0 }
 0x443   :  { %v2064_v46 = vpop.f32.mrf.mxu3  ;;  %v1964_v43 = vpop.f32.mrf.mxu1 }
 0x444   :  { %v2065_v47 = vadd.f32 %v2064_v46, %v2009_v27  ;;  %v1965_v46 = vadd.f32 %v1964_v43, %v1908_v29  ;;  %v8742_v29 = vld [vmem:[#allocation61_spill] sm:$0xff]  ;;  %v8743_v43 = vld [vmem:[#allocation62_spill] sm:$0xff] }
 0x445   :  { %2388 = vmatmul.f32.gmra.mxu3 %v2215_v58  ;;  %v2244_v58 = vld [vmem:[#allocation2 + $0x9b8] sm:$0xff] }
 0x446   :  { %5128 = vmatmul.msk.f32.gmra.mxu0 %vm824_vm1, %v2065_v47  ;;  %v2021_v55 = vadd.f32 %v2020_v56, %v1965_v46  ;;  %v2210_v47 = vld [vmem:[#allocation2 + $0x8a8] sm:$0xff]  ;;  %v8746_v46 = vld [vmem:[#allocation68_spill] sm:$0xff] }
 0x447   :  { %2270 = vmatmul.f32.gmra.mxu1 %v2205_v3  ;;  %2329 = vmatmul.f32.gmra.mxu2 %v2210_v47  ;;  %v8747_v56 = vld [vmem:[#allocation70_spill] sm:$0xff]  ;;  %v8749_v47 = vld [vmem:[#allocation75_spill] sm:$0xff] }
 0x44b   :  { %v2067_v7 = vpop.f32.mrf.mxu3 }
 0x44c   :  { %v2068_v25 = vadd.f32 %v2067_v7, %v2012_v5  ;;  %v2204_v5 = vld [vmem:[#allocation2 + $0x878] sm:$0xff] }
 0x44d   :  { %2391 = vmatmul.f32.gmra.mxu3 %v2219_v9  ;;  %v2216_v7 = vld [vmem:[#allocation2 + $0x8d8] sm:$0xff] }
 0x44e   :  { %5129 = vmatmul.msk.f32.gmra.mxu0 %vm824_vm1, %v2068_v25  ;;  %v8754_v9 = vld [vmem:[#allocation81_spill] sm:$0xff] }
 0x44f   :  { %2273 = vmatmul.f32.gmra.mxu1 %v2209_v21  ;;  %2332 = vmatmul.f32.gmra.mxu2 %v2214_v22 }
 0x453   :  { %v2070_v19 = vpop.f32.mrf.mxu3 }
 0x454   :  { %v2071_v20 = vadd.f32 %v2070_v19, %v2015_v45  ;;  %v2242_v45 = vld [vmem:[#allocation2 + $0x9a8] sm:$0xff]  ;;  %v2241_v19 = vld [vmem:[#allocation2 + $0x9a0] sm:$0xff] }
 0x456   :  { %5130 = vmatmul.msk.f32.gmra.mxu0 %vm824_vm1, %v2071_v20 }
 0x457   :  { %2276 = vmatmul.f32.gmra.mxu1 %v2213_v16  ;;  %2335 = vmatmul.f32.gmra.mxu2 %v2218_v13  ;;  %v8752_v16 = vld [vmem:[#allocation79_spill] sm:$0xff]  ;;  %v8753_v13 = vld [vmem:[#allocation80_spill] sm:$0xff] }
 0x45b   :  { %v2073_v28 = vpop.f32.mrf.mxu3 }
 0x45c   :  { %v2074_v27 = vadd.f32 %v2073_v28, %v2018_v32  ;;  %v8741_v32 = vld [vmem:[#allocation60_spill] sm:$0xff] }
 0x45d   :  { %2803 = vmatpush.msra.mxu1 %v8741_v32  ;;  %v2236_v28 = vld [vmem:[#allocation2 + $0x978] sm:$0xff] }
 0x45e   :  { %5131 = vmatmul.msk.f32.gmra.mxu0 %vm824_vm1, %v2074_v27  ;;  %v8745_v27 = vld [vmem:[#allocation67_spill] sm:$0xff] }
 0x45f   :  { %2279 = vmatmul.f32.gmra.mxu1 %v2217_v15 }
 0x460   :  { %2804 = vmatpush.msra.mxu1 %v8742_v29  ;;  %v7724_v29 = vld [vmem:[%s8523_s0 + $0x160] sm:$0xff] }
 0x462   :  { %2805 = vmatpush.msra.mxu1 %v8743_v43  ;;  %v7731_v43 = vld [vmem:[%s8523_s0 + $0x158] sm:$0xff] }
 0x463   :  { %v2076_v40 = vpop.f32.mrf.mxu3 }
 0x464   :  { %v2077_v61 = vadd.f32 %v2076_v40, %v2021_v55  ;;  %2806 = vmatpush.msra.mxu1 %v8744_v39  ;;  %v2240_v55 = vld [vmem:[#allocation2 + $0x998] sm:$0xff]  ;;  %v8748_v40 = vld [vmem:[#allocation74_spill] sm:$0xff]  ;;  %v7737_v39 = vld [vmem:[%s8523_s0 + $0x150] sm:$0xff] }
 0x466   :  { %5132 = vmatmul.msk.f32.gmra.mxu0 %vm824_vm1, %v2077_v61  ;;  %2807 = vmatpush.msra.mxu1 %v8745_v27 }
 0x468   :  { %2808 = vmatpush.msra.mxu1 %v8746_v46 }
 0x46a   :  { %2809 = vmatpush.msra.mxu1 %v8747_v56 }
 0x46c   :  { %2810 = vmatpush.msra.mxu1 %v8748_v40 }
 0x46e   :  { %2429 = vmatmul.f32.vlgmr.msrb.gmra.mxu0 %v2196_v35  ;;  %2811 = vmatpush.msra.mxu1 %v8749_v47  ;;  %v8751_v35 = vld [vmem:[#allocation77_spill] sm:$0xff] }
 0x46f   :  { %3081 = vmatpush.msrb.mxu0 %v7350_v54  ;;  %v2222_v54 = vld [vmem:[#allocation2 + $0x908] sm:$0xff] }
 0x470   :  { %2338 = vmatmul.f32.gmra.mxu2 %v2222_v54  ;;  %2812 = vmatpush.msra.mxu1 %v8750_v38 }
 0x471   :  { %3082 = vmatpush.msrb.mxu0 %v7356_v49  ;;  %v2223_v49 = vld [vmem:[#allocation2 + $0x910] sm:$0xff] }
 0x472   :  { %2394 = vmatmul.f32.gmra.mxu3 %v2223_v49  ;;  %2813 = vmatpush.msra.mxu1 %v8751_v35 }
 0x473   :  { %3083 = vmatpush.msrb.mxu0 %v7362_v44  ;;  %v2221_v44 = vld [vmem:[#allocation2 + $0x900] sm:$0xff] }
 0x474   :  { %2282 = vmatmul.f32.gmra.mxu1 %v2221_v44  ;;  %v8756_v44 = vld [vmem:[#allocation84_spill] sm:$0xff] }
 0x475   :  { %3084 = vmatpush.msrb.mxu0 %v7368_v48  ;;  %2814 = vmatpush.msra.mxu1 %v8752_v16 }
 0x476   :  { %2432 = vmatmul.f32.gmra.mxu0 %v2200_v18 }
 0x477   :  { %3085 = vmatpush.msrb.mxu0 %v7374_v37  ;;  %v2208_v37 = vld [vmem:[#allocation2 + $0x898] sm:$0xff]  ;;  %2815 = vmatpush.msra.mxu1 %v8753_v13 }
 0x479   :  { %3086 = vmatpush.msrb.mxu0 %v7380_v51  ;;  %v2226_v51 = vld [vmem:[#allocation2 + $0x928] sm:$0xff]  ;;  %2816 = vmatpush.msra.mxu1 %v8754_v9 }
 0x47a   :  { %2341 = vmatmul.f32.gmra.mxu2 %v2226_v51 }
 0x47b   :  { %3087 = vmatpush.msrb.mxu0 %v7386_v63  ;;  %v2227_v63 = vld [vmem:[#allocation2 + $0x930] sm:$0xff] }
 0x47c   :  { %2397 = vmatmul.f32.gmra.mxu3 %v2227_v63 }
 0x47d   :  { %3088 = vmatpush.msrb.mxu0 %v7392_v41  ;;  %v2225_v41 = vld [vmem:[#allocation2 + $0x920] sm:$0xff] }
 0x47e   :  { %2435 = vmatmul.f32.gmra.mxu0 %v2204_v5  ;;  %2285 = vmatmul.f32.gmra.mxu1 %v2225_v41  ;;  %v8755_v5 = vld [vmem:[#allocation82_spill] sm:$0xff] }
 0x47f   :  { %3089 = vmatpush.msrb.mxu0 %v7398_v4  ;;  %2817 = vmatpush.msra.mxu1 %v8755_v5 }
 0x481   :  { %3090 = vmatpush.msrb.mxu0 %v7404_v62  ;;  %v2212_v62 = vld [vmem:[#allocation2 + $0x8b8] sm:$0xff]  ;;  %2818 = vmatpush.msra.mxu1 %v8756_v44 }
 0x482   :  { %2344 = vmatmul.f32.gmra.mxu2 %v2230_v50 }
 0x483   :  { %v7653_v48 = vpop.f32.mrf.mxu0  ;;  %3091 = vmatpush.msrb.mxu0 %v7413_v26  ;;  %v2231_v26 = vld [vmem:[#allocation2 + $0x950] sm:$0xff] }
 0x484   :  { %2400 = vmatmul.f32.gmra.mxu3 %v2231_v26 }
 0x485   :  { %3092 = vmatpush.msrb.mxu0 %v7419_v12  ;;  %v2229_v12 = vld [vmem:[#allocation2 + $0x940] sm:$0xff] }
 0x486   :  { %2438 = vmatmul.f32.gmra.mxu0 %v2208_v37  ;;  %2288 = vmatmul.f32.gmra.mxu1 %v2229_v12 }
 0x487   :  { %3093 = vmatpush.msrb.mxu0 %v7425_v30  ;;  %v2234_v30 = vld [vmem:[#allocation2 + $0x968] sm:$0xff] }
 0x489   :  { %3094 = vmatpush.msrb.mxu0 %v7434_v8  ;;  %v2235_v8 = vld [vmem:[#allocation2 + $0x970] sm:$0xff] }
 0x48a   :  { %2347 = vmatmul.f32.gmra.mxu2 %v2234_v30 }
 0x48b   :  { %v7659_v4 = vpop.f32.mrf.mxu0  ;;  %3095 = vmatpush.msrb.mxu0 %v7440_v57  ;;  %v2220_v57 = vld [vmem:[#allocation2 + $0x8f8] sm:$0xff] }
 0x48c   :  { %2403 = vmatmul.f32.gmra.mxu3 %v2235_v8 }
 0x48d   :  { %3096 = vmatpush.msrb.mxu0 %v7446_v36  ;;  %v2239_v36 = vld [vmem:[#allocation2 + $0x990] sm:$0xff] }
 0x48e   :  { %2441 = vmatmul.f32.gmra.mxu0 %v2212_v62  ;;  %2291 = vmatmul.f32.gmra.mxu1 %v2233_v17 }
 0x492   :  { %2350 = vmatmul.f32.gmra.mxu2 %v2238_v31 }
 0x493   :  { %v7663_v11 = vpop.f32.mrf.mxu0 }
 0x494   :  { %8737 = vst [vmem:[#allocation87_spill] sm:$0xff] %v7663_v11  ;;  %2406 = vmatmul.f32.gmra.mxu3 %v2239_v36  ;;  %v7706_v36 = vld [vmem:[%s8523_s0 + $0x178] sm:$0xff] }
 0x496   :  { %2444 = vmatmul.f32.gmra.mxu0 %v2216_v7  ;;  %2294 = vmatmul.f32.gmra.mxu1 %v2237_v53 }
 0x49a   :  { %2353 = vmatmul.f32.gmra.mxu2 %v2242_v45  ;;  %v2318_v21 = vpop.f32.mrf.mxu2 }
 0x49b   :  { %v7665_v25 = vpop.f32.mrf.mxu0 }
 0x49c   :  { %8738 = vst [vmem:[#allocation88_spill] sm:$0xff] %v7665_v25  ;;  %2409 = vmatmul.f32.gmra.mxu3 %v2243_v6  ;;  %v7712_v6 = vld [vmem:[%s8523_s0 + $0x170] sm:$0xff] }
 0x49e   :  { %2447 = vmatmul.f32.gmra.mxu0 %v2220_v57  ;;  %2297 = vmatmul.f32.gmra.mxu1 %v2241_v19 }
 0x4a0   :  { %v2374_v18 = vpop.f32.mrf.mxu3 }
 0x4a2   :  { %v2321_v49 = vpop.f32.mrf.mxu2 }
 0x4a3   :  { %v7667_v52 = vpop.f32.mrf.mxu0 }
 0x4a4   :  { %8739 = vst [vmem:[#allocation89_spill] sm:$0xff] %v7667_v52 }
 0x4a6   :  { %2450 = vmatmul.f32.gmra.mxu0 %v2224_v33 }
 0x4a8   :  { %v2377_v37 = vpop.f32.mrf.mxu3 }
 0x4aa   :  { %v2262_v61 = vpop.f32.mrf.mxu1  ;;  %v2324_v41 = vpop.f32.mrf.mxu2 }
 0x4ab   :  { %v7669_v23 = vpop.f32.mrf.mxu0  ;;  %v2319_v26 = vadd.f32 %v2318_v21, %v2262_v61  ;;  %v7749_v61 = vld [vmem:[%s8523_s0 + $0x140] sm:$0xff]  ;;  %v7756_v21 = vld [vmem:[%s8523_s0 + $0x138] sm:$0xff] }
 0x4ac   :  { %8740 = vst [vmem:[#allocation90_spill] sm:$0xff] %v7669_v23 }
 0x4ad   :  { %v2375_v30 = vadd.f32 %v2374_v18, %v2319_v26 }
 0x4ae   :  { %2453 = vmatmul.f32.gmra.mxu0 %v2228_v60  ;;  %v7718_v60 = vld [vmem:[%s8523_s0 + $0x168] sm:$0xff] }
 0x4b0   :  { %v2380_v62 = vpop.f32.mrf.mxu3 }
 0x4b2   :  { %v2327_v7 = vpop.f32.mrf.mxu2 }
 0x4b3   :  { %v7671_v20 = vpop.f32.mrf.mxu0 }
 0x4b4   :  { %v2265_v15 = vpop.f32.mrf.mxu1 }
 0x4b5   :  { %v2322_v31 = vadd.f32 %v2321_v49, %v2265_v15 }
 0x4b6   :  { %2456 = vmatmul.f32.gmra.mxu0 %v2232_v14 }
 0x4b7   :  { %v2378_v53 = vadd.f32 %v2377_v37, %v2322_v31 }
 0x4b8   :  { %v2383_v17 = vpop.f32.mrf.mxu3 }
 0x4bb   :  { %v7677_v34 = vpop.f32.mrf.mxu0 }
 0x4bc   :  { %v2268_v63 = vpop.f32.mrf.mxu1 }
 0x4bd   :  { %v2325_v1 = vadd.f32 %v2324_v41, %v2268_v63 }
 0x4be   :  { %2459 = vmatmul.f32.gmra.mxu0 %v2236_v28 }
 0x4bf   :  { %v2381_v28 = vadd.f32 %v2380_v62, %v2325_v1 }
 0x4c0   :  { %v2386_v32 = vpop.f32.mrf.mxu3 }
 0x4c3   :  { %v7683_v3 = vpop.f32.mrf.mxu0 }
 0x4c4   :  { %v2271_v12 = vpop.f32.mrf.mxu1 }
 0x4c5   :  { %v2328_v47 = vadd.f32 %v2327_v7, %v2271_v12 }
 0x4c6   :  { %2462 = vmatmul.f32.gmra.mxu0 %v2240_v55  ;;  %v7743_v55 = vld [vmem:[%s8523_s0 + $0x148] sm:$0xff] }
 0x4c7   :  { %v2384_v35 = vadd.f32 %v2383_v17, %v2328_v47 }
 0x4c8   :  { %v2389_v38 = vpop.f32.mrf.mxu3 }
 0x4ca   :  { %v2330_v45 = vpop.f32.mrf.mxu2 }
 0x4cb   :  { %v7689_v22 = vpop.f32.mrf.mxu0 }
 0x4cc   :  { %v2274_v33 = vpop.f32.mrf.mxu1 }
 0x4cd   :  { %v2331_v13 = vadd.f32 %v2330_v45, %v2274_v33 }
 0x4ce   :  { %2465 = vmatmul.f32.gmra.mxu0 %v2244_v58  ;;  %v7762_v58 = vld [vmem:[%s8523_s0 + $0x130] sm:$0xff] }
 0x4cf   :  { %v2387_v5 = vadd.f32 %v2386_v32, %v2331_v13  ;;  %v2587_v13 = vld [vmem:[#allocation2 + $0x9e0] sm:$0xff] }
 0x4d0   :  { %v2392_v49 = vpop.f32.mrf.mxu3 }
 0x4d2   :  { %v2333_v56 = vpop.f32.mrf.mxu2 }
 0x4d3   :  { %v7695_v54 = vpop.f32.mrf.mxu0 }
 0x4d4   :  { %v2277_v27 = vpop.f32.mrf.mxu1 }
 0x4d5   :  { %v2334_v63 = vadd.f32 %v2333_v56, %v2277_v27  ;;  %v2584_v27 = vld [vmem:[#allocation2 + $0x9c8] sm:$0xff] }
 0x4d6   :  { %2707 = vmatmul.f32.vlgmr.msra.gmra.mxu3 %v2584_v27  ;;  %v5449_v27 = vld [vmem:[%s8523_s0 + $0x38] sm:$0xff] }
 0x4da   :  { %v2336_v15 = vpop.f32.mrf.mxu2 }
 0x4db   :  { %v7698_v51 = vpop.f32.mrf.mxu0 }
 0x4dc   :  { %v2280_v9 = vpop.f32.mrf.mxu1 }
 0x4e3   :  { %v7700_v50 = vpop.f32.mrf.mxu0 }
 0x4eb   :  { %v2430_v8 = vpop.f32.mrf.mxu0 }
 0x4ec   :  { %v2431_v57 = vadd.f32 %v2430_v8, %v2375_v30 }
 0x4ee   :  { %5134 = vmatmul.msk.f32.vlgmr.msrb.gmra.mxu1 %vm824_vm1, %v2431_v57 }
 0x4ef   :  { %3137 = vmatpush.msrb.mxu1 %v7706_v36 }
 0x4f1   :  { %3138 = vmatpush.msrb.mxu1 %v7712_v6 }
 0x4f3   :  { %v2433_v19 = vpop.f32.mrf.mxu0  ;;  %3139 = vmatpush.msrb.mxu1 %v7718_v60  ;;  %v2339_v41 = vpop.f32.mrf.mxu2 }
 0x4f4   :  { %v2434_v14 = vadd.f32 %v2433_v19, %v2378_v53 }
 0x4f5   :  { %3140 = vmatpush.msrb.mxu1 %v7724_v29  ;;  %v2395_v26 = vpop.f32.mrf.mxu3 }
 0x4f6   :  { %5135 = vmatmul.msk.f32.gmra.mxu1 %vm824_vm1, %v2434_v14 }
 0x4f7   :  { %3141 = vmatpush.msrb.mxu1 %v7731_v43 }
 0x4f9   :  { %3142 = vmatpush.msrb.mxu1 %v7737_v39 }
 0x4fb   :  { %v2436_v46 = vpop.f32.mrf.mxu0  ;;  %3143 = vmatpush.msrb.mxu1 %v7743_v55 }
 0x4fc   :  { %v2437_v40 = vadd.f32 %v2436_v46, %v2381_v28  ;;  %v2583_v28 = vld [vmem:[#allocation2 + $0x9c0] sm:$0xff] }
 0x4fd   :  { %3144 = vmatpush.msrb.mxu1 %v7749_v61  ;;  %v2342_v30 = vpop.f32.mrf.mxu2  ;;  %2651 = vmatmul.f32.vlgmr.msrb.gmra.mxu2 %v2583_v28 }
 0x4fe   :  { %5136 = vmatmul.msk.f32.gmra.mxu1 %vm824_vm1, %v2437_v40 }
 0x4ff   :  { %3145 = vmatpush.msrb.mxu1 %v7756_v21  ;;  %v2398_v57 = vpop.f32.mrf.mxu3 }
 0x501   :  { %3146 = vmatpush.msrb.mxu1 %v7762_v58 }
 0x503   :  { %v2439_v16 = vpop.f32.mrf.mxu0  ;;  %3147 = vmatpush.msrb.mxu1 %v7584_v10  ;;  %v2283_v10 = vpop.f32.mrf.mxu1 }
 0x504   :  { %v2440_v18 = vadd.f32 %v2439_v16, %v2384_v35  ;;  %v2340_v17 = vadd.f32 %v2339_v41, %v2283_v10  ;;  %v5441_v16 = vld [vmem:[%s8523_s0 + $0x78] sm:$0xff] }
 0x505   :  { %3148 = vmatpush.msrb.mxu1 %v7590_v2  ;;  %v2390_v2 = vadd.f32 %v2389_v38, %v2334_v63  ;;  %v2345_v33 = vpop.f32.mrf.mxu2  ;;  %v2585_v38 = vld [vmem:[#allocation2 + $0x9d0] sm:$0xff]  ;;  %2654 = vmatmul.f32.gmra.mxu2 %v2587_v13 }
 0x506   :  { %5137 = vmatmul.msk.f32.gmra.mxu1 %vm824_vm1, %v2440_v18  ;;  %2763 = vmatmul.f32.vlgmr.msra.gmra.mxu0 %v2585_v38  ;;  %v2589_v63 = vld [vmem:[#allocation2 + $0x9f0] sm:$0xff]  ;;  %v2599_v38 = vld [vmem:[#allocation2 + $0xa40] sm:$0xff] }
 0x507   :  { %3149 = vmatpush.msrb.mxu1 %v7597_v59  ;;  %v2337_v59 = vadd.f32 %v2336_v15, %v2280_v9  ;;  %v2401_v14 = vpop.f32.mrf.mxu3  ;;  %3415 = vmatpush.msra.mxu0 %v5441_v16  ;;  %v2588_v9 = vld [vmem:[#allocation2 + $0x9e8] sm:$0xff]  ;;  %v5442_v15 = vld [vmem:[%s8523_s0 + $0x70] sm:$0xff] }
 0x508   :  { %2710 = vmatmul.f32.gmra.mxu3 %v2588_v9  ;;  %v2597_v16 = vld [vmem:[#allocation2 + $0xa30] sm:$0xff]  ;;  %v5453_v9 = vld [vmem:[%s8523_s0 + $0x18] sm:$0xff] }
 0x509   :  { %3150 = vmatpush.msrb.mxu1 %v7603_v0  ;;  %v2393_v7 = vadd.f32 %v2392_v49, %v2337_v59  ;;  %3416 = vmatpush.msra.mxu0 %v5442_v15  ;;  %v5445_v59 = vld [vmem:[%s8523_s0 + $0x58] sm:$0xff]  ;;  %v5454_v15 = vld [vmem:[%s8523_s0 + $0x10] sm:$0xff] }
 0x50b   :  { %v2442_v44 = vpop.f32.mrf.mxu0  ;;  %3151 = vmatpush.msrb.mxu1 %v7609_v24  ;;  %v2286_v0 = vpop.f32.mrf.mxu1 }
 0x50c   :  { %v2443_v37 = vadd.f32 %v2442_v44, %v2387_v5  ;;  %v2343_v19 = vadd.f32 %v2342_v30, %v2286_v0 }
 0x50d   :  { %3152 = vmatpush.msrb.mxu1 %v7615_v42  ;;  %v2396_v42 = vadd.f32 %v2395_v26, %v2340_v17  ;;  %v2348_v47 = vpop.f32.mrf.mxu2  ;;  %v2591_v26 = vld [vmem:[#allocation2 + $0xa00] sm:$0xff]  ;;  %v2593_v17 = vld [vmem:[#allocation2 + $0xa10] sm:$0xff] }
 0x50e   :  { %5138 = vmatmul.msk.f32.gmra.mxu1 %vm824_vm1, %v2443_v37  ;;  %v2399_v1 = vadd.f32 %v2398_v57, %v2343_v19  ;;  %v5443_v37 = vld [vmem:[%s8523_s0 + $0x68] sm:$0xff]  ;;  %2766 = vmatmul.f32.gmra.mxu0 %v2589_v63  ;;  %v5448_v19 = vld [vmem:[%s8523_s0 + $0x40] sm:$0xff]  ;;  %v2601_v63 = vld [vmem:[#allocation2 + $0xa50] sm:$0xff] }
 0x50f   :  { %v2404_v18 = vpop.f32.mrf.mxu3  ;;  %3417 = vmatpush.msra.mxu0 %v5443_v37  ;;  %2657 = vmatmul.f32.gmra.mxu2 %v2591_v26  ;;  %v2604_v37 = vld [vmem:[#allocation2 + $0xa68] sm:$0xff]  ;;  %v2607_v26 = vld [vmem:[#allocation2 + $0xa80] sm:$0xff] }
 0x513   :  { %v2445_v62 = vpop.f32.mrf.mxu0  ;;  %v2289_v31 = vpop.f32.mrf.mxu1 }
 0x514   :  { %v2446_v12 = vadd.f32 %v2445_v62, %v2390_v2  ;;  %v2346_v56 = vadd.f32 %v2345_v33, %v2289_v31  ;;  %v5444_v62 = vld [vmem:[%s8523_s0 + $0x60] sm:$0xff] }
 0x515   :  { %v2351_v41 = vpop.f32.mrf.mxu2  ;;  %3418 = vmatpush.msra.mxu0 %v5444_v62  ;;  %v2595_v33 = vld [vmem:[#allocation2 + $0xa20] sm:$0xff]  ;;  %v2590_v62 = vld [vmem:[#allocation2 + $0x9f8] sm:$0xff] }
 0x516   :  { %5139 = vmatmul.msk.f32.gmra.mxu1 %vm824_vm1, %v2446_v12  ;;  %v2402_v35 = vadd.f32 %v2401_v14, %v2346_v56  ;;  %v2592_v12 = vld [vmem:[#allocation2 + $0xa08] sm:$0xff]  ;;  %2769 = vmatmul.f32.gmra.mxu0 %v2593_v17  ;;  %v2611_v17 = vld [vmem:[#allocation2 + $0xaa0] sm:$0xff] }
 0x517   :  { %3419 = vmatpush.msra.mxu0 %v5445_v59  ;;  %v2407_v0 = vpop.f32.mrf.mxu3  ;;  %2713 = vmatmul.f32.gmra.mxu3 %v2592_v12  ;;  %v2608_v12 = vld [vmem:[#allocation2 + $0xa88] sm:$0xff]  ;;  %v2605_v59 = vld [vmem:[#allocation2 + $0xa70] sm:$0xff] }
 0x518   :  { %2660 = vmatmul.f32.gmra.mxu2 %v2595_v33  ;;  %v5465_v33 = vld [vmem:[%s8523_s0 + $0xb8] sm:$0xff] }
 0x51b   :  { %v2448_v8 = vpop.f32.mrf.mxu0  ;;  %v2292_v40 = vpop.f32.mrf.mxu1 }
 0x51c   :  { %v2449_v24 = vadd.f32 %v2448_v8, %v2393_v7  ;;  %v2349_v44 = vadd.f32 %v2348_v47, %v2292_v40  ;;  %v5451_v40 = vld [vmem:[%s8523_s0 + $0x28] sm:$0xff] }
 0x51e   :  { %5140 = vmatmul.msk.f32.gmra.mxu1 %vm824_vm1, %v2449_v24  ;;  %v2405_v2 = vadd.f32 %v2404_v18, %v2349_v44  ;;  %v5446_v24 = vld [vmem:[%s8523_s0 + $0x50] sm:$0xff]  ;;  %v5452_v18 = vld [vmem:[%s8523_s0 + $0x20] sm:$0xff]  ;;  %2772 = vmatmul.f32.gmra.mxu0 %v2597_v16  ;;  %v2620_v16 = vld [vmem:[#allocation2 + $0xae8] sm:$0xff] }
 0x51f   :  { %3420 = vmatpush.msra.mxu0 %v5446_v24  ;;  %v2410_v28 = vpop.f32.mrf.mxu3  ;;  %v2603_v44 = vld [vmem:[#allocation2 + $0xa60] sm:$0xff]  ;;  %v2594_v24 = vld [vmem:[#allocation2 + $0xa18] sm:$0xff] }
 0x520   :  { %2663 = vmatmul.f32.gmra.mxu2 %v2599_v38 }
 0x523   :  { %v2451_v53 = vpop.f32.mrf.mxu0  ;;  %v2295_v10 = vpop.f32.mrf.mxu1 }
 0x524   :  { %v2452_v45 = vadd.f32 %v2451_v53, %v2396_v42  ;;  %v2352_v8 = vadd.f32 %v2351_v41, %v2295_v10  ;;  %v5447_v42 = vld [vmem:[%s8523_s0 + $0x48] sm:$0xff]  ;;  %v2354_v53 = vpop.f32.mrf.mxu2  ;;  %v5456_v10 = vld [vmem:[%s8523_s0] sm:$0xff]  ;;  %v5457_v41 = vld [vmem:[%s8523_s0 + $0xf8] sm:$0xff] }
 0x525   :  { %3421 = vmatpush.msra.mxu0 %v5447_v42  ;;  %v2609_v42 = vld [vmem:[#allocation2 + $0xa90] sm:$0xff] }
 0x526   :  { %5141 = vmatmul.msk.f32.gmra.mxu1 %vm824_vm1, %v2452_v45  ;;  %v2408_v57 = vadd.f32 %v2407_v0, %v2352_v8  ;;  %v2596_v45 = vld [vmem:[#allocation2 + $0xa28] sm:$0xff]  ;;  %2775 = vmatmul.f32.gmra.mxu0 %v2601_v63  ;;  %v5460_v0 = vld [vmem:[%s8523_s0 + $0xe0] sm:$0xff]  ;;  %v5462_v8 = vld [vmem:[%s8523_s0 + $0xd0] sm:$0xff] }
 0x527   :  { %3422 = vmatpush.msra.mxu0 %v5448_v19  ;;  %2716 = vmatmul.f32.gmra.mxu3 %v2596_v45  ;;  %v5466_v45 = vld [vmem:[%s8523_s0 + $0xb0] sm:$0xff]  ;;  %v2598_v19 = vld [vmem:[#allocation2 + $0xa38] sm:$0xff] }
 0x528   :  { %2666 = vmatmul.f32.gmra.mxu2 %v2603_v44  ;;  %v2624_v44 = vld [vmem:[#allocation2 + $0xb08] sm:$0xff]  ;;  %v2610_v63 = vld [vmem:[#allocation2 + $0xa98] sm:$0xff] }
 0x529   :  { %3423 = vmatpush.msra.mxu0 %v5449_v27  ;;  %v5467_v27 = vld [vmem:[%s8523_s0 + $0xa8] sm:$0xff] }
 0x52b   :  { %v2454_v32 = vpop.f32.mrf.mxu0  ;;  %v2298_v31 = vpop.f32.mrf.mxu1 }
 0x52c   :  { %v2455_v46 = vadd.f32 %v2454_v32, %v2399_v1  ;;  %v2355_v32 = vadd.f32 %v2354_v53, %v2298_v31  ;;  %v5463_v31 = vld [vmem:[%s8523_s0 + $0xc8] sm:$0xff]  ;;  %v5464_v53 = vld [vmem:[%s8523_s0 + $0xc0] sm:$0xff] }
 0x52e   :  { %5142 = vmatmul.msk.f32.gmra.mxu1 %vm824_vm1, %v2455_v46  ;;  %v5450_v46 = vld [vmem:[%s8523_s0 + $0x30] sm:$0xff]  ;;  %v2411_v56 = vadd.f32 %v2410_v28, %v2355_v32  ;;  %2778 = vmatmul.f32.gmra.mxu0 %v2605_v59  ;;  %v2616_v32 = vld [vmem:[#allocation2 + $0xac8] sm:$0xff]  ;;  %v2631_v59 = vld [vmem:[#allocation2 + $0xb40] sm:$0xff] }
 0x52f   :  { %3424 = vmatpush.msra.mxu0 %v5450_v46  ;;  %v2613_v28 = vld [vmem:[#allocation2 + $0xab0] sm:$0xff]  ;;  %v5468_v46 = vld [vmem:[%s8523_s0 + $0xa0] sm:$0xff] }
 0x530   :  { %2669 = vmatmul.f32.gmra.mxu2 %v2607_v26  ;;  %v2614_v26 = vld [vmem:[#allocation2 + $0xab8] sm:$0xff] }
 0x531   :  { %3425 = vmatpush.msra.mxu0 %v5451_v40  ;;  %v5470_v40 = vld [vmem:[%s8523_s0 + $0x90] sm:$0xff] }
 0x533   :  { %v2457_v5 = vpop.f32.mrf.mxu0  ;;  %3426 = vmatpush.msra.mxu0 %v5452_v18  ;;  %v2617_v18 = vld [vmem:[#allocation2 + $0xad0] sm:$0xff] }
 0x534   :  { %v2458_v49 = vadd.f32 %v2457_v5, %v2402_v35  ;;  %v2600_v35 = vld [vmem:[#allocation2 + $0xa48] sm:$0xff]  ;;  %v2586_v5 = vld [vmem:[#allocation2 + $0x9d8] sm:$0xff] }
 0x535   :  { %2719 = vmatmul.f32.gmra.mxu3 %v2600_v35  ;;  %3427 = vmatpush.msra.mxu0 %v5453_v9  ;;  %v2619_v35 = vld [vmem:[#allocation2 + $0xae0] sm:$0xff] }
 0x536   :  { %5143 = vmatmul.msk.f32.gmra.mxu1 %vm824_vm1, %v2458_v49  ;;  %v5455_v49 = vld [vmem:[%s8523_s0 + $0x8] sm:$0xff]  ;;  %2781 = vmatmul.f32.gmra.mxu0 %v2609_v42  ;;  %v5472_v9 = vld [vmem:[%s8523_s0 + $0x80] sm:$0xff]  ;;  %v2860_v42 = vld [vmem:[#allocation7 + $0x18] sm:$0xf] }
 0x537   :  { %3428 = vmatpush.msra.mxu0 %v5454_v15  ;;  %v2606_v15 = vld [vmem:[#allocation2 + $0xa78] sm:$0xff]  ;;  %5147 = vmatpush.msk.msra.mxu2 %vm864_vm0, %v2860_v42 }
 0x538   :  { %2672 = vmatmul.f32.gmra.mxu2 %v2611_v17 }
 0x539   :  { %3429 = vmatpush.msra.mxu0 %v5455_v49  ;;  %v2623_v49 = vld [vmem:[#allocation2 + $0xb00] sm:$0xff] }
 0x53b   :  { %v2460_v7 = vpop.f32.mrf.mxu0  ;;  %3430 = vmatpush.msra.mxu0 %v5456_v10 }
 0x53c   :  { %v2461_v30 = vadd.f32 %v2460_v7, %v2405_v2  ;;  %v5458_v2 = vld [vmem:[%s8523_s0 + $0xf0] sm:$0xff]  ;;  %v5459_v7 = vld [vmem:[%s8523_s0 + $0xe8] sm:$0xff] }
 0x53d   :  { %2722 = vmatmul.f32.gmra.mxu3 %v2604_v37  ;;  %v2621_v37 = vld [vmem:[#allocation2 + $0xaf0] sm:$0xff] }
 0x53e   :  { %5144 = vmatmul.msk.f32.gmra.mxu1 %vm824_vm1, %v2461_v30  ;;  %v5461_v30 = vld [vmem:[%s8523_s0 + $0xd8] sm:$0xff]  ;;  %2784 = vmatmul.f32.gmra.mxu0 %v2613_v28  ;;  %v7927_v28 = vld [vmem:[%s8523_s0 + $0x1d0] sm:$0xff] }
 0x543   :  { %v2463_v14 = vpop.f32.mrf.mxu0 }
 0x544   :  { %v2464_v1 = vadd.f32 %v2463_v14, %v2408_v57  ;;  %v2612_v57 = vld [vmem:[#allocation2 + $0xaa8] sm:$0xff] }
 0x545   :  { %2725 = vmatmul.f32.gmra.mxu3 %v2608_v12 }
 0x546   :  { %5145 = vmatmul.msk.f32.gmra.mxu1 %vm824_vm1, %v2464_v1  ;;  %v2615_v1 = vld [vmem:[#allocation2 + $0xac0] sm:$0xff]  ;;  %2787 = vmatmul.f32.gmra.mxu0 %v2617_v18 }
 0x547   :  { %2675 = vmatmul.f32.gmra.mxu2 %v2615_v1  ;;  %v7915_v1 = vld [vmem:[%s8523_s0 + $0x1e0] sm:$0xff] }
 0x54b   :  { %v2466_v47 = vpop.f32.mrf.mxu0 }
 0x54c   :  { %v2467_v13 = vadd.f32 %v2466_v47, %v2411_v56  ;;  %v5469_v56 = vld [vmem:[%s8523_s0 + $0x98] sm:$0xff] }
 0x54d   :  { %2728 = vmatmul.f32.gmra.mxu3 %v2612_v57  ;;  %v2602_v47 = vld [vmem:[#allocation2 + $0xa58] sm:$0xff] }
 0x54e   :  { %5146 = vmatmul.msk.f32.gmra.mxu1 %vm824_vm1, %v2467_v13  ;;  %v5471_v13 = vld [vmem:[%s8523_s0 + $0x88] sm:$0xff]  ;;  %2790 = vmatmul.f32.gmra.mxu0 %v2621_v37  ;;  %v2622_v57 = vld [vmem:[#allocation2 + $0xaf8] sm:$0xff] }
 0x54f   :  { %2678 = vmatmul.f32.gmra.mxu2 %v2619_v35  ;;  %v7973_v37 = vld [vmem:[%s8523_s0 + $0x198] sm:$0xff] }
 0x555   :  { %2731 = vmatmul.f32.gmra.mxu3 %v2616_v32  ;;  %v7921_v32 = vld [vmem:[%s8523_s0 + $0x1d8] sm:$0xff] }
 0x556   :  { %2819 = vmatmul.f32.vlgmr.msra.gmra.mxu1 %v2586_v5 }
 0x557   :  { %3471 = vmatpush.msra.mxu1 %v5457_v41  ;;  %2681 = vmatmul.f32.gmra.mxu2 %v2623_v49  ;;  %v2627_v41 = vld [vmem:[#allocation2 + $0xb20] sm:$0xff] }
 0x558   :  { %v7967_v49 = vld [vmem:[%s8523_s0 + $0x1a0] sm:$0xff] }
 0x559   :  { %3472 = vmatpush.msra.mxu1 %v5458_v2  ;;  %v2628_v2 = vld [vmem:[#allocation2 + $0xb28] sm:$0xff]  ;;  %v2708_v18 = vpop.f32.mrf.mxu3 }
 0x55b   :  { %3473 = vmatpush.msra.mxu1 %v5459_v7  ;;  %v2632_v7 = vld [vmem:[#allocation2 + $0xb48] sm:$0xff] }
 0x55d   :  { %3474 = vmatpush.msra.mxu1 %v5460_v0  ;;  %2734 = vmatmul.f32.gmra.mxu3 %v2620_v16  ;;  %v2629_v0 = vld [vmem:[#allocation2 + $0xb30] sm:$0xff] }
 0x55e   :  { %2822 = vmatmul.f32.gmra.mxu1 %v2590_v62  ;;  %v2625_v62 = vld [vmem:[#allocation2 + $0xb10] sm:$0xff] }
 0x55f   :  { %3475 = vmatpush.msra.mxu1 %v5461_v30  ;;  %2684 = vmatmul.f32.gmra.mxu2 %v2627_v41  ;;  %v7953_v16 = vld [vmem:[%s8523_s0 + $0x1b0] sm:$0xff] }
 0x560   :  { %2793 = vmatmul.f32.gmra.mxu0 %v2625_v62 }
 0x561   :  { %3476 = vmatpush.msra.mxu1 %v5462_v8  ;;  %v2618_v8 = vld [vmem:[#allocation2 + $0xad8] sm:$0xff] }
 0x563   :  { %3477 = vmatpush.msra.mxu1 %v5463_v31  ;;  %v7895_v31 = vld [vmem:[%s8523_s0 + $0x1f8] sm:$0xff] }
 0x564   :  { %3193 = vmatpush.msrb.mxu2 %v7895_v31 }
 0x565   :  { %3478 = vmatpush.msra.mxu1 %v5464_v53  ;;  %2737 = vmatmul.f32.gmra.mxu3 %v2624_v44  ;;  %v7901_v53 = vld [vmem:[%s8523_s0 + $0x1f0] sm:$0xff] }
 0x566   :  { %2825 = vmatmul.f32.gmra.mxu1 %v2594_v24  ;;  %v2633_v24 = vld [vmem:[#allocation2 + $0xb50] sm:$0xff]  ;;  %3194 = vmatpush.msrb.mxu2 %v7901_v53 }
 0x567   :  { %3479 = vmatpush.msra.mxu1 %v5465_v33  ;;  %2687 = vmatmul.f32.gmra.mxu2 %v2631_v59  ;;  %v7907_v33 = vld [vmem:[%s8523_s0 + $0x1e8] sm:$0xff]  ;;  %v7993_v59 = vld [vmem:[%s8523_s0 + $0x180] sm:$0xff] }
 0x568   :  { %2796 = vmatmul.f32.gmra.mxu0 %v2629_v0  ;;  %3195 = vmatpush.msrb.mxu2 %v7907_v33 }
 0x569   :  { %3480 = vmatpush.msra.mxu1 %v5466_v45 }
 0x56a   :  { %3196 = vmatpush.msrb.mxu2 %v7915_v1 }
 0x56b   :  { %v7859_v14 = vpop.f32.mrf.mxu1  ;;  %3481 = vmatpush.msra.mxu1 %v5467_v27  ;;  %v7933_v27 = vld [vmem:[%s8523_s0 + $0x1c8] sm:$0xff] }
 0x56c   :  { %3197 = vmatpush.msrb.mxu2 %v7921_v32 }
 0x56d   :  { %3482 = vmatpush.msra.mxu1 %v5468_v46  ;;  %2740 = vmatmul.f32.gmra.mxu3 %v2628_v2  ;;  %v7985_v2 = vld [vmem:[%s8523_s0 + $0x188] sm:$0xff] }
 0x56e   :  { %2828 = vmatmul.f32.gmra.mxu1 %v2598_v19  ;;  %v2626_v19 = vld [vmem:[#allocation2 + $0xb18] sm:$0xff]  ;;  %3198 = vmatpush.msrb.mxu2 %v7927_v28 }
 0x56f   :  { %3483 = vmatpush.msra.mxu1 %v5469_v56  ;;  %v2630_v56 = vld [vmem:[#allocation2 + $0xb38] sm:$0xff] }
 0x570   :  { %2799 = vmatmul.f32.gmra.mxu0 %v2633_v24  ;;  %3199 = vmatpush.msrb.mxu2 %v7933_v27 }
 0x571   :  { %3484 = vmatpush.msra.mxu1 %v5470_v40  ;;  %v7941_v40 = vld [vmem:[%s8523_s0 + $0x1c0] sm:$0xff] }
 0x572   :  { %3200 = vmatpush.msrb.mxu2 %v7941_v40 }
 0x573   :  { %v7873_v38 = vpop.f32.mrf.mxu1  ;;  %3485 = vmatpush.msra.mxu1 %v5471_v13  ;;  %v7959_v13 = vld [vmem:[%s8523_s0 + $0x1a8] sm:$0xff] }
 0x575   :  { %3486 = vmatpush.msra.mxu1 %v5472_v9  ;;  %2743 = vmatmul.f32.gmra.mxu3 %v2632_v7 }
 0x576   :  { %2831 = vmatmul.f32.gmra.mxu1 %v2602_v47  ;;  %v7947_v47 = vld [vmem:[%s8523_s0 + $0x1b8] sm:$0xff] }
 0x577   :  { %3201 = vmatpush.msrb.mxu2 %v7947_v47 }
 0x579   :  { %3202 = vmatpush.msrb.mxu2 %v7953_v16 }
 0x57b   :  { %v7881_v5 = vpop.f32.mrf.mxu1  ;;  %3203 = vmatpush.msrb.mxu2 %v7959_v13 }
 0x57c   :  { %8757 = vst [vmem:[#allocation60_spill] sm:$0xff] %v7881_v5 }
 0x57d   :  { %3204 = vmatpush.msrb.mxu2 %v7967_v49 }
 0x57e   :  { %2834 = vmatmul.f32.gmra.mxu1 %v2606_v15  ;;  %v2634_v15 = vld [vmem:[#allocation2 + $0xb58] sm:$0xff] }
 0x57f   :  { %3205 = vmatpush.msrb.mxu2 %v7973_v37 }
 0x580   :  { %v2652_v35 = vpop.f32.mrf.mxu2 }
 0x583   :  { %v7883_v10 = vpop.f32.mrf.mxu1  ;;  %v2764_v44 = vpop.f32.mrf.mxu0 }
 0x584   :  { %8758 = vst [vmem:[#allocation61_spill] sm:$0xff] %v7883_v10 }
 0x586   :  { %2837 = vmatmul.f32.gmra.mxu1 %v2610_v63  ;;  %v7979_v63 = vld [vmem:[%s8523_s0 + $0x190] sm:$0xff] }
 0x587   :  { %3206 = vmatpush.msrb.mxu2 %v7979_v63 }
 0x588   :  { %v2655_v41 = vpop.f32.mrf.mxu2 }
 0x589   :  { %3207 = vmatpush.msrb.mxu2 %v7985_v2 }
 0x58b   :  { %v7885_v12 = vpop.f32.mrf.mxu1  ;;  %3208 = vmatpush.msrb.mxu2 %v7993_v59  ;;  %v2767_v7 = vpop.f32.mrf.mxu0 }
 0x58c   :  { %8759 = vst [vmem:[#allocation62_spill] sm:$0xff] %v7885_v12 }
 0x58e   :  { %2840 = vmatmul.f32.gmra.mxu1 %v2614_v26  ;;  %v2711_v26 = vpop.f32.mrf.mxu3 }
 0x58f   :  { %v2712_v25 = vadd.f32 %v2711_v26, %v2655_v41  ;;  %v5493_v41 = vld [vmem:[%s8523_s0 + $0x108] sm:$0xff] }
 0x593   :  { %v7887_v30 = vpop.f32.mrf.mxu1 }
 0x594   :  { %8760 = vst [vmem:[#allocation66_spill] sm:$0xff] %v7887_v30  ;;  %v2768_v30 = vadd.f32 %v2767_v7, %v2712_v25 }
 0x596   :  { %2843 = vmatmul.f32.gmra.mxu1 %v2618_v8  ;;  %v2658_v8 = vpop.f32.mrf.mxu2 }
 0x59a   :  { %v2714_v24 = vpop.f32.mrf.mxu3 }
 0x59b   :  { %v7889_v17 = vpop.f32.mrf.mxu1 }
 0x59c   :  { %8761 = vst [vmem:[#allocation67_spill] sm:$0xff] %v7889_v17 }
 0x59e   :  { %2846 = vmatmul.f32.gmra.mxu1 %v2622_v57  ;;  %v2770_v57 = vpop.f32.mrf.mxu0 }
 0x5a3   :  { %v7910_v45 = vpop.f32.mrf.mxu1 }
 0x5a4   :  { %8762 = vst [vmem:[#allocation68_spill] sm:$0xff] %v7910_v45 }
 0x5a6   :  { %2849 = vmatmul.f32.gmra.mxu1 %v2626_v19  ;;  %v2709_v19 = vadd.f32 %v2708_v18, %v2652_v35  ;;  %v2773_v11 = vpop.f32.mrf.mxu0  ;;  %v2715_v18 = vadd.f32 %v2714_v24, %v2658_v8  ;;  %v5494_v8 = vld [vmem:[%s8523_s0 + $0x100] sm:$0xff] }
 0x5a8   :  { %v2765_v5 = vadd.f32 %v2764_v44, %v2709_v19 }
 0x5ab   :  { %v7936_v46 = vpop.f32.mrf.mxu1 }
 0x5ae   :  { %2852 = vmatmul.f32.gmra.mxu1 %v2630_v56  ;;  %v2661_v56 = vpop.f32.mrf.mxu2  ;;  %v2776_v45 = vpop.f32.mrf.mxu0 }
 0x5b3   :  { %v7962_v9 = vpop.f32.mrf.mxu1 }
 0x5b6   :  { %2855 = vmatmul.f32.gmra.mxu1 %v2634_v15  ;;  %v2717_v15 = vpop.f32.mrf.mxu3  ;;  %v2664_v52 = vpop.f32.mrf.mxu2 }
 0x5bb   :  { %v7988_v62 = vpop.f32.mrf.mxu1 }
 0x5be   :  { %v2720_v17 = vpop.f32.mrf.mxu3  ;;  %v2667_v25 = vpop.f32.mrf.mxu2 }
 0x5c3   :  { %v7996_v0 = vpop.f32.mrf.mxu1 }
 0x5cb   :  { %v7998_v42 = vpop.f32.mrf.mxu1 }
 0x5d3   :  { %v2820_v10 = vpop.f32.mrf.mxu1 }
 0x5d4   :  { %v2821_v12 = vadd.f32 %v2820_v10, %v2765_v5  ;;  %v2771_v5 = vadd.f32 %v2770_v57, %v2715_v18  ;;  %v2723_v10 = vpop.f32.mrf.mxu3 }
 0x5d5   :  { %v2724_v7 = vadd.f32 %v2723_v10, %v2667_v25 }
 0x5d6   :  { %5148 = vmatmul.msk.f32.vlgmr.msra.gmra.mxu2 %vm824_vm1, %v2821_v12  ;;  %v2718_v12 = vadd.f32 %v2717_v15, %v2661_v56 }
 0x5d7   :  { %3527 = vmatpush.msra.mxu2 %v7706_v36 }
 0x5d9   :  { %3528 = vmatpush.msra.mxu2 %v7712_v6 }
 0x5db   :  { %v2823_v23 = vpop.f32.mrf.mxu1  ;;  %3529 = vmatpush.msra.mxu2 %v7718_v60  ;;  %v2774_v60 = vadd.f32 %v2773_v11, %v2718_v12  ;;  %v5491_v11 = vld [vmem:[%s8523_s0 + $0x118] sm:$0xff] }
 0x5dc   :  { %v2824_v35 = vadd.f32 %v2823_v23, %v2768_v30  ;;  %v2779_v23 = vpop.f32.mrf.mxu0  ;;  %v2670_v30 = vpop.f32.mrf.mxu2 }
 0x5dd   :  { %3530 = vmatpush.msra.mxu2 %v7724_v29  ;;  %v2726_v44 = vpop.f32.mrf.mxu3  ;;  %v2780_v57 = vadd.f32 %v2779_v23, %v2724_v7 }
 0x5de   :  { %5149 = vmatmul.msk.f32.gmra.mxu2 %vm824_vm1, %v2824_v35  ;;  %v2727_v35 = vadd.f32 %v2726_v44, %v2670_v30 }
 0x5df   :  { %3531 = vmatpush.msra.mxu2 %v7731_v43  ;;  %v5489_v43 = vld [vmem:[%s8523_s0 + $0x128] sm:$0xff] }
 0x5e1   :  { %3532 = vmatpush.msra.mxu2 %v7737_v39 }
 0x5e3   :  { %v2826_v36 = vpop.f32.mrf.mxu1  ;;  %3533 = vmatpush.msra.mxu2 %v7743_v55  ;;  %v2721_v55 = vadd.f32 %v2720_v17, %v2664_v52  ;;  %v5492_v52 = vld [vmem:[%s8523_s0 + $0x110] sm:$0xff] }
 0x5e4   :  { %v2827_v6 = vadd.f32 %v2826_v36, %v2771_v5 }
 0x5e5   :  { %3534 = vmatpush.msra.mxu2 %v7749_v61  ;;  %v5490_v61 = vld [vmem:[%s8523_s0 + $0x120] sm:$0xff]  ;;  %v2729_v24 = vpop.f32.mrf.mxu3 }
 0x5e6   :  { %5150 = vmatmul.msk.f32.gmra.mxu2 %vm824_vm1, %v2827_v6 }
 0x5e7   :  { %3535 = vmatpush.msra.mxu2 %v7756_v21  ;;  %v2777_v21 = vadd.f32 %v2776_v45, %v2721_v55  ;;  %v2673_v45 = vpop.f32.mrf.mxu2 }
 0x5e8   :  { %v2730_v6 = vadd.f32 %v2729_v24, %v2673_v45  ;;  %v2974_v24 = vld [vmem:[#allocation2 + $0xb68] sm:$0xff] }
 0x5e9   :  { %3536 = vmatpush.msra.mxu2 %v7762_v58  ;;  %v2782_v58 = vpop.f32.mrf.mxu0  ;;  %3097 = vmatmul.f32.vlgmr.msrb.gmra.mxu0 %v2974_v24  ;;  %v2991_v24 = vld [vmem:[#allocation2 + $0xbf0] sm:$0xff] }
 0x5ea   :  { %v2783_v18 = vadd.f32 %v2782_v58, %v2727_v35 }
 0x5eb   :  { %v2829_v29 = vpop.f32.mrf.mxu1  ;;  %3537 = vmatpush.msra.mxu2 %v5489_v43 }
 0x5ec   :  { %v2830_v39 = vadd.f32 %v2829_v29, %v2774_v60 }
 0x5ed   :  { %3538 = vmatpush.msra.mxu2 %v5490_v61  ;;  %v2732_v36 = vpop.f32.mrf.mxu3 }
 0x5ee   :  { %5151 = vmatmul.msk.f32.gmra.mxu2 %vm824_vm1, %v2830_v39 }
 0x5ef   :  { %3539 = vmatpush.msra.mxu2 %v5491_v11  ;;  %v2676_v5 = vpop.f32.mrf.mxu2 }
 0x5f0   :  { %v2733_v55 = vadd.f32 %v2732_v36, %v2676_v5 }
 0x5f1   :  { %3540 = vmatpush.msra.mxu2 %v5492_v52  ;;  %v2785_v56 = vpop.f32.mrf.mxu0 }
 0x5f2   :  { %v2786_v60 = vadd.f32 %v2785_v56, %v2730_v6  ;;  %v2981_v6 = vld [vmem:[#allocation2 + $0xba0] sm:$0xff] }
 0x5f3   :  { %v2832_v17 = vpop.f32.mrf.mxu1  ;;  %3541 = vmatpush.msra.mxu2 %v5493_v41 }
 0x5f4   :  { %v2833_v26 = vadd.f32 %v2832_v17, %v2777_v21  ;;  %v2973_v17 = vld [vmem:[#allocation2 + $0xb60] sm:$0xff] }
 0x5f5   :  { %3542 = vmatpush.msra.mxu2 %v5494_v8  ;;  %v2735_v39 = vpop.f32.mrf.mxu3  ;;  %3041 = vmatmul.f32.vlgmr.msrb.gmra.mxu3 %v2973_v17  ;;  %v2986_v17 = vld [vmem:[#allocation2 + $0xbc8] sm:$0xff] }
 0x5f6   :  { %5152 = vmatmul.msk.f32.gmra.mxu2 %vm824_vm1, %v2833_v26 }
 0x5f7   :  { %v2679_v29 = vpop.f32.mrf.mxu2 }
 0x5f8   :  { %v2736_v21 = vadd.f32 %v2735_v39, %v2679_v29 }
 0x5f9   :  { %v2788_v12 = vpop.f32.mrf.mxu0 }
 0x5fa   :  { %v2789_v44 = vadd.f32 %v2788_v12, %v2733_v55  ;;  %v2979_v12 = vld [vmem:[#allocation2 + $0xb90] sm:$0xff] }
 0x5fb   :  { %v2835_v19 = vpop.f32.mrf.mxu1 }
 0x5fc   :  { %v2836_v15 = vadd.f32 %v2835_v19, %v2780_v57  ;;  %v2977_v57 = vld [vmem:[#allocation2 + $0xb80] sm:$0xff]  ;;  %v2975_v19 = vld [vmem:[#allocation2 + $0xb70] sm:$0xff] }
 0x5fd   :  { %v2738_v52 = vpop.f32.mrf.mxu3  ;;  %3044 = vmatmul.f32.gmra.mxu3 %v2977_v57  ;;  %3153 = vmatmul.f32.vlgmr.msrb.gmra.mxu1 %v2975_v19  ;;  %v2980_v57 = vld [vmem:[#allocation2 + $0xb98] sm:$0xff]  ;;  %v2994_v19 = vld [vmem:[#allocation2 + $0xc08] sm:$0xff] }
 0x5fe   :  { %5153 = vmatmul.msk.f32.gmra.mxu2 %vm824_vm1, %v2836_v15 }
 0x5ff   :  { %v2682_v58 = vpop.f32.mrf.mxu2 }
 0x600   :  { %v2739_v45 = vadd.f32 %v2738_v52, %v2682_v58 }
 0x601   :  { %v2791_v30 = vpop.f32.mrf.mxu0 }
 0x602   :  { %v2792_v41 = vadd.f32 %v2791_v30, %v2736_v21 }
 0x603   :  { %v2838_v25 = vpop.f32.mrf.mxu1 }
 0x604   :  { %v2839_v10 = vadd.f32 %v2838_v25, %v2783_v18 }
 0x605   :  { %v2741_v15 = vpop.f32.mrf.mxu3  ;;  %3047 = vmatmul.f32.gmra.mxu3 %v2981_v6  ;;  %3156 = vmatmul.f32.gmra.mxu1 %v2979_v12  ;;  %v3002_v12 = vld [vmem:[#allocation2 + $0xc48] sm:$0xff] }
 0x606   :  { %5154 = vmatmul.msk.f32.gmra.mxu2 %vm824_vm1, %v2839_v10  ;;  %v2978_v10 = vld [vmem:[#allocation2 + $0xb88] sm:$0xff] }
 0x607   :  { %v2685_v56 = vpop.f32.mrf.mxu2  ;;  %3100 = vmatmul.f32.gmra.mxu0 %v2978_v10  ;;  %v8763_v10 = vld [vmem:[#allocation50_spill] sm:$0xff] }
 0x608   :  { %v2742_v25 = vadd.f32 %v2741_v15, %v2685_v56  ;;  %v2997_v56 = vld [vmem:[#allocation2 + $0xc20] sm:$0xff]  ;;  %v2995_v15 = vld [vmem:[#allocation2 + $0xc10] sm:$0xff]  ;;  %v2179_v6 = vadd.f32 %v7653_v48, %v8763_v10  ;;  %v3012_v10 = vld [vmem:[#allocation2 + $0xc98] sm:$0xff] }
 0x609   :  { %v2794_v26 = vpop.f32.mrf.mxu0 }
 0x60a   :  { %v2795_v35 = vadd.f32 %v2794_v26, %v2739_v45  ;;  %v2987_v26 = vld [vmem:[#allocation2 + $0xbd0] sm:$0xff]  ;;  %v2993_v45 = vld [vmem:[#allocation2 + $0xc00] sm:$0xff] }
 0x60b   :  { %v2841_v43 = vpop.f32.mrf.mxu1 }
 0x60c   :  { %v2842_v23 = vadd.f32 %v2841_v43, %v2786_v60 }
 0x60d   :  { %v2744_v43 = vpop.f32.mrf.mxu3 }
 0x60e   :  { %5155 = vmatmul.msk.f32.gmra.mxu2 %vm824_vm1, %v2842_v23 }
 0x60f   :  { %v2688_v29 = vpop.f32.mrf.mxu2 }
 0x610   :  { %v2745_v55 = vadd.f32 %v2744_v43, %v2688_v29  ;;  %v3005_v43 = vld [vmem:[#allocation2 + $0xc60] sm:$0xff] }
 0x611   :  { %v2797_v5 = vpop.f32.mrf.mxu0 }
 0x612   :  { %v2798_v60 = vadd.f32 %v2797_v5, %v2742_v25  ;;  %v3001_v5 = vld [vmem:[#allocation2 + $0xc40] sm:$0xff]  ;;  %v2988_v25 = vld [vmem:[#allocation2 + $0xbd8] sm:$0xff] }
 0x613   :  { %v2844_v61 = vpop.f32.mrf.mxu1 }
 0x614   :  { %v2845_v11 = vadd.f32 %v2844_v61, %v2789_v44  ;;  %v2982_v44 = vld [vmem:[#allocation2 + $0xba8] sm:$0xff]  ;;  %v2985_v61 = vld [vmem:[#allocation2 + $0xbc0] sm:$0xff] }
 0x615   :  { %3103 = vmatmul.f32.gmra.mxu0 %v2982_v44  ;;  %3050 = vmatmul.f32.gmra.mxu3 %v2985_v61  ;;  %v3006_v61 = vld [vmem:[#allocation2 + $0xc68] sm:$0xff] }
 0x616   :  { %5156 = vmatmul.msk.f32.gmra.mxu2 %vm824_vm1, %v2845_v11  ;;  %v2983_v11 = vld [vmem:[#allocation2 + $0xbb0] sm:$0xff] }
 0x617   :  { %3159 = vmatmul.f32.gmra.mxu1 %v2983_v11 }
 0x619   :  { %v2800_v30 = vpop.f32.mrf.mxu0 }
 0x61a   :  { %v2801_v21 = vadd.f32 %v2800_v30, %v2745_v55  ;;  %v2992_v55 = vld [vmem:[#allocation2 + $0xbf8] sm:$0xff]  ;;  %v8764_v30 = vld [vmem:[#allocation51_spill] sm:$0xff] }
 0x61b   :  { %v2847_v7 = vpop.f32.mrf.mxu1  ;;  %v2180_v44 = vadd.f32 %v7659_v4, %v8764_v30  ;;  %v3011_v4 = vld [vmem:[#allocation2 + $0xc90] sm:$0xff] }
 0x61c   :  { %v2848_v8 = vadd.f32 %v2847_v7, %v2792_v41  ;;  %v2989_v41 = vld [vmem:[#allocation2 + $0xbe0] sm:$0xff]  ;;  %v2976_v7 = vld [vmem:[#allocation2 + $0xb78] sm:$0xff] }
 0x61d   :  { %3106 = vmatmul.f32.gmra.mxu0 %v2986_v17  ;;  %3053 = vmatmul.f32.gmra.mxu3 %v2989_v41  ;;  %v2570_v48 = vadd.f32 %v7873_v38, %v2180_v44  ;;  %v3010_v17 = vld [vmem:[#allocation2 + $0xc88] sm:$0xff] }
 0x61e   :  { %5157 = vmatmul.msk.f32.gmra.mxu2 %vm824_vm1, %v2848_v8  ;;  %v2990_v8 = vld [vmem:[#allocation2 + $0xbe8] sm:$0xff] }
 0x61f   :  { %3162 = vmatmul.f32.gmra.mxu1 %v2987_v26  ;;  %v3013_v26 = vld [vmem:[#allocation2 + $0xca0] sm:$0xff]  ;;  %v3014_v38 = vld [vmem:[#allocation2 + $0xca8] sm:$0xff] }
 0x623   :  { %v2850_v18 = vpop.f32.mrf.mxu1 }
 0x624   :  { %v2851_v36 = vadd.f32 %v2850_v18, %v2795_v35  ;;  %v2984_v35 = vld [vmem:[#allocation2 + $0xbb8] sm:$0xff]  ;;  %v2998_v18 = vld [vmem:[#allocation2 + $0xc28] sm:$0xff] }
 0x625   :  { %3109 = vmatmul.f32.gmra.mxu0 %v2990_v8  ;;  %3056 = vmatmul.f32.gmra.mxu3 %v2993_v45  ;;  %v3017_v45 = vld [vmem:[#allocation2 + $0xcc0] sm:$0xff] }
 0x626   :  { %5158 = vmatmul.msk.f32.gmra.mxu2 %vm824_vm1, %v2851_v36  ;;  %v2999_v36 = vld [vmem:[#allocation2 + $0xc30] sm:$0xff] }
 0x627   :  { %3165 = vmatmul.f32.gmra.mxu1 %v2991_v24  ;;  %v3015_v24 = vld [vmem:[#allocation2 + $0xcb0] sm:$0xff] }
 0x62b   :  { %v2853_v39 = vpop.f32.mrf.mxu1 }
 0x62c   :  { %v2854_v23 = vadd.f32 %v2853_v39, %v2798_v60  ;;  %v2569_v60 = vadd.f32 %v7859_v14, %v2179_v6  ;;  %v3003_v39 = vld [vmem:[#allocation2 + $0xc50] sm:$0xff] }
 0x62d   :  { %3112 = vmatmul.f32.gmra.mxu0 %v2994_v19  ;;  %3059 = vmatmul.f32.gmra.mxu3 %v2997_v56  ;;  %v3018_v19 = vld [vmem:[#allocation2 + $0xcc8] sm:$0xff] }
 0x62e   :  { %5159 = vmatmul.msk.f32.gmra.mxu2 %vm824_vm1, %v2854_v23 }
 0x62f   :  { %3168 = vmatmul.f32.gmra.mxu1 %v2995_v15  ;;  %v3021_v15 = vld [vmem:[#allocation2 + $0xce0] sm:$0xff] }
 0x633   :  { %v2856_v58 = vpop.f32.mrf.mxu1 }
 0x634   :  { %v2857_v52 = vadd.f32 %v2856_v58, %v2801_v21  ;;  %v3009_v21 = vld [vmem:[#allocation2 + $0xc80] sm:$0xff]  ;;  %v3007_v58 = vld [vmem:[#allocation2 + $0xc70] sm:$0xff] }
 0x635   :  { %3115 = vmatmul.f32.gmra.mxu0 %v2998_v18  ;;  %3062 = vmatmul.f32.gmra.mxu3 %v3001_v5  ;;  %v3008_v18 = vld [vmem:[#allocation2 + $0xc78] sm:$0xff]  ;;  %v3022_v5 = vld [vmem:[#allocation2 + $0xce8] sm:$0xff] }
 0x636   :  { %5160 = vmatmul.msk.f32.gmra.mxu2 %vm824_vm1, %v2857_v52  ;;  %v2996_v52 = vld [vmem:[#allocation2 + $0xc18] sm:$0xff] }
 0x637   :  { %3171 = vmatmul.f32.gmra.mxu1 %v2999_v36 }
 0x63d   :  { %3118 = vmatmul.f32.gmra.mxu0 %v3002_v12  ;;  %3065 = vmatmul.f32.gmra.mxu3 %v3005_v43  ;;  %v3250_v12 = vld [vmem:[#allocation7 + $0x1c] sm:$0xf] }
 0x63e   :  { %3209 = vmatmul.f32.vlgmr.msrb.gmra.mxu2 %v2976_v7  ;;  %v3000_v7 = vld [vmem:[#allocation2 + $0xc38] sm:$0xff]  ;;  %5161 = vmatpush.msk.msra.mxu3 %vm864_vm0, %v3250_v12 }
 0x63f   :  { %3174 = vmatmul.f32.gmra.mxu1 %v3003_v39  ;;  %v3020_v43 = vld [vmem:[#allocation2 + $0xcd8] sm:$0xff] }
 0x640   :  { %3583 = vmatpush.msrb.mxu3 %v7895_v31  ;;  %v3024_v31 = vld [vmem:[#allocation2 + $0xcf8] sm:$0xff] }
 0x642   :  { %3584 = vmatpush.msrb.mxu3 %v7901_v53 }
 0x644   :  { %3585 = vmatpush.msrb.mxu3 %v7907_v33 }
 0x645   :  { %3121 = vmatmul.f32.gmra.mxu0 %v3006_v61  ;;  %3068 = vmatmul.f32.gmra.mxu3 %v3009_v21 }
 0x646   :  { %3212 = vmatmul.f32.gmra.mxu2 %v2980_v57  ;;  %v3004_v57 = vld [vmem:[#allocation2 + $0xc58] sm:$0xff]  ;;  %3586 = vmatpush.msrb.mxu3 %v7915_v1 }
 0x647   :  { %3177 = vmatmul.f32.gmra.mxu1 %v3007_v58 }
 0x648   :  { %3587 = vmatpush.msrb.mxu3 %v7921_v32 }
 0x64a   :  { %3588 = vmatpush.msrb.mxu3 %v7927_v28 }
 0x64c   :  { %3589 = vmatpush.msrb.mxu3 %v7933_v27 }
 0x64d   :  { %3124 = vmatmul.f32.gmra.mxu0 %v3010_v17  ;;  %3071 = vmatmul.f32.gmra.mxu3 %v3013_v26 }
 0x64e   :  { %3215 = vmatmul.f32.gmra.mxu2 %v2984_v35  ;;  %v3019_v35 = vld [vmem:[#allocation2 + $0xcd0] sm:$0xff]  ;;  %3590 = vmatpush.msrb.mxu3 %v7941_v40 }
 0x64f   :  { %3180 = vmatmul.f32.gmra.mxu1 %v3011_v4 }
 0x650   :  { %3591 = vmatpush.msrb.mxu3 %v7947_v47 }
 0x652   :  { %3592 = vmatpush.msrb.mxu3 %v7953_v16 }
 0x654   :  { %3593 = vmatpush.msrb.mxu3 %v7959_v13 }
 0x655   :  { %3127 = vmatmul.f32.gmra.mxu0 %v3014_v38  ;;  %3074 = vmatmul.f32.gmra.mxu3 %v3017_v45 }
 0x656   :  { %3218 = vmatmul.f32.gmra.mxu2 %v2988_v25  ;;  %v3023_v25 = vld [vmem:[#allocation2 + $0xcf0] sm:$0xff]  ;;  %3594 = vmatpush.msrb.mxu3 %v7967_v49 }
 0x657   :  { %3183 = vmatmul.f32.gmra.mxu1 %v3015_v24 }
 0x658   :  { %3595 = vmatpush.msrb.mxu3 %v7973_v37 }
 0x659   :  { %v2920_v29 = vpop.f32.mrf.mxu2 }
 0x65a   :  { %v8044_v23 = vadd.f32 %v2920_v29, %v2569_v60  ;;  %v3016_v60 = vld [vmem:[#allocation2 + $0xcb8] sm:$0xff]  ;;  %3596 = vmatpush.msrb.mxu3 %v7979_v63 }
 0x65c   :  { %3597 = vmatpush.msrb.mxu3 %v7985_v2 }
 0x65d   :  { %3130 = vmatmul.f32.gmra.mxu0 %v3018_v19  ;;  %3077 = vmatmul.f32.gmra.mxu3 %v3021_v15 }
 0x65e   :  { %3221 = vmatmul.f32.gmra.mxu2 %v2992_v55  ;;  %3598 = vmatpush.msrb.mxu3 %v7993_v59 }
 0x65f   :  { %3186 = vmatmul.f32.gmra.mxu1 %v3019_v35 }
 0x661   :  { %v2923_v11 = vpop.f32.mrf.mxu2 }
 0x662   :  { %v8049_v14 = vadd.f32 %v2923_v11, %v2570_v48 }
 0x665   :  { %3133 = vmatmul.f32.gmra.mxu0 %v3022_v5 }
 0x666   :  { %3224 = vmatmul.f32.gmra.mxu2 %v2996_v52  ;;  %v3098_v53 = vpop.f32.mrf.mxu0 }
 0x667   :  { %3189 = vmatmul.f32.gmra.mxu1 %v3023_v25 }
 0x669   :  { %v8051_v41 = vpop.f32.mrf.mxu2 }
 0x66a   :  { %8765 = vst [vmem:[#allocation70_spill] sm:$0xff] %v8051_v41 }
 0x66e   :  { %3227 = vmatmul.f32.gmra.mxu2 %v3000_v7 }
 0x671   :  { %v8053_v8 = vpop.f32.mrf.mxu2 }
 0x676   :  { %3230 = vmatmul.f32.gmra.mxu2 %v3004_v57 }
 0x678   :  { %v3042_v33 = vpop.f32.mrf.mxu3 }
 0x679   :  { %v8055_v56 = vpop.f32.mrf.mxu2  ;;  %v3099_v44 = vadd.f32 %v3098_v53, %v3042_v33 }
 0x67a   :  { %v3154_v32 = vpop.f32.mrf.mxu1 }
 0x67b   :  { %v3155_v63 = vadd.f32 %v3154_v32, %v3099_v44 }
 0x67e   :  { %3233 = vmatmul.f32.gmra.mxu2 %v3008_v18 }
 0x680   :  { %v3045_v40 = vpop.f32.mrf.mxu3 }
 0x681   :  { %v8057_v36 = vpop.f32.mrf.mxu2 }
 0x682   :  { %v3157_v47 = vpop.f32.mrf.mxu1 }
 0x684   :  { %v3101_v28 = vpop.f32.mrf.mxu0 }
 0x685   :  { %v3102_v21 = vadd.f32 %v3101_v28, %v3045_v40 }
 0x686   :  { %3236 = vmatmul.f32.gmra.mxu2 %v3012_v10 }
 0x687   :  { %v3158_v58 = vadd.f32 %v3157_v47, %v3102_v21 }
 0x688   :  { %v3048_v55 = vpop.f32.mrf.mxu3 }
 0x689   :  { %v8059_v6 = vpop.f32.mrf.mxu2 }
 0x68e   :  { %3239 = vmatmul.f32.gmra.mxu2 %v3016_v60 }
 0x691   :  { %v8065_v29 = vpop.f32.mrf.mxu2 }
 0x692   :  { %v3104_v13 = vpop.f32.mrf.mxu0 }
 0x693   :  { %v3105_v4 = vadd.f32 %v3104_v13, %v3048_v55 }
 0x694   :  { %v3160_v30 = vpop.f32.mrf.mxu1 }
 0x695   :  { %v3161_v38 = vadd.f32 %v3160_v30, %v3105_v4 }
 0x696   :  { %3242 = vmatmul.f32.gmra.mxu2 %v3020_v43 }
 0x698   :  { %v3051_v61 = vpop.f32.mrf.mxu3 }
 0x699   :  { %v8071_v39 = vpop.f32.mrf.mxu2 }
 0x69a   :  { %v3107_v37 = vpop.f32.mrf.mxu0 }
 0x69b   :  { %v3108_v15 = vadd.f32 %v3107_v37, %v3051_v61 }
 0x69c   :  { %v3163_v11 = vpop.f32.mrf.mxu1 }
 0x69d   :  { %v3164_v18 = vadd.f32 %v3163_v11, %v3108_v15 }
 0x69e   :  { %3245 = vmatmul.f32.gmra.mxu2 %v3024_v31 }
 0x6a0   :  { %v3054_v52 = vpop.f32.mrf.mxu3 }
 0x6a1   :  { %v8077_v1 = vpop.f32.mrf.mxu2 }
 0x6a2   :  { %v3110_v59 = vpop.f32.mrf.mxu0 }
 0x6a3   :  { %v3111_v10 = vadd.f32 %v3110_v59, %v3054_v52 }
 0x6a4   :  { %v3166_v7 = vpop.f32.mrf.mxu1 }
 0x6a5   :  { %v3167_v43 = vadd.f32 %v3166_v7, %v3111_v10 }
 0x6a8   :  { %v3057_v57 = vpop.f32.mrf.mxu3 }
 0x6a9   :  { %v8083_v27 = vpop.f32.mrf.mxu2 }
 0x6aa   :  { %v3113_v45 = vpop.f32.mrf.mxu0 }
 0x6ab   :  { %v3114_v32 = vadd.f32 %v3113_v45, %v3057_v57 }
 0x6ac   :  { %v3169_v35 = vpop.f32.mrf.mxu1 }
 0x6ad   :  { %v3170_v47 = vadd.f32 %v3169_v35, %v3114_v32  ;;  %v3365_v35 = vld [vmem:[#allocation2 + $0xd10] sm:$0xff] }
 0x6ae   :  { %3543 = vmatmul.f32.vlgmr.msra.gmra.mxu2 %v3365_v35  ;;  %v3370_v35 = vld [vmem:[#allocation2 + $0xd38] sm:$0xff] }
 0x6b0   :  { %v3060_v60 = vpop.f32.mrf.mxu3 }
 0x6b1   :  { %v8086_v16 = vpop.f32.mrf.mxu2 }
 0x6b2   :  { %v3116_v12 = vpop.f32.mrf.mxu0 }
 0x6b3   :  { %v3117_v44 = vadd.f32 %v3116_v12, %v3060_v60  ;;  %v3363_v60 = vld [vmem:[#allocation2 + $0xd00] sm:$0xff] }
 0x6b4   :  { %v3172_v31 = vpop.f32.mrf.mxu1  ;;  %3431 = vmatmul.f32.vlgmr.msra.gmra.mxu0 %v3363_v60  ;;  %v3388_v60 = vld [vmem:[#allocation2 + $0xdc8] sm:$0xff] }
 0x6b5   :  { %v3173_v37 = vadd.f32 %v3172_v31, %v3117_v44  ;;  %v3369_v31 = vld [vmem:[#allocation2 + $0xd30] sm:$0xff] }
 0x6b6   :  { %3546 = vmatmul.f32.gmra.mxu2 %v3369_v31  ;;  %v3373_v44 = vld [vmem:[#allocation2 + $0xd50] sm:$0xff]  ;;  %v3378_v31 = vld [vmem:[#allocation2 + $0xd78] sm:$0xff] }
 0x6b8   :  { %v3063_v40 = vpop.f32.mrf.mxu3 }
 0x6b9   :  { %v8088_v49 = vpop.f32.mrf.mxu2 }
 0x6ba   :  { %v3119_v28 = vpop.f32.mrf.mxu0 }
 0x6bc   :  { %v3175_v55 = vpop.f32.mrf.mxu1 }
 0x6be   :  { %3549 = vmatmul.f32.gmra.mxu2 %v3373_v44 }
 0x6c1   :  { %v3210_v48 = vpop.f32.mrf.mxu2 }
 0x6c2   :  { %v3211_v2 = vadd.f32 %v3210_v48, %v3155_v63  ;;  %v3122_v61 = vpop.f32.mrf.mxu0  ;;  %v3066_v63 = vpop.f32.mrf.mxu3 }
 0x6c3   :  { %v3123_v4 = vadd.f32 %v3122_v61, %v3066_v63 }
 0x6c4   :  { %5162 = vmatmul.msk.f32.vlgmr.msra.gmra.mxu3 %vm824_vm1, %v3211_v2  ;;  %v3120_v2 = vadd.f32 %v3119_v28, %v3063_v40  ;;  %v3178_v21 = vpop.f32.mrf.mxu1 }
 0x6c9   :  { %v3213_v17 = vpop.f32.mrf.mxu2 }
 0x6ca   :  { %v3214_v26 = vadd.f32 %v3213_v17, %v3158_v58  ;;  %v3176_v58 = vadd.f32 %v3175_v55, %v3120_v2  ;;  %v3125_v59 = vpop.f32.mrf.mxu0  ;;  %v3069_v17 = vpop.f32.mrf.mxu3  ;;  %v3367_v55 = vld [vmem:[#allocation2 + $0xd20] sm:$0xff] }
 0x6cb   :  { %v3126_v57 = vadd.f32 %v3125_v59, %v3069_v17  ;;  %3434 = vmatmul.f32.gmra.mxu0 %v3367_v55  ;;  %v3372_v59 = vld [vmem:[#allocation2 + $0xd48] sm:$0xff] }
 0x6cc   :  { %5163 = vmatmul.msk.f32.gmra.mxu3 %vm824_vm1, %v3214_v26  ;;  %v3181_v7 = vpop.f32.mrf.mxu1  ;;  %v3396_v55 = vld [vmem:[#allocation2 + $0xe08] sm:$0xff] }
 0x6d1   :  { %v3216_v24 = vpop.f32.mrf.mxu2 }
 0x6d2   :  { %v3217_v19 = vadd.f32 %v3216_v24, %v3161_v38  ;;  %v3179_v38 = vadd.f32 %v3178_v21, %v3123_v4  ;;  %v3128_v15 = vpop.f32.mrf.mxu0 }
 0x6d4   :  { %5164 = vmatmul.msk.f32.gmra.mxu3 %vm824_vm1, %v3217_v19  ;;  %v3072_v19 = vpop.f32.mrf.mxu3 }
 0x6d5   :  { %v3129_v12 = vadd.f32 %v3128_v15, %v3072_v19  ;;  %v3380_v19 = vld [vmem:[#allocation2 + $0xd88] sm:$0xff]  ;;  %v3385_v15 = vld [vmem:[#allocation2 + $0xdb0] sm:$0xff] }
 0x6d9   :  { %v3219_v5 = vpop.f32.mrf.mxu2 }
 0x6da   :  { %v3220_v25 = vadd.f32 %v3219_v5, %v3164_v18  ;;  %v3182_v18 = vadd.f32 %v3181_v7, %v3126_v57  ;;  %v3184_v5 = vpop.f32.mrf.mxu1  ;;  %v3375_v7 = vld [vmem:[#allocation2 + $0xd60] sm:$0xff] }
 0x6db   :  { %v3185_v32 = vadd.f32 %v3184_v5, %v3129_v12  ;;  %v3379_v57 = vld [vmem:[#allocation2 + $0xd80] sm:$0xff]  ;;  %v3384_v5 = vld [vmem:[#allocation2 + $0xda8] sm:$0xff] }
 0x6dc   :  { %5165 = vmatmul.msk.f32.gmra.mxu3 %vm824_vm1, %v3220_v25  ;;  %v3387_v12 = vld [vmem:[#allocation2 + $0xdc0] sm:$0xff] }
 0x6e1   :  { %v3222_v53 = vpop.f32.mrf.mxu2 }
 0x6e2   :  { %v3223_v33 = vadd.f32 %v3222_v53, %v3167_v43  ;;  %v3364_v43 = vld [vmem:[#allocation2 + $0xd08] sm:$0xff]  ;;  %v3075_v53 = vpop.f32.mrf.mxu3  ;;  %v3187_v40 = vpop.f32.mrf.mxu1 }
 0x6e3   :  { %3487 = vmatmul.f32.vlgmr.msra.gmra.mxu1 %v3364_v43  ;;  %v3393_v43 = vld [vmem:[#allocation2 + $0xdf0] sm:$0xff] }
 0x6e4   :  { %5166 = vmatmul.msk.f32.gmra.mxu3 %vm824_vm1, %v3223_v33  ;;  %v3131_v33 = vpop.f32.mrf.mxu0 }
 0x6e9   :  { %v3225_v13 = vpop.f32.mrf.mxu2 }
 0x6ea   :  { %v3226_v30 = vadd.f32 %v3225_v13, %v3170_v47  ;;  %v3132_v13 = vadd.f32 %v3131_v33, %v3075_v53  ;;  %v3078_v61 = vpop.f32.mrf.mxu3  ;;  %v3190_v21 = vpop.f32.mrf.mxu1  ;;  %v3391_v53 = vld [vmem:[#allocation2 + $0xde0] sm:$0xff]  ;;  %v3392_v33 = vld [vmem:[#allocation2 + $0xde8] sm:$0xff] }
 0x6ec   :  { %5167 = vmatmul.msk.f32.gmra.mxu3 %vm824_vm1, %v3226_v30  ;;  %v3368_v30 = vld [vmem:[#allocation2 + $0xd28] sm:$0xff]  ;;  %v3134_v63 = vpop.f32.mrf.mxu0 }
 0x6ed   :  { %3490 = vmatmul.f32.gmra.mxu1 %v3368_v30  ;;  %v3135_v2 = vadd.f32 %v3134_v63, %v3078_v61  ;;  %v3386_v61 = vld [vmem:[#allocation2 + $0xdb8] sm:$0xff]  ;;  %v3399_v63 = vld [vmem:[#allocation2 + $0xe20] sm:$0xff] }
 0x6ef   :  { %v3191_v17 = vadd.f32 %v3190_v21, %v3135_v2  ;;  %v3390_v2 = vld [vmem:[#allocation2 + $0xdd8] sm:$0xff]  ;;  %v3403_v21 = vld [vmem:[#allocation2 + $0xe40] sm:$0xff] }
 0x6f1   :  { %v3228_v48 = vpop.f32.mrf.mxu2 }
 0x6f2   :  { %v3229_v11 = vadd.f32 %v3228_v48, %v3173_v37  ;;  %v3188_v37 = vadd.f32 %v3187_v40, %v3132_v13  ;;  %v3397_v40 = vld [vmem:[#allocation2 + $0xe10] sm:$0xff]  ;;  %v3395_v13 = vld [vmem:[#allocation2 + $0xe00] sm:$0xff] }
 0x6f4   :  { %5168 = vmatmul.msk.f32.gmra.mxu3 %vm824_vm1, %v3229_v11 }
 0x6f5   :  { %3493 = vmatmul.f32.gmra.mxu1 %v3372_v59  ;;  %v3409_v59 = vld [vmem:[#allocation2 + $0xe70] sm:$0xff] }
 0x6f9   :  { %v3231_v52 = vpop.f32.mrf.mxu2 }
 0x6fa   :  { %v3232_v26 = vadd.f32 %v3231_v52, %v3176_v58  ;;  %v3371_v58 = vld [vmem:[#allocation2 + $0xd40] sm:$0xff]  ;;  %v3377_v52 = vld [vmem:[#allocation2 + $0xd70] sm:$0xff] }
 0x6fb   :  { %3437 = vmatmul.f32.gmra.mxu0 %v3371_v58  ;;  %3552 = vmatmul.f32.gmra.mxu2 %v3377_v52  ;;  %v3404_v58 = vld [vmem:[#allocation2 + $0xe48] sm:$0xff]  ;;  %v3394_v52 = vld [vmem:[#allocation2 + $0xdf8] sm:$0xff] }
 0x6fc   :  { %5169 = vmatmul.msk.f32.gmra.mxu3 %vm824_vm1, %v3232_v26 }
 0x701   :  { %v3234_v45 = vpop.f32.mrf.mxu2 }
 0x702   :  { %v3235_v24 = vadd.f32 %v3234_v45, %v3179_v38  ;;  %v3376_v38 = vld [vmem:[#allocation2 + $0xd68] sm:$0xff]  ;;  %v3381_v45 = vld [vmem:[#allocation2 + $0xd90] sm:$0xff] }
 0x703   :  { %3440 = vmatmul.f32.gmra.mxu0 %v3375_v7  ;;  %3496 = vmatmul.f32.gmra.mxu1 %v3376_v38  ;;  %v3413_v7 = vld [vmem:[#allocation2 + $0xe90] sm:$0xff]  ;;  %v3398_v38 = vld [vmem:[#allocation2 + $0xe18] sm:$0xff] }
 0x704   :  { %5170 = vmatmul.msk.f32.gmra.mxu3 %vm824_vm1, %v3235_v24  ;;  %v3366_v24 = vld [vmem:[#allocation2 + $0xd18] sm:$0xff]  ;;  %3555 = vmatmul.f32.gmra.mxu2 %v3381_v45  ;;  %v3411_v45 = vld [vmem:[#allocation2 + $0xe80] sm:$0xff] }
 0x709   :  { %v3237_v25 = vpop.f32.mrf.mxu2 }
 0x70a   :  { %v3238_v10 = vadd.f32 %v3237_v25, %v3182_v18  ;;  %v3383_v18 = vld [vmem:[#allocation2 + $0xda0] sm:$0xff]  ;;  %v3389_v25 = vld [vmem:[#allocation2 + $0xdd0] sm:$0xff] }
 0x70b   :  { %3443 = vmatmul.f32.gmra.mxu0 %v3379_v57  ;;  %3499 = vmatmul.f32.gmra.mxu1 %v3380_v19  ;;  %v3402_v19 = vld [vmem:[#allocation2 + $0xe38] sm:$0xff] }
 0x70c   :  { %5171 = vmatmul.msk.f32.gmra.mxu3 %vm824_vm1, %v3238_v10  ;;  %3558 = vmatmul.f32.gmra.mxu2 %v3385_v15  ;;  %v3374_v10 = vld [vmem:[#allocation2 + $0xd58] sm:$0xff] }
 0x711   :  { %v3240_v28 = vpop.f32.mrf.mxu2 }
 0x712   :  { %v3241_v47 = vadd.f32 %v3240_v28, %v3185_v32 }
 0x713   :  { %3446 = vmatmul.f32.gmra.mxu0 %v3383_v18  ;;  %3502 = vmatmul.f32.gmra.mxu1 %v3384_v5  ;;  %v3406_v18 = vld [vmem:[#allocation2 + $0xe58] sm:$0xff] }
 0x714   :  { %5172 = vmatmul.msk.f32.gmra.mxu3 %vm824_vm1, %v3241_v47  ;;  %3561 = vmatmul.f32.gmra.mxu2 %v3389_v25  ;;  %v3382_v47 = vld [vmem:[#allocation2 + $0xd98] sm:$0xff] }
 0x715   :  { %v3410_v25 = vld [vmem:[#allocation2 + $0xe78] sm:$0xff] }
 0x719   :  { %v3243_v48 = vpop.f32.mrf.mxu2 }
 0x71a   :  { %v3244_v11 = vadd.f32 %v3243_v48, %v3188_v37  ;;  %v3401_v37 = vld [vmem:[#allocation2 + $0xe30] sm:$0xff]  ;;  %v3400_v48 = vld [vmem:[#allocation2 + $0xe28] sm:$0xff] }
 0x71b   :  { %3449 = vmatmul.f32.gmra.mxu0 %v3387_v12  ;;  %3505 = vmatmul.f32.gmra.mxu1 %v3388_v60  ;;  %v3414_v12 = vld [vmem:[#allocation2 + $0xe98] sm:$0xff] }
 0x71c   :  { %5173 = vmatmul.msk.f32.gmra.mxu3 %vm824_vm1, %v3244_v11  ;;  %3564 = vmatmul.f32.gmra.mxu2 %v3393_v43  ;;  %v3405_v11 = vld [vmem:[#allocation2 + $0xe50] sm:$0xff] }
 0x721   :  { %v3246_v26 = vpop.f32.mrf.mxu2 }
 0x722   :  { %v3247_v4 = vadd.f32 %v3246_v26, %v3191_v17  ;;  %v3407_v17 = vld [vmem:[#allocation2 + $0xe60] sm:$0xff]  ;;  %v3408_v26 = vld [vmem:[#allocation2 + $0xe68] sm:$0xff] }
 0x723   :  { %3452 = vmatmul.f32.gmra.mxu0 %v3391_v53  ;;  %3508 = vmatmul.f32.gmra.mxu1 %v3392_v33 }
 0x724   :  { %5174 = vmatmul.msk.f32.gmra.mxu3 %vm824_vm1, %v3247_v4  ;;  %3567 = vmatmul.f32.gmra.mxu2 %v3397_v40 }
 0x72b   :  { %3455 = vmatmul.f32.gmra.mxu0 %v3395_v13  ;;  %3511 = vmatmul.f32.gmra.mxu1 %v3396_v55 }
 0x72c   :  { %3599 = vmatmul.f32.vlgmr.msrb.gmra.mxu3 %v3366_v24  ;;  %3570 = vmatmul.f32.gmra.mxu2 %v3401_v37  ;;  %v3412_v24 = vld [vmem:[#allocation2 + $0xe88] sm:$0xff] }
 0x731   :  { %v3432_v60 = vpop.f32.mrf.mxu0  ;;  %v3544_v53 = vpop.f32.mrf.mxu2 }
 0x733   :  { %3458 = vmatmul.f32.gmra.mxu0 %v3399_v63  ;;  %3514 = vmatmul.f32.gmra.mxu1 %v3400_v48 }
 0x734   :  { %3602 = vmatmul.f32.gmra.mxu3 %v3370_v35  ;;  %3573 = vmatmul.f32.gmra.mxu2 %v3405_v11  ;;  %v3640_v35 = vld [vmem:[#allocation7 + $0x20] sm:$0xf] }
 0x735   :  { %5175 = vmatpush.msk.msrb.mxu0 %vm864_vm0, %v3640_v35 }
 0x73b   :  { %3461 = vmatmul.f32.gmra.mxu0 %v3403_v21  ;;  %3517 = vmatmul.f32.gmra.mxu1 %v3404_v58 }
 0x73c   :  { %3605 = vmatmul.f32.gmra.mxu3 %v3374_v10  ;;  %3576 = vmatmul.f32.gmra.mxu2 %v3409_v59 }
 0x743   :  { %3464 = vmatmul.f32.gmra.mxu0 %v3407_v17  ;;  %3520 = vmatmul.f32.gmra.mxu1 %v3408_v26 }
 0x744   :  { %3608 = vmatmul.f32.gmra.mxu3 %v3378_v31  ;;  %3579 = vmatmul.f32.gmra.mxu2 %v3413_v7 }
 0x747   :  { %v3310_v32 = vpop.f32.mrf.mxu3 }
 0x748   :  { %v8104_v28 = vadd.f32 %v3310_v32, %v8044_v23  ;;  %v3435_v33 = vpop.f32.mrf.mxu0 }
 0x74b   :  { %3467 = vmatmul.f32.gmra.mxu0 %v3411_v45  ;;  %3523 = vmatmul.f32.gmra.mxu1 %v3412_v24 }
 0x74c   :  { %3611 = vmatmul.f32.gmra.mxu3 %v3382_v47  ;;  %v3547_v47 = vpop.f32.mrf.mxu2 }
 0x74f   :  { %v3313_v30 = vpop.f32.mrf.mxu3 }
 0x750   :  { %v8107_v44 = vadd.f32 %v3313_v30, %v8049_v14 }
 0x754   :  { %3614 = vmatmul.f32.gmra.mxu3 %v3386_v61  ;;  %v3550_v37 = vpop.f32.mrf.mxu2 }
 0x757   :  { %v8109_v23 = vpop.f32.mrf.mxu3 }
 0x758   :  { %8766 = vst [vmem:[#allocation74_spill] sm:$0xff] %v8109_v23  ;;  %v8790_v23 = vld [vmem:[#allocation44_spill] sm:$0xff] }
 0x75c   :  { %3617 = vmatmul.f32.gmra.mxu3 %v3390_v2 }
 0x75f   :  { %v8111_v14 = vpop.f32.mrf.mxu3 }
 0x760   :  { %8767 = vst [vmem:[#allocation75_spill] sm:$0xff] %v8111_v14  ;;  %v3488_v43 = vpop.f32.mrf.mxu1  ;;  %v8799_v14 = vld [vmem:[#allocation42_spill] sm:$0xff] }
 0x761   :  { %v3489_v63 = vadd.f32 %v3488_v43, %v3432_v60 }
 0x763   :  { %v3545_v2 = vadd.f32 %v3544_v53, %v3489_v63 }
 0x764   :  { %3620 = vmatmul.f32.gmra.mxu3 %v3394_v52 }
 0x767   :  { %v8113_v4 = vpop.f32.mrf.mxu3 }
 0x76a   :  { %v3491_v40 = vpop.f32.mrf.mxu1 }
 0x76b   :  { %v3492_v52 = vadd.f32 %v3491_v40, %v3435_v33 }
 0x76c   :  { %3623 = vmatmul.f32.gmra.mxu3 %v3398_v38 }
 0x76d   :  { %v3548_v17 = vadd.f32 %v3547_v47, %v3492_v52 }
 0x76f   :  { %v8115_v57 = vpop.f32.mrf.mxu3 }
 0x772   :  { %v3494_v30 = vpop.f32.mrf.mxu1 }
 0x774   :  { %3626 = vmatmul.f32.gmra.mxu3 %v3402_v19 }
 0x777   :  { %v8117_v15 = vpop.f32.mrf.mxu3 }
 0x778   :  { %v3438_v55 = vpop.f32.mrf.mxu0 }
 0x779   :  { %v3495_v24 = vadd.f32 %v3494_v30, %v3438_v55 }
 0x77b   :  { %v3551_v35 = vadd.f32 %v3550_v37, %v3495_v24 }
 0x77c   :  { %3629 = vmatmul.f32.gmra.mxu3 %v3406_v18 }
 0x77e   :  { %v3553_v58 = vpop.f32.mrf.mxu2 }
 0x77f   :  { %v8120_v5 = vpop.f32.mrf.mxu3 }
 0x780   :  { %v3441_v48 = vpop.f32.mrf.mxu0  ;;  %v3497_v11 = vpop.f32.mrf.mxu1 }
 0x781   :  { %v3498_v43 = vadd.f32 %v3497_v11, %v3441_v48 }
 0x783   :  { %v3554_v33 = vadd.f32 %v3553_v58, %v3498_v43 }
 0x784   :  { %3632 = vmatmul.f32.gmra.mxu3 %v3410_v25 }
 0x787   :  { %v8122_v10 = vpop.f32.mrf.mxu3  ;;  %v3556_v19 = vpop.f32.mrf.mxu2 }
 0x788   :  { %v3444_v26 = vpop.f32.mrf.mxu0  ;;  %v3500_v7 = vpop.f32.mrf.mxu1 }
 0x789   :  { %v3501_v63 = vadd.f32 %v3500_v7, %v3444_v26 }
 0x78b   :  { %v3557_v55 = vadd.f32 %v3556_v19, %v3501_v63 }
 0x78c   :  { %3635 = vmatmul.f32.gmra.mxu3 %v3414_v12 }
 0x78f   :  { %v8124_v31 = vpop.f32.mrf.mxu3  ;;  %v3559_v53 = vpop.f32.mrf.mxu2 }
 0x790   :  { %v3447_v18 = vpop.f32.mrf.mxu0  ;;  %v3503_v12 = vpop.f32.mrf.mxu1 }
 0x791   :  { %v3504_v52 = vadd.f32 %v3503_v12, %v3447_v18 }
 0x793   :  { %v3560_v11 = vadd.f32 %v3559_v53, %v3504_v52 }
 0x797   :  { %v8126_v32 = vpop.f32.mrf.mxu3  ;;  %v3562_v30 = vpop.f32.mrf.mxu2 }
 0x79f   :  { %v8128_v13 = vpop.f32.mrf.mxu3 }
 0x7a7   :  { %v8130_v61 = vpop.f32.mrf.mxu3 }
 0x7af   :  { %v3600_v21 = vpop.f32.mrf.mxu3 }
 0x7b0   :  { %v3601_v59 = vadd.f32 %v3600_v21, %v3545_v2  ;;  %v3450_v2 = vpop.f32.mrf.mxu0  ;;  %v3506_v21 = vpop.f32.mrf.mxu1 }
 0x7b1   :  { %v3507_v24 = vadd.f32 %v3506_v21, %v3450_v2 }
 0x7b2   :  { %5176 = vmatmul.msk.f32.vlgmr.msrb.gmra.mxu0 %vm824_vm1, %v3601_v59 }
 0x7b3   :  { %v3563_v26 = vadd.f32 %v3562_v30, %v3507_v24 }
 0x7b7   :  { %v3603_v38 = vpop.f32.mrf.mxu3 }
 0x7b8   :  { %v3604_v45 = vadd.f32 %v3603_v38, %v3548_v17  ;;  %v3453_v17 = vpop.f32.mrf.mxu0  ;;  %v3509_v48 = vpop.f32.mrf.mxu1 }
 0x7ba   :  { %5177 = vmatmul.msk.f32.gmra.mxu0 %vm824_vm1, %v3604_v45  ;;  %v3565_v45 = vpop.f32.mrf.mxu2 }
 0x7bf   :  { %v3606_v25 = vpop.f32.mrf.mxu3 }
 0x7c0   :  { %v3607_v60 = vadd.f32 %v3606_v25, %v3551_v35  ;;  %v3456_v7 = vpop.f32.mrf.mxu0  ;;  %v3512_v35 = vpop.f32.mrf.mxu1 }
 0x7c2   :  { %5178 = vmatmul.msk.f32.gmra.mxu0 %vm824_vm1, %v3607_v60  ;;  %v3510_v60 = vadd.f32 %v3509_v48, %v3453_v17  ;;  %v3568_v43 = vpop.f32.mrf.mxu2 }
 0x7c4   :  { %v3566_v18 = vadd.f32 %v3565_v45, %v3510_v60 }
 0x7c7   :  { %v3609_v40 = vpop.f32.mrf.mxu3 }
 0x7c8   :  { %v3610_v47 = vadd.f32 %v3609_v40, %v3554_v33  ;;  %v3459_v12 = vpop.f32.mrf.mxu0  ;;  %v3515_v40 = vpop.f32.mrf.mxu1 }
 0x7c9   :  { %v3516_v30 = vadd.f32 %v3515_v40, %v3459_v12 }
 0x7ca   :  { %5179 = vmatmul.msk.f32.gmra.mxu0 %vm824_vm1, %v3610_v47  ;;  %v3513_v47 = vadd.f32 %v3512_v35, %v3456_v7  ;;  %v3571_v63 = vpop.f32.mrf.mxu2 }
 0x7cb   :  { %v3572_v52 = vadd.f32 %v3571_v63, %v3516_v30 }
 0x7cc   :  { %v3569_v2 = vadd.f32 %v3568_v43, %v3513_v47 }
 0x7cf   :  { %v3612_v59 = vpop.f32.mrf.mxu3 }
 0x7d0   :  { %v3613_v37 = vadd.f32 %v3612_v59, %v3557_v55  ;;  %v3462_v59 = vpop.f32.mrf.mxu0 }
 0x7d2   :  { %5180 = vmatmul.msk.f32.gmra.mxu0 %vm824_vm1, %v3613_v37  ;;  %v3518_v37 = vpop.f32.mrf.mxu1  ;;  %v3574_v17 = vpop.f32.mrf.mxu2 }
 0x7d7   :  { %v3615_v38 = vpop.f32.mrf.mxu3 }
 0x7d8   :  { %v3616_v58 = vadd.f32 %v3615_v38, %v3560_v11  ;;  %v3519_v38 = vadd.f32 %v3518_v37, %v3462_v59  ;;  %v3465_v45 = vpop.f32.mrf.mxu0 }
 0x7da   :  { %5181 = vmatmul.msk.f32.gmra.mxu0 %vm824_vm1, %v3616_v58  ;;  %v3521_v58 = vpop.f32.mrf.mxu1  ;;  %v3575_v24 = vadd.f32 %v3574_v17, %v3519_v38  ;;  %v3577_v7 = vpop.f32.mrf.mxu2 }
 0x7df   :  { %v3618_v25 = vpop.f32.mrf.mxu3 }
 0x7e0   :  { %v3619_v19 = vadd.f32 %v3618_v25, %v3563_v26  ;;  %v3522_v25 = vadd.f32 %v3521_v58, %v3465_v45  ;;  %v3468_v60 = vpop.f32.mrf.mxu0  ;;  %v8773_v58 = vld [vmem:[#allocation71_spill] sm:$0xff] }
 0x7e2   :  { %5182 = vmatmul.msk.f32.gmra.mxu0 %vm824_vm1, %v3619_v19  ;;  %v3578_v19 = vadd.f32 %v3577_v7, %v3522_v25  ;;  %v3524_v43 = vpop.f32.mrf.mxu1  ;;  %v3580_v40 = vpop.f32.mrf.mxu2  ;;  %v8776_v7 = vld [vmem:[#allocation49_spill] sm:$0xff]  ;;  %v8777_v25 = vld [vmem:[#allocation72_spill] sm:$0xff] }
 0x7e7   :  { %v3621_v33 = vpop.f32.mrf.mxu3 }
 0x7e8   :  { %v3622_v53 = vadd.f32 %v3621_v33, %v3566_v18  ;;  %v3525_v33 = vadd.f32 %v3524_v43, %v3468_v60  ;;  %v8779_v43 = vld [vmem:[#allocation27_spill] sm:$0xff] }
 0x7ea   :  { %5183 = vmatmul.msk.f32.gmra.mxu0 %vm824_vm1, %v3622_v53  ;;  %v3581_v53 = vadd.f32 %v3580_v40, %v3525_v33  ;;  %v8781_v33 = vld [vmem:[#allocation46_spill] sm:$0xff] }
 0x7ef   :  { %v3624_v21 = vpop.f32.mrf.mxu3 }
 0x7f0   :  { %v3625_v55 = vadd.f32 %v3624_v21, %v3569_v2 }
 0x7f2   :  { %5184 = vmatmul.msk.f32.gmra.mxu0 %vm824_vm1, %v3625_v55 }
 0x7f7   :  { %v3627_v48 = vpop.f32.mrf.mxu3 }
 0x7f8   :  { %v3628_v11 = vadd.f32 %v3627_v48, %v3572_v52 }
 0x7fa   :  { %5185 = vmatmul.msk.f32.gmra.mxu0 %vm824_vm1, %v3628_v11 }
 0x7ff   :  { %v3630_v26 = vpop.f32.mrf.mxu3 }
 0x800   :  { %v3631_v35 = vadd.f32 %v3630_v26, %v3575_v24  ;;  %v8775_v26 = vld [vmem:[#allocation69_spill] sm:$0xff] }
 0x802   :  { %5186 = vmatmul.msk.f32.gmra.mxu0 %vm824_vm1, %v3631_v35  ;;  %v1014_v35 = vadd.f32 %v8776_v7, %v8775_v26  ;;  %v8789_v7 = vld [vmem:[#allocation58_spill] sm:$0xff] }
 0x807   :  { %v3633_v18 = vpop.f32.mrf.mxu3 }
 0x808   :  { %v3634_v12 = vadd.f32 %v3633_v18, %v3578_v19  ;;  %v8778_v19 = vld [vmem:[#allocation63_spill] sm:$0xff] }
 0x809   :  { %v1020_v60 = vadd.f32 %v8778_v19, %v8777_v25  ;;  %v1008_v25 = vadd.f32 %v8790_v23, %v8789_v7  ;;  %v8791_v19 = vld [vmem:[#allocation25_spill] sm:$0xff]  ;;  %v8801_v7 = vld [vmem:[#allocation78_spill] sm:$0xff] }
 0x80a   :  { %5187 = vmatmul.msk.f32.gmra.mxu0 %vm824_vm1, %v3634_v12  ;;  %v8780_v12 = vld [vmem:[#allocation64_spill] sm:$0xff] }
 0x80b   :  { %v1011_v40 = vadd.f32 %v8781_v33, %v8780_v12  ;;  %v8793_v12 = vld [vmem:[#allocation86_spill] sm:$0xff] }
 0x80f   :  { %v3636_v47 = vpop.f32.mrf.mxu3 }
 0x810   :  { %v3637_v63 = vadd.f32 %v3636_v47, %v3581_v53  ;;  %v8782_v53 = vld [vmem:[#allocation37_spill] sm:$0xff] }
 0x811   :  { %v1409_v47 = vadd.f32 %v8782_v53, %v1014_v35  ;;  %v8795_v53 = vld [vmem:[#allocation36_spill] sm:$0xff] }
 0x812   :  { %5188 = vmatmul.msk.f32.gmra.mxu0 %vm824_vm1, %v3637_v63  ;;  %v8783_v63 = vld [vmem:[#allocation48_spill] sm:$0xff] }
 0x82f   :  { %v3700_v2 = vpop.f32.mrf.mxu0 }
 0x830   :  { %v8146_v21 = vadd.f32 %v3700_v2, %v8104_v28  ;;  %v1411_v2 = vadd.f32 %v8783_v63, %v1020_v60  ;;  %v8794_v60 = vld [vmem:[#allocation43_spill] sm:$0xff]  ;;  %v8796_v63 = vld [vmem:[#allocation45_spill] sm:$0xff] }
 0x832   :  { %8768 = vst [vmem:[#allocation76_spill] sm:$0xff] %v8146_v21  ;;  %v1801_v33 = vadd.f32 %v8793_v12, %v1411_v2  ;;  %v8804_v12 = vld [vmem:[#allocation30_spill] sm:$0xff] }
 0x834   :  { %v2191_v2 = vadd.f32 %v7700_v50, %v1801_v33  ;;  %v8807_v50 = vld [vmem:[#allocation31_spill] sm:$0xff] }
 0x837   :  { %v3703_v55 = vpop.f32.mrf.mxu0 }
 0x838   :  { %v8149_v30 = vadd.f32 %v3703_v55, %v8107_v44  ;;  %v8774_v44 = vld [vmem:[#allocation56_spill] sm:$0xff]  ;;  %v8784_v55 = vld [vmem:[#allocation85_spill] sm:$0xff] }
 0x839   :  { %v1017_v24 = vadd.f32 %v8774_v44, %v8773_v58  ;;  %v8787_v44 = vld [vmem:[#allocation41_spill] sm:$0xff] }
 0x83a   :  { %8769 = vst [vmem:[#allocation77_spill] sm:$0xff] %v8149_v30  ;;  %v8785_v30 = vld [vmem:[#allocation39_spill] sm:$0xff] }
 0x83b   :  { %v1410_v18 = vadd.f32 %v8779_v43, %v1017_v24  ;;  %v1408_v24 = vadd.f32 %v8791_v19, %v1011_v40  ;;  %v8792_v43 = vld [vmem:[#allocation83_spill] sm:$0xff]  ;;  %v8803_v19 = vld [vmem:[#allocation40_spill] sm:$0xff] }
 0x83d   :  { %v1800_v21 = vadd.f32 %v8784_v55, %v1410_v18  ;;  %v996_v18 = vadd.f32 %v8795_v53, %v8794_v60  ;;  %v8797_v55 = vld [vmem:[#allocation38_spill] sm:$0xff]  ;;  %v1798_v40 = vadd.f32 %v8801_v7, %v1408_v24  ;;  %v2581_v24 = vadd.f32 %v7998_v42, %v2191_v2  ;;  %v8810_v7 = vld [vmem:[#allocation33_spill] sm:$0xff] }
 0x83e   :  { %v8805_v53 = vld [vmem:[#allocation34_spill] sm:$0xff] }
 0x83f   :  { %v8151_v59 = vpop.f32.mrf.mxu0  ;;  %v2190_v35 = vadd.f32 %v7698_v51, %v1800_v21  ;;  %v8802_v21 = vld [vmem:[#allocation47_spill] sm:$0xff] }
 0x840   :  { %8770 = vst [vmem:[#allocation79_spill] sm:$0xff] %v8151_v59  ;;  %v8786_v59 = vld [vmem:[#allocation28_spill] sm:$0xff] }
 0x841   :  { %v990_v58 = vadd.f32 %v8786_v59, %v8785_v30  ;;  %v999_v30 = vadd.f32 %v8797_v55, %v8796_v63  ;;  %v8798_v59 = vld [vmem:[#allocation52_spill] sm:$0xff]  ;;  %v2580_v51 = vadd.f32 %v7996_v0, %v2190_v35  ;;  %v8806_v55 = vld [vmem:[#allocation73_spill] sm:$0xff]  ;;  %v8808_v0 = vld [vmem:[#allocation26_spill] sm:$0xff] }
 0x842   :  { %v8809_v35 = vld [vmem:[#allocation65_spill] sm:$0xff] }
 0x843   :  { %v1401_v60 = vadd.f32 %v8804_v12, %v990_v58  ;;  %v1404_v42 = vadd.f32 %v8810_v7, %v999_v30  ;;  %v8814_v30 = vld [vmem:[#allocation68_spill] sm:$0xff] }
 0x847   :  { %v8153_v37 = vpop.f32.mrf.mxu0 }
 0x848   :  { %8771 = vst [vmem:[#allocation80_spill] sm:$0xff] %v8153_v37  ;;  %v8788_v37 = vld [vmem:[#allocation29_spill] sm:$0xff] }
 0x849   :  { %v993_v26 = vadd.f32 %v8788_v37, %v8787_v44  ;;  %v1005_v37 = vadd.f32 %v8799_v14, %v8798_v59  ;;  %v8800_v44 = vld [vmem:[#allocation35_spill] sm:$0xff] }
 0x84a   :  { %v1407_v41 = vadd.f32 %v8800_v44, %v1008_v25  ;;  %v2188_v25 = vadd.f32 %v7689_v22, %v1798_v40  ;;  %v2971_v22 = vadd.f32 %v8088_v49, %v2581_v24  ;;  %v8811_v40 = vld [vmem:[#allocation59_spill] sm:$0xff]  ;;  %v8813_v49 = vld [vmem:[#allocation57_spill] sm:$0xff]  ;;  %v8818_v24 = vld [vmem:[#allocation54_spill] sm:$0xff] }
 0x84b   :  { %v1406_v63 = vadd.f32 %v8805_v53, %v1005_v37  ;;  %v8230_v53 = vld [vmem:[#allocation9] ss:$0 sm:$0xff] }
 0x84c   :  { %v1797_v14 = vadd.f32 %v8806_v55, %v1407_v41  ;;  %v2578_v37 = vadd.f32 %v7962_v9, %v2188_v25  ;;  %v3361_v9 = vadd.f32 %v8130_v61, %v2971_v22 }
 0x84d   :  { %v1796_v44 = vadd.f32 %v8809_v35, %v1406_v63  ;;  %v8815_v63 = vld [vmem:[#allocation55_spill] sm:$0xff] }
 0x84e   :  { %v2187_v58 = vadd.f32 %v7683_v3, %v1797_v14  ;;  %v2968_v2 = vadd.f32 %v8077_v1, %v2578_v37 }
 0x84f   :  { %v8155_v52 = vpop.f32.mrf.mxu0 }
 0x850   :  { %8772 = vst [vmem:[#allocation81_spill] sm:$0xff] %v8155_v52  ;;  %v1799_v52 = vadd.f32 %v8792_v43, %v1409_v47  ;;  %v1002_v43 = vadd.f32 %v8803_v19, %v8802_v21  ;;  %v1794_v19 = vadd.f32 %v8813_v49, %v1404_v42 }
 0x852   :  { %v2189_v47 = vadd.f32 %v7695_v54, %v1799_v52  ;;  %v2970_v54 = vadd.f32 %v8086_v16, %v2580_v51  ;;  %v1402_v52 = vadd.f32 %v8807_v50, %v993_v26  ;;  %v1405_v33 = vadd.f32 %v8808_v0, %v1002_v43  ;;  %v8820_v0 = vld [vmem:[#allocation66_spill] sm:$0xff] }
 0x853   :  { %v2186_v26 = vadd.f32 %v7677_v34, %v1796_v44 }
 0x854   :  { %v2579_v59 = vadd.f32 %v7988_v62, %v2189_v47  ;;  %v3360_v62 = vadd.f32 %v8128_v13, %v2970_v54  ;;  %v1795_v16 = vadd.f32 %v8811_v40, %v1405_v33  ;;  %v2577_v47 = vadd.f32 %v7936_v46, %v2187_v58 }
 0x855   :  { %v2576_v43 = vadd.f32 %v8814_v30, %v2186_v26  ;;  %v3358_v46 = vadd.f32 %v8124_v31, %v2968_v2  ;;  %v1792_v54 = vadd.f32 %v8818_v24, %v1402_v52  ;;  %v8834_v24 = vld [vmem:[#allocation76_spill] sm:$0xff] }
 0x856   :  { %v2969_v41 = vadd.f32 %v8083_v27, %v2579_v59  ;;  %v8812_v27 = vld [vmem:[#allocation32_spill] sm:$0xff]  ;;  %v2185_v13 = vadd.f32 %v7671_v20, %v1795_v16  ;;  %v2967_v34 = vadd.f32 %v8071_v39, %v2577_v47  ;;  %v8825_v16 = vld [vmem:[#allocation61_spill] sm:$0xff] }
 0x857   :  { %v8157_v17 = vpop.f32.mrf.mxu0  ;;  %v1403_v21 = vadd.f32 %v8812_v27, %v996_v18  ;;  %v8817_v18 = vld [vmem:[#allocation67_spill] sm:$0xff]  ;;  %v2966_v25 = vadd.f32 %v8065_v29, %v2576_v43  ;;  %v8829_v30 = vld [vmem:[#allocation81_spill] sm:$0xff] }
 0x858   :  { %v3359_v3 = vadd.f32 %v8126_v32, %v2969_v41  ;;  %v2575_v14 = vadd.f32 %v8817_v18, %v2185_v13  ;;  %v3357_v20 = vadd.f32 %v8122_v10, %v2967_v34  ;;  %v8822_v41 = vld [vmem:[#allocation88_spill] sm:$0xff] }
 0x859   :  { %v1793_v61 = vadd.f32 %v8815_v63, %v1403_v21  ;;  %v3356_v44 = vadd.f32 %v8120_v5, %v2966_v25  ;;  %v2182_v22 = vadd.f32 %v8822_v41, %v1792_v54  ;;  %v8831_v34 = vld [vmem:[#allocation80_spill] sm:$0xff]  ;;  %v8832_v63 = vld [vmem:[#allocation79_spill] sm:$0xff]  ;;  %v3756_v54 = vadd.f32 %v8230_v53, %v8834_v24 }
 0x85a   :  { %v2965_v35 = vadd.f32 %v8059_v6, %v2575_v14  ;;  %v3937_v41 = vld [vmem:[#allocation4 + $0x30] sm:$0xff] }
 0x85b   :  { %v2572_v26 = vadd.f32 %v8825_v16, %v2182_v22  ;;  %v3938_v22 = vld [vmem:[#allocation4 + $0x38] sm:$0xff]  ;;  %v3976_v16 = vld [vmem:[#allocation10 + $0x20] sm:$0xff] }
 0x85c   :  { %v3355_v42 = vadd.f32 %v8117_v15, %v2965_v35  ;;  %v3824_v35 = vld [vmem:[#allocation4 + $0x18] sm:$0xff] }
 0x85f   :  { %v8159_v48 = vpop.f32.mrf.mxu0 }
 0x860   :  { %v3745_v15 = vadd.f32 %v8159_v48, %v3355_v42  ;;  %v8827_v48 = vld [vmem:[#allocation70_spill] sm:$0xff]  ;;  %v4216_v42 = vld [vmem:[#allocation10 + $0x50] sm:$0xff] }
 0x867   :  { %v8161_v11 = vpop.f32.mrf.mxu0 }
 0x868   :  { %v3746_v6 = vadd.f32 %v8161_v11, %v3356_v44  ;;  %v3821_v44 = vld [vmem:[#allocation10] sm:$0xff] }
 0x86f   :  { %v8163_v38 = vpop.f32.mrf.mxu0 }
 0x870   :  { %v3747_v29 = vadd.f32 %v8163_v38, %v3357_v20  ;;  %v8824_v38 = vld [vmem:[#allocation87_spill] sm:$0xff] }
 0x872   :  { %v3764_v11 = vadd.f32 %v8230_v53, %v3747_v29  ;;  %v3783_v29 = vld [vmem:[#allocation4 + $0x8] sm:$0xff] }
 0x877   :  { %v8165_v28 = vpop.f32.mrf.mxu0 }
 0x878   :  { %v3748_v59 = vadd.f32 %v8165_v28, %v3358_v46  ;;  %v8821_v28 = vld [vmem:[#allocation53_spill] sm:$0xff] }
 0x879   :  { %v1791_v37 = vadd.f32 %v8821_v28, %v1401_v60  ;;  %v3784_v28 = vld [vmem:[#allocation4 + $0x10] sm:$0xff] }
 0x87a   :  { %v3765_v5 = vadd.f32 %v8230_v53, %v3748_v59  ;;  %v8833_v59 = vld [vmem:[#allocation77_spill] sm:$0xff] }
 0x87b   :  { %v2181_v60 = vadd.f32 %v8824_v38, %v1791_v37  ;;  %v3826_v37 = vld [vmem:[#allocation4 + $0x28] sm:$0xff] }
 0x87c   :  { %v8275_v21 = vmax.f32 %v3765_v5, 0.0  ;;  %v3863_v5 = vld [vmem:[#allocation10 + $0x10] sm:$0xff]  ;;  %v3977_v38 = vld [vmem:[#allocation10 + $0x28] sm:$0xff] }
 0x87f   :  { %v3730_v45 = vpop.f32.mrf.mxu0 }
 0x880   :  { %v3749_v1 = vadd.f32 %v3730_v45, %v3359_v3  ;;  %v8819_v45 = vld [vmem:[#allocation89_spill] sm:$0xff]  ;;  %v8826_v3 = vld [vmem:[#allocation60_spill] sm:$0xff] }
 0x881   :  { %v2183_v50 = vadd.f32 %v8819_v45, %v1793_v61 }
 0x882   :  { %v3766_v10 = vadd.f32 %v8230_v53, %v3749_v1 }
 0x884   :  { %v8266_v2 = vmax.f32 %v3766_v10, 0.0  ;;  %v3825_v10 = vld [vmem:[#allocation4 + $0x20] sm:$0xff] }
 0x887   :  { %v3733_v23 = vpop.f32.mrf.mxu0 }
 0x888   :  { %v3750_v51 = vadd.f32 %v3733_v23, %v3360_v62  ;;  %v8816_v23 = vld [vmem:[#allocation90_spill] sm:$0xff] }
 0x889   :  { %v2184_v55 = vadd.f32 %v8816_v23, %v1794_v19  ;;  %v8823_v62 = vld [vmem:[#allocation62_spill] sm:$0xff]  ;;  %v8828_v19 = vld [vmem:[#allocation75_spill] sm:$0xff] }
 0x88a   :  { %v3767_v39 = vadd.f32 %v8230_v53, %v3750_v51  ;;  %v2573_v52 = vadd.f32 %v8823_v62, %v2183_v50  ;;  %v2962_v51 = vadd.f32 %v8053_v8, %v2572_v26  ;;  %v3762_v8 = vadd.f32 %v8230_v53, %v3745_v15  ;;  %v3939_v62 = vld [vmem:[#allocation4 + $0x40] sm:$0xff] }
 0x88b   :  { %v2574_v33 = vadd.f32 %v8820_v0, %v2184_v55  ;;  %v8326_v0 = vmax.f32 %v3756_v54, 0.0 }
 0x88c   :  { %v8256_v40 = vmax.f32 %v3767_v39, 0.0  ;;  %v2963_v47 = vadd.f32 %v8055_v56, %v2573_v52  ;;  %v3352_v13 = vadd.f32 %v8828_v19, %v2962_v51  ;;  %v8296_v55 = vmax.f32 %v3762_v8, 0.0  ;;  %v4217_v52 = vld [vmem:[#allocation10 + $0x58] sm:$0xff]  ;;  %v4056_v8 = vld [vmem:[#allocation10 + $0x30] sm:$0xff] }
 0x88d   :  { %v2964_v7 = vadd.f32 %v8057_v36, %v2574_v33  ;;  %v3757_v39 = vadd.f32 %v8230_v53, %v8833_v59  ;;  %v3782_v33 = vld [vmem:[#allocation4] sm:$0xff] }
 0x88e   :  { %v3353_v27 = vadd.f32 %v8113_v4, %v2963_v47  ;;  %v8830_v4 = vld [vmem:[#allocation74_spill] sm:$0xff]  ;;  %v3742_v46 = vadd.f32 %v8831_v34, %v3352_v13 }
 0x88f   :  { %v3736_v12 = vpop.f32.mrf.mxu0  ;;  %v3354_v36 = vadd.f32 %v8115_v57, %v2964_v7  ;;  %v3763_v57 = vadd.f32 %v8230_v53, %v3746_v6  ;;  %v8322_v50 = vmax.f32 %v3757_v39, 0.0  ;;  %v4097_v7 = vld [vmem:[#allocation4 + $0x60] sm:$0xff] }
 0x890   :  { %v3751_v32 = vadd.f32 %v3736_v12, %v3361_v9  ;;  %v2571_v9 = vadd.f32 %v8826_v3, %v2181_v60  ;;  %v3743_v43 = vadd.f32 %v8829_v30, %v3353_v27  ;;  %v8283_v12 = vmax.f32 %v3764_v11, 0.0  ;;  %v3864_v6 = vld [vmem:[#allocation10 + $0x18] sm:$0xff]  ;;  %v4099_v3 = vld [vmem:[#allocation4 + $0x70] sm:$0xff]  ;;  %v4179_v30 = vld [vmem:[#allocation4 + $0x88] sm:$0xff] }
 0x891   :  { %v3744_v56 = vadd.f32 %v8157_v17, %v3354_v36  ;;  %v3759_v18 = vadd.f32 %v8230_v53, %v3742_v46  ;;  %3889 = vmatpush.msra.mxu3 %v3864_v6  ;;  %v4098_v36 = vld [vmem:[#allocation4 + $0x68] sm:$0xff]  ;;  %v4018_v27 = vld [vmem:[#allocation4 + $0x50] sm:$0xff]  ;;  %v4178_v13 = vld [vmem:[#allocation4 + $0x80] sm:$0xff] }
 0x892   :  { %v3768_v31 = vadd.f32 %v8230_v53, %v3751_v32  ;;  %v2961_v49 = vadd.f32 %v8827_v48, %v2571_v9  ;;  %v8290_v32 = vmax.f32 %v3763_v57, 0.0  ;;  %v3760_v23 = vadd.f32 %v8230_v53, %v3743_v43  ;;  %v4017_v9 = vld [vmem:[#allocation4 + $0x48] sm:$0xff]  ;;  %v4019_v57 = vld [vmem:[#allocation4 + $0x58] sm:$0xff] }
 0x893   :  { %v3761_v1 = vadd.f32 %v8230_v53, %v3744_v56  ;;  %3890 = vmatpush.msra.mxu3 %v3863_v5  ;;  %v4057_v43 = vld [vmem:[#allocation10 + $0x38] sm:$0xff]  ;;  %v4296_v5 = vld [vmem:[#allocation10 + $0x60] sm:$0xff] }
 0x894   :  { %v8247_v58 = vmax.f32 %v3768_v31, 0.0  ;;  %v3351_v17 = vadd.f32 %v8830_v4, %v2961_v49  ;;  %v8306_v20 = vmax.f32 %v3760_v23, 0.0  ;;  %v8312_v31 = vmax.f32 %v3759_v18, 0.0  ;;  %v4177_v49 = vld [vmem:[#allocation4 + $0x78] sm:$0xff]  ;;  %v4137_v4 = vld [vmem:[#allocation10 + $0x48] sm:$0xff] }
 0x895   :  { %v8301_v14 = vmax.f32 %v3761_v1, 0.0  ;;  %4001 = vmatpush.msrb.mxu3 %v3977_v38 }
 0x896   :  { %3798 = vmatpush.msrb.mxu1 %v8247_v58  ;;  %3839 = vmatpush.msrb.mxu2 %v8247_v58  ;;  %v3741_v61 = vadd.f32 %v8832_v63, %v3351_v17  ;;  %v4136_v17 = vld [vmem:[#allocation10 + $0x40] sm:$0xff] }
 0x897   :  { %4002 = vmatpush.msrb.mxu3 %v3976_v16 }
 0x898   :  { %3799 = vmatpush.msrb.mxu1 %v8256_v40  ;;  %3840 = vmatpush.msrb.mxu2 %v8256_v40  ;;  %v3758_v25 = vadd.f32 %v8230_v53, %v3741_v61  ;;  %v3822_v53 = vld [vmem:[#allocation10 + $0x8] sm:$0xff] }
 0x89a   :  { %3800 = vmatpush.msrb.mxu1 %v8266_v2  ;;  %3841 = vmatpush.msrb.mxu2 %v8266_v2  ;;  %v8318_v45 = vmax.f32 %v3758_v25, 0.0 }
 0x89c   :  { %3801 = vmatpush.msrb.mxu1 %v8275_v21  ;;  %3842 = vmatpush.msrb.mxu2 %v8275_v21 }
 0x89e   :  { %3802 = vmatpush.msrb.mxu1 %v8283_v12  ;;  %3843 = vmatpush.msrb.mxu2 %v8283_v12 }
 0x8a0   :  { %3803 = vmatpush.msrb.mxu1 %v8290_v32  ;;  %3844 = vmatpush.msrb.mxu2 %v8290_v32 }
 0x8a2   :  { %3804 = vmatpush.msrb.mxu1 %v8296_v55  ;;  %3845 = vmatpush.msrb.mxu2 %v8296_v55 }
 0x8a4   :  { %3805 = vmatpush.msrb.mxu1 %v8301_v14  ;;  %3846 = vmatpush.msrb.mxu2 %v8301_v14 }
 0x8a6   :  { %3806 = vmatpush.msrb.mxu1 %v8306_v20  ;;  %3847 = vmatpush.msrb.mxu2 %v8306_v20 }
 0x8a8   :  { %3807 = vmatpush.msrb.mxu1 %v8312_v31  ;;  %3848 = vmatpush.msrb.mxu2 %v8312_v31 }
 0x8aa   :  { %3808 = vmatpush.msrb.mxu1 %v8318_v45  ;;  %3849 = vmatpush.msrb.mxu2 %v8318_v45 }
 0x8ac   :  { %3809 = vmatpush.msrb.mxu1 %v8322_v50  ;;  %3850 = vmatpush.msrb.mxu2 %v8322_v50 }
 0x8ae   :  { %3810 = vmatpush.msrb.mxu1 %v8326_v0  ;;  %3851 = vmatpush.msrb.mxu2 %v8326_v0 }
 0x8af   :  { %5189 = vmatmul.msk.f32.vlgmr.msrb.gmra.mxu1 %vm3785_vm2, %v3782_v33  ;;  %5192 = vmatmul.msk.f32.vlgmr.msrb.gmra.mxu2 %vm3785_vm2, %v3824_v35 }
 0x8b0   :  { %3952 = vmatpush.msra.mxu2 %v8247_v58  ;;  %3924 = vmatpush.msra.mxu1 %v3822_v53 }
 0x8b2   :  { %3953 = vmatpush.msra.mxu2 %v8256_v40  ;;  %3925 = vmatpush.msra.mxu1 %v3821_v44 }
 0x8b4   :  { %4032 = vmatpush.msrb.mxu1 %v8247_v58  ;;  %3954 = vmatpush.msra.mxu2 %v8266_v2 }
 0x8b6   :  { %4033 = vmatpush.msrb.mxu1 %v8256_v40  ;;  %3955 = vmatpush.msra.mxu2 %v8275_v21 }
 0x8b7   :  { %5190 = vmatmul.msk.f32.gmra.mxu1 %vm3785_vm2, %v3783_v29  ;;  %5193 = vmatmul.msk.f32.gmra.mxu2 %vm3785_vm2, %v3825_v10 }
 0x8b8   :  { %4034 = vmatpush.msrb.mxu1 %v8266_v2  ;;  %3956 = vmatpush.msra.mxu2 %v8283_v12 }
 0x8ba   :  { %4035 = vmatpush.msrb.mxu1 %v8275_v21  ;;  %3957 = vmatpush.msra.mxu2 %v8290_v32 }
 0x8bc   :  { %4036 = vmatpush.msrb.mxu1 %v8283_v12  ;;  %3958 = vmatpush.msra.mxu2 %v8296_v55 }
 0x8be   :  { %4037 = vmatpush.msrb.mxu1 %v8290_v32  ;;  %3959 = vmatpush.msra.mxu2 %v8301_v14 }
 0x8bf   :  { %5191 = vmatmul.msk.f32.gmra.mxu1 %vm3785_vm2, %v3784_v28  ;;  %5194 = vmatmul.msk.f32.gmra.mxu2 %vm3785_vm2, %v3826_v37 }
 0x8c0   :  { %4038 = vmatpush.msrb.mxu1 %v8296_v55  ;;  %3960 = vmatpush.msra.mxu2 %v8306_v20 }
 0x8c2   :  { %4039 = vmatpush.msrb.mxu1 %v8301_v14  ;;  %3961 = vmatpush.msra.mxu2 %v8312_v31 }
 0x8c4   :  { %4040 = vmatpush.msrb.mxu1 %v8306_v20  ;;  %3962 = vmatpush.msra.mxu2 %v8318_v45 }
 0x8c6   :  { %4041 = vmatpush.msrb.mxu1 %v8312_v31  ;;  %3963 = vmatpush.msra.mxu2 %v8322_v50 }
 0x8c8   :  { %4042 = vmatpush.msrb.mxu1 %v8318_v45  ;;  %3964 = vmatpush.msra.mxu2 %v8326_v0 }
 0x8c9   :  { %5201 = vmatmul.msk.f32.vlgmr.msra.gmra.mxu2 %vm3785_vm2, %v3937_v41 }
 0x8ca   :  { %4112 = vmatpush.msrb.mxu2 %v8247_v58  ;;  %4043 = vmatpush.msrb.mxu1 %v8322_v50 }
 0x8cc   :  { %4113 = vmatpush.msrb.mxu2 %v8256_v40  ;;  %4044 = vmatpush.msrb.mxu1 %v8326_v0 }
 0x8ce   :  { %4114 = vmatpush.msrb.mxu2 %v8266_v2 }
 0x8d0   :  { %4115 = vmatpush.msrb.mxu2 %v8275_v21 }
 0x8d1   :  { %5202 = vmatmul.msk.f32.gmra.mxu2 %vm3785_vm2, %v3938_v22 }
 0x8d2   :  { %4116 = vmatpush.msrb.mxu2 %v8283_v12 }
 0x8d4   :  { %4117 = vmatpush.msrb.mxu2 %v8290_v32 }
 0x8d6   :  { %4118 = vmatpush.msrb.mxu2 %v8296_v55 }
 0x8d8   :  { %4119 = vmatpush.msrb.mxu2 %v8301_v14 }
 0x8d9   :  { %5203 = vmatmul.msk.f32.gmra.mxu2 %vm3785_vm2, %v3939_v62 }
 0x8da   :  { %4120 = vmatpush.msrb.mxu2 %v8306_v20 }
 0x8dc   :  { %4121 = vmatpush.msrb.mxu2 %v8312_v31 }
 0x8de   :  { %4122 = vmatpush.msrb.mxu2 %v8318_v45 }
 0x8e0   :  { %4123 = vmatpush.msrb.mxu2 %v8322_v50 }
 0x8e2   :  { %4124 = vmatpush.msrb.mxu2 %v8326_v0 }
 0x8e3   :  { %5213 = vmatmul.msk.f32.vlgmr.msrb.gmra.mxu2 %vm3785_vm2, %v4097_v7  ;;  %v4377_v7 = vld [vmem:[#allocation10 + $0x78] sm:$0xff] }
 0x8e4   :  { %4241 = vmatpush.msra.mxu2 %v4217_v52  ;;  %v4297_v52 = vld [vmem:[#allocation10 + $0x68] sm:$0xff]  ;;  %4401 = vmatpush.msra.mxu0 %v4377_v7  ;;  %v4531_v7 = vld [vmem:[#allocation13] sm:$0xff] }
 0x8e6   :  { %4242 = vmatpush.msra.mxu2 %v4216_v42 }
 0x8e8   :  { %4352 = vmatpush.msrb.mxu2 %v8247_v58 }
 0x8ea   :  { %4353 = vmatpush.msrb.mxu2 %v8256_v40 }
 0x8eb   :  { %5214 = vmatmul.msk.f32.gmra.mxu2 %vm3785_vm2, %v4098_v36 }
 0x8ec   :  { %4354 = vmatpush.msrb.mxu2 %v8266_v2 }
 0x8ee   :  { %4355 = vmatpush.msrb.mxu2 %v8275_v21 }
 0x8f0   :  { %4356 = vmatpush.msrb.mxu2 %v8283_v12 }
 0x8f2   :  { %4357 = vmatpush.msrb.mxu2 %v8290_v32 }
 0x8f3   :  { %5215 = vmatmul.msk.f32.gmra.mxu2 %vm3785_vm2, %v4099_v3 }
 0x8f4   :  { %4358 = vmatpush.msrb.mxu2 %v8296_v55 }
 0x8f6   :  { %4359 = vmatpush.msrb.mxu2 %v8301_v14 }
 0x8f8   :  { %4360 = vmatpush.msrb.mxu2 %v8306_v20 }
 0x8fa   :  { %4361 = vmatpush.msrb.mxu2 %v8312_v31 }
 0x8fc   :  { %4362 = vmatpush.msrb.mxu2 %v8318_v45 }
 0x8fe   :  { %4363 = vmatpush.msrb.mxu2 %v8322_v50 }
 0x900   :  { %4364 = vmatpush.msrb.mxu2 %v8326_v0 }
 0x92c   :  { %v3812_v60 = vpop.f32.mrf.mxu1 }
 0x92d   :  { %5198 = vmatmul.msk.f32.vlgmr.msra.gmra.mxu1 %vm3865_vm3, %v3812_v60  ;;  %v4376_v60 = vld [vmem:[#allocation10 + $0x70] sm:$0xff] }
 0x92e   :  { %4192 = vmatpush.msra.mxu1 %v8247_v58  ;;  %4402 = vmatpush.msra.mxu0 %v4376_v60  ;;  %v4613_v60 = vld [vmem:[#allocation6 + $0x10] sm:$0xff] }
 0x930   :  { %4193 = vmatpush.msra.mxu1 %v8256_v40 }
 0x932   :  { %4194 = vmatpush.msra.mxu1 %v8266_v2  ;;  %v3853_v26 = vpop.f32.mrf.mxu2 }
 0x933   :  { %5195 = vmatmul.msk.f32.vlgmr.msra.gmra.mxu3 %vm3865_vm3, %v3853_v26 }
 0x934   :  { %4195 = vmatpush.msra.mxu1 %v8275_v21  ;;  %v3815_v47 = vpop.f32.mrf.mxu1  ;;  %4081 = vmatpush.msra.mxu3 %v4057_v43 }
 0x935   :  { %5199 = vmatmul.msk.f32.gmra.mxu1 %vm3865_vm3, %v3815_v47 }
 0x936   :  { %4196 = vmatpush.msra.mxu1 %v8283_v12  ;;  %4082 = vmatpush.msra.mxu3 %v4056_v8 }
 0x938   :  { %4197 = vmatpush.msra.mxu1 %v8290_v32 }
 0x93a   :  { %4198 = vmatpush.msra.mxu1 %v8296_v55  ;;  %v3856_v15 = vpop.f32.mrf.mxu2 }
 0x93b   :  { %5196 = vmatmul.msk.f32.gmra.mxu3 %vm3865_vm3, %v3856_v15 }
 0x93c   :  { %4199 = vmatpush.msra.mxu1 %v8301_v14  ;;  %v3818_v11 = vpop.f32.mrf.mxu1 }
 0x93d   :  { %5200 = vmatmul.msk.f32.gmra.mxu1 %vm3865_vm3, %v3818_v11 }
 0x93e   :  { %4200 = vmatpush.msra.mxu1 %v8306_v20 }
 0x940   :  { %4201 = vmatpush.msra.mxu1 %v8312_v31 }
 0x942   :  { %4202 = vmatpush.msra.mxu1 %v8318_v45  ;;  %v3859_v51 = vpop.f32.mrf.mxu2 }
 0x943   :  { %5197 = vmatmul.msk.f32.gmra.mxu3 %vm3865_vm3, %v3859_v51 }
 0x944   :  { %4203 = vmatpush.msra.mxu1 %v8322_v50 }
 0x945   :  { %5207 = vmatmul.msk.f32.vlgmr.msrb.gmra.mxu1 %vm3785_vm2, %v4017_v9  ;;  %v4457_v9 = vld [vmem:[#allocation10 + $0x88] sm:$0xff] }
 0x946   :  { %4204 = vmatpush.msra.mxu1 %v8326_v0 }
 0x948   :  { %4321 = vmatpush.msrb.mxu1 %v4297_v52  ;;  %v4532_v52 = vld [vmem:[#allocation13 + $0x8] sm:$0xff] }
 0x94a   :  { %4322 = vmatpush.msrb.mxu1 %v4296_v5 }
 0x94c   :  { %v3966_v56 = vpop.f32.mrf.mxu2 }
 0x94d   :  { %5204 = vmatmul.msk.f32.vlgmr.msrb.gmra.mxu3 %vm3865_vm3, %v3966_v56  ;;  %5208 = vmatmul.msk.f32.gmra.mxu1 %vm3785_vm2, %v4018_v27  ;;  %v4456_v56 = vld [vmem:[#allocation10 + $0x80] sm:$0xff] }
 0x94e   :  { %4161 = vmatpush.msrb.mxu3 %v4137_v4 }
 0x950   :  { %4162 = vmatpush.msrb.mxu3 %v4136_v17 }
 0x954   :  { %v3969_v48 = vpop.f32.mrf.mxu2 }
 0x955   :  { %5205 = vmatmul.msk.f32.gmra.mxu3 %vm3865_vm3, %v3969_v48  ;;  %5209 = vmatmul.msk.f32.gmra.mxu1 %vm3785_vm2, %v4019_v57 }
 0x95c   :  { %v3972_v19 = vpop.f32.mrf.mxu2 }
 0x95d   :  { %5206 = vmatmul.msk.f32.gmra.mxu3 %vm3865_vm3, %v3972_v19  ;;  %5219 = vmatmul.msk.f32.vlgmr.msra.gmra.mxu1 %vm3785_vm2, %v4177_v49 }
 0x95e   :  { %4481 = vmatpush.msra.mxu1 %v4457_v9  ;;  %v4640_v9 = vld [vmem:[#allocation13 + $0x50] sm:$0xff] }
 0x960   :  { %4482 = vmatpush.msra.mxu1 %v4456_v56  ;;  %v4639_v56 = vld [vmem:[#allocation13 + $0x48] sm:$0xff] }
 0x965   :  { %5220 = vmatmul.msk.f32.gmra.mxu1 %vm3785_vm2, %v4178_v13 }
 0x966   :  { %v4126_v35 = vpop.f32.mrf.mxu2 }
 0x96d   :  { %5221 = vmatmul.msk.f32.gmra.mxu1 %vm3785_vm2, %v4179_v30 }
 0x96e   :  { %v4129_v28 = vpop.f32.mrf.mxu2 }
 0x976   :  { %v4132_v41 = vpop.f32.mrf.mxu2 }
 0x9aa   :  { %v3927_v34 = vpop.f32.mrf.mxu1 }
 0x9b2   :  { %v3930_v46 = vpop.f32.mrf.mxu1 }
 0x9b6   :  { %v3892_v1 = vpop.f32.mrf.mxu3 }
 0x9b7   :  { %v3928_v63 = vadd.f32 %v3927_v34, %v3892_v1 }
 0x9ba   :  { %v3933_v61 = vpop.f32.mrf.mxu1 }
 0x9be   :  { %v3895_v23 = vpop.f32.mrf.mxu3 }
 0x9bf   :  { %v3931_v18 = vadd.f32 %v3930_v46, %v3895_v23 }
 0x9c2   :  { %v4046_v25 = vpop.f32.mrf.mxu1 }
 0x9c3   :  { %5210 = vmatmul.msk.f32.vlgmr.msra.gmra.mxu3 %vm3865_vm3, %v4046_v25 }
 0x9c4   :  { %4272 = vmatpush.msra.mxu3 %v8247_v58 }
 0x9c6   :  { %4273 = vmatpush.msra.mxu3 %v8256_v40  ;;  %v3898_v59 = vpop.f32.mrf.mxu3 }
 0x9c7   :  { %v8427_v39 = vadd.f32 %v3933_v61, %v3898_v59 }
 0x9c8   :  { %4274 = vmatpush.msra.mxu3 %v8266_v2 }
 0x9ca   :  { %4275 = vmatpush.msra.mxu3 %v8275_v21  ;;  %v4049_v24 = vpop.f32.mrf.mxu1 }
 0x9cb   :  { %5211 = vmatmul.msk.f32.gmra.mxu3 %vm3865_vm3, %v4049_v24 }
 0x9cc   :  { %4276 = vmatpush.msra.mxu3 %v8283_v12 }
 0x9ce   :  { %4277 = vmatpush.msra.mxu3 %v8290_v32 }
 0x9d0   :  { %v4004_v54 = vpop.f32.mrf.mxu3  ;;  %4278 = vmatpush.msra.mxu3 %v8296_v55 }
 0x9d1   :  { %v4013_v33 = vadd.f32 %v4004_v54, %v3928_v63 }
 0x9d2   :  { %4279 = vmatpush.msra.mxu3 %v8301_v14  ;;  %v4052_v53 = vpop.f32.mrf.mxu1 }
 0x9d3   :  { %5212 = vmatmul.msk.f32.gmra.mxu3 %vm3865_vm3, %v4052_v53 }
 0x9d4   :  { %4280 = vmatpush.msra.mxu3 %v8306_v20 }
 0x9d6   :  { %4281 = vmatpush.msra.mxu3 %v8312_v31 }
 0x9d8   :  { %v4007_v44 = vpop.f32.mrf.mxu3  ;;  %4282 = vmatpush.msra.mxu3 %v8318_v45 }
 0x9d9   :  { %v4014_v29 = vadd.f32 %v4007_v44, %v3931_v18 }
 0x9da   :  { %4283 = vmatpush.msra.mxu3 %v8322_v50  ;;  %v4206_v10 = vpop.f32.mrf.mxu1 }
 0x9db   :  { %5216 = vmatmul.msk.f32.vlgmr.msrb.gmra.mxu3 %vm3865_vm3, %v4126_v35  ;;  %5222 = vmatmul.msk.f32.vlgmr.msra.gmra.mxu2 %vm3865_vm3, %v4206_v10 }
 0x9dc   :  { %4284 = vmatpush.msra.mxu3 %v8326_v0 }
 0x9de   :  { %4432 = vmatpush.msrb.mxu3 %v8247_v58 }
 0x9e0   :  { %4433 = vmatpush.msrb.mxu3 %v8256_v40  ;;  %v4337_v40 = vld [vmem:[#allocation4 + $0xa8] sm:$0xff] }
 0x9e2   :  { %4434 = vmatpush.msrb.mxu3 %v8266_v2  ;;  %v4209_v37 = vpop.f32.mrf.mxu1  ;;  %v4257_v2 = vld [vmem:[#allocation4 + $0x90] sm:$0xff] }
 0x9e3   :  { %5223 = vmatmul.msk.f32.gmra.mxu2 %vm3865_vm3, %v4209_v37  ;;  %5217 = vmatmul.msk.f32.gmra.mxu3 %vm3865_vm3, %v4129_v28  ;;  %v5296_v37 = vld [vmem:[#allocation12] ss:$0 sm:$0xff] }
 0x9e4   :  { %4435 = vmatpush.msrb.mxu3 %v8275_v21  ;;  %v4338_v21 = vld [vmem:[#allocation4 + $0xb0] sm:$0xff] }
 0x9e6   :  { %4436 = vmatpush.msrb.mxu3 %v8283_v12  ;;  %v4258_v12 = vld [vmem:[#allocation4 + $0x98] sm:$0xff] }
 0x9e8   :  { %4437 = vmatpush.msrb.mxu3 %v8290_v32  ;;  %v4339_v32 = vld [vmem:[#allocation4 + $0xb8] sm:$0xff] }
 0x9ea   :  { %4438 = vmatpush.msrb.mxu3 %v8296_v55  ;;  %v4212_v58 = vpop.f32.mrf.mxu1  ;;  %v4259_v55 = vld [vmem:[#allocation4 + $0xa0] sm:$0xff] }
 0x9eb   :  { %5224 = vmatmul.msk.f32.gmra.mxu2 %vm3865_vm3, %v4212_v58  ;;  %5218 = vmatmul.msk.f32.gmra.mxu3 %vm3865_vm3, %v4132_v41 }
 0x9ec   :  { %4439 = vmatpush.msrb.mxu3 %v8301_v14  ;;  %v4417_v14 = vld [vmem:[#allocation4 + $0xc0] sm:$0xff] }
 0x9ee   :  { %4440 = vmatpush.msrb.mxu3 %v8306_v20  ;;  %v4418_v20 = vld [vmem:[#allocation4 + $0xc8] sm:$0xff] }
 0x9f0   :  { %4441 = vmatpush.msrb.mxu3 %v8312_v31  ;;  %v4419_v31 = vld [vmem:[#allocation4 + $0xd0] sm:$0xff] }
 0x9f2   :  { %4442 = vmatpush.msrb.mxu3 %v8318_v45  ;;  %v4010_v45 = vpop.f32.mrf.mxu3 }
 0x9f3   :  { %5231 = vmatmul.msk.f32.vlgmr.msrb.gmra.mxu2 %vm3785_vm2, %v4337_v40  ;;  %5225 = vmatmul.msk.f32.vlgmr.msra.gmra.mxu3 %vm3785_vm2, %v4257_v2  ;;  %v4015_v42 = vadd.f32 %v4010_v45, %v8427_v39  ;;  %v4563_v45 = vld [vmem:[#allocation13 + $0x30] sm:$0xff] }
 0x9f4   :  { %4443 = vmatpush.msrb.mxu3 %v8322_v50 }
 0x9f6   :  { %4444 = vmatpush.msrb.mxu3 %v8326_v0 }
 0x9fb   :  { %5232 = vmatmul.msk.f32.gmra.mxu2 %vm3785_vm2, %v4338_v21  ;;  %5226 = vmatmul.msk.f32.gmra.mxu3 %vm3785_vm2, %v4258_v12 }
 0xa03   :  { %5233 = vmatmul.msk.f32.gmra.mxu2 %vm3785_vm2, %v4339_v32  ;;  %5227 = vmatmul.msk.f32.gmra.mxu3 %vm3785_vm2, %v4259_v55  ;;  %v4536_v55 = vld [vmem:[#allocation6 + $0x8] sm:$0xff] }
 0xa0b   :  { %5237 = vmatmul.msk.f32.vlgmr.msrb.gmra.mxu3 %vm3785_vm2, %v4417_v14  ;;  %v4564_v14 = vld [vmem:[#allocation13 + $0x38] sm:$0xff] }
 0xa13   :  { %5238 = vmatmul.msk.f32.gmra.mxu3 %vm3785_vm2, %v4418_v20  ;;  %v4667_v20 = vld [vmem:[#allocation6 + $0x18] sm:$0xff] }
 0xa1b   :  { %5239 = vmatmul.msk.f32.gmra.mxu3 %vm3785_vm2, %v4419_v31  ;;  %v4506_v31 = vld [vmem:[#allocation6] sm:$0xff] }
 0xa46   :  { %v4084_v50 = vpop.f32.mrf.mxu3 }
 0xa47   :  { %v4093_v0 = vadd.f32 %v4084_v50, %v4013_v33  ;;  %v4562_v50 = vld [vmem:[#allocation13 + $0x28] sm:$0xff] }
 0xa4e   :  { %v4087_v22 = vpop.f32.mrf.mxu3 }
 0xa4f   :  { %v4094_v62 = vadd.f32 %v4087_v22, %v4014_v29  ;;  %v4534_v22 = vld [vmem:[#allocation13 + $0x18] sm:$0xff] }
 0xa56   :  { %v4090_v6 = vpop.f32.mrf.mxu3 }
 0xa57   :  { %v4095_v38 = vadd.f32 %v4090_v6, %v4015_v42  ;;  %v4775_v42 = vld [vmem:[#allocation6 + $0x28] sm:$0xff]  ;;  %v4883_v6 = vld [vmem:[#allocation6 + $0x38] sm:$0xff] }
 0xa5e   :  { %v4164_v16 = vpop.f32.mrf.mxu3  ;;  %v4244_v26 = vpop.f32.mrf.mxu2 }
 0xa5f   :  { %v4173_v47 = vadd.f32 %v4164_v16, %v4093_v0  ;;  %v4561_v0 = vld [vmem:[#allocation13 + $0x20] sm:$0xff] }
 0xa61   :  { %v4253_v36 = vadd.f32 %v4244_v26, %v4173_v47  ;;  %v4721_v26 = vld [vmem:[#allocation6 + $0x20] sm:$0xff]  ;;  %v4829_v47 = vld [vmem:[#allocation6 + $0x30] sm:$0xff] }
 0xa66   :  { %v4247_v15 = vpop.f32.mrf.mxu2  ;;  %v4167_v11 = vpop.f32.mrf.mxu3 }
 0xa67   :  { %v4174_v3 = vadd.f32 %v4167_v11, %v4094_v62  ;;  %v4533_v62 = vld [vmem:[#allocation13 + $0x10] sm:$0xff]  ;;  %v4641_v11 = vld [vmem:[#allocation13 + $0x58] sm:$0xff] }
 0xa69   :  { %v4254_v51 = vadd.f32 %v4247_v15, %v4174_v3  ;;  %v4694_v15 = vld [vmem:[#allocation13 + $0x70] sm:$0xff]  ;;  %v4693_v3 = vld [vmem:[#allocation13 + $0x68] sm:$0xff] }
 0xa6e   :  { %v4250_v27 = vpop.f32.mrf.mxu2  ;;  %v4170_v57 = vpop.f32.mrf.mxu3 }
 0xa6f   :  { %v4175_v48 = vadd.f32 %v4170_v57, %v4095_v38  ;;  %v4695_v38 = vld [vmem:[#allocation13 + $0x78] sm:$0xff] }
 0xa70   :  { %4711 = vmatpush.msra.mxu3 %v4695_v38  ;;  %v4803_v57 = vld [vmem:[#allocation13 + $0xb8] sm:$0xff] }
 0xa71   :  { %v4255_v49 = vadd.f32 %v4250_v27, %v4175_v48  ;;  %v4692_v27 = vld [vmem:[#allocation13 + $0x60] sm:$0xff] }
 0xa72   :  { %4712 = vmatpush.msra.mxu3 %v4694_v15  ;;  %v4638_v48 = vld [vmem:[#allocation13 + $0x40] sm:$0xff] }
 0xa73   :  { %v5298_v15 = vld [vmem:[#allocation18] ss:$0 sm:$0xff] }
 0xa74   :  { %4713 = vmatpush.msra.mxu3 %v4693_v3 }
 0xa76   :  { %v4366_v19 = vpop.f32.mrf.mxu2  ;;  %v4286_v13 = vpop.f32.mrf.mxu3  ;;  %4714 = vmatpush.msra.mxu3 %v4692_v27 }
 0xa77   :  { %5234 = vmatmul.msk.f32.vlgmr.msra.gmra.mxu0 %vm3865_vm3, %v4366_v19  ;;  %5228 = vmatmul.msk.f32.vlgmr.msrb.gmra.mxu1 %vm3865_vm3, %v4286_v13  ;;  %v4749_v19 = vld [vmem:[#allocation13 + $0x98] sm:$0xff]  ;;  %v4801_v13 = vld [vmem:[#allocation13 + $0xa8] sm:$0xff] }
 0xa78   :  { %4819 = vmatpush.msrb.mxu3 %v4803_v57 }
 0xa7e   :  { %v4369_v30 = vpop.f32.mrf.mxu2  ;;  %v4289_v43 = vpop.f32.mrf.mxu3 }
 0xa7f   :  { %5235 = vmatmul.msk.f32.gmra.mxu0 %vm3865_vm3, %v4369_v30  ;;  %5229 = vmatmul.msk.f32.gmra.mxu1 %vm3865_vm3, %v4289_v43  ;;  %v4748_v30 = vld [vmem:[#allocation13 + $0x90] sm:$0xff]  ;;  %v4800_v43 = vld [vmem:[#allocation13 + $0xa0] sm:$0xff] }
 0xa86   :  { %v4372_v8 = vpop.f32.mrf.mxu2  ;;  %v4292_v4 = vpop.f32.mrf.mxu3 }
 0xa87   :  { %5236 = vmatmul.msk.f32.gmra.mxu0 %vm3865_vm3, %v4372_v8  ;;  %5230 = vmatmul.msk.f32.gmra.mxu1 %vm3865_vm3, %v4292_v4  ;;  %v4747_v8 = vld [vmem:[#allocation13 + $0x88] sm:$0xff] }
 0xa8e   :  { %v4446_v17 = vpop.f32.mrf.mxu3 }
 0xa8f   :  { %5240 = vmatmul.msk.f32.vlgmr.msra.gmra.mxu1 %vm3865_vm3, %v4446_v17  ;;  %v4911_v17 = vld [vmem:[#allocation13 + $0xf8] sm:$0xff] }
 0xa96   :  { %v4449_v34 = vpop.f32.mrf.mxu3 }
 0xa97   :  { %5241 = vmatmul.msk.f32.gmra.mxu1 %vm3865_vm3, %v4449_v34  ;;  %v4746_v34 = vld [vmem:[#allocation13 + $0x80] sm:$0xff] }
 0xa9e   :  { %v4452_v46 = vpop.f32.mrf.mxu3 }
 0xa9f   :  { %5242 = vmatmul.msk.f32.gmra.mxu1 %vm3865_vm3, %v4452_v46  ;;  %v4910_v46 = vld [vmem:[#allocation13 + $0xf0] sm:$0xff] }
 0xaf4   :  { %v4324_v1 = vpop.f32.mrf.mxu1  ;;  %v4404_v61 = vpop.f32.mrf.mxu0 }
 0xaf5   :  { %v4333_v24 = vadd.f32 %v4324_v1, %v4253_v36  ;;  %v4937_v36 = vld [vmem:[#allocation6 + $0x40] sm:$0xff]  ;;  %v4909_v1 = vld [vmem:[#allocation13 + $0xe8] sm:$0xff] }
 0xaf7   :  { %v4413_v35 = vadd.f32 %v4404_v61, %v4333_v24  ;;  %v4854_v24 = vld [vmem:[#allocation13 + $0xc0] sm:$0xff] }
 0xafc   :  { %v4327_v63 = vpop.f32.mrf.mxu1  ;;  %v4407_v25 = vpop.f32.mrf.mxu0 }
 0xafd   :  { %v4334_v39 = vadd.f32 %v4327_v63, %v4254_v51  ;;  %v4908_v63 = vld [vmem:[#allocation13 + $0xe0] sm:$0xff] }
 0xaff   :  { %v4414_v53 = vadd.f32 %v4407_v25, %v4334_v39  ;;  %v4855_v39 = vld [vmem:[#allocation13 + $0xc8] sm:$0xff] }
 0xb04   :  { %v4330_v23 = vpop.f32.mrf.mxu1  ;;  %v4410_v33 = vpop.f32.mrf.mxu0 }
 0xb05   :  { %v4335_v54 = vadd.f32 %v4330_v23, %v4255_v49  ;;  %v4802_v49 = vld [vmem:[#allocation13 + $0xb0] sm:$0xff] }
 0xb06   :  { %4820 = vmatpush.msrb.mxu3 %v4802_v49 }
 0xb07   :  { %v4415_v44 = vadd.f32 %v4410_v33, %v4335_v54  ;;  %v4965_v54 = vld [vmem:[#allocation13 + $0x118] sm:$0xff] }
 0xb08   :  { %4821 = vmatpush.msrb.mxu3 %v4801_v13 }
 0xb0a   :  { %4822 = vmatpush.msrb.mxu3 %v4800_v43 }
 0xb0c   :  { %v4484_v18 = vpop.f32.mrf.mxu1 }
 0xb0d   :  { %v4493_v28 = vadd.f32 %v4484_v18, %v4413_v35  ;;  %v4857_v18 = vld [vmem:[#allocation13 + $0xd8] sm:$0xff]  ;;  %v4963_v35 = vld [vmem:[#allocation13 + $0x108] sm:$0xff] }
 0xb0f   :  { %v4500_v2 = vadd.f32 %v5296_v37, %v4493_v28  ;;  %v5003_v28 = vld [vmem:[#allocation16 + $0x38] sm:$0xff] }
 0xb11   :  { %v4503_v32 = vmax.f32 %v4500_v2, 0.0  ;;  %v4999_v2 = vld [vmem:[#allocation16 + $0x18] sm:$0xff] }
 0xb14   :  { %v4487_v59 = vpop.f32.mrf.mxu1 }
 0xb15   :  { %v4494_v29 = vadd.f32 %v4487_v59, %v4414_v53  ;;  %v4856_v59 = vld [vmem:[#allocation13 + $0xd0] sm:$0xff] }
 0xb16   :  { %v4964_v53 = vld [vmem:[#allocation13 + $0x110] sm:$0xff] }
 0xb17   :  { %v4501_v58 = vadd.f32 %v5296_v37, %v4494_v29 }
 0xb19   :  { %v8482_v12 = vmax.f32 %v4501_v58, 0.0  ;;  %v5000_v58 = vld [vmem:[#allocation16 + $0x20] sm:$0xff] }
 0xb1c   :  { %v4490_v10 = vpop.f32.mrf.mxu1 }
 0xb1d   :  { %v4495_v41 = vadd.f32 %v4490_v10, %v4415_v44  ;;  %v4962_v44 = vld [vmem:[#allocation13 + $0x100] sm:$0xff] }
 0xb1f   :  { %v4502_v40 = vadd.f32 %v5296_v37, %v4495_v41  ;;  %v5002_v37 = vld [vmem:[#allocation16 + $0x30] sm:$0xff]  ;;  %v5001_v41 = vld [vmem:[#allocation16 + $0x28] sm:$0xff] }
 0xb21   :  { %v8480_v21 = vmax.f32 %v4502_v40, 0.0 }
 0xb23   :  { %4524 = vmatpush.msra.mxu2 %v8480_v21  ;;  %4553 = vmatpush.msrb.mxu0 %v8480_v21 }
 0xb24   :  { %4684 = vmatpush.msrb.mxu1 %v8480_v21 }
 0xb25   :  { %4525 = vmatpush.msra.mxu2 %v8482_v12  ;;  %4554 = vmatpush.msrb.mxu0 %v8482_v12 }
 0xb26   :  { %4685 = vmatpush.msrb.mxu1 %v8482_v12 }
 0xb27   :  { %4526 = vmatpush.msra.mxu2 %v4503_v32  ;;  %4555 = vmatpush.msrb.mxu0 %v4503_v32 }
 0xb28   :  { %4686 = vmatpush.msrb.mxu1 %v4503_v32  ;;  %5244 = vmatmul.msk.f32.vlgmr.msrb.gmra.mxu0 %vm4507_vm4, %v4536_v55 }
 0xb29   :  { %4581 = vmatpush.msrb.mxu2 %v4564_v14  ;;  %5249 = vmatmul.msk.f32.vlgmr.msrb.gmra.mxu1 %vm4507_vm4, %v4667_v20 }
 0xb2a   :  { %4792 = vmatpush.msra.mxu1 %v8480_v21  ;;  %5243 = vmatmul.msk.f32.vlgmr.msra.gmra.mxu2 %vm4507_vm4, %v4506_v31 }
 0xb2b   :  { %4582 = vmatpush.msrb.mxu2 %v4563_v45  ;;  %4604 = vmatpush.msra.mxu0 %v4534_v22 }
 0xb2c   :  { %4793 = vmatpush.msra.mxu1 %v8482_v12 }
 0xb2d   :  { %4583 = vmatpush.msrb.mxu2 %v4562_v50  ;;  %4605 = vmatpush.msra.mxu0 %v4533_v62 }
 0xb2e   :  { %4794 = vmatpush.msra.mxu1 %v4503_v32 }
 0xb2f   :  { %4584 = vmatpush.msrb.mxu2 %v4561_v0  ;;  %4606 = vmatpush.msra.mxu0 %v4532_v52 }
 0xb30   :  { %4900 = vmatpush.msrb.mxu1 %v8480_v21 }
 0xb31   :  { %4630 = vmatpush.msra.mxu2 %v8480_v21  ;;  %4607 = vmatpush.msra.mxu0 %v4531_v7 }
 0xb32   :  { %4901 = vmatpush.msrb.mxu1 %v8482_v12 }
 0xb33   :  { %4631 = vmatpush.msra.mxu2 %v8482_v12  ;;  %5253 = vmatmul.msk.f32.vlgmr.msra.gmra.mxu1 %vm4507_vm4, %v4775_v42 }
 0xb34   :  { %4902 = vmatpush.msrb.mxu1 %v4503_v32  ;;  %4657 = vmatpush.msrb.mxu0 %v4641_v11 }
 0xb35   :  { %4632 = vmatpush.msra.mxu2 %v4503_v32 }
 0xb36   :  { %4658 = vmatpush.msrb.mxu0 %v4640_v9  ;;  %5020 = vmatpush.msra.mxu1 %v5003_v28 }
 0xb38   :  { %4659 = vmatpush.msrb.mxu0 %v4639_v56  ;;  %5021 = vmatpush.msra.mxu1 %v5002_v37 }
 0xb3a   :  { %4660 = vmatpush.msrb.mxu0 %v4638_v48  ;;  %5022 = vmatpush.msra.mxu1 %v5001_v41 }
 0xb3b   :  { %5257 = vmatmul.msk.f32.vlgmr.msrb.gmra.mxu1 %vm4507_vm4, %v4883_v6 }
 0xb3c   :  { %5023 = vmatpush.msra.mxu1 %v5000_v58 }
 0xb3e   :  { %5024 = vmatpush.msra.mxu1 %v4999_v2 }
 0xba5   :  { %v4557_v5 = vpop.f32.mrf.mxu0 }
 0xba6   :  { %5245 = vmatmul.msk.f32.vlgmr.msrb.gmra.mxu2 %vm4565_vm5, %v4557_v5  ;;  %v4688_v51 = vpop.f32.mrf.mxu1  ;;  %v5297_v5 = vld [vmem:[#allocation15] ss:$0 sm:$0xff] }
 0xba7   :  { %4738 = vmatpush.msrb.mxu2 %v8480_v21  ;;  %5250 = vmatmul.msk.f32.vlgmr.msra.gmra.mxu3 %vm4565_vm5, %v4688_v51 }
 0xba8   :  { %4927 = vmatpush.msra.mxu3 %v4911_v17 }
 0xba9   :  { %4739 = vmatpush.msrb.mxu2 %v8482_v12 }
 0xbaa   :  { %4928 = vmatpush.msra.mxu3 %v4910_v46 }
 0xbab   :  { %4740 = vmatpush.msrb.mxu2 %v4503_v32 }
 0xbac   :  { %4929 = vmatpush.msra.mxu3 %v4909_v1 }
 0xbad   :  { %v4528_v16 = vpop.f32.mrf.mxu2 }
 0xbae   :  { %5247 = vmatmul.msk.f32.vlgmr.msra.gmra.mxu2 %vm4507_vm4, %v4613_v60  ;;  %5246 = vmatmul.msk.f32.vlgmr.msra.gmra.mxu0 %vm4565_vm5, %v4528_v16 }
 0xbaf   :  { %4846 = vmatpush.msra.mxu2 %v8480_v21  ;;  %4765 = vmatpush.msra.mxu0 %v4749_v19 }
 0xbb0   :  { %v4796_v4 = vpop.f32.mrf.mxu1  ;;  %4930 = vmatpush.msra.mxu3 %v4908_v63 }
 0xbb1   :  { %4847 = vmatpush.msra.mxu2 %v8482_v12  ;;  %4766 = vmatpush.msra.mxu0 %v4748_v30 }
 0xbb2   :  { %5254 = vmatmul.msk.f32.vlgmr.msrb.gmra.mxu3 %vm4565_vm5, %v4796_v4 }
 0xbb3   :  { %4848 = vmatpush.msra.mxu2 %v4503_v32  ;;  %4767 = vmatpush.msra.mxu0 %v4747_v8 }
 0xbb5   :  { %4768 = vmatpush.msra.mxu0 %v4746_v34 }
 0xbb6   :  { %5251 = vmatmul.msk.f32.vlgmr.msrb.gmra.mxu2 %vm4507_vm4, %v4721_v26 }
 0xbb7   :  { %4954 = vmatpush.msrb.mxu2 %v8480_v21  ;;  %v4998_v21 = vld [vmem:[#allocation16 + $0x10] sm:$0xff] }
 0xbb8   :  { %v4904_v61 = vpop.f32.mrf.mxu1  ;;  %5025 = vmatpush.msra.mxu1 %v4998_v21 }
 0xbb9   :  { %4955 = vmatpush.msrb.mxu2 %v8482_v12  ;;  %v4997_v12 = vld [vmem:[#allocation16 + $0x8] sm:$0xff] }
 0xbba   :  { %5258 = vmatmul.msk.f32.vlgmr.msra.gmra.mxu3 %vm4565_vm5, %v4904_v61  ;;  %5026 = vmatpush.msra.mxu1 %v4997_v12 }
 0xbbb   :  { %4956 = vmatpush.msrb.mxu2 %v4503_v32  ;;  %v4996_v32 = vld [vmem:[#allocation16] sm:$0xff] }
 0xbbc   :  { %5027 = vmatpush.msra.mxu1 %v4996_v32 }
 0xbbe   :  { %5255 = vmatmul.msk.f32.vlgmr.msra.gmra.mxu2 %vm4507_vm4, %v4829_v47  ;;  %v5032_v47 = vlaneseq }
 0xbc6   :  { %5259 = vmatmul.msk.f32.vlgmr.msrb.gmra.mxu2 %vm4507_vm4, %v4937_v36  ;;  %v5033_v36 = vand.u32 127, %v5032_v47 }
 0xbc8   :  { %vm5034_vm7 = vcmp.lt.s32.totalorder %v5033_v36, 6  ;;  %vm5035_vm8 = vcmp.ge.s32.totalorder %v5033_v36, 6  ;;  %vm5036_vm9 = vcmp.lt.s32.totalorder %v5033_v36, 12 }
 0xbc9   :  { %vm5037_vm10 = vmand %vm5035_vm8, %vm5036_vm9 }
 0xc29   :  { %v4586_v23 = vpop.f32.mrf.mxu2 }
 0xc2a   :  { %v4716_v14 = vpop.f32.mrf.mxu3 }
 0xc2b   :  { %v4609_v40 = vpop.f32.mrf.mxu0 }
 0xc2c   :  { %v4610_v20 = vadd.f32 %v4609_v40, %v4586_v23 }
 0xc31   :  { %v4634_v25 = vpop.f32.mrf.mxu2 }
 0xc32   :  { %5248 = vmatmul.msk.f32.vlgmr.msrb.gmra.mxu0 %vm4565_vm5, %v4634_v25 }
 0xc33   :  { %4873 = vmatpush.msrb.mxu0 %v4857_v18 }
 0xc35   :  { %4874 = vmatpush.msrb.mxu0 %v4856_v59  ;;  %v4824_v50 = vpop.f32.mrf.mxu3 }
 0xc37   :  { %4875 = vmatpush.msrb.mxu0 %v4855_v39 }
 0xc39   :  { %v4742_v33 = vpop.f32.mrf.mxu2  ;;  %4876 = vmatpush.msrb.mxu0 %v4854_v24 }
 0xc3a   :  { %5252 = vmatmul.msk.f32.vlgmr.msra.gmra.mxu0 %vm4565_vm5, %v4742_v33 }
 0xc3b   :  { %4981 = vmatpush.msra.mxu0 %v4965_v54 }
 0xc3d   :  { %4982 = vmatpush.msra.mxu0 %v4964_v53  ;;  %v4932_v42 = vpop.f32.mrf.mxu3 }
 0xc3f   :  { %4983 = vmatpush.msra.mxu0 %v4963_v35 }
 0xc41   :  { %v4850_v29 = vpop.f32.mrf.mxu2  ;;  %4984 = vmatpush.msra.mxu0 %v4962_v44 }
 0xc42   :  { %5256 = vmatmul.msk.f32.vlgmr.msrb.gmra.mxu0 %vm4565_vm5, %v4850_v29 }
 0xc49   :  { %v4958_v10 = vpop.f32.mrf.mxu2 }
 0xc4a   :  { %5260 = vmatmul.msk.f32.vlgmr.msra.gmra.mxu0 %vm4565_vm5, %v4958_v10 }
 0xcaf   :  { %v4662_v55 = vpop.f32.mrf.mxu0 }
 0xcb0   :  { %v4665_v31 = vadd.f32 %v4662_v55, %v4610_v20 }
 0xcb2   :  { %v4719_v0 = vadd.f32 %v4716_v14, %v4665_v31 }
 0xcb7   :  { %v4770_v45 = vpop.f32.mrf.mxu0 }
 0xcb8   :  { %v4773_v22 = vadd.f32 %v4770_v45, %v4719_v0 }
 0xcba   :  { %v4827_v52 = vadd.f32 %v4824_v50, %v4773_v22 }
 0xcbf   :  { %v4878_v62 = vpop.f32.mrf.mxu0 }
 0xcc0   :  { %v4881_v7 = vadd.f32 %v4878_v62, %v4827_v52 }
 0xcc2   :  { %v4935_v6 = vadd.f32 %v4932_v42, %v4881_v7 }
 0xcc7   :  { %v4986_v38 = vpop.f32.mrf.mxu0 }
 0xcc8   :  { %v4989_v60 = vadd.f32 %v4986_v38, %v4935_v6 }
 0xcca   :  { %v4994_v16 = vadd.f32 %v5297_v5, %v4989_v60 }
 0xccc   :  { %v4995_v26 = vmax.f32 %v4994_v16, 0.0 }
 0xcce   :  { %5261 = vmatmul.msk.f32.vlgmr.msra.gmra.mxu1 %vm5008_vm6, %v4995_v26 }
 0xd4b   :  { %v5029_v11 = vpop.f32.mrf.mxu1 }
 0xd4c   :  { %v5030_v3 = vadd.f32 %v5298_v15, %v5029_v11 }
 0xd4e   :  { %v5038_v9 = vsel %vm5034_vm7, %v5030_v3, -1e+30 }
 0xd4f   :  { %5039 = vmax.xlane.f32.xlu0 %v5038_v9 }
 0xdc2   :  { %v5040_v51 = vpop.xlane.xlu0 %5039 }
 0xdc3   :  { %v5041_v27 = vsub.f32 %v5030_v3, %v5040_v51 }
 0xdc5   :  { %v5042_v56 = vmul.f32 1.442695, %v5041_v27 }
 0xdc7   :  { %5299 = vpow2.f32 %v5042_v56 }
 0xdcd   :  { %v5300_v57 = vpop.eup %5299 }
 0xdce   :  { %v5044_v48 = vsel %vm5034_vm7, %v5300_v57, 0.0 }
 0xdcf   :  { %5045 = vadd.xlane.f32.xlu0 %v5044_v48 }
 0xe42   :  { %v5046_v49 = vpop.xlane.xlu0 %5045 }
 0xe43   :  { %5301 = vlog2.f32 %v5046_v49 }
 0xe49   :  { %v5302_v19 = vpop.eup %5301 }
 0xe4a   :  { %v5048_v13 = vmul.f32 0.6931472, %v5302_v19 }
 0xe4c   :  { %v5049_v30 = vadd.f32 %v5048_v13, %v5040_v51 }
 0xe4e   :  { %v5050_v43 = vsel %vm5037_vm10, %v5049_v30, 0.0 }
 0xe4f   :  { %v5051_v8 = vsub.f32 %v5030_v3, %v5050_v43 }
 0xe51   :  { %5052 = vst [vmem:[%s8535_s12] sm:$0xff] %v5051_v8 }
 0xe52   :  { %5057 = vsyncpa [#allocation3], 1 }
 0xe53   :  { %5058 = vsyncpa [#allocation5], 1 }
 0xe54   :  { %5059 = vsyncpa [#allocation8], 1 }
 0xe55   :  { %5060 = vsyncpa [#allocation11], 1 }
 0xe56   :  { %5061 = vsyncpa [#allocation14], 1 }
 0xe57   :  { %5062 = vsyncpa [#allocation17], 1 }

</bundles_post_ra>
